<compile_context>
chip_gen: v6e
topology: v6e:2x2x1
jax: 0.10.0
libtpu: 0.0.40
codegen_flags: <defaults>
</compile_context>

<pallas_src>
import functools

import jax
import jax.numpy as jnp
from jax.experimental import pallas as pl
from jax.experimental.pallas import tpu as pltpu


def _round_up(x, m):
    return ((x + m - 1) // m) * m


def poker2mlp_kernel(x_ref, w_in_ref, w_bd_ref, b_tile_ref, w_d1_ref, w_d2_ref,
                     w_d3_ref, b_d12_ref, b_d3_ref, out_ref, *, tb, n, hid):
    f32, bf16 = jnp.float32, jnp.bfloat16

    def dense(x, w, b, relu=True):
        # bf16 MXU inputs, f32 accumulation, f32 bias/ReLU.
        y = jnp.dot(x.astype(bf16), w, preferred_element_type=f32) + b
        return jnp.maximum(y, 0.0) if relu else y

    # ---- enc, lane-packed: one row per hand, n cards x hid features --------
    # x_ref: (TB, 2*n) with (suit, num) interleaved per card.
    h = dense(x_ref[...], w_in_ref[...], b_tile_ref[0:1, :])           # Linear(2,H)+ReLU
    h = dense(h, w_bd_ref[0], b_tile_ref[1:2, :])                      # Linear(H,H)+ReLU
    h = dense(h, w_bd_ref[1], b_tile_ref[2:3, :], relu=False)          # Linear(H,H)
    # h: (TB, n*hid) f32, lane block i = enc(card i).

    # ---- pairwise products via cyclic diagonals (symmetry-reduced) ---------
    # Diagonal d holds pairs (i, i+d mod n); diagonals d and n-d are the same
    # unordered pairs, so only d = 0..n//2 are computed and off-diagonal ones
    # get weight 2 in the reduction.  Roll direction does not matter for the
    # block-summed result.
    ndiag = n // 2 + 1
    diags = [(h * h).astype(bf16)]                                     # d = 0
    for d in range(1, ndiag):
        hr = pltpu.roll(h, d * hid, 1)                                 # XLU lane roll
        diags.append((h * hr).astype(bf16))
    p = jnp.concatenate(diags, axis=0)                                 # (ndiag*TB, n*hid)

    # ---- tenc: 3 x (Linear(H,H) + ReLU), block-diagonal over lane blocks ---
    t = dense(p, w_bd_ref[2], b_tile_ref[3:4, :])
    t = dense(t, w_bd_ref[3], b_tile_ref[4:5, :])
    t = dense(t, w_bd_ref[4], b_tile_ref[5:6, :])                      # (ndiag*TB, n*hid)

    # Weighted sum over diagonals (2x for strictly-off-diagonal ones).
    s = t[0:tb]
    for d in range(1, ndiag):
        w = 1.0 if (n % 2 == 0 and d == n // 2) else 2.0
        s = s + w * t[d * tb:(d + 1) * tb]                             # (TB, n*hid)

    # ---- dec ----------------------------------------------------------------
    # w_d1 is dec.W1 row-stacked n times, so this dot simultaneously sums the
    # n lane blocks of s (the pair-sum) and applies Linear(H,H).
    d1 = dense(s, w_d1_ref[...], b_d12_ref[0:1, :])                    # (TB, hid)
    d2 = dense(d1, w_d2_ref[...], b_d12_ref[1:2, :])                   # (TB, hid)
    out_ref[...] = dense(d2, w_d3_ref[...], b_d3_ref[...], relu=False)  # (TB, out_pad)


def init_params(key, hid_dim, out_dim):
    """Deterministic synthetic init, PyTorch-Linear-style U(-1/sqrt(fan_in), +)."""
    dims = [(2, hid_dim), (hid_dim, hid_dim), (hid_dim, hid_dim),          # enc
            (hid_dim, hid_dim), (hid_dim, hid_dim), (hid_dim, hid_dim),    # tenc
            (hid_dim, hid_dim), (hid_dim, hid_dim), (hid_dim, out_dim)]    # dec
    params = []
    for fan_in, fan_out in dims:
        key, kw, kb = jax.random.split(key, 3)
        bound = 1.0 / float(fan_in) ** 0.5
        w = jax.random.uniform(kw, (fan_in, fan_out), jnp.float32, -bound, bound)
        b = jax.random.uniform(kb, (1, fan_out), jnp.float32, -bound, bound)
        params.append((w, b))
    return params


def poker2mlp_forward(suits, nums, params, *, tb=256):
    """Pallas forward.  `tb` = hands per grid step.  TB=256 keeps the kernel
    well under a 32 MiB scoped-VMEM limit on every generation; on v6e the
    limit and TB can be raised (sweep 256-1024 with ~64 MiB)."""
    B, N = suits.shape
    (ew1, eb1), (ew2, eb2), (ew3, eb3), \
        (tw1, tb1), (tw2, tb2), (tw3, tb3), \
        (dw1, db1), (dw2, db2), (dw3, db3) = params
    hid = ew1.shape[1]
    out_dim = dw3.shape[1]
    bf16 = jnp.bfloat16

    # Keep >= 2 grid blocks when possible so the "parallel" axis can be
    # sharded across v7x's two TensorCores (no effect on single-TC v5e/v6e).
    if B > 8:
        tb = min(tb, _round_up(pl.cdiv(B, 2), 8))
    n_blocks = pl.cdiv(B, tb)
    b_pad = n_blocks * tb

    # Lane-dense input: one row per hand, (suit, num) interleaved per card.
    x = jnp.stack([suits, nums], axis=-1).astype(jnp.float32).reshape(B, 2 * N)
    if b_pad != B:
        x = jnp.pad(x, ((0, b_pad - B), (0, 0)))

    # Block-diagonal (lane-packed) weights and lane-tiled biases.
    eye = jnp.eye(N, dtype=jnp.float32)
    w_in = jnp.kron(eye, ew1).astype(bf16)                              # (2N, N*H)
    w_bd = jnp.stack([jnp.kron(eye, w) for w in (ew2, ew3, tw1, tw2, tw3)],
                     axis=0).astype(bf16)                               # (5, N*H, N*H)
    b_tile = jnp.concatenate(
        [jnp.tile(b, (1, N)) for b in (eb1, eb2, eb3, tb1, tb2, tb3)],
        axis=0)                                                         # (6, N*H) f32

    w_d1 = jnp.tile(dw1, (N, 1)).astype(bf16)                           # (N*H, H): fused pair-sum
    w_d2 = dw2.astype(bf16)                                             # (H, H)
    out_pad = pl.cdiv(out_dim, 128) * 128
    w_d3 = jnp.pad(dw3, ((0, 0), (0, out_pad - out_dim))).astype(bf16)  # (H, out_pad)
    b_d12 = jnp.concatenate([db1, db2], axis=0)                         # (2, H) f32
    b_d3 = jnp.pad(db3, ((0, 0), (0, out_pad - out_dim)))               # (1, out_pad) f32

    kernel = functools.partial(poker2mlp_kernel, tb=tb, n=N, hid=hid)

    # Note: for much larger H, the grid-invariant weight specs could use
    # pipeline_mode=pl.Buffered(1) to avoid double-buffering; negligible here.
    out = pl.pallas_call(
        kernel,
        out_shape=jax.ShapeDtypeStruct((b_pad, out_pad), jnp.float32),
        grid_spec=pltpu.PrefetchScalarGridSpec(
            num_scalar_prefetch=0,
            grid=(n_blocks,),
            in_specs=[
                pl.BlockSpec((tb, 2 * N), lambda b: (b, 0)),     # hands for this tile
                pl.BlockSpec(w_in.shape, lambda b: (0, 0)),
                pl.BlockSpec(w_bd.shape, lambda b: (0, 0, 0)),
                pl.BlockSpec(b_tile.shape, lambda b: (0, 0)),
                pl.BlockSpec(w_d1.shape, lambda b: (0, 0)),
                pl.BlockSpec(w_d2.shape, lambda b: (0, 0)),
                pl.BlockSpec(w_d3.shape, lambda b: (0, 0)),
                pl.BlockSpec(b_d12.shape, lambda b: (0, 0)),
                pl.BlockSpec(b_d3.shape, lambda b: (0, 0)),
            ],
            out_specs=pl.BlockSpec((tb, out_pad), lambda b: (b, 0)),
        ),
        compiler_params=pltpu.CompilerParams(
            dimension_semantics=("parallel",),      # megacore-shardable on v7x
            vmem_limit_bytes=32 * 1024 * 1024,      # ample at TB=256, safe on v5e/v6e/v7x
        ),
    )(x, w_in, w_bd, b_tile, w_d1, w_d2, w_d3, b_d12, b_d3)

    return out[:B, :out_dim]


def reference_forward(suits, nums, params):
    """Pure-JAX reference mirroring the PyTorch forward exactly (f32)."""
    (ew1, eb1), (ew2, eb2), (ew3, eb3), \
        (tw1, tb1), (tw2, tb2), (tw3, tb3), \
        (dw1, db1), (dw2, db2), (dw3, db3) = params
    x = jnp.stack([suits, nums], axis=-1).astype(jnp.float32)      # (B, N, 2)
    h = jnp.maximum(x @ ew1 + eb1, 0.0)
    h = jnp.maximum(h @ ew2 + eb2, 0.0)
    h = h @ ew3 + eb3                                              # (B, N, H)
    p = jnp.einsum('bid,bjd->bijd', h, h)                          # (B, N, N, H)
    t = jnp.maximum(p @ tw1 + tb1, 0.0)
    t = jnp.maximum(t @ tw2 + tb2, 0.0)
    t = jnp.maximum(t @ tw3 + tb3, 0.0)
    s = t.sum(axis=(1, 2))                                         # (B, H)
    d = jnp.maximum(s @ dw1 + db1, 0.0)
    d = jnp.maximum(d @ dw2 + db2, 0.0)
    return d @ dw3 + db3                                           # (B, out_dim)


if __name__ == "__main__":
    B, N, HID, OUT = 2, 8, 32, 10

    key = jax.random.PRNGKey(0)
    k_suits, k_nums, k_params = jax.random.split(key, 3)
    suits = jax.random.randint(k_suits, (B, N), 0, 4)
    nums = jax.random.randint(k_nums, (B, N), 0, 13)
    params = init_params(k_params, HID, OUT)

    out = poker2mlp_forward(suits, nums, params)
    out = jax.block_until_ready(out)

    ref = reference_forward(suits, nums, params)
    assert out.shape == (B, OUT)
    # Kernel uses bf16 MXU inputs (f32 accumulation): compare with a
    # bf16-appropriate, max-normalized error metric instead of 1e-4 allclose.
    err = float(jnp.max(jnp.abs(out - ref)) / (jnp.max(jnp.abs(ref)) + 1e-6))
    assert err < 5e-2, (err, out, ref)
    print("KERNEL_OK")
</pallas_src>

<mosaic_0001>
module attributes {stable_mosaic.version = 11 : i64} {
  func.func @poker2mlp_kernel(%arg0: i32, %arg1: memref<256x16xf32, #tpu.memory_space<vmem>>, %arg2: memref<16x256xbf16, #tpu.memory_space<vmem>>, %arg3: memref<5x256x256xbf16, #tpu.memory_space<vmem>>, %arg4: memref<6x256xf32, #tpu.memory_space<vmem>>, %arg5: memref<256x32xbf16, #tpu.memory_space<vmem>>, %arg6: memref<32x32xbf16, #tpu.memory_space<vmem>>, %arg7: memref<32x128xbf16, #tpu.memory_space<vmem>>, %arg8: memref<2x32xf32, #tpu.memory_space<vmem>>, %arg9: memref<1x128xf32, #tpu.memory_space<vmem>>, %arg10: memref<256x128xf32, #tpu.memory_space<vmem>>) attributes {dimension_semantics = [#tpu.dimension_semantics<parallel>], iteration_bounds = array<i64: 1>, scalar_prefetch = 0 : i64, scratch_operands = 0 : i64, tpu.core_type = #tpu.core_type<tc>, window_params = [{transform_indices = @transform_0, window_bounds = array<i64: 256, 16>}, {pipeline_mode = #tpu.pipeline_mode<synchronous>, transform_indices = @transform_1, window_bounds = array<i64: 16, 256>}, {pipeline_mode = #tpu.pipeline_mode<synchronous>, transform_indices = @transform_2, window_bounds = array<i64: 5, 256, 256>}, {pipeline_mode = #tpu.pipeline_mode<synchronous>, transform_indices = @transform_3, window_bounds = array<i64: 6, 256>}, {pipeline_mode = #tpu.pipeline_mode<synchronous>, transform_indices = @transform_4, window_bounds = array<i64: 256, 32>}, {pipeline_mode = #tpu.pipeline_mode<synchronous>, transform_indices = @transform_5, window_bounds = array<i64: 32, 32>}, {pipeline_mode = #tpu.pipeline_mode<synchronous>, transform_indices = @transform_6, window_bounds = array<i64: 32, 128>}, {pipeline_mode = #tpu.pipeline_mode<synchronous>, transform_indices = @transform_7, window_bounds = array<i64: 2, 32>}, {pipeline_mode = #tpu.pipeline_mode<synchronous>, transform_indices = @transform_8, window_bounds = array<i64: 1, 128>}, {transform_indices = @transform_9, window_bounds = array<i64: 256, 128>}]} {
    %c0 = arith.constant 0 : index
    %c0_0 = arith.constant 0 : index
    %0 = vector.load %arg1[%c0, %c0_0] : memref<256x16xf32, #tpu.memory_space<vmem>>, vector<256x16xf32>
    %c0_1 = arith.constant 0 : index
    %c0_2 = arith.constant 0 : index
    %1 = vector.load %arg2[%c0_1, %c0_2] : memref<16x256xbf16, #tpu.memory_space<vmem>>, vector<16x256xbf16>
    %c0_3 = arith.constant 0 : index
    %c0_4 = arith.constant 0 : index
    %2 = vector.load %arg4[%c0_3, %c0_4] : memref<6x256xf32, #tpu.memory_space<vmem>>, vector<1x256xf32>
    %3 = arith.truncf %0 : vector<256x16xf32> to vector<256x16xbf16>
    %cst = arith.constant dense<0.000000e+00> : vector<256x256xf32>
    %4 = tpu.matmul %3, %1, %cst {dimension_numbers = #tpu.dot_dimension_numbers<[1], [0], [0], [1], [0, 0, 1, 1], [], []>} : vector<256x16xbf16>, vector<16x256xbf16>, vector<256x256xf32> -> vector<256x256xf32>
    %5 = vector.broadcast %2 : vector<1x256xf32> to vector<256x256xf32>
    %6 = arith.addf %4, %5 : vector<256x256xf32>
    %cst_5 = arith.constant 0.000000e+00 : f32
    %7 = vector.broadcast %cst_5 : f32 to vector<256x256xf32>
    %8 = arith.maximumf %6, %7 : vector<256x256xf32>
    %c0_6 = arith.constant 0 : index
    %c0_7 = arith.constant 0 : index
    %c0_8 = arith.constant 0 : index
    %9 = vector.load %arg3[%c0_6, %c0_7, %c0_8] : memref<5x256x256xbf16, #tpu.memory_space<vmem>>, vector<1x256x256xbf16>
    %10 = vector.shape_cast %9 : vector<1x256x256xbf16> to vector<256x256xbf16>
    %c1 = arith.constant 1 : index
    %c0_9 = arith.constant 0 : index
    %11 = vector.load %arg4[%c1, %c0_9] : memref<6x256xf32, #tpu.memory_space<vmem>>, vector<1x256xf32>
    %12 = arith.truncf %8 : vector<256x256xf32> to vector<256x256xbf16>
    %cst_10 = arith.constant dense<0.000000e+00> : vector<256x256xf32>
    %13 = tpu.matmul %12, %10, %cst_10 {dimension_numbers = #tpu.dot_dimension_numbers<[1], [0], [0], [1], [0, 0, 1, 1], [], []>} : vector<256x256xbf16>, vector<256x256xbf16>, vector<256x256xf32> -> vector<256x256xf32>
    %14 = vector.broadcast %11 : vector<1x256xf32> to vector<256x256xf32>
    %15 = arith.addf %13, %14 : vector<256x256xf32>
    %cst_11 = arith.constant 0.000000e+00 : f32
    %16 = vector.broadcast %cst_11 : f32 to vector<256x256xf32>
    %17 = arith.maximumf %15, %16 : vector<256x256xf32>
    %c1_12 = arith.constant 1 : index
    %c0_13 = arith.constant 0 : index
    %c0_14 = arith.constant 0 : index
    %18 = vector.load %arg3[%c1_12, %c0_13, %c0_14] : memref<5x256x256xbf16, #tpu.memory_space<vmem>>, vector<1x256x256xbf16>
    %19 = vector.shape_cast %18 : vector<1x256x256xbf16> to vector<256x256xbf16>
    %c2 = arith.constant 2 : index
    %c0_15 = arith.constant 0 : index
    %20 = vector.load %arg4[%c2, %c0_15] : memref<6x256xf32, #tpu.memory_space<vmem>>, vector<1x256xf32>
    %21 = arith.truncf %17 : vector<256x256xf32> to vector<256x256xbf16>
    %cst_16 = arith.constant dense<0.000000e+00> : vector<256x256xf32>
    %22 = tpu.matmul %21, %19, %cst_16 {dimension_numbers = #tpu.dot_dimension_numbers<[1], [0], [0], [1], [0, 0, 1, 1], [], []>} : vector<256x256xbf16>, vector<256x256xbf16>, vector<256x256xf32> -> vector<256x256xf32>
    %23 = vector.broadcast %20 : vector<1x256xf32> to vector<256x256xf32>
    %24 = arith.addf %22, %23 : vector<256x256xf32>
    %25 = arith.mulf %24, %24 : vector<256x256xf32>
    %26 = arith.truncf %25 : vector<256x256xf32> to vector<256x256xbf16>
    %c32_i32 = arith.constant 32 : i32
    %27 = tpu.dynamic_rotate %24 by %c32_i32 dim 1 : vector<256x256xf32>, i32 -> vector<256x256xf32>
    %28 = arith.mulf %24, %27 : vector<256x256xf32>
    %29 = arith.truncf %28 : vector<256x256xf32> to vector<256x256xbf16>
    %c64_i32 = arith.constant 64 : i32
    %30 = tpu.dynamic_rotate %24 by %c64_i32 dim 1 : vector<256x256xf32>, i32 -> vector<256x256xf32>
    %31 = arith.mulf %24, %30 : vector<256x256xf32>
    %32 = arith.truncf %31 : vector<256x256xf32> to vector<256x256xbf16>
    %c96_i32 = arith.constant 96 : i32
    %33 = tpu.dynamic_rotate %24 by %c96_i32 dim 1 : vector<256x256xf32>, i32 -> vector<256x256xf32>
    %34 = arith.mulf %24, %33 : vector<256x256xf32>
    %35 = arith.truncf %34 : vector<256x256xf32> to vector<256x256xbf16>
    %c128_i32 = arith.constant 128 : i32
    %36 = tpu.dynamic_rotate %24 by %c128_i32 dim 1 : vector<256x256xf32>, i32 -> vector<256x256xf32>
    %37 = arith.mulf %24, %36 : vector<256x256xf32>
    %38 = arith.truncf %37 : vector<256x256xf32> to vector<256x256xbf16>
    %39 = tpu.concatenate %26, %29, %32, %35, %38 in 0 : vector<256x256xbf16>, vector<256x256xbf16>, vector<256x256xbf16>, vector<256x256xbf16>, vector<256x256xbf16> -> vector<1280x256xbf16>
    %c2_17 = arith.constant 2 : index
    %c0_18 = arith.constant 0 : index
    %c0_19 = arith.constant 0 : index
    %40 = vector.load %arg3[%c2_17, %c0_18, %c0_19] : memref<5x256x256xbf16, #tpu.memory_space<vmem>>, vector<1x256x256xbf16>
    %41 = vector.shape_cast %40 : vector<1x256x256xbf16> to vector<256x256xbf16>
    %c3 = arith.constant 3 : index
    %c0_20 = arith.constant 0 : index
    %42 = vector.load %arg4[%c3, %c0_20] : memref<6x256xf32, #tpu.memory_space<vmem>>, vector<1x256xf32>
    %cst_21 = arith.constant dense<0.000000e+00> : vector<1280x256xf32>
    %43 = tpu.matmul %39, %41, %cst_21 {dimension_numbers = #tpu.dot_dimension_numbers<[1], [0], [0], [1], [0, 0, 1, 1], [], []>} : vector<1280x256xbf16>, vector<256x256xbf16>, vector<1280x256xf32> -> vector<1280x256xf32>
    %44 = vector.broadcast %42 : vector<1x256xf32> to vector<1280x256xf32>
    %45 = arith.addf %43, %44 : vector<1280x256xf32>
    %cst_22 = arith.constant 0.000000e+00 : f32
    %46 = vector.broadcast %cst_22 : f32 to vector<1280x256xf32>
    %47 = arith.maximumf %45, %46 : vector<1280x256xf32>
    %c3_23 = arith.constant 3 : index
    %c0_24 = arith.constant 0 : index
    %c0_25 = arith.constant 0 : index
    %48 = vector.load %arg3[%c3_23, %c0_24, %c0_25] : memref<5x256x256xbf16, #tpu.memory_space<vmem>>, vector<1x256x256xbf16>
    %49 = vector.shape_cast %48 : vector<1x256x256xbf16> to vector<256x256xbf16>
    %c4 = arith.constant 4 : index
    %c0_26 = arith.constant 0 : index
    %50 = vector.load %arg4[%c4, %c0_26] : memref<6x256xf32, #tpu.memory_space<vmem>>, vector<1x256xf32>
    %51 = arith.truncf %47 : vector<1280x256xf32> to vector<1280x256xbf16>
    %cst_27 = arith.constant dense<0.000000e+00> : vector<1280x256xf32>
    %52 = tpu.matmul %51, %49, %cst_27 {dimension_numbers = #tpu.dot_dimension_numbers<[1], [0], [0], [1], [0, 0, 1, 1], [], []>} : vector<1280x256xbf16>, vector<256x256xbf16>, vector<1280x256xf32> -> vector<1280x256xf32>
    %53 = vector.broadcast %50 : vector<1x256xf32> to vector<1280x256xf32>
    %54 = arith.addf %52, %53 : vector<1280x256xf32>
    %cst_28 = arith.constant 0.000000e+00 : f32
    %55 = vector.broadcast %cst_28 : f32 to vector<1280x256xf32>
    %56 = arith.maximumf %54, %55 : vector<1280x256xf32>
    %c4_29 = arith.constant 4 : index
    %c0_30 = arith.constant 0 : index
    %c0_31 = arith.constant 0 : index
    %57 = vector.load %arg3[%c4_29, %c0_30, %c0_31] : memref<5x256x256xbf16, #tpu.memory_space<vmem>>, vector<1x256x256xbf16>
    %58 = vector.shape_cast %57 : vector<1x256x256xbf16> to vector<256x256xbf16>
    %c5 = arith.constant 5 : index
    %c0_32 = arith.constant 0 : index
    %59 = vector.load %arg4[%c5, %c0_32] : memref<6x256xf32, #tpu.memory_space<vmem>>, vector<1x256xf32>
    %60 = arith.truncf %56 : vector<1280x256xf32> to vector<1280x256xbf16>
    %cst_33 = arith.constant dense<0.000000e+00> : vector<1280x256xf32>
    %61 = tpu.matmul %60, %58, %cst_33 {dimension_numbers = #tpu.dot_dimension_numbers<[1], [0], [0], [1], [0, 0, 1, 1], [], []>} : vector<1280x256xbf16>, vector<256x256xbf16>, vector<1280x256xf32> -> vector<1280x256xf32>
    %62 = vector.broadcast %59 : vector<1x256xf32> to vector<1280x256xf32>
    %63 = arith.addf %61, %62 : vector<1280x256xf32>
    %cst_34 = arith.constant 0.000000e+00 : f32
    %64 = vector.broadcast %cst_34 : f32 to vector<1280x256xf32>
    %65 = arith.maximumf %63, %64 : vector<1280x256xf32>
    %66 = vector.extract_strided_slice %65 {offsets = [0, 0], sizes = [256, 256], strides = [1, 1]} : vector<1280x256xf32> to vector<256x256xf32>
    %67 = vector.extract_strided_slice %65 {offsets = [256, 0], sizes = [256, 256], strides = [1, 1]} : vector<1280x256xf32> to vector<256x256xf32>
    %cst_35 = arith.constant 2.000000e+00 : f32
    %68 = vector.broadcast %cst_35 : f32 to vector<256x256xf32>
    %69 = arith.mulf %68, %67 : vector<256x256xf32>
    %70 = arith.addf %66, %69 : vector<256x256xf32>
    %71 = vector.extract_strided_slice %65 {offsets = [512, 0], sizes = [256, 256], strides = [1, 1]} : vector<1280x256xf32> to vector<256x256xf32>
    %cst_36 = arith.constant 2.000000e+00 : f32
    %72 = vector.broadcast %cst_36 : f32 to vector<256x256xf32>
    %73 = arith.mulf %72, %71 : vector<256x256xf32>
    %74 = arith.addf %70, %73 : vector<256x256xf32>
    %75 = vector.extract_strided_slice %65 {offsets = [768, 0], sizes = [256, 256], strides = [1, 1]} : vector<1280x256xf32> to vector<256x256xf32>
    %cst_37 = arith.constant 2.000000e+00 : f32
    %76 = vector.broadcast %cst_37 : f32 to vector<256x256xf32>
    %77 = arith.mulf %76, %75 : vector<256x256xf32>
    %78 = arith.addf %74, %77 : vector<256x256xf32>
    %79 = vector.extract_strided_slice %65 {offsets = [1024, 0], sizes = [256, 256], strides = [1, 1]} : vector<1280x256xf32> to vector<256x256xf32>
    %cst_38 = arith.constant 1.000000e+00 : f32
    %80 = vector.broadcast %cst_38 : f32 to vector<256x256xf32>
    %81 = arith.mulf %80, %79 : vector<256x256xf32>
    %82 = arith.addf %78, %81 : vector<256x256xf32>
    %c0_39 = arith.constant 0 : index
    %c0_40 = arith.constant 0 : index
    %83 = vector.load %arg5[%c0_39, %c0_40] : memref<256x32xbf16, #tpu.memory_space<vmem>>, vector<256x32xbf16>
    %c0_41 = arith.constant 0 : index
    %c0_42 = arith.constant 0 : index
    %84 = vector.load %arg8[%c0_41, %c0_42] : memref<2x32xf32, #tpu.memory_space<vmem>>, vector<1x32xf32>
    %85 = arith.truncf %82 : vector<256x256xf32> to vector<256x256xbf16>
    %cst_43 = arith.constant dense<0.000000e+00> : vector<256x32xf32>
    %86 = tpu.matmul %85, %83, %cst_43 {dimension_numbers = #tpu.dot_dimension_numbers<[1], [0], [0], [1], [0, 0, 1, 1], [], []>} : vector<256x256xbf16>, vector<256x32xbf16>, vector<256x32xf32> -> vector<256x32xf32>
    %87 = vector.broadcast %84 : vector<1x32xf32> to vector<256x32xf32>
    %88 = arith.addf %86, %87 : vector<256x32xf32>
    %cst_44 = arith.constant 0.000000e+00 : f32
    %89 = vector.broadcast %cst_44 : f32 to vector<256x32xf32>
    %90 = arith.maximumf %88, %89 : vector<256x32xf32>
    %c0_45 = arith.constant 0 : index
    %c0_46 = arith.constant 0 : index
    %91 = vector.load %arg6[%c0_45, %c0_46] : memref<32x32xbf16, #tpu.memory_space<vmem>>, vector<32x32xbf16>
    %c1_47 = arith.constant 1 : index
    %c0_48 = arith.constant 0 : index
    %92 = vector.load %arg8[%c1_47, %c0_48] : memref<2x32xf32, #tpu.memory_space<vmem>>, vector<1x32xf32>
    %93 = arith.truncf %90 : vector<256x32xf32> to vector<256x32xbf16>
    %cst_49 = arith.constant dense<0.000000e+00> : vector<256x32xf32>
    %94 = tpu.matmul %93, %91, %cst_49 {dimension_numbers = #tpu.dot_dimension_numbers<[1], [0], [0], [1], [0, 0, 1, 1], [], []>} : vector<256x32xbf16>, vector<32x32xbf16>, vector<256x32xf32> -> vector<256x32xf32>
    %95 = vector.broadcast %92 : vector<1x32xf32> to vector<256x32xf32>
    %96 = arith.addf %94, %95 : vector<256x32xf32>
    %cst_50 = arith.constant 0.000000e+00 : f32
    %97 = vector.broadcast %cst_50 : f32 to vector<256x32xf32>
    %98 = arith.maximumf %96, %97 : vector<256x32xf32>
    %c0_51 = arith.constant 0 : index
    %c0_52 = arith.constant 0 : index
    %99 = vector.load %arg7[%c0_51, %c0_52] : memref<32x128xbf16, #tpu.memory_space<vmem>>, vector<32x128xbf16>
    %c0_53 = arith.constant 0 : index
    %c0_54 = arith.constant 0 : index
    %100 = vector.load %arg9[%c0_53, %c0_54] : memref<1x128xf32, #tpu.memory_space<vmem>>, vector<1x128xf32>
    %101 = arith.truncf %98 : vector<256x32xf32> to vector<256x32xbf16>
    %cst_55 = arith.constant dense<0.000000e+00> : vector<256x128xf32>
    %102 = tpu.matmul %101, %99, %cst_55 {dimension_numbers = #tpu.dot_dimension_numbers<[1], [0], [0], [1], [0, 0, 1, 1], [], []>} : vector<256x32xbf16>, vector<32x128xbf16>, vector<256x128xf32> -> vector<256x128xf32>
    %103 = vector.broadcast %100 : vector<1x128xf32> to vector<256x128xf32>
    %104 = arith.addf %102, %103 : vector<256x128xf32>
    %c0_56 = arith.constant 0 : index
    %c0_57 = arith.constant 0 : index
    %105 = vector.load %arg10[%c0_56, %c0_57] : memref<256x128xf32, #tpu.memory_space<vmem>>, vector<256x128xf32>
    tpu.vector_store %arg10[%c0_56, %c0_57], %104 {strides = array<i32>} : memref<256x128xf32, #tpu.memory_space<vmem>>, vector<256x128xf32>,
    return
  }
  func.func @transform_0(%arg0: i32) -> (i32, i32) {
    %c0_i32 = arith.constant 0 : i32
    %c0_i32_0 = arith.constant 0 : i32
    return %arg0, %c0_i32 : i32, i32
  }
  func.func @transform_1(%arg0: i32) -> (i32, i32) {
    %c0_i32 = arith.constant 0 : i32
    %c0_i32_0 = arith.constant 0 : i32
    %c0_i32_1 = arith.constant 0 : i32
    return %c0_i32, %c0_i32_0 : i32, i32
  }
  func.func @transform_2(%arg0: i32) -> (i32, i32, i32) {
    %c0_i32 = arith.constant 0 : i32
    %c0_i32_0 = arith.constant 0 : i32
    %c0_i32_1 = arith.constant 0 : i32
    %c0_i32_2 = arith.constant 0 : i32
    return %c0_i32, %c0_i32_0, %c0_i32_1 : i32, i32, i32
  }
  func.func @transform_3(%arg0: i32) -> (i32, i32) {
    %c0_i32 = arith.constant 0 : i32
    %c0_i32_0 = arith.constant 0 : i32
    %c0_i32_1 = arith.constant 0 : i32
    return %c0_i32, %c0_i32_0 : i32, i32
  }
  func.func @transform_4(%arg0: i32) -> (i32, i32) {
    %c0_i32 = arith.constant 0 : i32
    %c0_i32_0 = arith.constant 0 : i32
    %c0_i32_1 = arith.constant 0 : i32
    return %c0_i32, %c0_i32_0 : i32, i32
  }
  func.func @transform_5(%arg0: i32) -> (i32, i32) {
    %c0_i32 = arith.constant 0 : i32
    %c0_i32_0 = arith.constant 0 : i32
    %c0_i32_1 = arith.constant 0 : i32
    return %c0_i32, %c0_i32_0 : i32, i32
  }
  func.func @transform_6(%arg0: i32) -> (i32, i32) {
    %c0_i32 = arith.constant 0 : i32
    %c0_i32_0 = arith.constant 0 : i32
    %c0_i32_1 = arith.constant 0 : i32
    return %c0_i32, %c0_i32_0 : i32, i32
  }
  func.func @transform_7(%arg0: i32) -> (i32, i32) {
    %c0_i32 = arith.constant 0 : i32
    %c0_i32_0 = arith.constant 0 : i32
    %c0_i32_1 = arith.constant 0 : i32
    return %c0_i32, %c0_i32_0 : i32, i32
  }
  func.func @transform_8(%arg0: i32) -> (i32, i32) {
    %c0_i32 = arith.constant 0 : i32
    %c0_i32_0 = arith.constant 0 : i32
    %c0_i32_1 = arith.constant 0 : i32
    return %c0_i32, %c0_i32_0 : i32, i32
  }
  func.func @transform_9(%arg0: i32) -> (i32, i32) {
    %c0_i32 = arith.constant 0 : i32
    %c0_i32_0 = arith.constant 0 : i32
    return %arg0, %c0_i32 : i32, i32
  }
}

</mosaic_0001>

<bundles_post_ra>
// kernel: tpu_custom_call.1
= control target key start
LH: loop header
LB: loop body
LE: loop exit
PB: predicated region body
PF: predicated region fallthrough
CT: control target
= control target key end

     0   :  { %14 = vsyncpa [#allocation3], 0  ;;  %s13858_s0 = inlined_call_operand.vmem [shape: f32[256,16], index: 0, kind: input, shape index: {}]   ;;  %s13859_s1 = inlined_call_operand.vmem [shape: bf16[16,256], index: 1, kind: input, shape index: {}]   ;;  %s13860_s2 = inlined_call_operand.hbm [shape: bf16[5,256,256], index: 2, kind: input, shape index: {}]   ;;  %s13861_s3 = inlined_call_operand.vmem [shape: f32[6,256], index: 3, kind: input, shape index: {}]   ;;  %s13862_s4 = inlined_call_operand.vmem [shape: bf16[256,32], index: 4, kind: input, shape index: {}]   ;;  %s13863_s5 = inlined_call_operand.vmem [shape: bf16[32,32], index: 5, kind: input, shape index: {}]   ;;  %s13864_s6 = inlined_call_operand.vmem [shape: bf16[32,128], index: 6, kind: input, shape index: {}]   ;;  %s13865_s7 = inlined_call_operand.vmem [shape: f32[2,32], index: 7, kind: input, shape index: {}]   ;;  %s13866_s8 = inlined_call_operand.vmem [shape: f32[1,128], index: 8, kind: input, shape index: {}]   ;;  %s13867_s9 = inlined_call_operand.hbm [shape: f32[256,128], index: 9, kind: output, shape index: {}]  }
   0x1   :  { %15 = vsyncpa [#allocation4], 0  ;;  %s8948_s30 = smov [#allocation2]  }
   0x2   :  { %s25_s10 = sshll.u32 %s8948_s30, 4  ;;  %s26_s10 = int_to_ptr.vmem [resolvable:$true] %s25_s10 }
   0x3   :  { %s8912_s11 = scalar_lea.vmem %s26_s10, 20480  ;;  %p8917_p1 = scmp.lt.s32.totalorder %s26_s10, %s26_s10 }
   0x4   :  { %p8913_p0 = scmp.ne.s32.totalorder %s26_s10, %s8912_s11  ;;  %p8918_p2 = scmp.lt.s32.totalorder %s8912_s11, %s8912_s11 }
   0x6   :  { %p8919_p3 = por %p8918_p2, %p8917_p1 }
   0x8   :  { %p8920_p4 = pnand %p8919_p3, %p8913_p0 }
   0xa   :  { %8923 = shalt.err (!%p8920_p4)
}
   0xb   :  { %s8949_s12 = smov 128   ;;  %s8950_s13 = smov 8  }
   0xc   :  { %31 = dma.hbm_to_vmem [thread:$0]  %s13860_s2, 20480, %s26_s10, [#allocation3], %s8949_s12, %s8949_s12, %s8950_s13  }
   0xd   :  { %8944 = dma.done.wait [#allocation3], 20480  }
   0xe   :  { %8945 = vsyncadd [#allocation3], 4294946816  ;;  %v8951_v0 = vmov 0   ;;  %v8641_v1 = vld [vmem:[%s13859_s1 + $0x4] ss:$8 sps:$4 sm:$0xff]   ;;  %vm120_vm0 = vcmask 130048  }
   0xf   :  { %201 = vmatprep.mubr.bf16.mxu0 %v8951_v0  ;;  %v8643_v2 = vld [vmem:[%s13859_s1] ss:$8 sps:$4 sm:$0xff]   ;;  %183 = vmatprep.subr.bf16.mxu0 %v8641_v1  ;;  %v50_v6 = vld [vmem:[%s13858_s0 + $0x10] sm:$0xff]  ;;  %v51_v7 = vld [vmem:[%s13858_s0 + $0x18] sm:$0xff]  ;;  %s8952_s1 = smov 64   ;;  %s8953_s25 = smov 32  }
  0x10   :  { %v48_v3 = vld [vmem:[%s13858_s0] sm:$0xff]  ;;  %v49_v4 = vld [vmem:[%s13858_s0 + $0x8] sm:$0xff]  ;;  %184 = vmatpush1.bf16.msra.mxu0 %v8643_v2  ;;  %v84_v8 = vpack.c.bf16 %v51_v7, %v50_v6  ;;  %v8644_v9 = vld [vmem:[#allocation2 + $0x74] ss:$8 sps:$4 sm:$0xff]   ;;  %s8954_s26 = smov 96   ;;  %vm7604_vm4 = vcmask 261120  }
  0x11   :  { %v83_v5 = vpack.c.bf16 %v49_v4, %v48_v3  ;;  %v8646_v10 = vld [vmem:[#allocation2 + $0x70] ss:$8 sps:$4 sm:$0xff]   ;;  %v52_v11 = vld [vmem:[%s13858_s0 + $0x20] sm:$0xff]  ;;  %663 = vmatprep.subr.bf16.mxu1 %v8644_v9  ;;  %v53_v13 = vld [vmem:[%s13858_s0 + $0x28] sm:$0xff] }
  0x12   :  { %v8647_v12 = vld [vmem:[#allocation2 + $0x64] ss:$8 sps:$4 sm:$0xff]   ;;  %664 = vmatpush1.bf16.msra.mxu1 %v8646_v10  ;;  %v8649_v14 = vld [vmem:[#allocation2 + $0x60] ss:$8 sps:$4 sm:$0xff]   ;;  %v8650_v15 = vld [vmem:[#allocation2 + $0x54] ss:$8 sps:$4 sm:$0xff]   ;;  %v85_v16 = vpack.c.bf16 %v53_v13, %v52_v11 }
  0x13   :  { %8145 = vmatmul.mubr.msk.bf16.vlgmr.msra.gmra.mxu0 %vm120_vm0, %v83_v5  ;;  %665 = vmatprep.subr.bf16.mxu1 %v8647_v12  ;;  %v8652_v17 = vld [vmem:[#allocation2 + $0x50] ss:$8 sps:$4 sm:$0xff]   ;;  %v8653_v18 = vld [vmem:[#allocation2 + $0x44] ss:$8 sps:$4 sm:$0xff]   ;;  %v8655_v21 = vld [vmem:[#allocation2 + $0x40] ss:$8 sps:$4 sm:$0xff]  }
  0x14   :  { %211 = vmatprep.mubr.bf16.mxu0 %v8951_v0  ;;  %v54_v19 = vld [vmem:[%s13858_s0 + $0x30] sm:$0xff]  ;;  %v55_v20 = vld [vmem:[%s13858_s0 + $0x38] sm:$0xff]  ;;  %v8659_v25 = vld [vmem:[#allocation2 + $0x24] ss:$8 sps:$4 sm:$0xff]  }
  0x15   :  { %v8656_v22 = vld [vmem:[#allocation2 + $0x34] ss:$8 sps:$4 sm:$0xff]   ;;  %v86_v23 = vpack.c.bf16 %v55_v20, %v54_v19  ;;  %v8658_v24 = vld [vmem:[#allocation2 + $0x30] ss:$8 sps:$4 sm:$0xff]   ;;  %v56_v26 = vld [vmem:[%s13858_s0 + $0x40] sm:$0xff] }
  0x16   :  { %666 = vmatpush1.bf16.msra.mxu1 %v8649_v14  ;;  %v57_v27 = vld [vmem:[%s13858_s0 + $0x48] sm:$0xff]  ;;  %v8662_v29 = vld [vmem:[#allocation2 + $0x14] ss:$8 sps:$4 sm:$0xff]   ;;  %v8664_v30 = vld [vmem:[#allocation2 + $0x10] ss:$8 sps:$4 sm:$0xff]  }
  0x17   :  { %667 = vmatprep.subr.bf16.mxu1 %v8650_v15  ;;  %v8661_v28 = vld [vmem:[#allocation2 + $0x20] ss:$8 sps:$4 sm:$0xff]   ;;  %v87_v31 = vpack.c.bf16 %v57_v27, %v56_v26  ;;  %v8665_v32 = vld [vmem:[#allocation2 + $0x4] ss:$8 sps:$4 sm:$0xff]   ;;  %v58_v33 = vld [vmem:[%s13858_s0 + $0x50] sm:$0xff]  ;;  %v13868_v27 = vlaneseq }
  0x18   :  { %v59_v34 = vld [vmem:[%s13858_s0 + $0x58] sm:$0xff]  ;;  %v8667_v35 = vld [vmem:[#allocation2] ss:$8 sps:$4 sm:$0xff]   ;;  %v8671_v39 = vld [vmem:[#allocation2 + $0xe4] ss:$8 sps:$4 sm:$0xff]  }
  0x19   :  { %v8668_v36 = vld [vmem:[#allocation2 + $0xf4] ss:$8 sps:$4 sm:$0xff]   ;;  %v8670_v37 = vld [vmem:[#allocation2 + $0xf0] ss:$8 sps:$4 sm:$0xff]   ;;  %v88_v38 = vpack.c.bf16 %v59_v34, %v58_v33  ;;  %v60_v40 = vld [vmem:[%s13858_s0 + $0x60] sm:$0xff] }
  0x1a   :  { %668 = vmatpush1.bf16.msra.mxu1 %v8652_v17  ;;  %v61_v41 = vld [vmem:[%s13858_s0 + $0x68] sm:$0xff]  ;;  %v8674_v43 = vld [vmem:[#allocation2 + $0xd4] ss:$8 sps:$4 sm:$0xff]   ;;  %v8676_v44 = vld [vmem:[#allocation2 + $0xd0] ss:$8 sps:$4 sm:$0xff]  }
  0x1b   :  { %8146 = vmatmul.mubr.msk.bf16.gmra.mxu0 %vm120_vm0, %v84_v8  ;;  %669 = vmatprep.subr.bf16.mxu1 %v8653_v18  ;;  %v8673_v42 = vld [vmem:[#allocation2 + $0xe0] ss:$8 sps:$4 sm:$0xff]   ;;  %v89_v45 = vpack.c.bf16 %v61_v41, %v60_v40  ;;  %v8677_v46 = vld [vmem:[#allocation2 + $0xc4] ss:$8 sps:$4 sm:$0xff]   ;;  %v62_v47 = vld [vmem:[%s13858_s0 + $0x70] sm:$0xff] }
  0x1c   :  { %221 = vmatprep.mubr.bf16.mxu0 %v8951_v0  ;;  %v63_v48 = vld [vmem:[%s13858_s0 + $0x78] sm:$0xff]  ;;  %v8679_v49 = vld [vmem:[#allocation2 + $0xc0] ss:$8 sps:$4 sm:$0xff]   ;;  %v66_v56 = vld [vmem:[%s13858_s0 + $0x90] sm:$0xff] }
  0x1d   :  { %v8680_v50 = vld [vmem:[#allocation2 + $0xb4] ss:$8 sps:$4 sm:$0xff]   ;;  %v8682_v51 = vld [vmem:[#allocation2 + $0xb0] ss:$8 sps:$4 sm:$0xff]   ;;  %v90_v52 = vpack.c.bf16 %v63_v48, %v62_v47  ;;  %v64_v53 = vld [vmem:[%s13858_s0 + $0x80] sm:$0xff] }
  0x1e   :  { %670 = vmatpush1.bf16.msra.mxu1 %v8655_v21  ;;  %v65_v54 = vld [vmem:[%s13858_s0 + $0x88] sm:$0xff]  ;;  %v67_v57 = vld [vmem:[%s13858_s0 + $0x98] sm:$0xff]  ;;  %v68_v63 = vld [vmem:[%s13858_s0 + $0xa0] sm:$0xff] }
  0x1f   :  { %671 = vmatprep.subr.bf16.mxu1 %v8656_v22  ;;  %v91_v55 = vpack.c.bf16 %v65_v54, %v64_v53  ;;  %v8683_v58 = vld [vmem:[#allocation2 + $0xa4] ss:$8 sps:$4 sm:$0xff]   ;;  %v8685_v59 = vld [vmem:[#allocation2 + $0xa0] ss:$8 sps:$4 sm:$0xff]   ;;  %v92_v60 = vpack.c.bf16 %v67_v57, %v66_v56  ;;  %v8686_v61 = vld [vmem:[#allocation2 + $0x94] ss:$8 sps:$4 sm:$0xff]  }
  0x20   :  { %v8688_v62 = vld [vmem:[#allocation2 + $0x90] ss:$8 sps:$4 sm:$0xff]   ;;  %v69_v1 = vld [vmem:[%s13858_s0 + $0xa8] sm:$0xff]  ;;  %v72_v8 = vld [vmem:[%s13858_s0 + $0xc0] sm:$0xff] }
  0x21   :  { %v8689_v2 = vld [vmem:[#allocation2 + $0x84] ss:$8 sps:$4 sm:$0xff]   ;;  %v8691_v3 = vld [vmem:[#allocation2 + $0x80] ss:$8 sps:$4 sm:$0xff]   ;;  %v93_v4 = vpack.c.bf16 %v69_v1, %v68_v63  ;;  %v70_v5 = vld [vmem:[%s13858_s0 + $0xb0] sm:$0xff] }
  0x22   :  { %672 = vmatpush1.bf16.msra.mxu1 %v8658_v24  ;;  %v71_v6 = vld [vmem:[%s13858_s0 + $0xb8] sm:$0xff]  ;;  %v73_v9 = vld [vmem:[%s13858_s0 + $0xc8] sm:$0xff]  ;;  %v74_v11 = vld [vmem:[%s13858_s0 + $0xd0] sm:$0xff] }
  0x23   :  { %8147 = vmatmul.mubr.msk.bf16.gmra.mxu0 %vm120_vm0, %v85_v16  ;;  %673 = vmatprep.subr.bf16.mxu1 %v8659_v25  ;;  %v94_v7 = vpack.c.bf16 %v71_v6, %v70_v5  ;;  %v95_v10 = vpack.c.bf16 %v73_v9, %v72_v8  ;;  %v75_v12 = vld [vmem:[%s13858_s0 + $0xd8] sm:$0xff]  ;;  %v76_v14 = vld [vmem:[%s13858_s0 + $0xe0] sm:$0xff]  ;;  %v77_v15 = vld [vmem:[%s13858_s0 + $0xe8] sm:$0xff] }
  0x24   :  { %231 = vmatprep.mubr.bf16.mxu0 %v8951_v0  ;;  %v96_v13 = vpack.c.bf16 %v75_v12, %v74_v11  ;;  %v97_v16 = vpack.c.bf16 %v77_v15, %v76_v14  ;;  %v78_v17 = vld [vmem:[%s13858_s0 + $0xf0] sm:$0xff]  ;;  %v79_v18 = vld [vmem:[%s13858_s0 + $0xf8] sm:$0xff]  ;;  %v8695_v22 = vld [vmem:[#allocation2 + $0x160] ss:$8 sps:$4 sm:$0xff]  }
  0x25   :  { %v98_v19 = vpack.c.bf16 %v79_v18, %v78_v17  ;;  %v8692_v20 = vld [vmem:[#allocation2 + $0x170] ss:$8 sps:$4 sm:$0xff]   ;;  %v8694_v21 = vld [vmem:[#allocation2 + $0x174] ss:$8 sps:$4 sm:$0xff]   ;;  %v8701_v25 = vld [vmem:[#allocation2 + $0x140] ss:$8 sps:$4 sm:$0xff]  }
  0x26   :  { %674 = vmatpush1.bf16.msra.mxu1 %v8661_v28  ;;  %1158 = vmatprep.subr.bf16.mxu0 %v8694_v21  ;;  %v8700_v24 = vld [vmem:[#allocation2 + $0x154] ss:$8 sps:$4 sm:$0xff]   ;;  %v8703_v26 = vld [vmem:[#allocation2 + $0x144] ss:$8 sps:$4 sm:$0xff]   ;;  %v101_v28 = vshrl.u32 %v13868_v27, 7 }
  0x27   :  { %675 = vmatprep.subr.bf16.mxu1 %v8662_v29  ;;  %1159 = vmatpush1.bf16.msra.mxu0 %v8692_v20  ;;  %v82_v33 = vld [vmem:[%s13861_s3] ss:$8 sm:$0x3]  ;;  %v8715_v48 = vld [vmem:[#allocation2 + $0x104] ss:$8 sps:$4 sm:$0xff]  }
  0x28   :  { %v9147_v29 = vsub.s32 1, %v101_v28  ;;  %v8713_v53 = vld [vmem:[#allocation2 + $0x100] ss:$8 sps:$4 sm:$0xff]   ;;  %v8718_v56 = vld [vmem:[#allocation2 + $0x1f4] ss:$8 sps:$4 sm:$0xff]  }
  0x29   :  { %v8719_v8 = vld [vmem:[#allocation2 + $0x1e0] ss:$8 sps:$4 sm:$0xff]   ;;  %v8724_v11 = vld [vmem:[#allocation2 + $0x1d4] ss:$8 sps:$4 sm:$0xff]   ;;  %v8722_v17 = vld [vmem:[#allocation2 + $0x1d0] ss:$8 sps:$4 sm:$0xff]  }
  0x2a   :  { %676 = vmatpush1.bf16.msra.mxu1 %v8664_v30  ;;  %14035 = vst [vmem:[#allocation8_spill] sm:$0xff] %v9147_v29  ;;  %v8704_v30 = vld [vmem:[#allocation2 + $0x130] ss:$8 sps:$4 sm:$0xff]   ;;  %v8727_v20 = vld [vmem:[#allocation2 + $0x1c4] ss:$8 sps:$4 sm:$0xff]  }
  0x2b   :  { %8148 = vmatmul.mubr.msk.bf16.gmra.mxu0 %vm120_vm0, %v86_v23  ;;  %677 = vmatprep.subr.bf16.mxu1 %v8665_v32  ;;  %v8697_v23 = vld [vmem:[#allocation2 + $0x164] ss:$8 sps:$4 sm:$0xff]   ;;  %v9149_v32 = vsub.s32 0, %v101_v28 }
  0x2c   :  { %241 = vmatprep.mubr.bf16.mxu0 %v8951_v0  ;;  %1160 = vmatprep.subr.bf16.mxu0 %v8697_v23 }
  0x2d   :  { %1161 = vmatpush1.bf16.msra.mxu0 %v8695_v22  ;;  %14036 = vst [vmem:[#allocation9_spill] sm:$0xff] %v9149_v32 }
  0x2e   :  { %678 = vmatpush1.bf16.msra.mxu1 %v8667_v35  ;;  %1162 = vmatprep.subr.bf16.mxu0 %v8700_v24  ;;  %v9155_v35 = vrot.slane %v82_v33, %v9147_v29 }
  0x2f   :  { %679 = vmatprep.subr.bf16.mxu1 %v8668_v36  ;;  %v8707_v36 = vld [vmem:[#allocation2 + $0x120] ss:$8 sps:$4 sm:$0xff]  }
  0x32   :  { %680 = vmatpush2.bf16.msra.mxu1 %v8670_v37  ;;  %v8709_v37 = vld [vmem:[#allocation2 + $0x124] ss:$8 sps:$4 sm:$0xff]  }
  0x33   :  { %8149 = vmatmul.mubr.msk.bf16.gmra.mxu0 %vm120_vm0, %v87_v31  ;;  %681 = vmatprep.subr.bf16.mxu1 %v8671_v39  ;;  %v8706_v31 = vld [vmem:[#allocation2 + $0x134] ss:$8 sps:$4 sm:$0xff]  }
  0x34   :  { %251 = vmatprep.mubr.bf16.mxu0 %v8951_v0 }
  0x36   :  { %682 = vmatpush2.bf16.msra.mxu1 %v8673_v42 }
  0x37   :  { %683 = vmatprep.subr.bf16.mxu1 %v8674_v43 }
  0x3a   :  { %684 = vmatpush2.bf16.msra.mxu1 %v8676_v44 }
  0x3b   :  { %8150 = vmatmul.mubr.msk.bf16.gmra.mxu0 %vm120_vm0, %v88_v38  ;;  %685 = vmatprep.subr.bf16.mxu1 %v8677_v46  ;;  %v9158_v38 = vrot.slane %v82_v33, %v9149_v32  ;;  %v8712_v46 = vld [vmem:[#allocation2 + $0x114] ss:$8 sps:$4 sm:$0xff]  }
  0x3c   :  { %261 = vmatprep.mubr.bf16.mxu0 %v8951_v0 }
  0x3e   :  { %686 = vmatpush2.bf16.msra.mxu1 %v8679_v49 }
  0x3f   :  { %687 = vmatprep.subr.bf16.mxu1 %v8680_v50 }
  0x42   :  { %688 = vmatpush2.bf16.msra.mxu1 %v8682_v51 }
  0x43   :  { %8151 = vmatmul.mubr.msk.bf16.gmra.mxu0 %vm120_vm0, %v89_v45  ;;  %689 = vmatprep.subr.bf16.mxu1 %v8683_v58  ;;  %v8710_v45 = vld [vmem:[#allocation2 + $0x110] ss:$8 sps:$4 sm:$0xff]  }
  0x44   :  { %271 = vmatprep.mubr.bf16.mxu0 %v8951_v0 }
  0x46   :  { %690 = vmatpush2.bf16.msra.mxu1 %v8685_v59 }
  0x47   :  { %691 = vmatprep.subr.bf16.mxu1 %v8686_v61 }
  0x4a   :  { %692 = vmatpush2.bf16.msra.mxu1 %v8688_v62  ;;  %v8716_v62 = vld [vmem:[#allocation2 + $0x1f0] ss:$8 sps:$4 sm:$0xff]  }
  0x4b   :  { %8152 = vmatmul.mubr.msk.bf16.gmra.mxu0 %vm120_vm0, %v90_v52  ;;  %693 = vmatprep.subr.bf16.mxu1 %v8689_v2  ;;  %v8721_v2 = vld [vmem:[#allocation2 + $0x1e4] ss:$8 sps:$4 sm:$0xff]  }
  0x4c   :  { %281 = vmatprep.mubr.bf16.mxu0 %v8951_v0 }
  0x4e   :  { %694 = vmatpush2.bf16.msra.mxu1 %v8691_v3 }
  0x53   :  { %8153 = vmatmul.mubr.msk.bf16.gmra.mxu0 %vm120_vm0, %v91_v55 }
  0x54   :  { %291 = vmatprep.mubr.bf16.mxu0 %v8951_v0 }
  0x5b   :  { %8154 = vmatmul.mubr.msk.bf16.gmra.mxu0 %vm120_vm0, %v92_v60 }
  0x5c   :  { %301 = vmatprep.mubr.bf16.mxu0 %v8951_v0 }
  0x63   :  { %8155 = vmatmul.mubr.msk.bf16.gmra.mxu0 %vm120_vm0, %v93_v4 }
  0x64   :  { %311 = vmatprep.mubr.bf16.mxu0 %v8951_v0 }
  0x6b   :  { %8156 = vmatmul.mubr.msk.bf16.gmra.mxu0 %vm120_vm0, %v94_v7 }
  0x6c   :  { %321 = vmatprep.mubr.bf16.mxu0 %v8951_v0 }
  0x73   :  { %8157 = vmatmul.mubr.msk.bf16.gmra.mxu0 %vm120_vm0, %v95_v10 }
  0x74   :  { %331 = vmatprep.mubr.bf16.mxu0 %v8951_v0 }
  0x7b   :  { %8158 = vmatmul.mubr.msk.bf16.gmra.mxu0 %vm120_vm0, %v96_v13 }
  0x7c   :  { %341 = vmatprep.mubr.bf16.mxu0 %v8951_v0 }
  0x83   :  { %8159 = vmatmul.mubr.msk.bf16.gmra.mxu0 %vm120_vm0, %v97_v16 }
  0x84   :  { %351 = vmatprep.mubr.bf16.mxu0 %v8951_v0  ;;  %v8698_v0 = vld [vmem:[#allocation2 + $0x150] ss:$8 sps:$4 sm:$0xff]  }
  0x85   :  { %1163 = vmatpush1.bf16.msra.mxu0 %v8698_v0 }
  0x86   :  { %1164 = vmatprep.subr.bf16.mxu0 %v8703_v26 }
  0x89   :  { %1165 = vmatpush1.bf16.msra.mxu0 %v8701_v25  ;;  %v8725_v25 = vld [vmem:[#allocation2 + $0x1c0] ss:$8 sps:$4 sm:$0xff]  }
  0x8a   :  { %1166 = vmatprep.subr.bf16.mxu0 %v8706_v31 }
  0x8b   :  { %8160 = vmatmul.mubr.msk.bf16.gmra.mxu0 %vm120_vm0, %v98_v19 }
  0x8d   :  { %1167 = vmatpush1.bf16.msra.mxu0 %v8704_v30  ;;  %v8730_v30 = vld [vmem:[#allocation2 + $0x1b4] ss:$8 sps:$4 sm:$0xff]  }
  0x8e   :  { %1168 = vmatprep.subr.bf16.mxu0 %v8709_v37 }
  0x91   :  { %1169 = vmatpush1.bf16.msra.mxu0 %v8707_v36 }
  0x92   :  { %1170 = vmatprep.subr.bf16.mxu0 %v8712_v46 }
  0x95   :  { %1171 = vmatpush1.bf16.msra.mxu0 %v8710_v45 }
  0x96   :  { %1172 = vmatprep.subr.bf16.mxu0 %v8715_v48  ;;  %v8731_v48 = vld [vmem:[#allocation2 + $0x1a0] ss:$8 sps:$4 sm:$0xff]  }
  0x99   :  { %1173 = vmatpush1.bf16.msra.mxu0 %v8713_v53 }
  0x9a   :  { %1174 = vmatprep.subr.bf16.mxu0 %v8718_v56 }
  0x9d   :  { %1175 = vmatpush2.bf16.msra.mxu0 %v8716_v62 }
  0x9e   :  { %1176 = vmatprep.subr.bf16.mxu0 %v8721_v2 }
  0xa1   :  { %1177 = vmatpush2.bf16.msra.mxu0 %v8719_v8 }
  0xa2   :  { %1178 = vmatprep.subr.bf16.mxu0 %v8724_v11 }
  0xa5   :  { %1179 = vmatpush2.bf16.msra.mxu0 %v8722_v17 }
  0xa6   :  { %1180 = vmatprep.subr.bf16.mxu0 %v8727_v20 }
  0xa9   :  { %1181 = vmatpush2.bf16.msra.mxu0 %v8725_v25 }
  0xaa   :  { %1182 = vmatprep.subr.bf16.mxu0 %v8730_v30 }
  0xd3   :  { %v203_v34 = vpop.f32.mrf.mxu0 }
  0xd4   :  { %v204_v43 = vadd.f32 %v203_v34, %v9158_v38 }
  0xd5   :  { %v205_v39 = vpop.f32.mrf.mxu0 }
  0xd6   :  { %v206_v41 = vadd.f32 %v205_v39, %v9155_v35  ;;  %v362_v54 = vmax.f32 %v204_v43, 0.0  ;;  %v8728_v39 = vld [vmem:[#allocation2 + $0x1b0] ss:$8 sps:$4 sm:$0xff]  }
  0xd7   :  { %v207_v40 = vpop.f32.mrf.mxu0  ;;  %1183 = vmatpush2.bf16.msra.mxu0 %v8728_v39 }
  0xd8   :  { %v208_v42 = vadd.f32 %v207_v40, %v9158_v38  ;;  %v363_v51 = vmax.f32 %v206_v41, 0.0 }
  0xd9   :  { %v209_v44 = vpop.f32.mrf.mxu0 }
  0xda   :  { %v210_v47 = vadd.f32 %v209_v44, %v9155_v35  ;;  %v364_v49 = vmax.f32 %v208_v42, 0.0  ;;  %v8733_v42 = vld [vmem:[#allocation2 + $0x1a4] ss:$8 sps:$4 sm:$0xff]  }
  0xdb   :  { %v213_v50 = vpop.f32.mrf.mxu0  ;;  %1184 = vmatprep.subr.bf16.mxu0 %v8733_v42 }
  0xdc   :  { %v365_v52 = vmax.f32 %v210_v47, 0.0  ;;  %v460_v58 = vpack.c.bf16 %v364_v49, %v362_v54  ;;  %v214_v63 = vadd.f32 %v213_v50, %v9158_v38  ;;  %1185 = vmatpush2.bf16.msra.mxu0 %v8731_v48 }
  0xdd   :  { %v215_v55 = vpop.f32.mrf.mxu0 }
  0xde   :  { %v461_v57 = vpack.c.bf16 %v365_v52, %v363_v51  ;;  %v216_v60 = vadd.f32 %v215_v55, %v9155_v35  ;;  %v366_v9 = vmax.f32 %v214_v63, 0.0  ;;  %v8736_v51 = vld [vmem:[#allocation2 + $0x194] ss:$8 sps:$4 sm:$0xff]  }
  0xdf   :  { %v217_v59 = vpop.f32.mrf.mxu0  ;;  %1186 = vmatprep.subr.bf16.mxu0 %v8736_v51 }
  0xe0   :  { %v218_v61 = vadd.f32 %v217_v59, %v9158_v38  ;;  %695 = vmatprep.mubr.bf16.mxu1 %v461_v57  ;;  %v367_v6 = vmax.f32 %v216_v60, 0.0  ;;  %v8734_v57 = vld [vmem:[#allocation2 + $0x190] ss:$8 sps:$4 sm:$0xff]  }
  0xe1   :  { %v219_v1 = vpop.f32.mrf.mxu0  ;;  %696 = vmatmul.mubr.bf16.vlgmr.msra.gmra.mxu1 %v460_v58  ;;  %1187 = vmatpush2.bf16.msra.mxu0 %v8734_v57 }
  0xe2   :  { %v220_v3 = vadd.f32 %v219_v1, %v9155_v35  ;;  %v368_v4 = vmax.f32 %v218_v61, 0.0 }
  0xe3   :  { %v223_v5 = vpop.f32.mrf.mxu0 }
  0xe4   :  { %v369_v7 = vmax.f32 %v220_v3, 0.0  ;;  %v462_v13 = vpack.c.bf16 %v368_v4, %v366_v9  ;;  %v224_v18 = vadd.f32 %v223_v5, %v9158_v38 }
  0xe5   :  { %v225_v10 = vpop.f32.mrf.mxu0 }
  0xe6   :  { %v463_v12 = vpack.c.bf16 %v369_v7, %v367_v6  ;;  %v226_v15 = vadd.f32 %v225_v10, %v9155_v35  ;;  %v370_v26 = vmax.f32 %v224_v18, 0.0 }
  0xe7   :  { %v227_v14 = vpop.f32.mrf.mxu0 }
  0xe8   :  { %v228_v16 = vadd.f32 %v227_v14, %v9158_v38  ;;  %705 = vmatprep.mubr.bf16.mxu1 %v463_v12  ;;  %v371_v0 = vmax.f32 %v226_v15, 0.0 }
  0xe9   :  { %v229_v19 = vpop.f32.mrf.mxu0  ;;  %706 = vmatmul.mubr.bf16.gmra.mxu1 %v462_v13 }
  0xea   :  { %v230_v21 = vadd.f32 %v229_v19, %v9155_v35  ;;  %v372_v22 = vmax.f32 %v228_v16, 0.0 }
  0xeb   :  { %v233_v23 = vpop.f32.mrf.mxu0 }
  0xec   :  { %v373_v24 = vmax.f32 %v230_v21, 0.0  ;;  %v464_v33 = vpack.c.bf16 %v372_v22, %v370_v26  ;;  %v234_v40 = vadd.f32 %v233_v23, %v9158_v38 }
  0xed   :  { %v235_v28 = vpop.f32.mrf.mxu0 }
  0xee   :  { %v465_v31 = vpack.c.bf16 %v373_v24, %v371_v0  ;;  %v236_v36 = vadd.f32 %v235_v28, %v9155_v35  ;;  %v374_v49 = vmax.f32 %v234_v40, 0.0 }
  0xef   :  { %v237_v34 = vpop.f32.mrf.mxu0 }
  0xf0   :  { %v238_v37 = vadd.f32 %v237_v34, %v9158_v38  ;;  %715 = vmatprep.mubr.bf16.mxu1 %v465_v31  ;;  %v375_v46 = vmax.f32 %v236_v36, 0.0 }
  0xf1   :  { %v239_v41 = vpop.f32.mrf.mxu0  ;;  %716 = vmatmul.mubr.bf16.gmra.mxu1 %v464_v33 }
  0xf2   :  { %v240_v43 = vadd.f32 %v239_v41, %v9155_v35  ;;  %v376_v44 = vmax.f32 %v238_v37, 0.0 }
  0xf3   :  { %v243_v45 = vpop.f32.mrf.mxu0 }
  0xf4   :  { %v377_v47 = vmax.f32 %v240_v43, 0.0  ;;  %v466_v53 = vpack.c.bf16 %v376_v44, %v374_v49  ;;  %v244_v58 = vadd.f32 %v243_v45, %v9158_v38 }
  0xf5   :  { %v245_v50 = vpop.f32.mrf.mxu0 }
  0xf6   :  { %v467_v52 = vpack.c.bf16 %v377_v47, %v375_v46  ;;  %v246_v55 = vadd.f32 %v245_v50, %v9155_v35  ;;  %v378_v2 = vmax.f32 %v244_v58, 0.0 }
  0xf7   :  { %v247_v54 = vpop.f32.mrf.mxu0 }
  0xf8   :  { %v248_v56 = vadd.f32 %v247_v54, %v9158_v38  ;;  %725 = vmatprep.mubr.bf16.mxu1 %v467_v52  ;;  %v379_v63 = vmax.f32 %v246_v55, 0.0 }
  0xf9   :  { %v249_v59 = vpop.f32.mrf.mxu0  ;;  %726 = vmatmul.mubr.bf16.gmra.mxu1 %v466_v53 }
  0xfa   :  { %v250_v60 = vadd.f32 %v249_v59, %v9155_v35  ;;  %v380_v61 = vmax.f32 %v248_v56, 0.0 }
  0xfb   :  { %v253_v62 = vpop.f32.mrf.mxu0 }
  0xfc   :  { %v381_v1 = vmax.f32 %v250_v60, 0.0  ;;  %v468_v5 = vpack.c.bf16 %v380_v61, %v378_v2  ;;  %v254_v9 = vadd.f32 %v253_v62, %v9158_v38 }
  0xfd   :  { %v255_v3 = vpop.f32.mrf.mxu0 }
  0xfe   :  { %v469_v4 = vpack.c.bf16 %v381_v1, %v379_v63  ;;  %v256_v7 = vadd.f32 %v255_v3, %v9155_v35  ;;  %v382_v16 = vmax.f32 %v254_v9, 0.0 }
  0xff   :  { %v257_v6 = vpop.f32.mrf.mxu0 }
 0x100   :  { %v258_v8 = vadd.f32 %v257_v6, %v9158_v38  ;;  %735 = vmatprep.mubr.bf16.mxu1 %v469_v4  ;;  %v383_v14 = vmax.f32 %v256_v7, 0.0 }
 0x101   :  { %v259_v10 = vpop.f32.mrf.mxu0  ;;  %736 = vmatmul.mubr.bf16.gmra.mxu1 %v468_v5 }
 0x102   :  { %v260_v11 = vadd.f32 %v259_v10, %v9155_v35  ;;  %v384_v12 = vmax.f32 %v258_v8, 0.0 }
 0x103   :  { %v263_v13 = vpop.f32.mrf.mxu0 }
 0x104   :  { %v385_v15 = vmax.f32 %v260_v11, 0.0  ;;  %v470_v19 = vpack.c.bf16 %v384_v12, %v382_v16  ;;  %v264_v23 = vadd.f32 %v263_v13, %v9158_v38 }
 0x105   :  { %v265_v17 = vpop.f32.mrf.mxu0 }
 0x106   :  { %v471_v18 = vpack.c.bf16 %v385_v15, %v383_v14  ;;  %v266_v21 = vadd.f32 %v265_v17, %v9155_v35  ;;  %v386_v31 = vmax.f32 %v264_v23, 0.0 }
 0x107   :  { %v267_v20 = vpop.f32.mrf.mxu0 }
 0x108   :  { %v268_v22 = vadd.f32 %v267_v20, %v9158_v38  ;;  %745 = vmatprep.mubr.bf16.mxu1 %v471_v18  ;;  %v387_v28 = vmax.f32 %v266_v21, 0.0 }
 0x109   :  { %v269_v0 = vpop.f32.mrf.mxu0  ;;  %746 = vmatmul.mubr.bf16.gmra.mxu1 %v470_v19 }
 0x10a   :  { %v270_v24 = vadd.f32 %v269_v0, %v9155_v35  ;;  %v388_v25 = vmax.f32 %v268_v22, 0.0  ;;  %v8739_v22 = vld [vmem:[#allocation2 + $0x184] ss:$8 sps:$4 sm:$0xff]   ;;  %v8737_v0 = vld [vmem:[#allocation2 + $0x180] ss:$8 sps:$4 sm:$0xff]  }
 0x10b   :  { %v273_v26 = vpop.f32.mrf.mxu0  ;;  %1188 = vmatprep.subr.bf16.mxu0 %v8739_v22 }
 0x10c   :  { %v389_v30 = vmax.f32 %v270_v24, 0.0  ;;  %v472_v36 = vpack.c.bf16 %v388_v25, %v386_v31  ;;  %v274_v41 = vadd.f32 %v273_v26, %v9158_v38  ;;  %1189 = vmatpush2.bf16.msra.mxu0 %v8737_v0 }
 0x10d   :  { %v275_v33 = vpop.f32.mrf.mxu0 }
 0x10e   :  { %v473_v34 = vpack.c.bf16 %v389_v30, %v387_v28  ;;  %v276_v39 = vadd.f32 %v275_v33, %v9155_v35  ;;  %v390_v48 = vmax.f32 %v274_v41, 0.0 }
 0x10f   :  { %v277_v37 = vpop.f32.mrf.mxu0 }
 0x110   :  { %v278_v40 = vadd.f32 %v277_v37, %v9158_v38  ;;  %755 = vmatprep.mubr.bf16.mxu1 %v473_v34  ;;  %v391_v46 = vmax.f32 %v276_v39, 0.0 }
 0x111   :  { %v279_v42 = vpop.f32.mrf.mxu0  ;;  %756 = vmatmul.mubr.bf16.gmra.mxu1 %v472_v36 }
 0x112   :  { %v280_v43 = vadd.f32 %v279_v42, %v9155_v35  ;;  %v392_v44 = vmax.f32 %v278_v40, 0.0 }
 0x113   :  { %v283_v45 = vpop.f32.mrf.mxu0 }
 0x114   :  { %v393_v47 = vmax.f32 %v280_v43, 0.0  ;;  %v474_v51 = vpack.c.bf16 %v392_v44, %v390_v48  ;;  %v284_v55 = vadd.f32 %v283_v45, %v9158_v38 }
 0x115   :  { %v285_v49 = vpop.f32.mrf.mxu0 }
 0x116   :  { %v475_v50 = vpack.c.bf16 %v393_v47, %v391_v46  ;;  %v286_v53 = vadd.f32 %v285_v49, %v9155_v35  ;;  %v394_v62 = vmax.f32 %v284_v55, 0.0 }
 0x117   :  { %v287_v52 = vpop.f32.mrf.mxu0 }
 0x118   :  { %v288_v54 = vadd.f32 %v287_v52, %v9158_v38  ;;  %765 = vmatprep.mubr.bf16.mxu1 %v475_v50  ;;  %v395_v60 = vmax.f32 %v286_v53, 0.0 }
 0x119   :  { %v289_v56 = vpop.f32.mrf.mxu0  ;;  %766 = vmatmul.mubr.bf16.gmra.mxu1 %v474_v51 }
 0x11a   :  { %v290_v57 = vadd.f32 %v289_v56, %v9155_v35  ;;  %v396_v58 = vmax.f32 %v288_v54, 0.0 }
 0x11b   :  { %v293_v59 = vpop.f32.mrf.mxu0 }
 0x11c   :  { %v397_v61 = vmax.f32 %v290_v57, 0.0  ;;  %v476_v2 = vpack.c.bf16 %v396_v58, %v394_v62  ;;  %v294_v6 = vadd.f32 %v293_v59, %v9158_v38 }
 0x11d   :  { %v295_v63 = vpop.f32.mrf.mxu0 }
 0x11e   :  { %v477_v1 = vpack.c.bf16 %v397_v61, %v395_v60  ;;  %v296_v4 = vadd.f32 %v295_v63, %v9155_v35  ;;  %v398_v13 = vmax.f32 %v294_v6, 0.0 }
 0x11f   :  { %v297_v3 = vpop.f32.mrf.mxu0 }
 0x120   :  { %v298_v5 = vadd.f32 %v297_v3, %v9158_v38  ;;  %775 = vmatprep.mubr.bf16.mxu1 %v477_v1  ;;  %v399_v11 = vmax.f32 %v296_v4, 0.0 }
 0x121   :  { %v299_v7 = vpop.f32.mrf.mxu0  ;;  %776 = vmatmul.mubr.bf16.gmra.mxu1 %v476_v2 }
 0x122   :  { %v300_v8 = vadd.f32 %v299_v7, %v9155_v35  ;;  %v400_v9 = vmax.f32 %v298_v5, 0.0 }
 0x123   :  { %v303_v10 = vpop.f32.mrf.mxu0 }
 0x124   :  { %v401_v12 = vmax.f32 %v300_v8, 0.0  ;;  %v478_v16 = vpack.c.bf16 %v400_v9, %v398_v13  ;;  %v304_v20 = vadd.f32 %v303_v10, %v9158_v38 }
 0x125   :  { %v305_v14 = vpop.f32.mrf.mxu0 }
 0x126   :  { %v479_v15 = vpack.c.bf16 %v401_v12, %v399_v11  ;;  %v306_v18 = vadd.f32 %v305_v14, %v9155_v35  ;;  %v402_v30 = vmax.f32 %v304_v20, 0.0 }
 0x127   :  { %v307_v17 = vpop.f32.mrf.mxu0 }
 0x128   :  { %v308_v19 = vadd.f32 %v307_v17, %v9158_v38  ;;  %785 = vmatprep.mubr.bf16.mxu1 %v479_v15  ;;  %v403_v26 = vmax.f32 %v306_v18, 0.0 }
 0x129   :  { %v309_v21 = vpop.f32.mrf.mxu0  ;;  %786 = vmatmul.mubr.bf16.gmra.mxu1 %v478_v16 }
 0x12a   :  { %v310_v23 = vadd.f32 %v309_v21, %v9155_v35  ;;  %v404_v24 = vmax.f32 %v308_v19, 0.0 }
 0x12b   :  { %v313_v25 = vpop.f32.mrf.mxu0 }
 0x12c   :  { %v405_v28 = vmax.f32 %v310_v23, 0.0  ;;  %v480_v34 = vpack.c.bf16 %v404_v24, %v402_v30  ;;  %v314_v40 = vadd.f32 %v313_v25, %v9158_v38 }
 0x12d   :  { %v315_v31 = vpop.f32.mrf.mxu0 }
 0x12e   :  { %v481_v33 = vpack.c.bf16 %v405_v28, %v403_v26  ;;  %v316_v37 = vadd.f32 %v315_v31, %v9155_v35  ;;  %v406_v47 = vmax.f32 %v314_v40, 0.0 }
 0x12f   :  { %v317_v36 = vpop.f32.mrf.mxu0 }
 0x130   :  { %v318_v39 = vadd.f32 %v317_v36, %v9158_v38  ;;  %795 = vmatprep.mubr.bf16.mxu1 %v481_v33  ;;  %v407_v45 = vmax.f32 %v316_v37, 0.0 }
 0x131   :  { %v319_v41 = vpop.f32.mrf.mxu0  ;;  %796 = vmatmul.mubr.bf16.gmra.mxu1 %v480_v34 }
 0x132   :  { %v320_v42 = vadd.f32 %v319_v41, %v9155_v35  ;;  %v408_v43 = vmax.f32 %v318_v39, 0.0 }
 0x133   :  { %v323_v44 = vpop.f32.mrf.mxu0 }
 0x134   :  { %v409_v46 = vmax.f32 %v320_v42, 0.0  ;;  %v482_v50 = vpack.c.bf16 %v408_v43, %v406_v47  ;;  %v324_v54 = vadd.f32 %v323_v44, %v9158_v38 }
 0x135   :  { %v325_v48 = vpop.f32.mrf.mxu0 }
 0x136   :  { %v483_v49 = vpack.c.bf16 %v409_v46, %v407_v45  ;;  %v326_v52 = vadd.f32 %v325_v48, %v9155_v35  ;;  %v410_v61 = vmax.f32 %v324_v54, 0.0  ;;  %v8161_v46 = vld [vmem:[%s13861_s3 + $0x1] ss:$8 sm:$0x3]  ;;  %v8742_v54 = vld [vmem:[#allocation2 + $0x274] ss:$8 sps:$4 sm:$0xff]  }
 0x137   :  { %v327_v51 = vpop.f32.mrf.mxu0  ;;  %v9228_v48 = vrot.slane %v8161_v46, %v9147_v29  ;;  %2570 = vmatprep.subr.bf16.mxu0 %v8742_v54  ;;  %8601 = vmatprep.subr.bf16.mxu1 %v8742_v54  ;;  %v8763_v54 = vld [vmem:[#allocation2 + $0x204] ss:$8 sps:$4 sm:$0xff]  }
 0x138   :  { %v328_v53 = vadd.f32 %v327_v51, %v9158_v38  ;;  %805 = vmatprep.mubr.bf16.mxu1 %v483_v49  ;;  %v411_v59 = vmax.f32 %v326_v52, 0.0 }
 0x139   :  { %v329_v55 = vpop.f32.mrf.mxu0  ;;  %806 = vmatmul.mubr.bf16.gmra.mxu1 %v482_v50 }
 0x13a   :  { %v330_v56 = vadd.f32 %v329_v55, %v9155_v35  ;;  %v412_v57 = vmax.f32 %v328_v53, 0.0 }
 0x13b   :  { %v333_v58 = vpop.f32.mrf.mxu0 }
 0x13c   :  { %v413_v60 = vmax.f32 %v330_v56, 0.0  ;;  %v484_v1 = vpack.c.bf16 %v412_v57, %v410_v61  ;;  %v334_v5 = vadd.f32 %v333_v58, %v9158_v38  ;;  %v8740_v56 = vld [vmem:[#allocation2 + $0x270] ss:$8 sps:$4 sm:$0xff]  }
 0x13d   :  { %v335_v62 = vpop.f32.mrf.mxu0  ;;  %8617 = vmatpush1.bf16.msra.mxu1 %v8740_v56 }
 0x13e   :  { %v485_v63 = vpack.c.bf16 %v413_v60, %v411_v59  ;;  %v336_v3 = vadd.f32 %v335_v62, %v9155_v35  ;;  %v414_v12 = vmax.f32 %v334_v5, 0.0  ;;  %v8745_v59 = vld [vmem:[#allocation2 + $0x264] ss:$8 sps:$4 sm:$0xff]   ;;  %v8748_v5 = vld [vmem:[#allocation2 + $0x254] ss:$8 sps:$4 sm:$0xff]  }
 0x13f   :  { %v337_v2 = vpop.f32.mrf.mxu0  ;;  %8602 = vmatprep.subr.bf16.mxu1 %v8745_v59 }
 0x140   :  { %v338_v4 = vadd.f32 %v337_v2, %v9158_v38  ;;  %815 = vmatprep.mubr.bf16.mxu1 %v485_v63  ;;  %v415_v10 = vmax.f32 %v336_v3, 0.0  ;;  %v8743_v2 = vld [vmem:[#allocation2 + $0x260] ss:$8 sps:$4 sm:$0xff]  }
 0x141   :  { %v339_v6 = vpop.f32.mrf.mxu0  ;;  %816 = vmatmul.mubr.bf16.gmra.mxu1 %v484_v1 }
 0x142   :  { %v340_v7 = vadd.f32 %v339_v6, %v9155_v35  ;;  %v416_v8 = vmax.f32 %v338_v4, 0.0  ;;  %8618 = vmatpush1.bf16.msra.mxu1 %v8743_v2 }
 0x143   :  { %v343_v9 = vpop.f32.mrf.mxu0  ;;  %8603 = vmatprep.subr.bf16.mxu1 %v8748_v5 }
 0x144   :  { %v417_v11 = vmax.f32 %v340_v7, 0.0  ;;  %v486_v15 = vpack.c.bf16 %v416_v8, %v414_v12  ;;  %v344_v19 = vadd.f32 %v343_v9, %v9158_v38 }
 0x145   :  { %v345_v13 = vpop.f32.mrf.mxu0 }
 0x146   :  { %v487_v14 = vpack.c.bf16 %v417_v11, %v415_v10  ;;  %v346_v17 = vadd.f32 %v345_v13, %v9155_v35  ;;  %v418_v25 = vmax.f32 %v344_v19, 0.0  ;;  %v8746_v11 = vld [vmem:[#allocation2 + $0x250] ss:$8 sps:$4 sm:$0xff]  }
 0x147   :  { %v347_v16 = vpop.f32.mrf.mxu0  ;;  %8619 = vmatpush1.bf16.msra.mxu1 %v8746_v11 }
 0x148   :  { %v348_v18 = vadd.f32 %v347_v16, %v9158_v38  ;;  %825 = vmatprep.mubr.bf16.mxu1 %v487_v14  ;;  %v419_v0 = vmax.f32 %v346_v17, 0.0  ;;  %v8751_v14 = vld [vmem:[#allocation2 + $0x244] ss:$8 sps:$4 sm:$0xff]  }
 0x149   :  { %v349_v20 = vpop.f32.mrf.mxu0  ;;  %826 = vmatmul.mubr.bf16.gmra.mxu1 %v486_v15  ;;  %8604 = vmatprep.subr.bf16.mxu1 %v8751_v14 }
 0x14a   :  { %v350_v21 = vadd.f32 %v349_v20, %v9155_v35  ;;  %v420_v22 = vmax.f32 %v348_v18, 0.0  ;;  %v8749_v20 = vld [vmem:[#allocation2 + $0x240] ss:$8 sps:$4 sm:$0xff]  }
 0x14b   :  { %v353_v23 = vpop.f32.mrf.mxu0  ;;  %8620 = vmatpush1.bf16.msra.mxu1 %v8749_v20 }
 0x14c   :  { %v421_v24 = vmax.f32 %v350_v21, 0.0  ;;  %v488_v30 = vpack.c.bf16 %v420_v22, %v418_v25  ;;  %v354_v36 = vadd.f32 %v353_v23, %v9158_v38  ;;  %v8754_v23 = vld [vmem:[#allocation2 + $0x234] ss:$8 sps:$4 sm:$0xff]  }
 0x14d   :  { %v355_v26 = vpop.f32.mrf.mxu0  ;;  %8605 = vmatprep.subr.bf16.mxu1 %v8754_v23 }
 0x14e   :  { %v489_v28 = vpack.c.bf16 %v421_v24, %v419_v0  ;;  %v356_v33 = vadd.f32 %v355_v26, %v9155_v35  ;;  %v422_v43 = vmax.f32 %v354_v36, 0.0 }
 0x14f   :  { %v357_v31 = vpop.f32.mrf.mxu0 }
 0x150   :  { %v358_v34 = vadd.f32 %v357_v31, %v9158_v38  ;;  %835 = vmatprep.mubr.bf16.mxu1 %v489_v28  ;;  %v423_v41 = vmax.f32 %v356_v33, 0.0  ;;  %v9231_v38 = vrot.slane %v8161_v46, %v9149_v32 }
 0x151   :  { %v359_v37 = vpop.f32.mrf.mxu0  ;;  %836 = vmatmul.mubr.bf16.gmra.mxu1 %v488_v30  ;;  %v8752_v30 = vld [vmem:[#allocation2 + $0x230] ss:$8 sps:$4 sm:$0xff]  }
 0x152   :  { %v360_v39 = vadd.f32 %v359_v37, %v9155_v35  ;;  %v424_v40 = vmax.f32 %v358_v34, 0.0  ;;  %v8757_v34 = vld [vmem:[#allocation2 + $0x224] ss:$8 sps:$4 sm:$0xff]   ;;  %8621 = vmatpush1.bf16.msra.mxu1 %v8752_v30 }
 0x153   :  { %8606 = vmatprep.subr.bf16.mxu1 %v8757_v34 }
 0x154   :  { %v425_v42 = vmax.f32 %v360_v39, 0.0  ;;  %v490_v45 = vpack.c.bf16 %v424_v40, %v422_v43 }
 0x156   :  { %v491_v44 = vpack.c.bf16 %v425_v42, %v423_v41  ;;  %v8755_v42 = vld [vmem:[#allocation2 + $0x220] ss:$8 sps:$4 sm:$0xff]  }
 0x157   :  { %8622 = vmatpush1.bf16.msra.mxu1 %v8755_v42 }
 0x158   :  { %845 = vmatprep.mubr.bf16.mxu1 %v491_v44 }
 0x159   :  { %846 = vmatmul.mubr.bf16.gmra.mxu1 %v490_v45  ;;  %v8760_v45 = vld [vmem:[#allocation2 + $0x214] ss:$8 sps:$4 sm:$0xff]  }
 0x15a   :  { %8607 = vmatprep.subr.bf16.mxu1 %v8760_v45 }
 0x1a1   :  { %v697_v47 = vpop.f32.mrf.mxu1 }
 0x1a2   :  { %v698_v52 = vadd.f32 %v697_v47, %v9231_v38 }
 0x1a3   :  { %v699_v35 = vpop.f32.mrf.mxu1 }
 0x1a4   :  { %v700_v50 = vadd.f32 %v699_v35, %v9228_v48  ;;  %v856_v62 = vmax.f32 %v698_v52, 0.0 }
 0x1a5   :  { %v701_v49 = vpop.f32.mrf.mxu1 }
 0x1a6   :  { %v702_v51 = vadd.f32 %v701_v49, %v9231_v38  ;;  %v857_v60 = vmax.f32 %v700_v50, 0.0 }
 0x1a7   :  { %v703_v53 = vpop.f32.mrf.mxu1 }
 0x1a8   :  { %v704_v55 = vadd.f32 %v703_v53, %v9228_v48  ;;  %v858_v57 = vmax.f32 %v702_v51, 0.0  ;;  %v8758_v51 = vld [vmem:[#allocation2 + $0x210] ss:$8 sps:$4 sm:$0xff]  }
 0x1a9   :  { %v707_v58 = vpop.f32.mrf.mxu1  ;;  %8623 = vmatpush1.bf16.msra.mxu1 %v8758_v51 }
 0x1aa   :  { %v859_v61 = vmax.f32 %v704_v55, 0.0  ;;  %v955_v3 = vpack.c.bf16 %v858_v57, %v856_v62  ;;  %v708_v8 = vadd.f32 %v707_v58, %v9231_v38  ;;  %8608 = vmatprep.subr.bf16.mxu1 %v8763_v54 }
 0x1ab   :  { %v709_v63 = vpop.f32.mrf.mxu1 }
 0x1ac   :  { %v956_v1 = vpack.c.bf16 %v859_v61, %v857_v60  ;;  %v710_v6 = vadd.f32 %v709_v63, %v9228_v48  ;;  %v860_v17 = vmax.f32 %v708_v8, 0.0  ;;  %v8761_v60 = vld [vmem:[#allocation2 + $0x200] ss:$8 sps:$4 sm:$0xff]   ;;  %v8766_v63 = vld [vmem:[#allocation2 + $0x2f4] ss:$8 sps:$4 sm:$0xff]  }
 0x1ad   :  { %v711_v4 = vpop.f32.mrf.mxu1  ;;  %8624 = vmatpush1.bf16.msra.mxu1 %v8761_v60 }
 0x1ae   :  { %v712_v7 = vadd.f32 %v711_v4, %v9231_v38  ;;  %1190 = vmatprep.mubr.bf16.mxu0 %v956_v1  ;;  %v861_v15 = vmax.f32 %v710_v6, 0.0  ;;  %8609 = vmatprep.subr.bf16.mxu1 %v8766_v63  ;;  %v8764_v6 = vld [vmem:[#allocation2 + $0x2f0] ss:$8 sps:$4 sm:$0xff]  }
 0x1af   :  { %v713_v9 = vpop.f32.mrf.mxu1  ;;  %1191 = vmatmul.mubr.bf16.vlgmr.msra.gmra.mxu0 %v955_v3 }
 0x1b0   :  { %v714_v10 = vadd.f32 %v713_v9, %v9228_v48  ;;  %2571 = vmatpush1.bf16.msra.mxu0 %v8740_v56  ;;  %v862_v12 = vmax.f32 %v712_v7, 0.0  ;;  %v8769_v9 = vld [vmem:[#allocation2 + $0x2e4] ss:$8 sps:$4 sm:$0xff]  }
 0x1b1   :  { %v717_v13 = vpop.f32.mrf.mxu1  ;;  %2572 = vmatprep.subr.bf16.mxu0 %v8745_v59  ;;  %8625 = vmatpush2.bf16.msra.mxu1 %v8764_v6 }
 0x1b2   :  { %v863_v16 = vmax.f32 %v714_v10, 0.0  ;;  %v957_v21 = vpack.c.bf16 %v862_v12, %v860_v17  ;;  %v718_v25 = vadd.f32 %v717_v13, %v9231_v38  ;;  %8610 = vmatprep.subr.bf16.mxu1 %v8769_v9 }
 0x1b3   :  { %v719_v18 = vpop.f32.mrf.mxu1 }
 0x1b4   :  { %v958_v19 = vpack.c.bf16 %v863_v16, %v861_v15  ;;  %2573 = vmatpush1.bf16.msra.mxu0 %v8743_v2  ;;  %v720_v0 = vadd.f32 %v719_v18, %v9228_v48  ;;  %v864_v39 = vmax.f32 %v718_v25, 0.0  ;;  %v8767_v15 = vld [vmem:[#allocation2 + $0x2e0] ss:$8 sps:$4 sm:$0xff]   ;;  %v8772_v18 = vld [vmem:[#allocation2 + $0x2d4] ss:$8 sps:$4 sm:$0xff]  }
 0x1b5   :  { %v721_v22 = vpop.f32.mrf.mxu1  ;;  %2574 = vmatprep.subr.bf16.mxu0 %v8748_v5  ;;  %8626 = vmatpush2.bf16.msra.mxu1 %v8767_v15 }
 0x1b6   :  { %v722_v24 = vadd.f32 %v721_v22, %v9231_v38  ;;  %1200 = vmatprep.mubr.bf16.mxu0 %v958_v19  ;;  %v865_v36 = vmax.f32 %v720_v0, 0.0  ;;  %8611 = vmatprep.subr.bf16.mxu1 %v8772_v18  ;;  %v8770_v0 = vld [vmem:[#allocation2 + $0x2d0] ss:$8 sps:$4 sm:$0xff]  }
 0x1b7   :  { %v723_v26 = vpop.f32.mrf.mxu1  ;;  %1201 = vmatmul.mubr.bf16.gmra.mxu0 %v957_v21 }
 0x1b8   :  { %v724_v28 = vadd.f32 %v723_v26, %v9228_v48  ;;  %2575 = vmatpush1.bf16.msra.mxu0 %v8746_v11  ;;  %v866_v31 = vmax.f32 %v722_v24, 0.0  ;;  %v8775_v26 = vld [vmem:[#allocation2 + $0x2c4] ss:$8 sps:$4 sm:$0xff]  }
 0x1b9   :  { %v727_v33 = vpop.f32.mrf.mxu1  ;;  %2576 = vmatprep.subr.bf16.mxu0 %v8751_v14  ;;  %8627 = vmatpush2.bf16.msra.mxu1 %v8770_v0 }
 0x1ba   :  { %v867_v37 = vmax.f32 %v724_v28, 0.0  ;;  %v959_v43 = vpack.c.bf16 %v866_v31, %v864_v39  ;;  %v728_v35 = vadd.f32 %v727_v33, %v9231_v38  ;;  %8612 = vmatprep.subr.bf16.mxu1 %v8775_v26 }
 0x1bb   :  { %v729_v40 = vpop.f32.mrf.mxu1 }
 0x1bc   :  { %v960_v41 = vpack.c.bf16 %v867_v37, %v865_v36  ;;  %2577 = vmatpush1.bf16.msra.mxu0 %v8749_v20  ;;  %v730_v46 = vadd.f32 %v729_v40, %v9228_v48  ;;  %v868_v57 = vmax.f32 %v728_v35, 0.0  ;;  %v8773_v36 = vld [vmem:[#allocation2 + $0x2c0] ss:$8 sps:$4 sm:$0xff]   ;;  %v8778_v40 = vld [vmem:[#allocation2 + $0x2b4] ss:$8 sps:$4 sm:$0xff]  }
 0x1bd   :  { %v731_v44 = vpop.f32.mrf.mxu1  ;;  %2578 = vmatprep.subr.bf16.mxu0 %v8754_v23  ;;  %8628 = vmatpush2.bf16.msra.mxu1 %v8773_v36 }
 0x1be   :  { %v732_v47 = vadd.f32 %v731_v44, %v9231_v38  ;;  %1210 = vmatprep.mubr.bf16.mxu0 %v960_v41  ;;  %v869_v55 = vmax.f32 %v730_v46, 0.0  ;;  %8613 = vmatprep.subr.bf16.mxu1 %v8778_v40  ;;  %v8776_v46 = vld [vmem:[#allocation2 + $0x2b0] ss:$8 sps:$4 sm:$0xff]  }
 0x1bf   :  { %v733_v49 = vpop.f32.mrf.mxu1  ;;  %1211 = vmatmul.mubr.bf16.gmra.mxu0 %v959_v43 }
 0x1c0   :  { %v734_v50 = vadd.f32 %v733_v49, %v9228_v48  ;;  %2579 = vmatpush1.bf16.msra.mxu0 %v8752_v30  ;;  %v870_v52 = vmax.f32 %v732_v47, 0.0 }
 0x1c1   :  { %v737_v53 = vpop.f32.mrf.mxu1  ;;  %2580 = vmatprep.subr.bf16.mxu0 %v8757_v34  ;;  %8629 = vmatpush2.bf16.msra.mxu1 %v8776_v46 }
 0x1c2   :  { %v871_v56 = vmax.f32 %v734_v50, 0.0  ;;  %v961_v61 = vpack.c.bf16 %v870_v52, %v868_v57  ;;  %v738_v3 = vadd.f32 %v737_v53, %v9231_v38 }
 0x1c3   :  { %v739_v58 = vpop.f32.mrf.mxu1 }
 0x1c4   :  { %v962_v59 = vpack.c.bf16 %v871_v56, %v869_v55  ;;  %2581 = vmatpush1.bf16.msra.mxu0 %v8755_v42  ;;  %v740_v1 = vadd.f32 %v739_v58, %v9228_v48  ;;  %v872_v12 = vmax.f32 %v738_v3, 0.0 }
 0x1c5   :  { %v741_v62 = vpop.f32.mrf.mxu1  ;;  %2582 = vmatprep.subr.bf16.mxu0 %v8760_v45 }
 0x1c6   :  { %v742_v2 = vadd.f32 %v741_v62, %v9231_v38  ;;  %1220 = vmatprep.mubr.bf16.mxu0 %v962_v59  ;;  %v873_v10 = vmax.f32 %v740_v1, 0.0 }
 0x1c7   :  { %v743_v4 = vpop.f32.mrf.mxu1  ;;  %1221 = vmatmul.mubr.bf16.gmra.mxu0 %v961_v61 }
 0x1c8   :  { %v744_v5 = vadd.f32 %v743_v4, %v9228_v48  ;;  %2583 = vmatpush1.bf16.msra.mxu0 %v8758_v51  ;;  %v874_v7 = vmax.f32 %v742_v2, 0.0 }
 0x1c9   :  { %v747_v8 = vpop.f32.mrf.mxu1  ;;  %2584 = vmatprep.subr.bf16.mxu0 %v8763_v54 }
 0x1ca   :  { %v875_v11 = vmax.f32 %v744_v5, 0.0  ;;  %v963_v16 = vpack.c.bf16 %v874_v7, %v872_v12  ;;  %v748_v21 = vadd.f32 %v747_v8, %v9231_v38 }
 0x1cb   :  { %v749_v13 = vpop.f32.mrf.mxu1 }
 0x1cc   :  { %v964_v14 = vpack.c.bf16 %v875_v11, %v873_v10  ;;  %2585 = vmatpush1.bf16.msra.mxu0 %v8761_v60  ;;  %v750_v19 = vadd.f32 %v749_v13, %v9228_v48  ;;  %v876_v31 = vmax.f32 %v748_v21, 0.0 }
 0x1cd   :  { %v751_v17 = vpop.f32.mrf.mxu1  ;;  %2586 = vmatprep.subr.bf16.mxu0 %v8766_v63 }
 0x1ce   :  { %v752_v20 = vadd.f32 %v751_v17, %v9231_v38  ;;  %1230 = vmatprep.mubr.bf16.mxu0 %v964_v14  ;;  %v877_v28 = vmax.f32 %v750_v19, 0.0 }
 0x1cf   :  { %v753_v22 = vpop.f32.mrf.mxu1  ;;  %1231 = vmatmul.mubr.bf16.gmra.mxu0 %v963_v16 }
 0x1d0   :  { %v754_v23 = vadd.f32 %v753_v22, %v9228_v48  ;;  %2587 = vmatpush2.bf16.msra.mxu0 %v8764_v6  ;;  %v878_v24 = vmax.f32 %v752_v20, 0.0 }
 0x1d1   :  { %v757_v25 = vpop.f32.mrf.mxu1  ;;  %2588 = vmatprep.subr.bf16.mxu0 %v8769_v9 }
 0x1d2   :  { %v879_v30 = vmax.f32 %v754_v23, 0.0  ;;  %v965_v37 = vpack.c.bf16 %v878_v24, %v876_v31  ;;  %v758_v43 = vadd.f32 %v757_v25, %v9231_v38  ;;  %v8781_v24 = vld [vmem:[#allocation2 + $0x2a4] ss:$8 sps:$4 sm:$0xff]  }
 0x1d3   :  { %v759_v33 = vpop.f32.mrf.mxu1  ;;  %8614 = vmatprep.subr.bf16.mxu1 %v8781_v24 }
 0x1d4   :  { %v966_v34 = vpack.c.bf16 %v879_v30, %v877_v28  ;;  %2589 = vmatpush2.bf16.msra.mxu0 %v8767_v15  ;;  %v760_v41 = vadd.f32 %v759_v33, %v9228_v48  ;;  %v880_v51 = vmax.f32 %v758_v43, 0.0 }
 0x1d5   :  { %v761_v39 = vpop.f32.mrf.mxu1  ;;  %2590 = vmatprep.subr.bf16.mxu0 %v8772_v18 }
 0x1d6   :  { %v762_v42 = vadd.f32 %v761_v39, %v9231_v38  ;;  %1240 = vmatprep.mubr.bf16.mxu0 %v966_v34  ;;  %v881_v49 = vmax.f32 %v760_v41, 0.0 }
 0x1d7   :  { %v763_v44 = vpop.f32.mrf.mxu1  ;;  %1241 = vmatmul.mubr.bf16.gmra.mxu0 %v965_v37  ;;  %v8784_v37 = vld [vmem:[#allocation2 + $0x294] ss:$8 sps:$4 sm:$0xff]  }
 0x1d8   :  { %v764_v45 = vadd.f32 %v763_v44, %v9228_v48  ;;  %2591 = vmatpush2.bf16.msra.mxu0 %v8770_v0  ;;  %v882_v47 = vmax.f32 %v762_v42, 0.0 }
 0x1d9   :  { %v767_v35 = vpop.f32.mrf.mxu1  ;;  %2592 = vmatprep.subr.bf16.mxu0 %v8775_v26  ;;  %v8779_v26 = vld [vmem:[#allocation2 + $0x2a0] ss:$8 sps:$4 sm:$0xff]  }
 0x1da   :  { %v883_v50 = vmax.f32 %v764_v45, 0.0  ;;  %v967_v54 = vpack.c.bf16 %v882_v47, %v880_v51  ;;  %v768_v58 = vadd.f32 %v767_v35, %v9231_v38  ;;  %8630 = vmatpush2.bf16.msra.mxu1 %v8779_v26  ;;  %v8787_v47 = vld [vmem:[#allocation2 + $0x284] ss:$8 sps:$4 sm:$0xff]  }
 0x1db   :  { %v769_v52 = vpop.f32.mrf.mxu1  ;;  %8615 = vmatprep.subr.bf16.mxu1 %v8784_v37 }
 0x1dc   :  { %v968_v53 = vpack.c.bf16 %v883_v50, %v881_v49  ;;  %2593 = vmatpush2.bf16.msra.mxu0 %v8773_v36  ;;  %v770_v56 = vadd.f32 %v769_v52, %v9228_v48  ;;  %v884_v2 = vmax.f32 %v768_v58, 0.0  ;;  %v8785_v49 = vld [vmem:[#allocation2 + $0x280] ss:$8 sps:$4 sm:$0xff]  }
 0x1dd   :  { %v771_v55 = vpop.f32.mrf.mxu1  ;;  %2594 = vmatprep.subr.bf16.mxu0 %v8778_v40  ;;  %v8782_v40 = vld [vmem:[#allocation2 + $0x290] ss:$8 sps:$4 sm:$0xff]  }
 0x1de   :  { %v772_v57 = vadd.f32 %v771_v55, %v9231_v38  ;;  %1250 = vmatprep.mubr.bf16.mxu0 %v968_v53  ;;  %v885_v63 = vmax.f32 %v770_v56, 0.0  ;;  %8631 = vmatpush2.bf16.msra.mxu1 %v8782_v40 }
 0x1df   :  { %v773_v59 = vpop.f32.mrf.mxu1  ;;  %1251 = vmatmul.mubr.bf16.gmra.mxu0 %v967_v54  ;;  %8616 = vmatprep.subr.bf16.mxu1 %v8787_v47 }
 0x1e0   :  { %v774_v60 = vadd.f32 %v773_v59, %v9228_v48  ;;  %2595 = vmatpush2.bf16.msra.mxu0 %v8776_v46  ;;  %v886_v61 = vmax.f32 %v772_v57, 0.0 }
 0x1e1   :  { %v777_v62 = vpop.f32.mrf.mxu1  ;;  %2596 = vmatprep.subr.bf16.mxu0 %v8781_v24 }
 0x1e2   :  { %v887_v1 = vmax.f32 %v774_v60, 0.0  ;;  %v969_v5 = vpack.c.bf16 %v886_v61, %v884_v2  ;;  %v778_v9 = vadd.f32 %v777_v62, %v9231_v38  ;;  %8632 = vmatpush2.bf16.msra.mxu1 %v8785_v49 }
 0x1e3   :  { %v779_v3 = vpop.f32.mrf.mxu1 }
 0x1e4   :  { %v970_v4 = vpack.c.bf16 %v887_v1, %v885_v63  ;;  %v780_v7 = vadd.f32 %v779_v3, %v9228_v48  ;;  %v888_v16 = vmax.f32 %v778_v9, 0.0  ;;  %2597 = vmatpush2.bf16.msra.mxu0 %v8779_v26 }
 0x1e5   :  { %v781_v6 = vpop.f32.mrf.mxu1  ;;  %2598 = vmatprep.subr.bf16.mxu0 %v8784_v37 }
 0x1e6   :  { %v782_v8 = vadd.f32 %v781_v6, %v9231_v38  ;;  %1260 = vmatprep.mubr.bf16.mxu0 %v970_v4  ;;  %v889_v14 = vmax.f32 %v780_v7, 0.0 }
 0x1e7   :  { %v783_v10 = vpop.f32.mrf.mxu1  ;;  %1261 = vmatmul.mubr.bf16.gmra.mxu0 %v969_v5 }
 0x1e8   :  { %v784_v11 = vadd.f32 %v783_v10, %v9228_v48  ;;  %v890_v12 = vmax.f32 %v782_v8, 0.0  ;;  %2599 = vmatpush2.bf16.msra.mxu0 %v8782_v40 }
 0x1e9   :  { %v787_v13 = vpop.f32.mrf.mxu1  ;;  %2600 = vmatprep.subr.bf16.mxu0 %v8787_v47 }
 0x1ea   :  { %v891_v15 = vmax.f32 %v784_v11, 0.0  ;;  %v971_v19 = vpack.c.bf16 %v890_v12, %v888_v16  ;;  %v788_v23 = vadd.f32 %v787_v13, %v9231_v38 }
 0x1eb   :  { %v789_v17 = vpop.f32.mrf.mxu1 }
 0x1ec   :  { %v972_v18 = vpack.c.bf16 %v891_v15, %v889_v14  ;;  %v790_v21 = vadd.f32 %v789_v17, %v9228_v48  ;;  %v892_v34 = vmax.f32 %v788_v23, 0.0  ;;  %2601 = vmatpush2.bf16.msra.mxu0 %v8785_v49 }
 0x1ed   :  { %v791_v20 = vpop.f32.mrf.mxu1 }
 0x1ee   :  { %v792_v22 = vadd.f32 %v791_v20, %v9231_v38  ;;  %1270 = vmatprep.mubr.bf16.mxu0 %v972_v18  ;;  %v893_v31 = vmax.f32 %v790_v21, 0.0 }
 0x1ef   :  { %v793_v0 = vpop.f32.mrf.mxu1  ;;  %1271 = vmatmul.mubr.bf16.gmra.mxu0 %v971_v19 }
 0x1f0   :  { %v794_v25 = vadd.f32 %v793_v0, %v9228_v48  ;;  %v894_v28 = vmax.f32 %v792_v22, 0.0 }
 0x1f1   :  { %v797_v30 = vpop.f32.mrf.mxu1 }
 0x1f2   :  { %v895_v33 = vmax.f32 %v794_v25, 0.0  ;;  %v973_v41 = vpack.c.bf16 %v894_v28, %v892_v34  ;;  %v798_v45 = vadd.f32 %v797_v30, %v9231_v38 }
 0x1f3   :  { %v799_v36 = vpop.f32.mrf.mxu1 }
 0x1f4   :  { %v974_v39 = vpack.c.bf16 %v895_v33, %v893_v31  ;;  %v800_v43 = vadd.f32 %v799_v36, %v9228_v48  ;;  %v896_v54 = vmax.f32 %v798_v45, 0.0 }
 0x1f5   :  { %v801_v42 = vpop.f32.mrf.mxu1 }
 0x1f6   :  { %v802_v44 = vadd.f32 %v801_v42, %v9231_v38  ;;  %1280 = vmatprep.mubr.bf16.mxu0 %v974_v39  ;;  %v897_v52 = vmax.f32 %v800_v43, 0.0 }
 0x1f7   :  { %v803_v46 = vpop.f32.mrf.mxu1  ;;  %1281 = vmatmul.mubr.bf16.gmra.mxu0 %v973_v41 }
 0x1f8   :  { %v804_v35 = vadd.f32 %v803_v46, %v9228_v48  ;;  %v898_v50 = vmax.f32 %v802_v44, 0.0 }
 0x1f9   :  { %v807_v51 = vpop.f32.mrf.mxu1 }
 0x1fa   :  { %v899_v53 = vmax.f32 %v804_v35, 0.0  ;;  %v975_v57 = vpack.c.bf16 %v898_v50, %v896_v54  ;;  %v808_v61 = vadd.f32 %v807_v51, %v9231_v38 }
 0x1fb   :  { %v809_v55 = vpop.f32.mrf.mxu1 }
 0x1fc   :  { %v976_v56 = vpack.c.bf16 %v899_v53, %v897_v52  ;;  %v810_v59 = vadd.f32 %v809_v55, %v9228_v48  ;;  %v900_v5 = vmax.f32 %v808_v61, 0.0 }
 0x1fd   :  { %v811_v58 = vpop.f32.mrf.mxu1 }
 0x1fe   :  { %v812_v60 = vadd.f32 %v811_v58, %v9231_v38  ;;  %1290 = vmatprep.mubr.bf16.mxu0 %v976_v56  ;;  %v901_v3 = vmax.f32 %v810_v59, 0.0 }
 0x1ff   :  { %v813_v62 = vpop.f32.mrf.mxu1  ;;  %1291 = vmatmul.mubr.bf16.gmra.mxu0 %v975_v57 }
 0x200   :  { %v814_v63 = vadd.f32 %v813_v62, %v9228_v48  ;;  %v902_v1 = vmax.f32 %v812_v60, 0.0 }
 0x201   :  { %v817_v2 = vpop.f32.mrf.mxu1 }
 0x202   :  { %v903_v4 = vmax.f32 %v814_v63, 0.0  ;;  %v977_v8 = vpack.c.bf16 %v902_v1, %v900_v5  ;;  %v818_v12 = vadd.f32 %v817_v2, %v9231_v38 }
 0x203   :  { %v819_v6 = vpop.f32.mrf.mxu1 }
 0x204   :  { %v978_v7 = vpack.c.bf16 %v903_v4, %v901_v3  ;;  %v820_v10 = vadd.f32 %v819_v6, %v9228_v48  ;;  %v904_v19 = vmax.f32 %v818_v12, 0.0  ;;  %v8194_v4 = vld [vmem:[%s13861_s3 + $0x2] ss:$8 sm:$0x3] }
 0x205   :  { %v821_v9 = vpop.f32.mrf.mxu1  ;;  %v9301_v5 = vrot.slane %v8194_v4, %v9149_v32 }
 0x206   :  { %v822_v11 = vadd.f32 %v821_v9, %v9231_v38  ;;  %1300 = vmatprep.mubr.bf16.mxu0 %v978_v7  ;;  %v905_v17 = vmax.f32 %v820_v10, 0.0 }
 0x207   :  { %v823_v13 = vpop.f32.mrf.mxu1  ;;  %1301 = vmatmul.mubr.bf16.gmra.mxu0 %v977_v8 }
 0x208   :  { %v824_v14 = vadd.f32 %v823_v13, %v9228_v48  ;;  %v906_v15 = vmax.f32 %v822_v11, 0.0 }
 0x209   :  { %v827_v16 = vpop.f32.mrf.mxu1 }
 0x20a   :  { %v907_v18 = vmax.f32 %v824_v14, 0.0  ;;  %v979_v22 = vpack.c.bf16 %v906_v15, %v904_v19  ;;  %v828_v25 = vadd.f32 %v827_v16, %v9231_v38 }
 0x20b   :  { %v829_v20 = vpop.f32.mrf.mxu1 }
 0x20c   :  { %v980_v21 = vpack.c.bf16 %v907_v18, %v905_v17  ;;  %v830_v0 = vadd.f32 %v829_v20, %v9228_v48  ;;  %v908_v36 = vmax.f32 %v828_v25, 0.0 }
 0x20d   :  { %v831_v23 = vpop.f32.mrf.mxu1 }
 0x20e   :  { %v832_v24 = vadd.f32 %v831_v23, %v9231_v38  ;;  %1310 = vmatprep.mubr.bf16.mxu0 %v980_v21  ;;  %v909_v33 = vmax.f32 %v830_v0, 0.0 }
 0x20f   :  { %v833_v26 = vpop.f32.mrf.mxu1  ;;  %1311 = vmatmul.mubr.bf16.gmra.mxu0 %v979_v22 }
 0x210   :  { %v834_v28 = vadd.f32 %v833_v26, %v9228_v48  ;;  %v910_v30 = vmax.f32 %v832_v24, 0.0 }
 0x211   :  { %v837_v31 = vpop.f32.mrf.mxu1 }
 0x212   :  { %v911_v34 = vmax.f32 %v834_v28, 0.0  ;;  %v981_v40 = vpack.c.bf16 %v910_v30, %v908_v36  ;;  %v838_v44 = vadd.f32 %v837_v31, %v9231_v38 }
 0x213   :  { %v839_v37 = vpop.f32.mrf.mxu1 }
 0x214   :  { %v982_v39 = vpack.c.bf16 %v911_v34, %v909_v33  ;;  %v840_v42 = vadd.f32 %v839_v37, %v9228_v48  ;;  %v912_v51 = vmax.f32 %v838_v44, 0.0 }
 0x215   :  { %v841_v41 = vpop.f32.mrf.mxu1 }
 0x216   :  { %v842_v43 = vadd.f32 %v841_v41, %v9231_v38  ;;  %1320 = vmatprep.mubr.bf16.mxu0 %v982_v39  ;;  %v913_v49 = vmax.f32 %v840_v42, 0.0 }
 0x217   :  { %v843_v45 = vpop.f32.mrf.mxu1  ;;  %1321 = vmatmul.mubr.bf16.gmra.mxu0 %v981_v40 }
 0x218   :  { %v844_v46 = vadd.f32 %v843_v45, %v9228_v48  ;;  %v914_v47 = vmax.f32 %v842_v43, 0.0 }
 0x219   :  { %v847_v35 = vpop.f32.mrf.mxu1 }
 0x21a   :  { %v915_v50 = vmax.f32 %v844_v46, 0.0  ;;  %v983_v54 = vpack.c.bf16 %v914_v47, %v912_v51  ;;  %v848_v58 = vadd.f32 %v847_v35, %v9231_v38 }
 0x21b   :  { %v849_v52 = vpop.f32.mrf.mxu1 }
 0x21c   :  { %v984_v53 = vpack.c.bf16 %v915_v50, %v913_v49  ;;  %v850_v56 = vadd.f32 %v849_v52, %v9228_v48  ;;  %v916_v1 = vmax.f32 %v848_v58, 0.0 }
 0x21d   :  { %v851_v55 = vpop.f32.mrf.mxu1 }
 0x21e   :  { %v852_v57 = vadd.f32 %v851_v55, %v9231_v38  ;;  %1330 = vmatprep.mubr.bf16.mxu0 %v984_v53  ;;  %v917_v62 = vmax.f32 %v850_v56, 0.0  ;;  %v8790_v53 = vld [vmem:[#allocation2 + $0x474] ss:$8 sps:$4 sm:$0xff]  }
 0x21f   :  { %v853_v59 = vpop.f32.mrf.mxu1  ;;  %1331 = vmatmul.mubr.bf16.gmra.mxu0 %v983_v54  ;;  %5608 = vmatprep.subr.bf16.mxu1 %v8790_v53 }
 0x220   :  { %v854_v60 = vadd.f32 %v853_v59, %v9228_v48  ;;  %v918_v61 = vmax.f32 %v852_v57, 0.0  ;;  %v9307_v48 = vrot.slane %v8194_v4, %v9147_v29 }
 0x222   :  { %v919_v63 = vmax.f32 %v854_v60, 0.0  ;;  %v985_v3 = vpack.c.bf16 %v918_v61, %v916_v1 }
 0x224   :  { %v986_v2 = vpack.c.bf16 %v919_v63, %v917_v62 }
 0x226   :  { %1340 = vmatprep.mubr.bf16.mxu0 %v986_v2 }
 0x227   :  { %1341 = vmatmul.mubr.bf16.gmra.mxu0 %v985_v3 }
 0x26f   :  { %v1192_v38 = vpop.f32.mrf.mxu0 }
 0x270   :  { %v9304_v6 = vadd.f32 %v1192_v38, %v9301_v5 }
 0x271   :  { %v1194_v7 = vpop.f32.mrf.mxu0 }
 0x272   :  { %1738 = vrot.lane.b32.xlu0 %v9304_v6, %s8952_s1  ;;  %v9312_v9 = vadd.f32 %v1194_v7, %v9307_v48  ;;  %v1351_v19 = vmul.f32 %v9304_v6, %v9304_v6 }
 0x273   :  { %v1196_v8 = vpop.f32.mrf.mxu0 }
 0x274   :  { %14037 = vst [vmem:[#allocation10_spill] sm:$0xff] %v9312_v9  ;;  %v9315_v10 = vadd.f32 %v1196_v8, %v9301_v5  ;;  %v1352_v16 = vmul.f32 %v9312_v9, %v9312_v9 }
 0x275   :  { %v1198_v11 = vpop.f32.mrf.mxu0 }
 0x276   :  { %v9318_v12 = vadd.f32 %v1198_v11, %v9307_v48  ;;  %1740 = vrot.lane.b32.xlu1 %v9315_v10, %s8952_s1  ;;  %1802 = vrot.lane.b32.xlu0 %v9312_v9, %s8952_s1  ;;  %v1353_v14 = vmul.f32 %v9315_v10, %v9315_v10 }
 0x277   :  { %v1202_v13 = vpop.f32.mrf.mxu0 }
 0x278   :  { %v9327_v15 = vadd.f32 %v1202_v13, %v9301_v5  ;;  %v1354_v17 = vmul.f32 %v9318_v12, %v9318_v12  ;;  %v1415_v22 = vpack.c.bf16 %v1353_v14, %v1351_v19 }
 0x279   :  { %v1204_v18 = vpop.f32.mrf.mxu0 }
 0x27a   :  { %14038 = vst [vmem:[#allocation11_spill] sm:$0xff] %v9327_v15  ;;  %1804 = vrot.lane.b32.xlu1 %v9318_v12, %s8952_s1  ;;  %1742 = vrot.lane.b32.xlu0 %v9327_v15, %s8952_s1  ;;  %v1416_v20 = vpack.c.bf16 %v1354_v17, %v1352_v16  ;;  %v9340_v23 = vadd.f32 %v1204_v18, %v9307_v48 }
 0x27b   :  { %v1206_v21 = vpop.f32.mrf.mxu0  ;;  %v1355_v36 = vmul.f32 %v9327_v15, %v9327_v15 }
 0x27c   :  { %14039 = vst [vmem:[#allocation12_spill] sm:$0xff] %v9340_v23  ;;  %v9343_v0 = vadd.f32 %v1206_v21, %v9301_v5  ;;  %2602 = vmatprep.mubr.bf16.mxu0 %v1416_v20  ;;  %v1356_v31 = vmul.f32 %v9340_v23, %v9340_v23 }
 0x27d   :  { %v1208_v24 = vpop.f32.mrf.mxu0  ;;  %2603 = vmatmul.mubr.bf16.vlgmr.msra.gmra.mxu0 %v1415_v22 }
 0x27e   :  { %14040 = vst [vmem:[#allocation13_spill] sm:$0xff] %v9343_v0  ;;  %v9346_v25 = vadd.f32 %v1208_v24, %v9307_v48  ;;  %1744 = vrot.lane.b32.xlu1 %v9343_v0, %s8952_s1  ;;  %1806 = vrot.lane.b32.xlu0 %v9340_v23, %s8952_s1  ;;  %v1357_v28 = vmul.f32 %v9343_v0, %v9343_v0 }
 0x27f   :  { %v1212_v26 = vpop.f32.mrf.mxu0 }
 0x280   :  { %14041 = vst [vmem:[#allocation14_spill] sm:$0xff] %v9346_v25  ;;  %v9355_v30 = vadd.f32 %v1212_v26, %v9301_v5  ;;  %v1358_v33 = vmul.f32 %v9346_v25, %v9346_v25  ;;  %v1417_v40 = vpack.c.bf16 %v1357_v28, %v1355_v36 }
 0x281   :  { %v1214_v34 = vpop.f32.mrf.mxu0 }
 0x282   :  { %14042 = vst [vmem:[#allocation15_spill] sm:$0xff] %v9355_v30  ;;  %1808 = vrot.lane.b32.xlu1 %v9346_v25, %s8952_s1  ;;  %1746 = vrot.lane.b32.xlu0 %v9355_v30, %s8952_s1  ;;  %v1418_v37 = vpack.c.bf16 %v1358_v33, %v1356_v31  ;;  %v9368_v41 = vadd.f32 %v1214_v34, %v9307_v48 }
 0x283   :  { %v1216_v39 = vpop.f32.mrf.mxu0  ;;  %v1359_v51 = vmul.f32 %v9355_v30, %v9355_v30 }
 0x284   :  { %14043 = vst [vmem:[#allocation16_spill] sm:$0xff] %v9368_v41  ;;  %v9371_v42 = vadd.f32 %v1216_v39, %v9301_v5  ;;  %2612 = vmatprep.mubr.bf16.mxu0 %v1418_v37  ;;  %v1360_v35 = vmul.f32 %v9368_v41, %v9368_v41 }
 0x285   :  { %v1218_v43 = vpop.f32.mrf.mxu0  ;;  %2613 = vmatmul.mubr.bf16.gmra.mxu0 %v1417_v40 }
 0x286   :  { %14044 = vst [vmem:[#allocation17_spill] sm:$0xff] %v9371_v42  ;;  %v9374_v44 = vadd.f32 %v1218_v43, %v9307_v48  ;;  %1748 = vrot.lane.b32.xlu1 %v9371_v42, %s8952_s1  ;;  %1810 = vrot.lane.b32.xlu0 %v9368_v41, %s8952_s1  ;;  %v1361_v46 = vmul.f32 %v9371_v42, %v9371_v42 }
 0x287   :  { %v1222_v45 = vpop.f32.mrf.mxu0 }
 0x288   :  { %14045 = vst [vmem:[#allocation18_spill] sm:$0xff] %v9374_v44  ;;  %v9383_v47 = vadd.f32 %v1222_v45, %v9301_v5  ;;  %v1362_v49 = vmul.f32 %v9374_v44, %v9374_v44  ;;  %v1419_v55 = vpack.c.bf16 %v1361_v46, %v1359_v51 }
 0x289   :  { %v1224_v50 = vpop.f32.mrf.mxu0 }
 0x28a   :  { %14046 = vst [vmem:[#allocation19_spill] sm:$0xff] %v9383_v47  ;;  %1812 = vrot.lane.b32.xlu1 %v9374_v44, %s8952_s1  ;;  %1459 = vrot.lane.b32.xlu0 %v9383_v47, %s8953_s25  ;;  %v1420_v52 = vpack.c.bf16 %v1362_v49, %v1360_v35  ;;  %v9396_v56 = vadd.f32 %v1224_v50, %v9307_v48 }
 0x28b   :  { %v1226_v54 = vpop.f32.mrf.mxu0  ;;  %v1363_v3 = vmul.f32 %v9383_v47, %v9383_v47 }
 0x28c   :  { %14047 = vst [vmem:[#allocation20_spill] sm:$0xff] %v9396_v56  ;;  %v9399_v57 = vadd.f32 %v1226_v54, %v9301_v5  ;;  %2622 = vmatprep.mubr.bf16.mxu0 %v1420_v52  ;;  %v1364_v63 = vmul.f32 %v9396_v56, %v9396_v56 }
 0x28d   :  { %v1228_v58 = vpop.f32.mrf.mxu0  ;;  %2623 = vmatmul.mubr.bf16.gmra.mxu0 %v1419_v55 }
 0x28e   :  { %14048 = vst [vmem:[#allocation21_spill] sm:$0xff] %v9399_v57  ;;  %v9402_v59 = vadd.f32 %v1228_v58, %v9307_v48  ;;  %1523 = vrot.lane.b32.xlu1 %v9396_v56, %s8953_s25  ;;  %1461 = vrot.lane.b32.xlu0 %v9399_v57, %s8953_s25  ;;  %v1365_v61 = vmul.f32 %v9399_v57, %v9399_v57 }
 0x28f   :  { %v1232_v60 = vpop.f32.mrf.mxu0 }
 0x290   :  { %14049 = vst [vmem:[#allocation22_spill] sm:$0xff] %v9402_v59  ;;  %v9411_v62 = vadd.f32 %v1232_v60, %v9301_v5  ;;  %v1366_v1 = vmul.f32 %v9402_v59, %v9402_v59  ;;  %v1421_v7 = vpack.c.bf16 %v1365_v61, %v1363_v3 }
 0x291   :  { %v1234_v2 = vpop.f32.mrf.mxu0 }
 0x292   :  { %14050 = vst [vmem:[#allocation23_spill] sm:$0xff] %v9411_v62  ;;  %1525 = vrot.lane.b32.xlu1 %v9402_v59, %s8953_s25  ;;  %1463 = vrot.lane.b32.xlu0 %v9411_v62, %s8953_s25  ;;  %v1422_v4 = vpack.c.bf16 %v1366_v1, %v1364_v63  ;;  %v9424_v8 = vadd.f32 %v1234_v2, %v9307_v48 }
 0x293   :  { %v1236_v38 = vpop.f32.mrf.mxu0  ;;  %v1367_v22 = vmul.f32 %v9411_v62, %v9411_v62 }
 0x294   :  { %14051 = vst [vmem:[#allocation24_spill] sm:$0xff] %v9424_v8  ;;  %v9427_v11 = vadd.f32 %v1236_v38, %v9301_v5  ;;  %2632 = vmatprep.mubr.bf16.mxu0 %v1422_v4  ;;  %v1368_v19 = vmul.f32 %v9424_v8, %v9424_v8 }
 0x295   :  { %v1238_v13 = vpop.f32.mrf.mxu0  ;;  %2633 = vmatmul.mubr.bf16.gmra.mxu0 %v1421_v7 }
 0x296   :  { %14052 = vst [vmem:[#allocation25_spill] sm:$0xff] %v9427_v11  ;;  %v9430_v14 = vadd.f32 %v1238_v13, %v9307_v48  ;;  %1465 = vrot.lane.b32.xlu1 %v9427_v11, %s8953_s25  ;;  %1527 = vrot.lane.b32.xlu0 %v9424_v8, %s8953_s25  ;;  %v1369_v17 = vmul.f32 %v9427_v11, %v9427_v11 }
 0x297   :  { %v1242_v16 = vpop.f32.mrf.mxu0 }
 0x298   :  { %14053 = vst [vmem:[#allocation26_spill] sm:$0xff] %v9430_v14  ;;  %v9439_v18 = vadd.f32 %v1242_v16, %v9301_v5  ;;  %v1370_v20 = vmul.f32 %v9430_v14, %v9430_v14  ;;  %v1423_v28 = vpack.c.bf16 %v1369_v17, %v1367_v22 }
 0x299   :  { %v1244_v21 = vpop.f32.mrf.mxu0 }
 0x29a   :  { %14054 = vst [vmem:[#allocation27_spill] sm:$0xff] %v9439_v18  ;;  %1529 = vrot.lane.b32.xlu1 %v9430_v14, %s8953_s25  ;;  %1467 = vrot.lane.b32.xlu0 %v9439_v18, %s8953_s25  ;;  %v1424_v24 = vpack.c.bf16 %v1370_v20, %v1368_v19  ;;  %v9452_v31 = vadd.f32 %v1244_v21, %v9307_v48 }
 0x29b   :  { %v1246_v26 = vpop.f32.mrf.mxu0  ;;  %v1371_v35 = vmul.f32 %v9439_v18, %v9439_v18 }
 0x29c   :  { %14055 = vst [vmem:[#allocation28_spill] sm:$0xff] %v9452_v31  ;;  %v9455_v33 = vadd.f32 %v1246_v26, %v9301_v5  ;;  %2642 = vmatprep.mubr.bf16.mxu0 %v1424_v24  ;;  %v1372_v43 = vmul.f32 %v9452_v31, %v9452_v31 }
 0x29d   :  { %v1248_v34 = vpop.f32.mrf.mxu0  ;;  %2643 = vmatmul.mubr.bf16.gmra.mxu0 %v1423_v28 }
 0x29e   :  { %14056 = vst [vmem:[#allocation29_spill] sm:$0xff] %v9455_v33  ;;  %v9458_v36 = vadd.f32 %v1248_v34, %v9307_v48  ;;  %1469 = vrot.lane.b32.xlu1 %v9455_v33, %s8953_s25  ;;  %1531 = vrot.lane.b32.xlu0 %v9452_v31, %s8953_s25  ;;  %v1373_v39 = vmul.f32 %v9455_v33, %v9455_v33 }
 0x29f   :  { %v1252_v37 = vpop.f32.mrf.mxu0 }
 0x2a0   :  { %14057 = vst [vmem:[#allocation30_spill] sm:$0xff] %v9458_v36  ;;  %v9467_v40 = vadd.f32 %v1252_v37, %v9301_v5  ;;  %v1374_v45 = vmul.f32 %v9458_v36, %v9458_v36  ;;  %v1425_v51 = vpack.c.bf16 %v1373_v39, %v1371_v35 }
 0x2a1   :  { %v1254_v46 = vpop.f32.mrf.mxu0 }
 0x2a2   :  { %14058 = vst [vmem:[#allocation31_spill] sm:$0xff] %v9467_v40  ;;  %1533 = vrot.lane.b32.xlu1 %v9458_v36, %s8953_s25  ;;  %1471 = vrot.lane.b32.xlu0 %v9467_v40, %s8953_s25  ;;  %v1426_v49 = vpack.c.bf16 %v1374_v45, %v1372_v43  ;;  %v9480_v52 = vadd.f32 %v1254_v46, %v9307_v48 }
 0x2a3   :  { %v1256_v50 = vpop.f32.mrf.mxu0  ;;  %v1375_v3 = vmul.f32 %v9467_v40, %v9467_v40 }
 0x2a4   :  { %14059 = vst [vmem:[#allocation32_spill] sm:$0xff] %v9480_v52  ;;  %v9483_v53 = vadd.f32 %v1256_v50, %v9301_v5  ;;  %2652 = vmatprep.mubr.bf16.mxu0 %v1426_v49  ;;  %v1376_v63 = vmul.f32 %v9480_v52, %v9480_v52 }
 0x2a5   :  { %v1258_v54 = vpop.f32.mrf.mxu0  ;;  %2653 = vmatmul.mubr.bf16.gmra.mxu0 %v1425_v51 }
 0x2a6   :  { %14060 = vst [vmem:[#allocation33_spill] sm:$0xff] %v9483_v53  ;;  %v9486_v55 = vadd.f32 %v1258_v54, %v9307_v48  ;;  %1473 = vrot.lane.b32.xlu1 %v9483_v53, %s8953_s25  ;;  %1535 = vrot.lane.b32.xlu0 %v9480_v52, %s8953_s25  ;;  %v1377_v60 = vmul.f32 %v9483_v53, %v9483_v53 }
 0x2a7   :  { %v1262_v58 = vpop.f32.mrf.mxu0 }
 0x2a8   :  { %14061 = vst [vmem:[#allocation34_spill] sm:$0xff] %v9486_v55  ;;  %v9495_v61 = vadd.f32 %v1262_v58, %v9301_v5  ;;  %v1378_v1 = vmul.f32 %v9486_v55, %v9486_v55  ;;  %v1427_v7 = vpack.c.bf16 %v1377_v60, %v1375_v3 }
 0x2a9   :  { %v1264_v2 = vpop.f32.mrf.mxu0 }
 0x2aa   :  { %14062 = vst [vmem:[#allocation35_spill] sm:$0xff] %v9495_v61  ;;  %1537 = vrot.lane.b32.xlu1 %v9486_v55, %s8953_s25  ;;  %1475 = vrot.lane.b32.xlu0 %v9495_v61, %s8953_s25  ;;  %v1428_v4 = vpack.c.bf16 %v1378_v1, %v1376_v63  ;;  %v9508_v13 = vadd.f32 %v1264_v2, %v9307_v48 }
 0x2ab   :  { %v1266_v38 = vpop.f32.mrf.mxu0  ;;  %v1379_v34 = vmul.f32 %v9495_v61, %v9495_v61 }
 0x2ac   :  { %14063 = vst [vmem:[#allocation36_spill] sm:$0xff] %v9508_v13  ;;  %v9511_v16 = vadd.f32 %v1266_v38, %v9301_v5  ;;  %2662 = vmatprep.mubr.bf16.mxu0 %v1428_v4  ;;  %v1380_v24 = vmul.f32 %v9508_v13, %v9508_v13 }
 0x2ad   :  { %v1268_v17 = vpop.f32.mrf.mxu0  ;;  %2663 = vmatmul.mubr.bf16.gmra.mxu0 %v1427_v7 }
 0x2ae   :  { %14064 = vst [vmem:[#allocation37_spill] sm:$0xff] %v9511_v16  ;;  %v9514_v19 = vadd.f32 %v1268_v17, %v9307_v48  ;;  %1477 = vrot.lane.b32.xlu1 %v9511_v16, %s8953_s25  ;;  %1539 = vrot.lane.b32.xlu0 %v9508_v13, %s8953_s25  ;;  %v1381_v21 = vmul.f32 %v9511_v16, %v9511_v16 }
 0x2af   :  { %v1272_v20 = vpop.f32.mrf.mxu0 }
 0x2b0   :  { %14065 = vst [vmem:[#allocation38_spill] sm:$0xff] %v9514_v19  ;;  %v9523_v22 = vadd.f32 %v1272_v20, %v9301_v5  ;;  %v1382_v26 = vmul.f32 %v9514_v19, %v9514_v19  ;;  %v1429_v43 = vpack.c.bf16 %v1381_v21, %v1379_v34 }
 0x2b1   :  { %v1274_v28 = vpop.f32.mrf.mxu0 }
 0x2b2   :  { %14066 = vst [vmem:[#allocation39_spill] sm:$0xff] %v9523_v22  ;;  %1541 = vrot.lane.b32.xlu1 %v9514_v19, %s8953_s25  ;;  %1479 = vrot.lane.b32.xlu0 %v9523_v22, %s8953_s25  ;;  %v1430_v37 = vpack.c.bf16 %v1382_v26, %v1380_v24  ;;  %v9536_v45 = vadd.f32 %v1274_v28, %v9307_v48 }
 0x2b3   :  { %v1276_v39 = vpop.f32.mrf.mxu0  ;;  %v1383_v1 = vmul.f32 %v9523_v22, %v9523_v22 }
 0x2b4   :  { %14067 = vst [vmem:[#allocation40_spill] sm:$0xff] %v9536_v45  ;;  %v9539_v46 = vadd.f32 %v1276_v39, %v9301_v5  ;;  %2672 = vmatprep.mubr.bf16.mxu0 %v1430_v37  ;;  %v1384_v58 = vmul.f32 %v9536_v45, %v9536_v45 }
 0x2b5   :  { %v1278_v35 = vpop.f32.mrf.mxu0  ;;  %2673 = vmatmul.mubr.bf16.gmra.mxu0 %v1429_v43 }
 0x2b6   :  { %14068 = vst [vmem:[#allocation41_spill] sm:$0xff] %v9539_v46  ;;  %v9542_v49 = vadd.f32 %v1278_v35, %v9307_v48  ;;  %1481 = vrot.lane.b32.xlu1 %v9539_v46, %s8953_s25  ;;  %1543 = vrot.lane.b32.xlu0 %v9536_v45, %s8953_s25  ;;  %v1385_v51 = vmul.f32 %v9539_v46, %v9539_v46 }
 0x2b7   :  { %v1282_v50 = vpop.f32.mrf.mxu0 }
 0x2b8   :  { %14069 = vst [vmem:[#allocation42_spill] sm:$0xff] %v9542_v49  ;;  %v9551_v54 = vadd.f32 %v1282_v50, %v9301_v5  ;;  %v1386_v60 = vmul.f32 %v9542_v49, %v9542_v49  ;;  %v1431_v4 = vpack.c.bf16 %v1385_v51, %v1383_v1 }
 0x2b9   :  { %v1284_v63 = vpop.f32.mrf.mxu0 }
 0x2ba   :  { %14070 = vst [vmem:[#allocation43_spill] sm:$0xff] %v9551_v54  ;;  %1545 = vrot.lane.b32.xlu1 %v9542_v49, %s8953_s25  ;;  %1483 = vrot.lane.b32.xlu0 %v9551_v54, %s8953_s25  ;;  %v1432_v2 = vpack.c.bf16 %v1386_v60, %v1384_v58  ;;  %v9564_v38 = vadd.f32 %v1284_v63, %v9307_v48 }
 0x2bb   :  { %v1286_v3 = vpop.f32.mrf.mxu0  ;;  %v1387_v39 = vmul.f32 %v9551_v54, %v9551_v54 }
 0x2bc   :  { %14071 = vst [vmem:[#allocation44_spill] sm:$0xff] %v9564_v38  ;;  %v9567_v7 = vadd.f32 %v1286_v3, %v9301_v5  ;;  %2682 = vmatprep.mubr.bf16.mxu0 %v1432_v2  ;;  %v1388_v28 = vmul.f32 %v9564_v38, %v9564_v38 }
 0x2bd   :  { %v1288_v17 = vpop.f32.mrf.mxu0  ;;  %2683 = vmatmul.mubr.bf16.gmra.mxu0 %v1431_v4 }
 0x2be   :  { %14072 = vst [vmem:[#allocation45_spill] sm:$0xff] %v9567_v7  ;;  %v9570_v20 = vadd.f32 %v1288_v17, %v9307_v48  ;;  %1485 = vrot.lane.b32.xlu1 %v9567_v7, %s8953_s25  ;;  %1547 = vrot.lane.b32.xlu0 %v9564_v38, %s8953_s25  ;;  %v1389_v24 = vmul.f32 %v9567_v7, %v9567_v7 }
 0x2bf   :  { %v1292_v21 = vpop.f32.mrf.mxu0 }
 0x2c0   :  { %14073 = vst [vmem:[#allocation46_spill] sm:$0xff] %v9570_v20  ;;  %v9579_v26 = vadd.f32 %v1292_v21, %v9301_v5  ;;  %v1390_v34 = vmul.f32 %v9570_v20, %v9570_v20  ;;  %v1433_v50 = vpack.c.bf16 %v1389_v24, %v1387_v39 }
 0x2c1   :  { %v1294_v37 = vpop.f32.mrf.mxu0 }
 0x2c2   :  { %14074 = vst [vmem:[#allocation47_spill] sm:$0xff] %v9579_v26  ;;  %1549 = vrot.lane.b32.xlu1 %v9570_v20, %s8953_s25  ;;  %1487 = vrot.lane.b32.xlu0 %v9579_v26, %s8953_s25  ;;  %v1434_v43 = vpack.c.bf16 %v1390_v34, %v1388_v28  ;;  %v9592_v51 = vadd.f32 %v1294_v37, %v9307_v48 }
 0x2c3   :  { %v1296_v35 = vpop.f32.mrf.mxu0  ;;  %v1391_v24 = vmul.f32 %v9579_v26, %v9579_v26 }
 0x2c4   :  { %14075 = vst [vmem:[#allocation48_spill] sm:$0xff] %v9592_v51  ;;  %v9595_v58 = vadd.f32 %v1296_v35, %v9301_v5  ;;  %2692 = vmatprep.mubr.bf16.mxu0 %v1434_v43  ;;  %v1392_v4 = vmul.f32 %v9592_v51, %v9592_v51 }
 0x2c5   :  { %v1298_v60 = vpop.f32.mrf.mxu0  ;;  %2693 = vmatmul.mubr.bf16.gmra.mxu0 %v1433_v50 }
 0x2c6   :  { %14076 = vst [vmem:[#allocation49_spill] sm:$0xff] %v9595_v58  ;;  %v9598_v63 = vadd.f32 %v1298_v60, %v9307_v48  ;;  %1489 = vrot.lane.b32.xlu1 %v9595_v58, %s8953_s25  ;;  %1551 = vrot.lane.b32.xlu0 %v9592_v51, %s8953_s25  ;;  %v1393_v2 = vmul.f32 %v9595_v58, %v9595_v58 }
 0x2c7   :  { %v1302_v1 = vpop.f32.mrf.mxu0 }
 0x2c8   :  { %14077 = vst [vmem:[#allocation50_spill] sm:$0xff] %v9598_v63  ;;  %v9607_v3 = vadd.f32 %v1302_v1, %v9301_v5  ;;  %v1394_v17 = vmul.f32 %v9598_v63, %v9598_v63  ;;  %v1435_v37 = vpack.c.bf16 %v1393_v2, %v1391_v24 }
 0x2c9   :  { %v1304_v21 = vpop.f32.mrf.mxu0 }
 0x2ca   :  { %14078 = vst [vmem:[#allocation51_spill] sm:$0xff] %v9607_v3  ;;  %1553 = vrot.lane.b32.xlu1 %v9598_v63, %s8953_s25  ;;  %1491 = vrot.lane.b32.xlu0 %v9607_v3, %s8953_s25  ;;  %v1436_v28 = vpack.c.bf16 %v1394_v17, %v1392_v4  ;;  %v9620_v39 = vadd.f32 %v1304_v21, %v9307_v48 }
 0x2cb   :  { %v1306_v34 = vpop.f32.mrf.mxu0  ;;  %v1395_v24 = vmul.f32 %v9607_v3, %v9607_v3 }
 0x2cc   :  { %14079 = vst [vmem:[#allocation52_spill] sm:$0xff] %v9620_v39  ;;  %v9623_v43 = vadd.f32 %v1306_v34, %v9301_v5  ;;  %2702 = vmatprep.mubr.bf16.mxu0 %v1436_v28  ;;  %v1396_v4 = vmul.f32 %v9620_v39, %v9620_v39 }
 0x2cd   :  { %v1308_v35 = vpop.f32.mrf.mxu0  ;;  %2703 = vmatmul.mubr.bf16.gmra.mxu0 %v1435_v37 }
 0x2ce   :  { %14080 = vst [vmem:[#allocation53_spill] sm:$0xff] %v9623_v43  ;;  %v9626_v50 = vadd.f32 %v1308_v35, %v9307_v48  ;;  %1493 = vrot.lane.b32.xlu1 %v9623_v43, %s8953_s25  ;;  %1555 = vrot.lane.b32.xlu0 %v9620_v39, %s8953_s25  ;;  %v1397_v1 = vmul.f32 %v9623_v43, %v9623_v43 }
 0x2cf   :  { %v1312_v60 = vpop.f32.mrf.mxu0 }
 0x2d0   :  { %14081 = vst [vmem:[#allocation54_spill] sm:$0xff] %v9626_v50  ;;  %v9635_v2 = vadd.f32 %v1312_v60, %v9301_v5  ;;  %v1398_v17 = vmul.f32 %v9626_v50, %v9626_v50  ;;  %v1437_v37 = vpack.c.bf16 %v1397_v1, %v1395_v24 }
 0x2d1   :  { %v1314_v21 = vpop.f32.mrf.mxu0 }
 0x2d2   :  { %14082 = vst [vmem:[#allocation55_spill] sm:$0xff] %v9635_v2  ;;  %1557 = vrot.lane.b32.xlu1 %v9626_v50, %s8953_s25  ;;  %1495 = vrot.lane.b32.xlu0 %v9635_v2, %s8953_s25  ;;  %v1438_v28 = vpack.c.bf16 %v1398_v17, %v1396_v4  ;;  %v9648_v35 = vadd.f32 %v1314_v21, %v9307_v48 }
 0x2d3   :  { %v1316_v34 = vpop.f32.mrf.mxu0 }
 0x2d4   :  { %14083 = vst [vmem:[#allocation56_spill] sm:$0xff] %v9648_v35  ;;  %v9651_v60 = vadd.f32 %v1316_v34, %v9301_v5  ;;  %2712 = vmatprep.mubr.bf16.mxu0 %v1438_v28  ;;  %v1400_v21 = vmul.f32 %v9648_v35, %v9648_v35  ;;  %v1399_v28 = vmul.f32 %v9635_v2, %v9635_v2 }
 0x2d5   :  { %v1318_v27 = vpop.f32.mrf.mxu0  ;;  %2713 = vmatmul.mubr.bf16.gmra.mxu0 %v1437_v37 }
 0x2d6   :  { %14084 = vst [vmem:[#allocation57_spill] sm:$0xff] %v9651_v60  ;;  %v9654_v29 = vadd.f32 %v1318_v27, %v9307_v48  ;;  %1497 = vrot.lane.b32.xlu1 %v9651_v60, %s8953_s25  ;;  %1559 = vrot.lane.b32.xlu0 %v9648_v35, %s8953_s25  ;;  %v1401_v1 = vmul.f32 %v9651_v60, %v9651_v60 }
 0x2d7   :  { %v1322_v4 = vpop.f32.mrf.mxu0 }
 0x2d8   :  { %14085 = vst [vmem:[#allocation58_spill] sm:$0xff] %v9654_v29  ;;  %v9663_v17 = vadd.f32 %v1322_v4, %v9301_v5  ;;  %v1402_v27 = vmul.f32 %v9654_v29, %v9654_v29  ;;  %v1439_v4 = vpack.c.bf16 %v1401_v1, %v1399_v28 }
 0x2d9   :  { %v1324_v24 = vpop.f32.mrf.mxu0 }
 0x2da   :  { %14086 = vst [vmem:[#allocation59_spill] sm:$0xff] %v9663_v17  ;;  %1561 = vrot.lane.b32.xlu1 %v9654_v29, %s8953_s25  ;;  %1499 = vrot.lane.b32.xlu0 %v9663_v17, %s8953_s25  ;;  %v1440_v34 = vpack.c.bf16 %v1402_v27, %v1400_v21  ;;  %v9676_v32 = vadd.f32 %v1324_v24, %v9307_v48 }
 0x2db   :  { %v1326_v37 = vpop.f32.mrf.mxu0 }
 0x2dc   :  { %14087 = vst [vmem:[#allocation60_spill] sm:$0xff] %v9676_v32  ;;  %v9679_v44 = vadd.f32 %v1326_v37, %v9301_v5  ;;  %2722 = vmatprep.mubr.bf16.mxu0 %v1440_v34  ;;  %v1404_v24 = vmul.f32 %v9676_v32, %v9676_v32  ;;  %v1403_v34 = vmul.f32 %v9663_v17, %v9663_v17 }
 0x2dd   :  { %v1328_v41 = vpop.f32.mrf.mxu0  ;;  %2723 = vmatmul.mubr.bf16.gmra.mxu0 %v1439_v4 }
 0x2de   :  { %14088 = vst [vmem:[#allocation61_spill] sm:$0xff] %v9679_v44  ;;  %v9682_v42 = vadd.f32 %v1328_v41, %v9307_v48  ;;  %1501 = vrot.lane.b32.xlu1 %v9679_v44, %s8953_s25  ;;  %1563 = vrot.lane.b32.xlu0 %v9676_v32, %s8953_s25  ;;  %v1405_v1 = vmul.f32 %v9679_v44, %v9679_v44 }
 0x2df   :  { %v1332_v21 = vpop.f32.mrf.mxu0 }
 0x2e0   :  { %14089 = vst [vmem:[#allocation62_spill] sm:$0xff] %v9682_v42  ;;  %v9691_v27 = vadd.f32 %v1332_v21, %v9301_v5  ;;  %v1406_v41 = vmul.f32 %v9682_v42, %v9682_v42  ;;  %v1441_v21 = vpack.c.bf16 %v1405_v1, %v1403_v34 }
 0x2e1   :  { %v1334_v28 = vpop.f32.mrf.mxu0 }
 0x2e2   :  { %14090 = vst [vmem:[#allocation63_spill] sm:$0xff] %v9691_v27  ;;  %1565 = vrot.lane.b32.xlu1 %v9682_v42, %s8953_s25  ;;  %1503 = vrot.lane.b32.xlu0 %v9691_v27, %s8953_s25  ;;  %v1442_v37 = vpack.c.bf16 %v1406_v41, %v1404_v24  ;;  %v9704_v30 = vadd.f32 %v1334_v28, %v9307_v48 }
 0x2e3   :  { %v1336_v4 = vpop.f32.mrf.mxu0 }
 0x2e4   :  { %14091 = vst [vmem:[#allocation64_spill] sm:$0xff] %v9704_v30  ;;  %v9707_v25 = vadd.f32 %v1336_v4, %v9301_v5  ;;  %v9709_v23 = vpop.permute.xlu0 %1738  ;;  %2732 = vmatprep.mubr.bf16.mxu0 %v1442_v37  ;;  %v1408_v4 = vmul.f32 %v9704_v30, %v9704_v30 }
 0x2e5   :  { %14093 = vst [vmem:[#allocation66_spill] sm:$0xff] %v9709_v23  ;;  %v1338_v0 = vpop.f32.mrf.mxu0  ;;  %2733 = vmatmul.mubr.bf16.gmra.mxu0 %v1441_v21  ;;  %v1407_v21 = vmul.f32 %v9691_v27, %v9691_v27 }
 0x2e6   :  { %14092 = vst [vmem:[#allocation65_spill] sm:$0xff] %v9707_v25  ;;  %v9712_v15 = vadd.f32 %v1338_v0, %v9307_v48  ;;  %1505 = vrot.lane.b32.xlu1 %v9707_v25, %s8953_s25  ;;  %1567 = vrot.lane.b32.xlu0 %v9704_v30, %s8953_s25  ;;  %v1409_v0 = vmul.f32 %v9707_v25, %v9707_v25 }
 0x2e7   :  { %v1342_v1 = vpop.f32.mrf.mxu0 }
 0x2e8   :  { %14094 = vst [vmem:[#allocation67_spill] sm:$0xff] %v9712_v15  ;;  %v9719_v24 = vadd.f32 %v1342_v1, %v9301_v5  ;;  %v9721_v41 = vpop.permute.xlu1 %1740  ;;  %v9723_v28 = vpop.permute.xlu0 %1802  ;;  %v1410_v34 = vmul.f32 %v9712_v15, %v9712_v15  ;;  %v1443_v42 = vpack.c.bf16 %v1409_v0, %v1407_v21 }
 0x2e9   :  { %14096 = vst [vmem:[#allocation69_spill] sm:$0xff] %v9721_v41  ;;  %14097 = vst [vmem:[#allocation70_spill] sm:$0xff] %v9723_v28  ;;  %v1344_v37 = vpop.f32.mrf.mxu0 }
 0x2ea   :  { %14095 = vst [vmem:[#allocation68_spill] sm:$0xff] %v9719_v24  ;;  %1569 = vrot.lane.b32.xlu1 %v9712_v15, %s8953_s25  ;;  %1507 = vrot.lane.b32.xlu0 %v9719_v24, %s8953_s25  ;;  %v1444_v23 = vpack.c.bf16 %v1410_v34, %v1408_v4  ;;  %v9738_v28 = vadd.f32 %v1344_v37, %v9307_v48 }
 0x2eb   :  { %v1346_v1 = vpop.f32.mrf.mxu0 }
 0x2ec   :  { %14098 = vst [vmem:[#allocation71_spill] sm:$0xff] %v9738_v28  ;;  %v9741_v41 = vadd.f32 %v1346_v1, %v9301_v5  ;;  %v9743_v25 = vpop.permute.xlu1 %1804  ;;  %v9745_v30 = vpop.permute.xlu0 %1742  ;;  %2742 = vmatprep.mubr.bf16.mxu0 %v1444_v23  ;;  %v1412_v37 = vmul.f32 %v9738_v28, %v9738_v28 }
 0x2ed   :  { %14100 = vst [vmem:[#allocation73_spill] sm:$0xff] %v9743_v25  ;;  %14101 = vst [vmem:[#allocation74_spill] sm:$0xff] %v9745_v30  ;;  %v1348_v15 = vpop.f32.mrf.mxu0  ;;  %2743 = vmatmul.mubr.bf16.gmra.mxu0 %v1443_v42  ;;  %v1411_v42 = vmul.f32 %v9719_v24, %v9719_v24  ;;  %v8788_v24 = vld [vmem:[#allocation2 + $0x470] ss:$8 sps:$4 sm:$0xff]  }
 0x2ee   :  { %14099 = vst [vmem:[#allocation72_spill] sm:$0xff] %v9741_v41  ;;  %v9748_v32 = vadd.f32 %v1348_v15, %v9307_v48  ;;  %1509 = vrot.lane.b32.xlu1 %v9741_v41, %s8953_s25  ;;  %1571 = vrot.lane.b32.xlu0 %v9738_v28, %s8953_s25  ;;  %v1413_v48 = vmul.f32 %v9741_v41, %v9741_v41 }
 0x2f0   :  { %14102 = vst [vmem:[#allocation75_spill] sm:$0xff] %v9748_v32  ;;  %v9754_v34 = vpop.permute.xlu1 %1744  ;;  %v9756_v5 = vpop.permute.xlu0 %1806  ;;  %v1414_v23 = vmul.f32 %v9748_v32, %v9748_v32  ;;  %v1445_v21 = vpack.c.bf16 %v1413_v48, %v1411_v42 }
 0x2f1   :  { %14103 = vst [vmem:[#allocation76_spill] sm:$0xff] %v9754_v34  ;;  %14104 = vst [vmem:[#allocation77_spill] sm:$0xff] %v9756_v5 }
 0x2f2   :  { %1573 = vrot.lane.b32.xlu1 %v9748_v32, %s8953_s25  ;;  %v1446_v15 = vpack.c.bf16 %v1414_v23, %v1412_v37  ;;  %1750 = vrot.lane.b32.xlu0 %v9383_v47, %s8952_s1 }
 0x2f4   :  { %v9770_v0 = vpop.permute.xlu1 %1808  ;;  %v9772_v4 = vpop.permute.xlu0 %1746  ;;  %2752 = vmatprep.mubr.bf16.mxu0 %v1446_v15  ;;  %v14110_v15 = vlaneseq }
 0x2f5   :  { %14105 = vst [vmem:[#allocation78_spill] sm:$0xff] %v9770_v0  ;;  %14106 = vst [vmem:[#allocation79_spill] sm:$0xff] %v9772_v4  ;;  %2753 = vmatmul.mubr.bf16.gmra.mxu0 %v1445_v21 }
 0x2f6   :  { %1752 = vrot.lane.b32.xlu1 %v9399_v57, %s8952_s1  ;;  %1814 = vrot.lane.b32.xlu0 %v9396_v56, %s8952_s1  ;;  %v9789_v42 = vand.u32 127, %v14110_v15 }
 0x2f8   :  { %v9778_v1 = vpop.permute.xlu1 %1748  ;;  %v9780_v37 = vpop.permute.xlu0 %1810  ;;  %vm1577_vm1 = vcmp.lt.s32.totalorder %v9789_v42, 32  ;;  %vm1866_vm2 = vcmp.lt.s32.totalorder %v9789_v42, 64  ;;  %vm2155_vm3 = vcmp.lt.s32.totalorder %v9789_v42, 96 }
 0x2f9   :  { %14107 = vst [vmem:[#allocation80_spill] sm:$0xff] %v9778_v1  ;;  %14108 = vst [vmem:[#allocation81_spill] sm:$0xff] %v9780_v37 }
 0x2fa   :  { %1816 = vrot.lane.b32.xlu1 %v9402_v59, %s8952_s1  ;;  %1754 = vrot.lane.b32.xlu0 %v9411_v62, %s8952_s1 }
 0x2fc   :  { %v9786_v23 = vpop.permute.xlu1 %1812  ;;  %v1460_v48 = vpop.permute.xlu0 %1459 }
 0x2fd   :  { %14109 = vst [vmem:[#allocation82_spill] sm:$0xff] %v9786_v23 }
 0x2fe   :  { %1756 = vrot.lane.b32.xlu1 %v9427_v11, %s8952_s1  ;;  %1818 = vrot.lane.b32.xlu0 %v9424_v8, %s8952_s1 }
 0x300   :  { %v1524_v21 = vpop.permute.xlu1 %1523  ;;  %v1462_v4 = vpop.permute.xlu0 %1461 }
 0x301   :  { %v1584_v37 = vsel %vm1577_vm1, %v1460_v48, %v1524_v21  ;;  %v1616_v15 = vsel %vm1577_vm1, %v1524_v21, %v1460_v48 }
 0x302   :  { %1820 = vrot.lane.b32.xlu1 %v9430_v14, %s8952_s1  ;;  %1758 = vrot.lane.b32.xlu0 %v9439_v18, %s8952_s1  ;;  %v1654_v34 = vmul.f32 %v1616_v15, %v9383_v47  ;;  %v1655_v0 = vmul.f32 %v1584_v37, %v9396_v56 }
 0x304   :  { %v1526_v1 = vpop.permute.xlu1 %1525  ;;  %v1464_v23 = vpop.permute.xlu0 %1463 }
 0x305   :  { %v1585_v30 = vsel %vm1577_vm1, %v1462_v4, %v1526_v1  ;;  %v1617_v5 = vsel %vm1577_vm1, %v1526_v1, %v1462_v4  ;;  %v8793_v4 = vld [vmem:[#allocation2 + $0x464] ss:$8 sps:$4 sm:$0xff]   ;;  %v8791_v1 = vld [vmem:[#allocation2 + $0x460] ss:$8 sps:$4 sm:$0xff]  }
 0x306   :  { %v1656_v32 = vmul.f32 %v1617_v5, %v9399_v57  ;;  %v1657_v41 = vmul.f32 %v1585_v30, %v9402_v59  ;;  %1760 = vrot.lane.b32.xlu1 %v9455_v33, %s8952_s1  ;;  %1822 = vrot.lane.b32.xlu0 %v9452_v31, %s8952_s1 }
 0x308   :  { %v1712_v48 = vpack.c.bf16 %v1656_v32, %v1654_v34  ;;  %v1466_v21 = vpop.permute.xlu1 %1465  ;;  %v1528_v28 = vpop.permute.xlu0 %1527  ;;  %v1713_v25 = vpack.c.bf16 %v1657_v41, %v1655_v0  ;;  %v8796_v0 = vld [vmem:[#allocation2 + $0x454] ss:$8 sps:$4 sm:$0xff]  }
 0x309   :  { %v1586_v5 = vsel %vm1577_vm1, %v1464_v23, %v1528_v28  ;;  %v1618_v30 = vsel %vm1577_vm1, %v1528_v28, %v1464_v23 }
 0x30a   :  { %1824 = vrot.lane.b32.xlu1 %v9458_v36, %s8952_s1  ;;  %2792 = vmatprep.mubr.bf16.mxu1 %v1713_v25  ;;  %v1658_v37 = vmul.f32 %v1618_v30, %v9411_v62  ;;  %v1659_v28 = vmul.f32 %v1586_v5, %v9424_v8  ;;  %v8794_v30 = vld [vmem:[#allocation2 + $0x450] ss:$8 sps:$4 sm:$0xff]   ;;  %v8799_v5 = vld [vmem:[#allocation2 + $0x444] ss:$8 sps:$4 sm:$0xff]  }
 0x30b   :  { %1762 = vrot.lane.b32.xlu0 %v9467_v40, %s8952_s1  ;;  %2793 = vmatmul.mubr.bf16.vlgmr.msra.gmra.mxu1 %v1712_v48  ;;  %v8805_v48 = vld [vmem:[#allocation2 + $0x374] ss:$8 sps:$4 sm:$0xff]  }
 0x30c   :  { %5609 = vmatpush1.bf16.msra.mxu1 %v8788_v24  ;;  %v1530_v32 = vpop.permute.xlu1 %1529  ;;  %v1468_v34 = vpop.permute.xlu0 %1467  ;;  %v8803_v24 = vld [vmem:[#allocation2 + $0x370] ss:$8 sps:$4 sm:$0xff]   ;;  %4089 = vmatprep.subr.bf16.mxu0 %v8805_v48 }
 0x30d   :  { %v1587_v41 = vsel %vm1577_vm1, %v1466_v21, %v1530_v32  ;;  %v1619_v25 = vsel %vm1577_vm1, %v1530_v32, %v1466_v21  ;;  %5610 = vmatprep.subr.bf16.mxu1 %v8793_v4  ;;  %4090 = vmatpush1.bf16.msra.mxu0 %v8803_v24 }
 0x30e   :  { %v1660_v23 = vmul.f32 %v1619_v25, %v9427_v11  ;;  %v1661_v15 = vmul.f32 %v1587_v41, %v9430_v14  ;;  %1764 = vrot.lane.b32.xlu1 %v9483_v53, %s8952_s1 }
 0x30f   :  { %1826 = vrot.lane.b32.xlu0 %v9480_v52, %s8952_s1 }
 0x310   :  { %v1470_v47 = vpop.permute.xlu1 %1469  ;;  %v1532_v21 = vpop.permute.xlu0 %1531  ;;  %v1715_v4 = vpack.c.bf16 %v1661_v15, %v1659_v28  ;;  %v1714_v32 = vpack.c.bf16 %v1660_v23, %v1658_v37  ;;  %5611 = vmatpush1.bf16.msra.mxu1 %v8791_v1  ;;  %v8802_v15 = vld [vmem:[#allocation2 + $0x434] ss:$8 sps:$4 sm:$0xff]  }
 0x311   :  { %5612 = vmatprep.subr.bf16.mxu1 %v8796_v0  ;;  %v1588_v41 = vsel %vm1577_vm1, %v1468_v34, %v1532_v21  ;;  %v1620_v25 = vsel %vm1577_vm1, %v1532_v21, %v1468_v34  ;;  %v8797_v0 = vld [vmem:[#allocation2 + $0x440] ss:$8 sps:$4 sm:$0xff]  }
 0x312   :  { %1828 = vrot.lane.b32.xlu1 %v9486_v55, %s8952_s1  ;;  %2802 = vmatprep.mubr.bf16.mxu1 %v1715_v4  ;;  %v1662_v24 = vmul.f32 %v1620_v25, %v9439_v18  ;;  %v1663_v34 = vmul.f32 %v1588_v41, %v9452_v31  ;;  %v8806_v25 = vld [vmem:[#allocation2 + $0x360] ss:$8 sps:$4 sm:$0xff]  }
 0x313   :  { %1766 = vrot.lane.b32.xlu0 %v9495_v61, %s8952_s1  ;;  %2803 = vmatmul.mubr.bf16.gmra.mxu1 %v1714_v32 }
 0x314   :  { %v1534_v1 = vpop.permute.xlu1 %1533  ;;  %v1472_v37 = vpop.permute.xlu0 %1471  ;;  %5613 = vmatpush1.bf16.msra.mxu1 %v8794_v30 }
 0x315   :  { %v1589_v28 = vsel %vm1577_vm1, %v1470_v47, %v1534_v1  ;;  %v1621_v23 = vsel %vm1577_vm1, %v1534_v1, %v1470_v47  ;;  %5614 = vmatprep.subr.bf16.mxu1 %v8799_v5  ;;  %v8800_v5 = vld [vmem:[#allocation2 + $0x430] ss:$8 sps:$4 sm:$0xff]   ;;  %v8808_v1 = vld [vmem:[#allocation2 + $0x364] ss:$8 sps:$4 sm:$0xff]  }
 0x316   :  { %v1664_v48 = vmul.f32 %v1621_v23, %v9455_v33  ;;  %v1665_v21 = vmul.f32 %v1589_v28, %v9458_v36  ;;  %1768 = vrot.lane.b32.xlu1 %v9511_v16, %s8952_s1  ;;  %4091 = vmatprep.subr.bf16.mxu0 %v8808_v1 }
 0x317   :  { %1830 = vrot.lane.b32.xlu0 %v9508_v13, %s8952_s1  ;;  %4092 = vmatpush1.bf16.msra.mxu0 %v8806_v25  ;;  %v8811_v25 = vld [vmem:[#allocation2 + $0x354] ss:$8 sps:$4 sm:$0xff]  }
 0x318   :  { %v1474_v4 = vpop.permute.xlu1 %1473  ;;  %v1536_v32 = vpop.permute.xlu0 %1535  ;;  %v1717_v30 = vpack.c.bf16 %v1665_v21, %v1663_v34  ;;  %v1716_v47 = vpack.c.bf16 %v1664_v48, %v1662_v24  ;;  %5615 = vmatpush1.bf16.msra.mxu1 %v8797_v0  ;;  %4093 = vmatprep.subr.bf16.mxu0 %v8811_v25 }
 0x319   :  { %5616 = vmatprep.subr.bf16.mxu1 %v8802_v15  ;;  %v1590_v41 = vsel %vm1577_vm1, %v1472_v37, %v1536_v32  ;;  %v1622_v28 = vsel %vm1577_vm1, %v1536_v32, %v1472_v37 }
 0x31a   :  { %1832 = vrot.lane.b32.xlu1 %v9514_v19, %s8952_s1  ;;  %2812 = vmatprep.mubr.bf16.mxu1 %v1717_v30  ;;  %v1666_v34 = vmul.f32 %v1622_v28, %v9467_v40  ;;  %v1667_v48 = vmul.f32 %v1590_v41, %v9480_v52 }
 0x31b   :  { %1770 = vrot.lane.b32.xlu0 %v9523_v22, %s8952_s1  ;;  %2813 = vmatmul.mubr.bf16.gmra.mxu1 %v1716_v47 }
 0x31c   :  { %v1538_v23 = vpop.permute.xlu1 %1537  ;;  %v1476_v0 = vpop.permute.xlu0 %1475  ;;  %5617 = vmatpush1.bf16.msra.mxu1 %v8800_v5 }
 0x31d   :  { %v1591_v15 = vsel %vm1577_vm1, %v1474_v4, %v1538_v23  ;;  %v1623_v24 = vsel %vm1577_vm1, %v1538_v23, %v1474_v4  ;;  %v8809_v4 = vld [vmem:[#allocation2 + $0x350] ss:$8 sps:$4 sm:$0xff]  }
 0x31e   :  { %v1668_v37 = vmul.f32 %v1623_v24, %v9483_v53  ;;  %v1669_v21 = vmul.f32 %v1591_v15, %v9486_v55  ;;  %1772 = vrot.lane.b32.xlu1 %v9539_v46, %s8952_s1  ;;  %4094 = vmatpush1.bf16.msra.mxu0 %v8809_v4 }
 0x31f   :  { %1834 = vrot.lane.b32.xlu0 %v9536_v45, %s8952_s1 }
 0x320   :  { %v1478_v32 = vpop.permute.xlu1 %1477  ;;  %v1540_v30 = vpop.permute.xlu0 %1539  ;;  %v1719_v47 = vpack.c.bf16 %v1669_v21, %v1667_v48  ;;  %v1718_v5 = vpack.c.bf16 %v1668_v37, %v1666_v34  ;;  %v8812_v21 = vld [vmem:[#allocation2 + $0x420] ss:$8 sps:$4 sm:$0xff]  }
 0x321   :  { %v1592_v1 = vsel %vm1577_vm1, %v1476_v0, %v1540_v30  ;;  %v1624_v41 = vsel %vm1577_vm1, %v1540_v30, %v1476_v0  ;;  %v8814_v30 = vld [vmem:[#allocation2 + $0x424] ss:$8 sps:$4 sm:$0xff]  }
 0x322   :  { %1836 = vrot.lane.b32.xlu1 %v9542_v49, %s8952_s1  ;;  %2822 = vmatprep.mubr.bf16.mxu1 %v1719_v47  ;;  %v1670_v34 = vmul.f32 %v1624_v41, %v9495_v61  ;;  %v1671_v48 = vmul.f32 %v1592_v1, %v9508_v13 }
 0x323   :  { %1774 = vrot.lane.b32.xlu0 %v9551_v54, %s8952_s1  ;;  %2823 = vmatmul.mubr.bf16.gmra.mxu1 %v1718_v5 }
 0x324   :  { %v1542_v28 = vpop.permute.xlu1 %1541  ;;  %v1480_v23 = vpop.permute.xlu0 %1479  ;;  %5618 = vmatprep.subr.bf16.mxu1 %v8814_v30 }
 0x325   :  { %v1593_v15 = vsel %vm1577_vm1, %v1478_v32, %v1542_v28  ;;  %v1625_v24 = vsel %vm1577_vm1, %v1542_v28, %v1478_v32  ;;  %5619 = vmatpush1.bf16.msra.mxu1 %v8812_v21  ;;  %v8817_v21 = vld [vmem:[#allocation2 + $0x344] ss:$8 sps:$4 sm:$0xff]  }
 0x326   :  { %v1672_v0 = vmul.f32 %v1625_v24, %v9511_v16  ;;  %v1673_v37 = vmul.f32 %v1593_v15, %v9514_v19  ;;  %1776 = vrot.lane.b32.xlu1 %v9567_v7, %s8952_s1  ;;  %4095 = vmatprep.subr.bf16.mxu0 %v8817_v21 }
 0x327   :  { %1838 = vrot.lane.b32.xlu0 %v9564_v38, %s8952_s1 }
 0x328   :  { %v1482_v47 = vpop.permute.xlu1 %1481  ;;  %v1544_v5 = vpop.permute.xlu0 %1543  ;;  %v1721_v32 = vpack.c.bf16 %v1673_v37, %v1671_v48  ;;  %v1720_v4 = vpack.c.bf16 %v1672_v0, %v1670_v34  ;;  %v8815_v37 = vld [vmem:[#allocation2 + $0x340] ss:$8 sps:$4 sm:$0xff]  }
 0x329   :  { %v1594_v25 = vsel %vm1577_vm1, %v1480_v23, %v1544_v5  ;;  %v1626_v1 = vsel %vm1577_vm1, %v1544_v5, %v1480_v23  ;;  %4096 = vmatpush1.bf16.msra.mxu0 %v8815_v37 }
 0x32a   :  { %1840 = vrot.lane.b32.xlu1 %v9570_v20, %s8952_s1  ;;  %2832 = vmatprep.mubr.bf16.mxu1 %v1721_v32  ;;  %v1674_v34 = vmul.f32 %v1626_v1, %v9523_v22  ;;  %v1675_v48 = vmul.f32 %v1594_v25, %v9536_v45 }
 0x32b   :  { %1778 = vrot.lane.b32.xlu0 %v9579_v26, %s8952_s1  ;;  %2833 = vmatmul.mubr.bf16.gmra.mxu1 %v1720_v4 }
 0x32c   :  { %v1546_v41 = vpop.permute.xlu1 %1545  ;;  %v1484_v28 = vpop.permute.xlu0 %1483 }
 0x32d   :  { %v1595_v15 = vsel %vm1577_vm1, %v1482_v47, %v1546_v41  ;;  %v1627_v24 = vsel %vm1577_vm1, %v1546_v41, %v1482_v47 }
 0x32e   :  { %v1676_v0 = vmul.f32 %v1627_v24, %v9539_v46  ;;  %v1677_v23 = vmul.f32 %v1595_v15, %v9542_v49  ;;  %1780 = vrot.lane.b32.xlu1 %v9595_v58, %s8952_s1 }
 0x32f   :  { %1842 = vrot.lane.b32.xlu0 %v9592_v51, %s8952_s1 }
 0x330   :  { %v1486_v30 = vpop.permute.xlu1 %1485  ;;  %v1548_v5 = vpop.permute.xlu0 %1547  ;;  %v1723_v32 = vpack.c.bf16 %v1677_v23, %v1675_v48  ;;  %v1722_v47 = vpack.c.bf16 %v1676_v0, %v1674_v34  ;;  %v8820_v23 = vld [vmem:[#allocation2 + $0x334] ss:$8 sps:$4 sm:$0xff]  }
 0x331   :  { %v1596_v4 = vsel %vm1577_vm1, %v1484_v28, %v1548_v5  ;;  %v1628_v25 = vsel %vm1577_vm1, %v1548_v5, %v1484_v28  ;;  %4097 = vmatprep.subr.bf16.mxu0 %v8820_v23  ;;  %v8821_v23 = vld [vmem:[#allocation2 + $0x320] ss:$8 sps:$4 sm:$0xff]  }
 0x332   :  { %1844 = vrot.lane.b32.xlu1 %v9598_v63, %s8952_s1  ;;  %2842 = vmatprep.mubr.bf16.mxu1 %v1723_v32  ;;  %v1678_v34 = vmul.f32 %v1628_v25, %v9551_v54  ;;  %v1679_v48 = vmul.f32 %v1596_v4, %v9564_v38  ;;  %v8857_v54 = vld [vmem:[#allocation2 + $0x380] ss:$8 sps:$4 sm:$0xff]  }
 0x333   :  { %1782 = vrot.lane.b32.xlu0 %v9607_v3, %s8952_s1  ;;  %2843 = vmatmul.mubr.bf16.gmra.mxu1 %v1722_v47 }
 0x334   :  { %v1550_v1 = vpop.permute.xlu1 %1549  ;;  %v1488_v41 = vpop.permute.xlu0 %1487 }
 0x335   :  { %v1597_v15 = vsel %vm1577_vm1, %v1486_v30, %v1550_v1  ;;  %v1629_v24 = vsel %vm1577_vm1, %v1550_v1, %v1486_v30  ;;  %v8818_v30 = vld [vmem:[#allocation2 + $0x330] ss:$8 sps:$4 sm:$0xff]  }
 0x336   :  { %v1680_v0 = vmul.f32 %v1629_v24, %v9567_v7  ;;  %v1681_v28 = vmul.f32 %v1597_v15, %v9570_v20  ;;  %1784 = vrot.lane.b32.xlu1 %v9623_v43, %s8952_s1  ;;  %4098 = vmatpush1.bf16.msra.mxu0 %v8818_v30 }
 0x337   :  { %1846 = vrot.lane.b32.xlu0 %v9620_v39, %s8952_s1 }
 0x338   :  { %v1490_v37 = vpop.permute.xlu1 %1489  ;;  %v1552_v21 = vpop.permute.xlu0 %1551  ;;  %v1725_v5 = vpack.c.bf16 %v1681_v28, %v1679_v48  ;;  %v1724_v32 = vpack.c.bf16 %v1680_v0, %v1678_v34  ;;  %v8823_v28 = vld [vmem:[#allocation2 + $0x324] ss:$8 sps:$4 sm:$0xff]  }
 0x339   :  { %v1598_v47 = vsel %vm1577_vm1, %v1488_v41, %v1552_v21  ;;  %v1630_v4 = vsel %vm1577_vm1, %v1552_v21, %v1488_v41  ;;  %4099 = vmatprep.subr.bf16.mxu0 %v8823_v28 }
 0x33a   :  { %1848 = vrot.lane.b32.xlu1 %v9626_v50, %s8952_s1  ;;  %2852 = vmatprep.mubr.bf16.mxu1 %v1725_v5  ;;  %v1682_v34 = vmul.f32 %v1630_v4, %v9579_v26  ;;  %v1683_v48 = vmul.f32 %v1598_v47, %v9592_v51  ;;  %v8829_v47 = vld [vmem:[#allocation2 + $0x314] ss:$8 sps:$4 sm:$0xff]  }
 0x33b   :  { %1786 = vrot.lane.b32.xlu0 %v9635_v2, %s8952_s1  ;;  %2853 = vmatmul.mubr.bf16.gmra.mxu1 %v1724_v32 }
 0x33c   :  { %v1554_v25 = vpop.permute.xlu1 %1553  ;;  %v1492_v1 = vpop.permute.xlu0 %1491  ;;  %4100 = vmatpush1.bf16.msra.mxu0 %v8821_v23 }
 0x33d   :  { %v1599_v15 = vsel %vm1577_vm1, %v1490_v37, %v1554_v25  ;;  %v1631_v24 = vsel %vm1577_vm1, %v1554_v25, %v1490_v37  ;;  %v8824_v25 = vld [vmem:[#allocation2 + $0x410] ss:$8 sps:$4 sm:$0xff]   ;;  %4101 = vmatprep.subr.bf16.mxu0 %v8829_v47 }
 0x33e   :  { %v1684_v0 = vmul.f32 %v1631_v24, %v9595_v58  ;;  %v1685_v41 = vmul.f32 %v1599_v15, %v9598_v63  ;;  %1788 = vrot.lane.b32.xlu1 %v9651_v60, %s8952_s1  ;;  %v8826_v15 = vld [vmem:[#allocation2 + $0x414] ss:$8 sps:$4 sm:$0xff]   ;;  %v8827_v24 = vld [vmem:[#allocation2 + $0x310] ss:$8 sps:$4 sm:$0xff]  }
 0x33f   :  { %1850 = vrot.lane.b32.xlu0 %v9648_v35, %s8952_s1  ;;  %5620 = vmatprep.subr.bf16.mxu1 %v8826_v15  ;;  %v14134_v58 = vld [vmem:[#allocation75_spill] sm:$0xff]  ;;  %v14139_v63 = vld [vmem:[#allocation78_spill] sm:$0xff] }
 0x340   :  { %v1494_v21 = vpop.permute.xlu1 %1493  ;;  %v1556_v5 = vpop.permute.xlu0 %1555  ;;  %v1727_v32 = vpack.c.bf16 %v1685_v41, %v1683_v48  ;;  %v1726_v37 = vpack.c.bf16 %v1684_v0, %v1682_v34  ;;  %4102 = vmatpush1.bf16.msra.mxu0 %v8827_v24  ;;  %5621 = vmatpush1.bf16.msra.mxu1 %v8824_v25 }
 0x341   :  { %v1632_v30 = vsel %vm1577_vm1, %v1556_v5, %v1492_v1  ;;  %v1600_v4 = vsel %vm1577_vm1, %v1492_v1, %v1556_v5 }
 0x342   :  { %1852 = vrot.lane.b32.xlu1 %v9654_v29, %s8952_s1  ;;  %2862 = vmatprep.mubr.bf16.mxu1 %v1727_v32  ;;  %v1686_v0 = vmul.f32 %v1632_v30, %v9607_v3  ;;  %v1687_v1 = vmul.f32 %v1600_v4, %v9620_v39  ;;  %v8832_v32 = vld [vmem:[#allocation2 + $0x304] ss:$8 sps:$4 sm:$0xff]   ;;  %v8835_v4 = vld [vmem:[#allocation2 + $0x3f4] ss:$8 sps:$4 sm:$0xff]   ;;  %v8851_v3 = vld [vmem:[#allocation2 + $0x400] ss:$8 sps:$4 sm:$0xff]  }
 0x343   :  { %1447 = vrot.lane.b32.xlu0 %v9304_v6, %s8953_s25  ;;  %2863 = vmatmul.mubr.bf16.gmra.mxu1 %v1726_v37  ;;  %v8830_v37 = vld [vmem:[#allocation2 + $0x300] ss:$8 sps:$4 sm:$0xff]   ;;  %v14132_v39 = vld [vmem:[#allocation71_spill] sm:$0xff] }
 0x344   :  { %v1558_v34 = vpop.permute.xlu1 %1557  ;;  %v1496_v48 = vpop.permute.xlu0 %1495  ;;  %4103 = vmatprep.subr.bf16.mxu0 %v8832_v32 }
 0x345   :  { %v1601_v41 = vsel %vm1577_vm1, %v1494_v21, %v1558_v34  ;;  %v1633_v28 = vsel %vm1577_vm1, %v1558_v34, %v1494_v21  ;;  %4104 = vmatpush1.bf16.msra.mxu0 %v8830_v37  ;;  %v8833_v34 = vld [vmem:[#allocation2 + $0x3f0] ss:$8 sps:$4 sm:$0xff]   ;;  %v8838_v37 = vld [vmem:[#allocation2 + $0x3e4] ss:$8 sps:$4 sm:$0xff]  }
 0x346   :  { %v1688_v23 = vmul.f32 %v1633_v28, %v9623_v43  ;;  %v1689_v5 = vmul.f32 %v1601_v41, %v9626_v50  ;;  %1449 = vrot.lane.b32.xlu1 %v9315_v10, %s8953_s25  ;;  %4105 = vmatprep.subr.bf16.mxu0 %v8835_v4 }
 0x347   :  { %1511 = vrot.lane.b32.xlu0 %v9312_v9, %s8953_s25 }
 0x348   :  { %v1498_v30 = vpop.permute.xlu1 %1497  ;;  %v1560_v47 = vpop.permute.xlu0 %1559  ;;  %v1729_v21 = vpack.c.bf16 %v1689_v5, %v1687_v1  ;;  %v1728_v15 = vpack.c.bf16 %v1688_v23, %v1686_v0 }
 0x349   :  { %v1602_v24 = vsel %vm1577_vm1, %v1496_v48, %v1560_v47  ;;  %v1634_v25 = vsel %vm1577_vm1, %v1560_v47, %v1496_v48  ;;  %4106 = vmatpush2.bf16.msra.mxu0 %v8833_v34  ;;  %v9994_v47 = vpop.f32.mrf.mxu0 }
 0x34a   :  { %1513 = vrot.lane.b32.xlu1 %v9318_v12, %s8953_s25  ;;  %2872 = vmatprep.mubr.bf16.mxu1 %v1729_v21  ;;  %v1690_v23 = vmul.f32 %v1634_v25, %v9635_v2  ;;  %v1691_v5 = vmul.f32 %v1602_v24, %v9648_v35  ;;  %14111 = vst [vmem:[#allocation83_spill] sm:$0xff] %v9994_v47  ;;  %v14112_v21 = vld [vmem:[#allocation60_spill] sm:$0xff]  ;;  %v14113_v24 = vld [vmem:[#allocation62_spill] sm:$0xff]  ;;  %v14115_v2 = vld [vmem:[#allocation11_spill] sm:$0xff] }
 0x34b   :  { %1790 = vrot.lane.b32.xlu0 %v9663_v17, %s8952_s1  ;;  %2873 = vmatmul.mubr.bf16.gmra.mxu1 %v1728_v15  ;;  %v8836_v15 = vld [vmem:[#allocation2 + $0x3e0] ss:$8 sps:$4 sm:$0xff]  }
 0x34c   :  { %v1562_v41 = vpop.permute.xlu1 %1561  ;;  %v1500_v0 = vpop.permute.xlu0 %1499  ;;  %4107 = vmatprep.subr.bf16.mxu0 %v8838_v37  ;;  %v8842_v35 = vld [vmem:[#allocation2 + $0x3c0] ss:$8 sps:$4 sm:$0xff]  }
 0x34d   :  { %v1603_v28 = vsel %vm1577_vm1, %v1498_v30, %v1562_v41  ;;  %v1635_v1 = vsel %vm1577_vm1, %v1562_v41, %v1498_v30  ;;  %4108 = vmatpush2.bf16.msra.mxu0 %v8836_v15  ;;  %v8841_v41 = vld [vmem:[#allocation2 + $0x3d4] ss:$8 sps:$4 sm:$0xff]  }
 0x34e   :  { %v1692_v48 = vmul.f32 %v1635_v1, %v9651_v60  ;;  %v1693_v32 = vmul.f32 %v1603_v28, %v9654_v29  ;;  %1792 = vrot.lane.b32.xlu1 %v9679_v44, %s8952_s1  ;;  %v10000_v28 = vpop.f32.mrf.mxu0  ;;  %4109 = vmatprep.subr.bf16.mxu0 %v8841_v41  ;;  %v14118_v60 = vld [vmem:[#allocation12_spill] sm:$0xff] }
 0x34f   :  { %1854 = vrot.lane.b32.xlu0 %v14112_v21, %s8952_s1  ;;  %14114 = vst [vmem:[#allocation84_spill] sm:$0xff] %v10000_v28  ;;  %v8844_v28 = vld [vmem:[#allocation2 + $0x3c4] ss:$8 sps:$4 sm:$0xff]  }
 0x350   :  { %v1502_v30 = vpop.permute.xlu1 %1501  ;;  %v1564_v4 = vpop.permute.xlu0 %1563  ;;  %v1731_v34 = vpack.c.bf16 %v1693_v32, %v1691_v5  ;;  %v1730_v25 = vpack.c.bf16 %v1692_v48, %v1690_v23  ;;  %v8839_v23 = vld [vmem:[#allocation2 + $0x3d0] ss:$8 sps:$4 sm:$0xff]   ;;  %v14131_v29 = vld [vmem:[#allocation68_spill] sm:$0xff] }
 0x351   :  { %v1604_v1 = vsel %vm1577_vm1, %v1500_v0, %v1564_v4  ;;  %v1636_v47 = vsel %vm1577_vm1, %v1564_v4, %v1500_v0  ;;  %4110 = vmatpush2.bf16.msra.mxu0 %v8839_v23  ;;  %v10018_v41 = vpop.f32.mrf.mxu0 }
 0x352   :  { %1856 = vrot.lane.b32.xlu1 %v14113_v24, %s8952_s1  ;;  %2882 = vmatprep.mubr.bf16.mxu1 %v1731_v34  ;;  %v1694_v15 = vmul.f32 %v1636_v47, %v9663_v17  ;;  %v1695_v34 = vmul.f32 %v1604_v1, %v14112_v21  ;;  %v14119_v1 = vld [vmem:[#allocation14_spill] sm:$0xff] }
 0x353   :  { %1451 = vrot.lane.b32.xlu0 %v14115_v2, %s8953_s25  ;;  %2883 = vmatmul.mubr.bf16.gmra.mxu1 %v1730_v25  ;;  %v14116_v25 = vld [vmem:[#allocation13_spill] sm:$0xff] }
 0x354   :  { %v1566_v5 = vpop.permute.xlu1 %1565  ;;  %v1504_v48 = vpop.permute.xlu0 %1503  ;;  %14117 = vst [vmem:[#allocation13_spill] sm:$0xff] %v10018_v41  ;;  %4111 = vmatprep.subr.bf16.mxu0 %v8844_v28 }
 0x355   :  { %v1605_v32 = vsel %vm1577_vm1, %v1502_v30, %v1566_v5  ;;  %v1637_v37 = vsel %vm1577_vm1, %v1566_v5, %v1502_v30  ;;  %4112 = vmatpush2.bf16.msra.mxu0 %v8842_v35 }
 0x356   :  { %v1696_v0 = vmul.f32 %v1637_v37, %v9679_v44  ;;  %v1697_v4 = vmul.f32 %v1605_v32, %v14113_v24  ;;  %1453 = vrot.lane.b32.xlu1 %v14116_v25, %s8953_s25  ;;  %v8847_v32 = vld [vmem:[#allocation2 + $0x3b4] ss:$8 sps:$4 sm:$0xff]   ;;  %v10024_v37 = vpop.f32.mrf.mxu0 }
 0x357   :  { %1515 = vrot.lane.b32.xlu0 %v14118_v60, %s8953_s25  ;;  %14120 = vst [vmem:[#allocation12_spill] sm:$0xff] %v10024_v37  ;;  %4113 = vmatprep.subr.bf16.mxu0 %v8847_v32  ;;  %v14123_v44 = vld [vmem:[#allocation67_spill] sm:$0xff]  ;;  %v8848_v32 = vld [vmem:[#allocation2 + $0x3a0] ss:$8 sps:$4 sm:$0xff]  }
 0x358   :  { %v1506_v30 = vpop.permute.xlu1 %1505  ;;  %v1568_v23 = vpop.permute.xlu0 %1567  ;;  %v1733_v5 = vpack.c.bf16 %v1697_v4, %v1695_v34  ;;  %v1732_v47 = vpack.c.bf16 %v1696_v0, %v1694_v15  ;;  %v8845_v15 = vld [vmem:[#allocation2 + $0x3b0] ss:$8 sps:$4 sm:$0xff]  }
 0x359   :  { %v1606_v41 = vsel %vm1577_vm1, %v1504_v48, %v1568_v23  ;;  %v1638_v17 = vsel %vm1577_vm1, %v1568_v23, %v1504_v48  ;;  %4114 = vmatpush2.bf16.msra.mxu0 %v8845_v15  ;;  %v14122_v48 = vld [vmem:[#allocation65_spill] sm:$0xff]  ;;  %v10044_v24 = vpop.f32.mrf.mxu0 }
 0x35a   :  { %1517 = vrot.lane.b32.xlu1 %v14119_v1, %s8953_s25  ;;  %2892 = vmatprep.mubr.bf16.mxu1 %v1733_v5  ;;  %v1698_v4 = vmul.f32 %v1638_v17, %v9691_v27  ;;  %v14121_v5 = vld [vmem:[#allocation64_spill] sm:$0xff]  ;;  %14124 = vst [vmem:[#allocation14_spill] sm:$0xff] %v10044_v24  ;;  %v8856_v24 = vld [vmem:[#allocation2 + $0x394] ss:$8 sps:$4 sm:$0xff]  }
 0x35b   :  { %1794 = vrot.lane.b32.xlu0 %v9691_v27, %s8952_s1  ;;  %2893 = vmatmul.mubr.bf16.gmra.mxu1 %v1732_v47  ;;  %v1699_v37 = vmul.f32 %v1606_v41, %v14121_v5  ;;  %v8850_v47 = vld [vmem:[#allocation2 + $0x3a4] ss:$8 sps:$4 sm:$0xff]  }
 0x35c   :  { %v1570_v28 = vpop.permute.xlu1 %1569  ;;  %v1508_v35 = vpop.permute.xlu0 %1507  ;;  %4115 = vmatprep.subr.bf16.mxu0 %v8850_v47  ;;  %v14125_v41 = vld [vmem:[#allocation73_spill] sm:$0xff]  ;;  %v14129_v47 = vld [vmem:[#allocation66_spill] sm:$0xff] }
 0x35d   :  { %v1607_v34 = vsel %vm1577_vm1, %v1506_v30, %v1570_v28  ;;  %v1639_v0 = vsel %vm1577_vm1, %v1570_v28, %v1506_v30  ;;  %4116 = vmatpush2.bf16.msra.mxu0 %v8848_v32 }
 0x35e   :  { %v1700_v23 = vmul.f32 %v1639_v0, %v14122_v48  ;;  %v1701_v21 = vmul.f32 %v1607_v34, %v14123_v44  ;;  %1796 = vrot.lane.b32.xlu1 %v14122_v48, %s8952_s1  ;;  %v14126_v34 = vld [vmem:[#allocation69_spill] sm:$0xff]  ;;  %v10063_v48 = vpop.f32.mrf.mxu0  ;;  %4117 = vmatprep.subr.bf16.mxu0 %v8856_v24 }
 0x35f   :  { %1858 = vrot.lane.b32.xlu0 %v14121_v5, %s8952_s1  ;;  %v1868_v0 = vsel %vm1866_vm2, %v14126_v34, %v14125_v41  ;;  %14130 = vst [vmem:[#allocation73_spill] sm:$0xff] %v10063_v48  ;;  %v14133_v48 = vld [vmem:[#allocation72_spill] sm:$0xff]  ;;  %v14135_v24 = vld [vmem:[#allocation17_spill] sm:$0xff] }
 0x360   :  { %v1510_v30 = vpop.permute.xlu1 %1509  ;;  %v1735_v15 = vpack.c.bf16 %v1701_v21, %v1699_v37  ;;  %v1734_v28 = vpack.c.bf16 %v1700_v23, %v1698_v4  ;;  %v1572_v17 = vpop.permute.xlu0 %1571  ;;  %v14127_v37 = vld [vmem:[#allocation15_spill] sm:$0xff]  ;;  %v14128_v23 = vld [vmem:[#allocation70_spill] sm:$0xff] }
 0x361   :  { %v1640_v27 = vsel %vm1577_vm1, %v1572_v17, %v1508_v35  ;;  %v1608_v21 = vsel %vm1577_vm1, %v1508_v35, %v1572_v17  ;;  %v8854_v4 = vld [vmem:[#allocation2 + $0x390] ss:$8 sps:$4 sm:$0xff]   ;;  %v1867_v32 = vsel %vm1866_vm2, %v14129_v47, %v14128_v23 }
 0x362   :  { %1860 = vrot.lane.b32.xlu1 %v14123_v44, %s8952_s1  ;;  %2902 = vmatprep.mubr.bf16.mxu1 %v1735_v15  ;;  %v8853_v44 = vld [vmem:[#allocation2 + $0x404] ss:$8 sps:$4 sm:$0xff]   ;;  %v1934_v15 = vmul.f32 %v1868_v0, %v9318_v12  ;;  %v1702_v35 = vmul.f32 %v1640_v27, %v14131_v29  ;;  %v1703_v26 = vmul.f32 %v1608_v21, %v14132_v39 }
 0x363   :  { %1455 = vrot.lane.b32.xlu0 %v14127_v37, %s8953_s25  ;;  %2903 = vmatmul.mubr.bf16.gmra.mxu1 %v1734_v28  ;;  %v8859_v27 = vld [vmem:[#allocation2 + $0x384] ss:$8 sps:$4 sm:$0xff]  }
 0x364   :  { %v1574_v5 = vpop.permute.xlu1 %1573  ;;  %v10071_v43 = vpop.permute.xlu0 %1750  ;;  %4118 = vmatpush2.bf16.msra.mxu0 %v8854_v4  ;;  %5622 = vmatprep.subr.bf16.mxu1 %v8853_v44  ;;  %v14136_v0 = vld [vmem:[#allocation16_spill] sm:$0xff]  ;;  %v1900_v44 = vsel %vm1866_vm2, %v14125_v41, %v14126_v34  ;;  %v14142_v34 = vld [vmem:[#allocation77_spill] sm:$0xff] }
 0x365   :  { %v1609_v17 = vsel %vm1577_vm1, %v1510_v30, %v1574_v5  ;;  %v1641_v28 = vsel %vm1577_vm1, %v1574_v5, %v1510_v30  ;;  %5623 = vmatpush1.bf16.msra.mxu1 %v8851_v3  ;;  %v1932_v5 = vmul.f32 %v1867_v32, %v9312_v9  ;;  %v10081_v30 = vpop.f32.mrf.mxu0  ;;  %4119 = vmatprep.subr.bf16.mxu0 %v8859_v27  ;;  %v14138_v3 = vld [vmem:[#allocation18_spill] sm:$0xff] }
 0x366   :  { %v1704_v50 = vmul.f32 %v1641_v28, %v14133_v48  ;;  %v1705_v51 = vmul.f32 %v1609_v17, %v14134_v58  ;;  %1457 = vrot.lane.b32.xlu1 %v14135_v24, %s8953_s25  ;;  %14137 = vst [vmem:[#allocation69_spill] sm:$0xff] %v10081_v30  ;;  %v14140_v30 = vld [vmem:[#allocation76_spill] sm:$0xff]  ;;  %v1933_v41 = vmul.f32 %v1900_v44, %v9315_v10 }
 0x367   :  { %1519 = vrot.lane.b32.xlu0 %v14136_v0, %s8953_s25  ;;  %v1996_v32 = vpack.c.bf16 %v1934_v15, %v1932_v5  ;;  %v14143_v15 = vld [vmem:[#allocation74_spill] sm:$0xff] }
 0x368   :  { %v1736_v4 = vpack.c.bf16 %v1704_v50, %v1702_v35  ;;  %v10083_v21 = vpop.permute.xlu1 %1752  ;;  %v1737_v28 = vpack.c.bf16 %v1705_v51, %v1703_v26  ;;  %v10085_v17 = vpop.permute.xlu0 %1814  ;;  %4120 = vmatpush2.bf16.msra.mxu0 %v8857_v54  ;;  %v1870_v50 = vsel %vm1866_vm2, %v14140_v30, %v14139_v63  ;;  %v1899_v54 = vsel %vm1866_vm2, %v14128_v23, %v14129_v47 }
 0x369   :  { %v10103_v26 = vpop.f32.mrf.mxu0  ;;  %v1869_v35 = vsel %vm1866_vm2, %v14143_v15, %v14142_v34  ;;  %v1938_v5 = vmul.f32 %v1870_v50, %v14119_v1  ;;  %v1931_v23 = vmul.f32 %v1899_v54, %v9304_v6  ;;  %v1902_v50 = vsel %vm1866_vm2, %v14139_v63, %v14140_v30 }
 0x36a   :  { %1521 = vrot.lane.b32.xlu1 %v14138_v3, %s8953_s25  ;;  %2912 = vmatprep.mubr.bf16.mxu1 %v1737_v28  ;;  %14141 = vst [vmem:[#allocation15_spill] sm:$0xff] %v10103_v26  ;;  %v1936_v47 = vmul.f32 %v1869_v35, %v14118_v60 }
 0x36b   :  { %1798 = vrot.lane.b32.xlu0 %v14131_v29, %s8952_s1  ;;  %2913 = vmatmul.mubr.bf16.gmra.mxu1 %v1736_v4  ;;  %v10119_v4 = vpop.f32.mrf.mxu0  ;;  %v1995_v44 = vpack.c.bf16 %v1933_v41, %v1931_v23  ;;  %v1901_v41 = vsel %vm1866_vm2, %v14142_v34, %v14143_v15  ;;  %v14148_v23 = vld [vmem:[#allocation81_spill] sm:$0xff] }
 0x36c   :  { %v1817_v51 = vpop.permute.xlu1 %1816  ;;  %2922 = vmatprep.mubr.bf16.mxu1 %v1996_v32  ;;  %v10110_v27 = vpop.permute.xlu0 %1754  ;;  %14144 = vst [vmem:[#allocation70_spill] sm:$0xff] %v10119_v4  ;;  %v1998_v54 = vpack.c.bf16 %v1938_v5, %v1936_v47  ;;  %v1937_v5 = vmul.f32 %v1902_v50, %v14116_v25  ;;  %v14149_v47 = vld [vmem:[#allocation79_spill] sm:$0xff]  ;;  %v1935_v34 = vmul.f32 %v1901_v41, %v14115_v2 }
 0x36d   :  { %v10141_v63 = vpop.f32.mrf.mxu0  ;;  %v1871_v4 = vsel %vm1866_vm2, %v14149_v47, %v14148_v23 }
 0x36e   :  { %1800 = vrot.lane.b32.xlu1 %v14133_v48, %s8952_s1  ;;  %v14145_v48 = vld [vmem:[#allocation82_spill] sm:$0xff]  ;;  %14147 = vst [vmem:[#allocation66_spill] sm:$0xff] %v10141_v63  ;;  %v1940_v15 = vmul.f32 %v1871_v4, %v14136_v0  ;;  %v1997_v63 = vpack.c.bf16 %v1937_v5, %v1935_v34  ;;  %v1874_v4 = vsel %vm1866_vm2, %v10083_v21, %v1817_v51 }
 0x36f   :  { %1862 = vrot.lane.b32.xlu0 %v14132_v39, %s8952_s1  ;;  %v14146_v39 = vld [vmem:[#allocation80_spill] sm:$0xff]  ;;  %v10159_v50 = vpop.f32.mrf.mxu0  ;;  %v1903_v5 = vsel %vm1866_vm2, %v14148_v23, %v14149_v47 }
 0x370   :  { %v10121_v28 = vpop.permute.xlu1 %1756  ;;  %v10123_v32 = vpop.permute.xlu0 %1818  ;;  %v1872_v35 = vsel %vm1866_vm2, %v14146_v39, %v14145_v48  ;;  %14150 = vst [vmem:[#allocation17_spill] sm:$0xff] %v10159_v50  ;;  %v1939_v23 = vmul.f32 %v1903_v5, %v14127_v37  ;;  %v8860_v50 = vld [vmem:[#allocation2 + $0x4f0] ss:$8 sps:$4 sm:$0xff]  }
 0x371   :  { %v10180_v34 = vpop.f32.mrf.mxu0 }
 0x372   :  { %1864 = vrot.lane.b32.xlu1 %v14134_v58, %s8952_s1  ;;  %14151 = vst [vmem:[#allocation16_spill] sm:$0xff] %v10180_v34  ;;  %v8862_v34 = vld [vmem:[#allocation2 + $0x4f4] ss:$8 sps:$4 sm:$0xff]  }
 0x373   :  { %2027 = vrot.lane.b32.xlu0 %v9304_v6, %s8954_s26  ;;  %2923 = vmatmul.mubr.bf16.gmra.mxu1 %v1995_v44  ;;  %v1942_v44 = vmul.f32 %v1872_v35, %v14138_v3  ;;  %v1904_v35 = vsel %vm1866_vm2, %v14145_v48, %v14146_v39  ;;  %v10197_v47 = vpop.f32.mrf.mxu0 }
 0x374   :  { %v10143_v30 = vpop.permute.xlu1 %1820  ;;  %2932 = vmatprep.mubr.bf16.mxu1 %v1998_v54  ;;  %v10150_v58 = vpop.permute.xlu0 %1758  ;;  %v1941_v48 = vmul.f32 %v1904_v35, %v14135_v24  ;;  %14152 = vst [vmem:[#allocation18_spill] sm:$0xff] %v10197_v47  ;;  %5624 = vmatprep.subr.bf16.mxu1 %v8862_v34 }
 0x375   :  { %v2000_v41 = vpack.c.bf16 %v1942_v44, %v1940_v15  ;;  %v1873_v44 = vsel %vm1866_vm2, %v10071_v43, %v10085_v17  ;;  %5625 = vmatpush2.bf16.msra.mxu1 %v8860_v50 }
 0x376   :  { %2029 = vrot.lane.b32.xlu1 %v9315_v10, %s8954_s26  ;;  %v1944_v35 = vmul.f32 %v1873_v44, %v9396_v56  ;;  %v1999_v26 = vpack.c.bf16 %v1941_v48, %v1939_v23  ;;  %v1876_v44 = vsel %vm1866_vm2, %v10121_v28, %v10143_v30  ;;  %v10215_v48 = vpop.f32.mrf.mxu0 }
 0x377   :  { %2091 = vrot.lane.b32.xlu0 %v9312_v9, %s8954_s26 }
 0x378   :  { %v10161_v54 = vpop.permute.xlu1 %1760  ;;  %v10163_v29 = vpop.permute.xlu0 %1822 }
 0x37a   :  { %2093 = vrot.lane.b32.xlu1 %v9318_v12, %s8954_s26 }
 0x37b   :  { %2031 = vrot.lane.b32.xlu0 %v14115_v2, %s8954_s26  ;;  %2933 = vmatmul.mubr.bf16.gmra.mxu1 %v1997_v63  ;;  %v1946_v63 = vmul.f32 %v1874_v4, %v9402_v59  ;;  %v1906_v4 = vsel %vm1866_vm2, %v1817_v51, %v10083_v21  ;;  %v1905_v21 = vsel %vm1866_vm2, %v10085_v17, %v10071_v43  ;;  %v10234_v43 = vpop.f32.mrf.mxu0 }
 0x37c   :  { %v10182_v39 = vpop.permute.xlu1 %1824  ;;  %2942 = vmatprep.mubr.bf16.mxu1 %v2000_v41  ;;  %v1945_v34 = vmul.f32 %v1906_v4, %v9399_v57  ;;  %14154 = vst [vmem:[#allocation78_spill] sm:$0xff] %v10234_v43 }
 0x37d   :  { %v10189_v15 = vpop.permute.xlu0 %1762  ;;  %v2002_v5 = vpack.c.bf16 %v1946_v63, %v1944_v35  ;;  %v1875_v63 = vsel %vm1866_vm2, %v10110_v27, %v10123_v32  ;;  %v14153_v35 = vld [vmem:[#allocation19_spill] sm:$0xff]  ;;  %v1878_v43 = vsel %vm1866_vm2, %v10161_v54, %v10182_v39 }
 0x37e   :  { %2033 = vrot.lane.b32.xlu1 %v14116_v25, %s8954_s26  ;;  %v1943_v47 = vmul.f32 %v1905_v21, %v14153_v35  ;;  %v1948_v17 = vmul.f32 %v1875_v63, %v9424_v8  ;;  %v1877_v63 = vsel %vm1866_vm2, %v10150_v58, %v10163_v29 }
 0x37f   :  { %2095 = vrot.lane.b32.xlu0 %v14118_v60, %s8954_s26 }
 0x380   :  { %v10200_v41 = vpop.permute.xlu1 %1764  ;;  %v2001_v4 = vpack.c.bf16 %v1945_v34, %v1943_v47  ;;  %v10253_v47 = vpop.f32.mrf.mxu0 }
 0x381   :  { %v10202_v2 = vpop.permute.xlu0 %1826 }
 0x382   :  { %2097 = vrot.lane.b32.xlu1 %v14119_v1, %s8954_s26 }
 0x383   :  { %2035 = vrot.lane.b32.xlu0 %v14127_v37, %s8954_s26  ;;  %2943 = vmatmul.mubr.bf16.gmra.mxu1 %v1999_v26  ;;  %v1950_v26 = vmul.f32 %v1876_v44, %v9430_v14  ;;  %v1908_v44 = vsel %vm1866_vm2, %v10143_v30, %v10121_v28  ;;  %v1907_v28 = vsel %vm1866_vm2, %v10123_v32, %v10110_v27  ;;  %v10272_v27 = vpop.f32.mrf.mxu0 }
 0x384   :  { %v1829_v51 = vpop.permute.xlu1 %1828  ;;  %2952 = vmatprep.mubr.bf16.mxu1 %v2002_v5  ;;  %v1949_v34 = vmul.f32 %v1908_v44, %v9427_v11  ;;  %v1952_v32 = vmul.f32 %v1877_v63, %v9452_v31  ;;  %v1909_v63 = vsel %vm1866_vm2, %v10163_v29, %v10150_v58 }
 0x385   :  { %v10226_v23 = vpop.permute.xlu0 %1766  ;;  %v2004_v21 = vpack.c.bf16 %v1950_v26, %v1948_v17  ;;  %v1954_v17 = vmul.f32 %v1878_v43, %v9458_v36  ;;  %v1910_v43 = vsel %vm1866_vm2, %v10182_v39, %v10161_v54 }
 0x386   :  { %2037 = vrot.lane.b32.xlu1 %v14135_v24, %s8954_s26  ;;  %v1953_v39 = vmul.f32 %v1910_v43, %v9455_v33 }
 0x387   :  { %2099 = vrot.lane.b32.xlu0 %v14136_v0, %s8954_s26 }
 0x388   :  { %v10237_v50 = vpop.permute.xlu1 %1768 }
 0x389   :  { %v10239_v5 = vpop.permute.xlu0 %1830 }
 0x38a   :  { %2101 = vrot.lane.b32.xlu1 %v14138_v3, %s8954_s26 }
 0x38b   :  { %2039 = vrot.lane.b32.xlu0 %v14153_v35, %s8954_s26  ;;  %2953 = vmatmul.mubr.bf16.gmra.mxu1 %v2001_v4  ;;  %v1947_v4 = vmul.f32 %v1907_v28, %v9411_v62  ;;  %v2006_v28 = vpack.c.bf16 %v1954_v17, %v1952_v32  ;;  %v1879_v17 = vsel %vm1866_vm2, %v10189_v15, %v10202_v2 }
 0x38c   :  { %v1833_v30 = vpop.permute.xlu1 %1832  ;;  %2962 = vmatprep.mubr.bf16.mxu1 %v2004_v21  ;;  %v1956_v58 = vmul.f32 %v1879_v17, %v9480_v52 }
 0x38d   :  { %v10264_v26 = vpop.permute.xlu0 %1770  ;;  %v2003_v21 = vpack.c.bf16 %v1949_v34, %v1947_v4  ;;  %v10290_v34 = vpop.f32.mrf.mxu0 }
 0x38e   :  { %2041 = vrot.lane.b32.xlu1 %v9399_v57, %s8954_s26  ;;  %v1880_v57 = vsel %vm1866_vm2, %v10200_v41, %v1829_v51 }
 0x38f   :  { %2103 = vrot.lane.b32.xlu0 %v9396_v56, %s8954_s26  ;;  %v1958_v32 = vmul.f32 %v1880_v57, %v9486_v55  ;;  %v10311_v29 = vpop.f32.mrf.mxu0  ;;  %v1912_v57 = vsel %vm1866_vm2, %v1829_v51, %v10200_v41 }
 0x390   :  { %v10275_v44 = vpop.permute.xlu1 %1772  ;;  %v1957_v51 = vmul.f32 %v1912_v57, %v9483_v53 }
 0x391   :  { %v10277_v35 = vpop.permute.xlu0 %1834  ;;  %v10328_v17 = vpop.f32.mrf.mxu0 }
 0x392   :  { %2105 = vrot.lane.b32.xlu1 %v9402_v59, %s8954_s26 }
 0x393   :  { %2043 = vrot.lane.b32.xlu0 %v9411_v62, %s8954_s26  ;;  %2963 = vmatmul.mubr.bf16.gmra.mxu1 %v2003_v21  ;;  %v1951_v21 = vmul.f32 %v1909_v63, %v9439_v18  ;;  %v2008_v63 = vpack.c.bf16 %v1958_v32, %v1956_v58  ;;  %v1881_v32 = vsel %vm1866_vm2, %v10226_v23, %v10239_v5 }
 0x394   :  { %v10296_v54 = vpop.permute.xlu1 %1836  ;;  %2972 = vmatprep.mubr.bf16.mxu1 %v2006_v28 }
 0x395   :  { %v10303_v4 = vpop.permute.xlu0 %1774  ;;  %v2005_v28 = vpack.c.bf16 %v1953_v39, %v1951_v21  ;;  %v1911_v39 = vsel %vm1866_vm2, %v10202_v2, %v10189_v15  ;;  %v10349_v2 = vpop.f32.mrf.mxu0  ;;  %v1960_v15 = vmul.f32 %v1881_v32, %v9508_v13  ;;  %v1884_v32 = vsel %vm1866_vm2, %v10275_v44, %v10296_v54 }
 0x396   :  { %2045 = vrot.lane.b32.xlu1 %v9427_v11, %s8954_s26  ;;  %v1882_v11 = vsel %vm1866_vm2, %v10237_v50, %v1833_v30 }
 0x397   :  { %2107 = vrot.lane.b32.xlu0 %v9424_v8, %s8954_s26  ;;  %v1962_v58 = vmul.f32 %v1882_v11, %v9514_v19  ;;  %v1914_v11 = vsel %vm1866_vm2, %v1833_v30, %v10237_v50  ;;  %v1913_v50 = vsel %vm1866_vm2, %v10239_v5, %v10226_v23 }
 0x398   :  { %v10314_v43 = vpop.permute.xlu1 %1776 }
 0x399   :  { %v10316_v62 = vpop.permute.xlu0 %1838 }
 0x39a   :  { %2109 = vrot.lane.b32.xlu1 %v9430_v14, %s8954_s26 }
 0x39b   :  { %2047 = vrot.lane.b32.xlu0 %v9439_v18, %s8954_s26  ;;  %2973 = vmatmul.mubr.bf16.gmra.mxu1 %v2005_v28  ;;  %v1955_v28 = vmul.f32 %v1911_v39, %v9467_v40  ;;  %v8865_v18 = vld [vmem:[#allocation2 + $0x4e4] ss:$8 sps:$4 sm:$0xff]   ;;  %v2010_v39 = vpack.c.bf16 %v1962_v58, %v1960_v15  ;;  %v1883_v58 = vsel %vm1866_vm2, %v10264_v26, %v10277_v35 }
 0x39c   :  { %v10334_v41 = vpop.permute.xlu1 %1840  ;;  %2982 = vmatprep.mubr.bf16.mxu1 %v2008_v63  ;;  %v8863_v63 = vld [vmem:[#allocation2 + $0x4e0] ss:$8 sps:$4 sm:$0xff]   ;;  %5626 = vmatprep.subr.bf16.mxu1 %v8865_v18  ;;  %v1961_v18 = vmul.f32 %v1914_v11, %v9511_v16  ;;  %v1959_v15 = vmul.f32 %v1913_v50, %v9495_v61  ;;  %v1964_v5 = vmul.f32 %v1883_v58, %v9536_v45 }
 0x39d   :  { %v10341_v21 = vpop.permute.xlu0 %1778  ;;  %v2007_v14 = vpack.c.bf16 %v1957_v51, %v1955_v28  ;;  %v10367_v51 = vpop.f32.mrf.mxu0  ;;  %5627 = vmatpush2.bf16.msra.mxu1 %v8863_v63 }
 0x39e   :  { %2049 = vrot.lane.b32.xlu1 %v9455_v33, %s8954_s26  ;;  %v2009_v11 = vpack.c.bf16 %v1961_v18, %v1959_v15 }
 0x39f   :  { %2111 = vrot.lane.b32.xlu0 %v9452_v31, %s8954_s26  ;;  %v10386_v23 = vpop.f32.mrf.mxu0 }
 0x3a0   :  { %v10352_v57 = vpop.permute.xlu1 %1780 }
 0x3a1   :  { %v10354_v8 = vpop.permute.xlu0 %1842  ;;  %v10405_v18 = vpop.f32.mrf.mxu0 }
 0x3a2   :  { %2113 = vrot.lane.b32.xlu1 %v9458_v36, %s8954_s26 }
 0x3a3   :  { %2051 = vrot.lane.b32.xlu0 %v9467_v40, %s8954_s26  ;;  %2983 = vmatmul.mubr.bf16.gmra.mxu1 %v2007_v14  ;;  %v1966_v14 = vmul.f32 %v1884_v32, %v9542_v49  ;;  %v1916_v32 = vsel %vm1866_vm2, %v10296_v54, %v10275_v44  ;;  %v1915_v44 = vsel %vm1866_vm2, %v10277_v35, %v10264_v26  ;;  %v10426_v35 = vpop.f32.mrf.mxu0 }
 0x3a4   :  { %v1845_v30 = vpop.permute.xlu1 %1844  ;;  %2992 = vmatprep.mubr.bf16.mxu1 %v2010_v39  ;;  %v1965_v58 = vmul.f32 %v1916_v32, %v9539_v46  ;;  %14155 = vst [vmem:[#allocation76_spill] sm:$0xff] %v10426_v35 }
 0x3a5   :  { %v10378_v28 = vpop.permute.xlu0 %1782  ;;  %v2012_v50 = vpack.c.bf16 %v1966_v14, %v1964_v5  ;;  %v1885_v14 = vsel %vm1866_vm2, %v10303_v4, %v10316_v62 }
 0x3a6   :  { %2053 = vrot.lane.b32.xlu1 %v9483_v53, %s8954_s26  ;;  %v1886_v53 = vsel %vm1866_vm2, %v10314_v43, %v10334_v41  ;;  %v1968_v26 = vmul.f32 %v1885_v14, %v9564_v38  ;;  %v1917_v14 = vsel %vm1866_vm2, %v10316_v62, %v10303_v4  ;;  %v14160_v4 = vld [vmem:[#allocation48_spill] sm:$0xff] }
 0x3a7   :  { %2115 = vrot.lane.b32.xlu0 %v9480_v52, %s8954_s26  ;;  %v1970_v5 = vmul.f32 %v1886_v53, %v9570_v20  ;;  %v1918_v53 = vsel %vm1866_vm2, %v10334_v41, %v10314_v43  ;;  %v1920_v52 = vsel %vm1866_vm2, %v1845_v30, %v10352_v57 }
 0x3a8   :  { %v10389_v63 = vpop.permute.xlu1 %1784  ;;  %v1969_v41 = vmul.f32 %v1918_v53, %v9567_v7 }
 0x3a9   :  { %v10391_v39 = vpop.permute.xlu0 %1846 }
 0x3aa   :  { %2117 = vrot.lane.b32.xlu1 %v9486_v55, %s8954_s26 }
 0x3ab   :  { %2055 = vrot.lane.b32.xlu0 %v9495_v61, %s8954_s26  ;;  %2993 = vmatmul.mubr.bf16.gmra.mxu1 %v2009_v11  ;;  %v1963_v11 = vmul.f32 %v1915_v44, %v9523_v22  ;;  %v2014_v44 = vpack.c.bf16 %v1970_v5, %v1968_v26  ;;  %v1887_v5 = vsel %vm1866_vm2, %v10341_v21, %v10354_v8  ;;  %v14157_v26 = vld [vmem:[#allocation50_spill] sm:$0xff] }
 0x3ac   :  { %v10411_v54 = vpop.permute.xlu1 %1848  ;;  %3002 = vmatprep.mubr.bf16.mxu1 %v2012_v50  ;;  %v1972_v53 = vmul.f32 %v1887_v5, %v14160_v4  ;;  %v14161_v5 = vld [vmem:[#allocation49_spill] sm:$0xff] }
 0x3ad   :  { %v10418_v15 = vpop.permute.xlu0 %1786  ;;  %v2011_v50 = vpack.c.bf16 %v1965_v58, %v1963_v11  ;;  %v10444_v58 = vpop.f32.mrf.mxu0 }
 0x3ae   :  { %2057 = vrot.lane.b32.xlu1 %v9511_v16, %s8954_s26  ;;  %v1888_v16 = vsel %vm1866_vm2, %v10352_v57, %v1845_v30  ;;  %14156 = vst [vmem:[#allocation77_spill] sm:$0xff] %v10444_v58  ;;  %v1919_v57 = vsel %vm1866_vm2, %v10354_v8, %v10341_v21  ;;  %v1890_v30 = vsel %vm1866_vm2, %v10389_v63, %v10411_v54 }
 0x3af   :  { %2119 = vrot.lane.b32.xlu0 %v9508_v13, %s8954_s26  ;;  %v10463_v62 = vpop.f32.mrf.mxu0 }
 0x3b0   :  { %v10429_v32 = vpop.permute.xlu1 %1788  ;;  %14159 = vst [vmem:[#allocation74_spill] sm:$0xff] %v10463_v62 }
 0x3b1   :  { %v10431_v61 = vpop.permute.xlu0 %1850 }
 0x3b2   :  { %2121 = vrot.lane.b32.xlu1 %v9514_v19, %s8954_s26 }
 0x3b3   :  { %2059 = vrot.lane.b32.xlu0 %v9523_v22, %s8954_s26  ;;  %3003 = vmatmul.mubr.bf16.gmra.mxu1 %v2011_v50  ;;  %v1974_v50 = vmul.f32 %v1888_v16, %v14157_v26  ;;  %v14158_v22 = vld [vmem:[#allocation43_spill] sm:$0xff] }
 0x3b4   :  { %v10450_v43 = vpop.permute.xlu1 %1852  ;;  %3012 = vmatprep.mubr.bf16.mxu1 %v2014_v44  ;;  %v1967_v19 = vmul.f32 %v1917_v14, %v14158_v22 }
 0x3b5   :  { %v1448_v11 = vpop.permute.xlu0 %1447  ;;  %v2016_v16 = vpack.c.bf16 %v1974_v50, %v1972_v53 }
 0x3b6   :  { %2061 = vrot.lane.b32.xlu1 %v9539_v46, %s8954_s26  ;;  %v2013_v13 = vpack.c.bf16 %v1969_v41, %v1967_v19  ;;  %v10477_v19 = vpop.f32.mrf.mxu0 }
 0x3b7   :  { %2123 = vrot.lane.b32.xlu0 %v9536_v45, %s8954_s26  ;;  %v14162_v45 = vld [vmem:[#allocation54_spill] sm:$0xff] }
 0x3b8   :  { %v1450_v44 = vpop.permute.xlu1 %1449  ;;  %v1978_v40 = vmul.f32 %v1890_v30, %v14162_v45 }
 0x3b9   :  { %v1512_v55 = vpop.permute.xlu0 %1511 }
 0x3ba   :  { %2125 = vrot.lane.b32.xlu1 %v9542_v49, %s8954_s26  ;;  %v1578_v14 = vsel %vm1577_vm1, %v1448_v11, %v1512_v55  ;;  %v1610_v46 = vsel %vm1577_vm1, %v1512_v55, %v1448_v11  ;;  %v1973_v55 = vmul.f32 %v1920_v52, %v14161_v5  ;;  %v8868_v49 = vld [vmem:[#allocation2 + $0x4d4] ss:$8 sps:$4 sm:$0xff]  }
 0x3bb   :  { %2063 = vrot.lane.b32.xlu0 %v14158_v22, %s8954_s26  ;;  %3013 = vmatmul.mubr.bf16.gmra.mxu1 %v2013_v13  ;;  %v1889_v13 = vsel %vm1866_vm2, %v10378_v28, %v10391_v39  ;;  %v1642_v50 = vmul.f32 %v1610_v46, %v9304_v6  ;;  %v1643_v53 = vmul.f32 %v1578_v14, %v9312_v9  ;;  %v8866_v22 = vld [vmem:[#allocation2 + $0x4d0] ss:$8 sps:$4 sm:$0xff]  }
 0x3bc   :  { %v1514_v41 = vpop.permute.xlu1 %1513  ;;  %3022 = vmatprep.mubr.bf16.mxu1 %v2016_v16  ;;  %5628 = vmatprep.subr.bf16.mxu1 %v8868_v49 }
 0x3bd   :  { %v1579_v11 = vsel %vm1577_vm1, %v1450_v44, %v1514_v41  ;;  %v1611_v8 = vsel %vm1577_vm1, %v1514_v41, %v1450_v44  ;;  %v10496_v21 = vpop.permute.xlu0 %1790  ;;  %v10507_v44 = vpop.f32.mrf.mxu0  ;;  %v14164_v41 = vld [vmem:[#allocation47_spill] sm:$0xff]  ;;  %5629 = vmatpush2.bf16.msra.mxu1 %v8866_v22  ;;  %v1892_v22 = vsel %vm1866_vm2, %v10429_v32, %v10450_v43 }
 0x3be   :  { %v1644_v16 = vmul.f32 %v1611_v8, %v9315_v10  ;;  %v1645_v52 = vmul.f32 %v1579_v11, %v9318_v12  ;;  %2065 = vrot.lane.b32.xlu1 %v9567_v7, %s8954_s26  ;;  %14163 = vst [vmem:[#allocation82_spill] sm:$0xff] %v10507_v44  ;;  %v1971_v46 = vmul.f32 %v1919_v57, %v14164_v41  ;;  %v14165_v11 = vld [vmem:[#allocation52_spill] sm:$0xff] }
 0x3bf   :  { %2127 = vrot.lane.b32.xlu0 %v9564_v38, %s8954_s26  ;;  %v1976_v33 = vmul.f32 %v1889_v13, %v14165_v11  ;;  %v1922_v57 = vsel %vm1866_vm2, %v10411_v54, %v10389_v63  ;;  %v10523_v30 = vpop.f32.mrf.mxu0  ;;  %v1921_v13 = vsel %vm1866_vm2, %v10391_v39, %v10378_v28  ;;  %v14167_v54 = vld [vmem:[#allocation53_spill] sm:$0xff]  ;;  %v14170_v28 = vld [vmem:[#allocation51_spill] sm:$0xff] }
 0x3c0   :  { %v1706_v36 = vpack.c.bf16 %v1644_v16, %v1642_v50  ;;  %v10510_v14 = vpop.permute.xlu1 %1792  ;;  %v1707_v8 = vpack.c.bf16 %v1645_v52, %v1643_v53  ;;  %v2015_v7 = vpack.c.bf16 %v1973_v55, %v1971_v46  ;;  %14166 = vst [vmem:[#allocation80_spill] sm:$0xff] %v10523_v30  ;;  %v1977_v50 = vmul.f32 %v1922_v57, %v14167_v54  ;;  %v8227_v16 = vld [vmem:[%s13861_s3 + $0x3] ss:$8 sm:$0x3] }
 0x3c1   :  { %v10513_v31 = vpop.permute.xlu0 %1854  ;;  %v2018_v49 = vpack.c.bf16 %v1978_v40, %v1976_v33  ;;  %v1891_v33 = vsel %vm1866_vm2, %v10418_v15, %v10431_v61  ;;  %v1975_v39 = vmul.f32 %v1921_v13, %v14170_v28  ;;  %v14171_v52 = vld [vmem:[#allocation56_spill] sm:$0xff] }
 0x3c2   :  { %2129 = vrot.lane.b32.xlu1 %v9570_v20, %s8954_s26  ;;  %2762 = vmatprep.mubr.bf16.mxu0 %v1707_v8  ;;  %v1980_v46 = vmul.f32 %v1891_v33, %v14171_v52  ;;  %v1924_v8 = vsel %vm1866_vm2, %v10450_v43, %v10429_v32  ;;  %v1923_v43 = vsel %vm1866_vm2, %v10431_v61, %v10418_v15 }
 0x3c3   :  { %2067 = vrot.lane.b32.xlu0 %v14164_v41, %s8954_s26  ;;  %2763 = vmatmul.mubr.bf16.gmra.mxu0 %v1706_v36  ;;  %v14168_v36 = vld [vmem:[#allocation58_spill] sm:$0xff] }
 0x3c4   :  { %3023 = vmatmul.mubr.bf16.gmra.mxu1 %v2015_v7  ;;  %v1857_v55 = vpop.permute.xlu1 %1856  ;;  %v1982_v40 = vmul.f32 %v1892_v22, %v14168_v36  ;;  %v10543_v7 = vpop.f32.mrf.mxu0 }
 0x3c5   :  { %3032 = vmatprep.mubr.bf16.mxu1 %v2018_v49  ;;  %v1452_v63 = vpop.permute.xlu0 %1451  ;;  %14169 = vst [vmem:[#allocation81_spill] sm:$0xff] %v10543_v7  ;;  %v2017_v49 = vpack.c.bf16 %v1977_v50, %v1975_v39  ;;  %v14174_v50 = vld [vmem:[#allocation57_spill] sm:$0xff]  ;;  %v14177_v7 = vld [vmem:[#allocation55_spill] sm:$0xff] }
 0x3c6   :  { %2069 = vrot.lane.b32.xlu1 %v14161_v5, %s8954_s26  ;;  %v2020_v5 = vpack.c.bf16 %v1982_v40, %v1980_v46  ;;  %v10565_v32 = vpop.f32.mrf.mxu0  ;;  %v1981_v39 = vmul.f32 %v1924_v8, %v14174_v50  ;;  %v1893_v40 = vsel %vm1866_vm2, %v10496_v21, %v10513_v31  ;;  %v14175_v46 = vld [vmem:[#allocation11_spill] sm:$0xff] }
 0x3c7   :  { %2131 = vrot.lane.b32.xlu0 %v14160_v4, %s8954_s26  ;;  %v14172_v4 = vld [vmem:[#allocation9_spill] sm:$0xff]  ;;  %14173 = vst [vmem:[#allocation79_spill] sm:$0xff] %v10565_v32 }
 0x3c8   :  { %v1454_v53 = vpop.permute.xlu1 %1453  ;;  %v10563_v41 = vrot.slane %v8227_v16, %v14172_v4  ;;  %v10599_v30 = vpop.f32.mrf.mxu0 }
 0x3c9   :  { %v1516_v57 = vpop.permute.xlu0 %1515  ;;  %14179 = vst [vmem:[#allocation11_spill] sm:$0xff] %v10599_v30 }
 0x3ca   :  { %v1612_v22 = vsel %vm1577_vm1, %v1516_v57, %v1452_v63  ;;  %2133 = vrot.lane.b32.xlu1 %v14157_v26, %s8954_s26  ;;  %v1580_v13 = vsel %vm1577_vm1, %v1452_v63, %v1516_v57  ;;  %v1894_v63 = vsel %vm1866_vm2, %v10510_v14, %v1857_v55 }
 0x3cb   :  { %2071 = vrot.lane.b32.xlu0 %v14170_v28, %s8954_s26  ;;  %v2794_v33 = vpop.f32.mrf.mxu1  ;;  %v1646_v4 = vmul.f32 %v1612_v22, %v14175_v46  ;;  %v14176_v22 = vld [vmem:[#allocation8_spill] sm:$0xff] }
 0x3cc   :  { %3033 = vmatmul.mubr.bf16.gmra.mxu1 %v2017_v49  ;;  %v1518_v57 = vpop.permute.xlu1 %1517  ;;  %v1647_v49 = vmul.f32 %v1580_v13, %v14118_v60  ;;  %v2795_v26 = vadd.f32 %v2794_v33, %v10563_v41  ;;  %v10593_v44 = vrot.slane %v8227_v16, %v14176_v22 }
 0x3cd   :  { %v1581_v28 = vsel %vm1577_vm1, %v1454_v53, %v1518_v57  ;;  %v1613_v61 = vsel %vm1577_vm1, %v1518_v57, %v1454_v53  ;;  %3042 = vmatprep.mubr.bf16.mxu1 %v2020_v5  ;;  %v10584_v15 = vpop.permute.xlu0 %1794  ;;  %v2796_v8 = vpop.f32.mrf.mxu1  ;;  %v1979_v53 = vmul.f32 %v1923_v43, %v14177_v7  ;;  %v14178_v5 = vld [vmem:[#allocation62_spill] sm:$0xff] }
 0x3ce   :  { %v1648_v20 = vmul.f32 %v1613_v61, %v14116_v25  ;;  %v1649_v38 = vmul.f32 %v1581_v28, %v14119_v1  ;;  %2073 = vrot.lane.b32.xlu1 %v14167_v54, %s8954_s26  ;;  %v1986_v57 = vmul.f32 %v1894_v63, %v14178_v5  ;;  %v14180_v54 = vld [vmem:[#allocation60_spill] sm:$0xff]  ;;  %v2797_v16 = vadd.f32 %v2796_v8, %v10593_v44 }
 0x3cf   :  { %2135 = vrot.lane.b32.xlu0 %v14165_v11, %s8954_s26  ;;  %v2798_v13 = vpop.f32.mrf.mxu1  ;;  %v2019_v32 = vpack.c.bf16 %v1981_v39, %v1979_v53  ;;  %v1984_v62 = vmul.f32 %v1893_v40, %v14180_v54  ;;  %v1926_v63 = vsel %vm1866_vm2, %v1857_v55, %v10510_v14  ;;  %v3479_v11 = vmax.f32 %v2795_v26, 0.0  ;;  %v14183_v40 = vld [vmem:[#allocation61_spill] sm:$0xff] }
 0x3d0   :  { %v1708_v33 = vpack.c.bf16 %v1648_v20, %v1646_v4  ;;  %v2799_v61 = vadd.f32 %v2798_v13, %v10563_v41  ;;  %v1797_v28 = vpop.permute.xlu1 %1796  ;;  %v1709_v35 = vpack.c.bf16 %v1649_v38, %v1647_v49  ;;  %v10612_v4 = vpop.f32.mrf.mxu0  ;;  %v1925_v26 = vsel %vm1866_vm2, %v10513_v31, %v10496_v21 }
 0x3d1   :  { %v1859_v22 = vpop.permute.xlu0 %1858  ;;  %v2800_v43 = vpop.f32.mrf.mxu1  ;;  %v2022_v20 = vpack.c.bf16 %v1986_v57, %v1984_v62  ;;  %14181 = vst [vmem:[#allocation85_spill] sm:$0xff] %v10612_v4  ;;  %v3480_v8 = vmax.f32 %v2797_v16, 0.0 }
 0x3d2   :  { %v3481_v58 = vmax.f32 %v2799_v61, 0.0  ;;  %v2801_v30 = vadd.f32 %v2800_v43, %v10593_v44  ;;  %2137 = vrot.lane.b32.xlu1 %v14162_v45, %s8954_s26  ;;  %2772 = vmatprep.mubr.bf16.mxu0 %v1709_v35  ;;  %v1985_v35 = vmul.f32 %v1926_v63, %v14183_v40  ;;  %v1895_v31 = vsel %vm1866_vm2, %v10584_v15, %v1859_v22  ;;  %v10639_v16 = vpop.f32.mrf.mxu0 }
 0x3d3   :  { %2075 = vrot.lane.b32.xlu0 %v14177_v7, %s8954_s26  ;;  %2773 = vmatmul.mubr.bf16.gmra.mxu0 %v1708_v33  ;;  %v2804_v38 = vpop.f32.mrf.mxu1 }
 0x3d4   :  { %v10618_v14 = vpack.c.bf16 %v3481_v58, %v3479_v11  ;;  %v3482_v55 = vmax.f32 %v2801_v30, 0.0  ;;  %3043 = vmatmul.mubr.bf16.gmra.mxu1 %v2019_v32  ;;  %v1861_v39 = vpop.permute.xlu1 %1860  ;;  %v2805_v49 = vadd.f32 %v2804_v38, %v10563_v41  ;;  %v14184_v58 = vld [vmem:[#allocation12_spill] sm:$0xff]  ;;  %v14185_v11 = vld [vmem:[#allocation59_spill] sm:$0xff] }
 0x3d5   :  { %v1896_v62 = vsel %vm1866_vm2, %v1797_v28, %v1861_v39  ;;  %3052 = vmatprep.mubr.bf16.mxu1 %v2022_v20  ;;  %v1456_v53 = vpop.permute.xlu0 %1455  ;;  %v2806_v57 = vpop.f32.mrf.mxu1  ;;  %v10631_v21 = vadd.f32 %v14184_v58, %v10593_v44  ;;  %v1983_v30 = vmul.f32 %v1925_v26, %v14185_v11  ;;  %v14186_v32 = vld [vmem:[#allocation67_spill] sm:$0xff]  ;;  %v14189_v58 = vld [vmem:[#allocation64_spill] sm:$0xff]  ;;  %v1928_v26 = vsel %vm1866_vm2, %v1861_v39, %v1797_v28 }
 0x3d6   :  { %14182 = vst [vmem:[#allocation86_spill] sm:$0xff] %v10618_v14  ;;  %2077 = vrot.lane.b32.xlu1 %v14174_v50, %s8954_s26  ;;  %v1990_v13 = vmul.f32 %v1896_v62, %v14186_v32  ;;  %v10637_v61 = vpack.c.bf16 %v3482_v55, %v3480_v8  ;;  %14188 = vst [vmem:[#allocation67_spill] sm:$0xff] %v10639_v16  ;;  %v2807_v43 = vadd.f32 %v2806_v57, %v10593_v44 }
 0x3d7   :  { %2139 = vrot.lane.b32.xlu0 %v14171_v52, %s8954_s26  ;;  %v2808_v33 = vpop.f32.mrf.mxu1  ;;  %v2021_v20 = vpack.c.bf16 %v1985_v35, %v1983_v30  ;;  %v1988_v14 = vmul.f32 %v1895_v31, %v14189_v58  ;;  %v3483_v50 = vmax.f32 %v2805_v49, 0.0  ;;  %v14190_v35 = vld [vmem:[#allocation84_spill] sm:$0xff]  ;;  %v3406_v31 = vmax.f32 %v10631_v21, 0.0 }
 0x3d8   :  { %14187 = vst [vmem:[#allocation12_spill] sm:$0xff] %v10637_v61  ;;  %v2809_v63 = vadd.f32 %v2808_v33, %v10563_v41  ;;  %v1458_v38 = vpop.permute.xlu1 %1457  ;;  %v2607_v49 = vadd.f32 %v14190_v35, %v10593_v44  ;;  %v1927_v28 = vsel %vm1866_vm2, %v1859_v22, %v10584_v15  ;;  %v8869_v21 = vld [vmem:[#allocation2 + $0x4c0] ss:$8 sps:$4 sm:$0xff]  }
 0x3d9   :  { %v1520_v62 = vpop.permute.xlu0 %1519  ;;  %v2810_v7 = vpop.f32.mrf.mxu1  ;;  %v2024_v30 = vpack.c.bf16 %v1990_v13, %v1988_v14 }
 0x3da   :  { %v3485_v52 = vmax.f32 %v2809_v63, 0.0  ;;  %v1582_v55 = vsel %vm1577_vm1, %v1456_v53, %v1520_v62  ;;  %v1614_v8 = vsel %vm1577_vm1, %v1520_v62, %v1456_v53  ;;  %v2811_v57 = vadd.f32 %v2810_v7, %v10593_v44  ;;  %2141 = vrot.lane.b32.xlu1 %v14168_v36, %s8954_s26  ;;  %v10661_v53 = vpop.f32.mrf.mxu0  ;;  %v14191_v7 = vld [vmem:[#allocation65_spill] sm:$0xff] }
 0x3db   :  { %2079 = vrot.lane.b32.xlu0 %v14185_v11, %s8954_s26  ;;  %v2814_v39 = vpop.f32.mrf.mxu1  ;;  %v1989_v33 = vmul.f32 %v1928_v26, %v14191_v7  ;;  %v3484_v63 = vmax.f32 %v2807_v43, 0.0  ;;  %v8871_v36 = vld [vmem:[#allocation2 + $0x4c4] ss:$8 sps:$4 sm:$0xff]   ;;  %v1650_v45 = vmul.f32 %v1614_v8, %v14127_v37  ;;  %v1651_v15 = vmul.f32 %v1582_v55, %v14136_v0 }
 0x3dc   :  { %v10664_v62 = vpack.c.bf16 %v3485_v52, %v3483_v50  ;;  %v3486_v61 = vmax.f32 %v2811_v57, 0.0  ;;  %3053 = vmatmul.mubr.bf16.gmra.mxu1 %v2021_v20  ;;  %v1522_v35 = vpop.permute.xlu1 %1521  ;;  %v2815_v52 = vadd.f32 %v2814_v39, %v10563_v41  ;;  %5630 = vmatprep.subr.bf16.mxu1 %v8871_v36  ;;  %v3404_v26 = vmax.f32 %v2607_v49, 0.0  ;;  %v14193_v55 = vld [vmem:[#allocation13_spill] sm:$0xff]  ;;  %v14194_v57 = vld [vmem:[#allocation63_spill] sm:$0xff] }
 0x3dd   :  { %v1583_v22 = vsel %vm1577_vm1, %v1458_v38, %v1522_v35  ;;  %v1615_v14 = vsel %vm1577_vm1, %v1522_v35, %v1458_v38  ;;  %3062 = vmatprep.mubr.bf16.mxu1 %v2024_v30  ;;  %v1799_v13 = vpop.permute.xlu0 %1798  ;;  %v2816_v43 = vpop.f32.mrf.mxu1  ;;  %v2609_v8 = vadd.f32 %v14193_v55, %v10563_v41  ;;  %5631 = vmatpush2.bf16.msra.mxu1 %v8869_v21  ;;  %v14196_v30 = vld [vmem:[#allocation15_spill] sm:$0xff] }
 0x3de   :  { %14192 = vst [vmem:[#allocation84_spill] sm:$0xff] %v10664_v62  ;;  %v1652_v50 = vmul.f32 %v1615_v14, %v14135_v24  ;;  %v1653_v20 = vmul.f32 %v1583_v22, %v14138_v3  ;;  %2081 = vrot.lane.b32.xlu1 %v14183_v40, %s8954_s26  ;;  %v1987_v62 = vmul.f32 %v1927_v28, %v14194_v57  ;;  %v10686_v22 = vpop.f32.mrf.mxu0  ;;  %v3487_v4 = vmax.f32 %v2815_v52, 0.0 }
 0x3df   :  { %2143 = vrot.lane.b32.xlu0 %v14180_v54, %s8954_s26  ;;  %v2818_v38 = vpop.f32.mrf.mxu1  ;;  %v10682_v39 = vpack.c.bf16 %v3486_v61, %v3484_v63  ;;  %v2621_v35 = vadd.f32 %v14196_v30, %v10593_v44  ;;  %14197 = vst [vmem:[#allocation15_spill] sm:$0xff] %v10686_v22  ;;  %v2817_v28 = vadd.f32 %v2816_v43, %v10593_v44  ;;  %v3405_v43 = vmax.f32 %v2609_v8, 0.0  ;;  %v14202_v30 = vld [vmem:[#allocation68_spill] sm:$0xff] }
 0x3e0   :  { %v1710_v14 = vpack.c.bf16 %v1652_v50, %v1650_v45  ;;  %v2819_v36 = vadd.f32 %v2818_v38, %v10563_v41  ;;  %v1801_v49 = vpop.permute.xlu1 %1800  ;;  %v1711_v40 = vpack.c.bf16 %v1653_v20, %v1651_v15  ;;  %v2023_v55 = vpack.c.bf16 %v1989_v33, %v1987_v62  ;;  %v14198_v45 = vld [vmem:[#allocation83_spill] sm:$0xff]  ;;  %v14199_v62 = vld [vmem:[#allocation73_spill] sm:$0xff]  ;;  %v10704_v50 = vpop.f32.mrf.mxu0 }
 0x3e1   :  { %14195 = vst [vmem:[#allocation13_spill] sm:$0xff] %v10682_v39  ;;  %v1863_v11 = vpop.permute.xlu0 %1862  ;;  %v2820_v16 = vpop.f32.mrf.mxu1  ;;  %v3759_v54 = vpack.c.bf16 %v3406_v31, %v3404_v26  ;;  %v2605_v33 = vadd.f32 %v14198_v45, %v10563_v41  ;;  %v2617_v15 = vadd.f32 %v14199_v62, %v10593_v44  ;;  %v3410_v52 = vmax.f32 %v2621_v35, 0.0  ;;  %14200 = vst [vmem:[#allocation83_spill] sm:$0xff] %v10704_v50  ;;  %v14203_v35 = vld [vmem:[#allocation71_spill] sm:$0xff] }
 0x3e2   :  { %v3489_v21 = vmax.f32 %v2819_v36, 0.0  ;;  %v1929_v61 = vsel %vm1866_vm2, %v1863_v11, %v1799_v13  ;;  %v2821_v63 = vadd.f32 %v2820_v16, %v10593_v44  ;;  %2145 = vrot.lane.b32.xlu1 %v14178_v5, %s8954_s26  ;;  %2782 = vmatprep.mubr.bf16.mxu0 %v1711_v40  ;;  %v1897_v31 = vsel %vm1866_vm2, %v1799_v13, %v1863_v11 }
 0x3e3   :  { %2083 = vrot.lane.b32.xlu0 %v14194_v57, %s8954_s26  ;;  %2783 = vmatmul.mubr.bf16.gmra.mxu0 %v1710_v14  ;;  %v2824_v16 = vpop.f32.mrf.mxu1  ;;  %v3488_v38 = vmax.f32 %v2817_v28, 0.0  ;;  %v1991_v36 = vmul.f32 %v1929_v61, %v14202_v30  ;;  %v1992_v45 = vmul.f32 %v1897_v31, %v14203_v35  ;;  %v3408_v28 = vmax.f32 %v2617_v15, 0.0  ;;  %v14206_v61 = vld [vmem:[#allocation69_spill] sm:$0xff]  ;;  %v14208_v31 = vld [vmem:[#allocation16_spill] sm:$0xff] }
 0x3e4   :  { %v10706_v40 = vpack.c.bf16 %v3489_v21, %v3487_v4  ;;  %v3490_v20 = vmax.f32 %v2821_v63, 0.0  ;;  %3063 = vmatmul.mubr.bf16.gmra.mxu1 %v2023_v55  ;;  %v1865_v26 = vpop.permute.xlu1 %1864  ;;  %4121 = vmatprep.mubr.bf16.mxu0 %v3759_v54  ;;  %v2825_v4 = vadd.f32 %v2824_v16, %v10563_v41  ;;  %v14204_v21 = vld [vmem:[#allocation72_spill] sm:$0xff]  ;;  %v14205_v55 = vld [vmem:[#allocation75_spill] sm:$0xff]  ;;  %v3403_v54 = vmax.f32 %v2605_v33, 0.0 }
 0x3e5   :  { %v1898_v11 = vsel %vm1866_vm2, %v1801_v49, %v1865_v26  ;;  %v1930_v13 = vsel %vm1866_vm2, %v1865_v26, %v1801_v49  ;;  %v2028_v14 = vpop.permute.xlu0 %2027  ;;  %v2826_v8 = vpop.f32.mrf.mxu1  ;;  %v2631_v16 = vadd.f32 %v14208_v31, %v10593_v44  ;;  %v3761_v22 = vpack.c.bf16 %v3410_v52, %v3408_v28 }
 0x3e6   :  { %14201 = vst [vmem:[#allocation73_spill] sm:$0xff] %v10706_v40  ;;  %v1993_v63 = vmul.f32 %v1930_v13, %v14204_v21  ;;  %v1994_v62 = vmul.f32 %v1898_v11, %v14205_v55  ;;  %2085 = vrot.lane.b32.xlu1 %v14191_v7, %s8954_s26  ;;  %v2619_v40 = vadd.f32 %v14206_v61, %v10563_v41  ;;  %v10727_v13 = vpop.f32.mrf.mxu0 }
 0x3e7   :  { %2147 = vrot.lane.b32.xlu0 %v14189_v58, %s8954_s26  ;;  %v2828_v49 = vpop.f32.mrf.mxu1  ;;  %v10723_v26 = vpack.c.bf16 %v3490_v20, %v3488_v38  ;;  %v3758_v15 = vpack.c.bf16 %v3405_v43, %v3403_v54  ;;  %v2827_v57 = vadd.f32 %v2826_v8, %v10593_v44  ;;  %v3491_v58 = vmax.f32 %v2825_v4, 0.0  ;;  %v14210_v43 = vld [vmem:[#allocation66_spill] sm:$0xff] }
 0x3e8   :  { %v2025_v11 = vpack.c.bf16 %v1993_v63, %v1991_v36  ;;  %v2829_v39 = vadd.f32 %v2828_v49, %v10563_v41  ;;  %v2030_v7 = vpop.permute.xlu1 %2029  ;;  %v2026_v33 = vpack.c.bf16 %v1994_v62, %v1992_v45  ;;  %v14209_v36 = vld [vmem:[#allocation14_spill] sm:$0xff]  ;;  %v2627_v8 = vadd.f32 %v14210_v43, %v10593_v44  ;;  %v10744_v63 = vpop.f32.mrf.mxu0 }
 0x3e9   :  { %14207 = vst [vmem:[#allocation68_spill] sm:$0xff] %v10723_v26  ;;  %v2092_v61 = vpop.permute.xlu0 %2091  ;;  %v2830_v5 = vpop.f32.mrf.mxu1  ;;  %v2615_v45 = vadd.f32 %v14209_v36, %v10563_v41  ;;  %v3409_v4 = vmax.f32 %v2619_v40, 0.0  ;;  %v3492_v49 = vmax.f32 %v2827_v57, 0.0  ;;  %v2641_v36 = vadd.f32 %v10253_v47, %v10593_v44 }
 0x3ea   :  { %v3493_v50 = vmax.f32 %v2829_v39, 0.0  ;;  %v2188_v20 = vsel %vm2155_vm3, %v2092_v61, %v2028_v14  ;;  %v2831_v38 = vadd.f32 %v2830_v5, %v10593_v44  ;;  %2149 = vrot.lane.b32.xlu1 %v14186_v32, %s8954_s26  ;;  %3072 = vmatprep.mubr.bf16.mxu1 %v2026_v33  ;;  %v2156_v52 = vsel %vm2155_vm3, %v2028_v14, %v2092_v61  ;;  %v14212_v61 = vld [vmem:[#allocation17_spill] sm:$0xff]  ;;  %v10767_v43 = vpop.f32.mrf.mxu0 }
 0x3eb   :  { %2087 = vrot.lane.b32.xlu0 %v14202_v30, %s8954_s26  ;;  %v2834_v39 = vpop.f32.mrf.mxu1  ;;  %4122 = vmatmul.mubr.bf16.vlgmr.msra.gmra.mxu0 %v3758_v15  ;;  %v3414_v5 = vmax.f32 %v2631_v16, 0.0  ;;  %v2220_v31 = vmul.f32 %v2188_v20, %v9304_v6  ;;  %v2221_v16 = vmul.f32 %v2156_v52, %v9312_v9  ;;  %v3407_v57 = vmax.f32 %v2615_v45, 0.0 }
 0x3ec   :  { %v10746_v62 = vpack.c.bf16 %v3493_v50, %v3491_v58  ;;  %v3494_v54 = vmax.f32 %v2831_v38, 0.0  ;;  %3073 = vmatmul.mubr.bf16.gmra.mxu1 %v2025_v11  ;;  %v2094_v28 = vpop.permute.xlu1 %2093  ;;  %4131 = vmatprep.mubr.bf16.mxu0 %v3761_v22  ;;  %v2835_v58 = vadd.f32 %v2834_v39, %v10563_v41  ;;  %v3412_v22 = vmax.f32 %v2627_v8, 0.0 }
 0x3ed   :  { %v2157_v14 = vsel %vm2155_vm3, %v2030_v7, %v2094_v28  ;;  %v2189_v33 = vsel %vm2155_vm3, %v2094_v28, %v2030_v7  ;;  %v2032_v15 = vpop.permute.xlu0 %2031  ;;  %v2836_v40 = vpop.f32.mrf.mxu1  ;;  %v2629_v20 = vadd.f32 %v14212_v61, %v10563_v41  ;;  %v3760_v8 = vpack.c.bf16 %v3409_v4, %v3407_v57 }
 0x3ee   :  { %14211 = vst [vmem:[#allocation71_spill] sm:$0xff] %v10746_v62  ;;  %v2222_v50 = vmul.f32 %v2189_v33, %v9315_v10  ;;  %v2223_v11 = vmul.f32 %v2157_v14, %v9318_v12  ;;  %2089 = vrot.lane.b32.xlu1 %v14204_v21, %s8954_s26  ;;  %v10763_v38 = vpack.c.bf16 %v3494_v54, %v3492_v49  ;;  %v3495_v26 = vmax.f32 %v2835_v58, 0.0  ;;  %v14214_v49 = vld [vmem:[#allocation70_spill] sm:$0xff] }
 0x3ef   :  { %2151 = vrot.lane.b32.xlu0 %v14203_v35, %s8954_s26  ;;  %v2838_v7 = vpop.f32.mrf.mxu1  ;;  %v2837_v14 = vadd.f32 %v2836_v40, %v10593_v44  ;;  %v3763_v62 = vpack.c.bf16 %v3414_v5, %v3412_v22  ;;  %v2637_v4 = vadd.f32 %v10215_v48, %v10593_v44  ;;  %v3418_v58 = vmax.f32 %v2641_v36, 0.0 }
 0x3f0   :  { %14213 = vst [vmem:[#allocation72_spill] sm:$0xff] %v10763_v38  ;;  %v2284_v52 = vpack.c.bf16 %v2222_v50, %v2220_v31  ;;  %v2839_v39 = vadd.f32 %v2838_v7, %v10563_v41  ;;  %v2034_v28 = vpop.permute.xlu1 %2033  ;;  %v2285_v45 = vpack.c.bf16 %v2223_v11, %v2221_v16  ;;  %v2625_v31 = vadd.f32 %v14214_v49, %v10563_v41  ;;  %v10782_v50 = vpop.f32.mrf.mxu0 }
 0x3f1   :  { %v2096_v33 = vpop.permute.xlu0 %2095  ;;  %v2840_v61 = vpop.f32.mrf.mxu1  ;;  %v3413_v16 = vmax.f32 %v2629_v20, 0.0  ;;  %v3496_v7 = vmax.f32 %v2837_v14, 0.0  ;;  %v14216_v14 = vld [vmem:[#allocation78_spill] sm:$0xff] }
 0x3f2   :  { %v3497_v9 = vmax.f32 %v2839_v39, 0.0  ;;  %v2190_v54 = vsel %vm2155_vm3, %v2096_v33, %v2032_v15  ;;  %v2841_v47 = vadd.f32 %v2840_v61, %v10593_v44  ;;  %2153 = vrot.lane.b32.xlu1 %v14205_v55, %s8954_s26  ;;  %3082 = vmatprep.mubr.bf16.mxu1 %v2285_v45  ;;  %v2158_v5 = vsel %vm2155_vm3, %v2032_v15, %v2096_v33 }
 0x3f3   :  { %v2844_v40 = vpop.f32.mrf.mxu1  ;;  %4132 = vmatmul.mubr.bf16.gmra.mxu0 %v3760_v8  ;;  %v2224_v39 = vmul.f32 %v2190_v54, %v14175_v46  ;;  %v2225_v36 = vmul.f32 %v2158_v5, %v14118_v60  ;;  %v3416_v8 = vmax.f32 %v2637_v4, 0.0  ;;  %v2639_v33 = vadd.f32 %v14216_v14, %v10563_v41 }
 0x3f4   :  { %v10784_v11 = vpack.c.bf16 %v3497_v9, %v3495_v26  ;;  %v3498_v57 = vmax.f32 %v2841_v47, 0.0  ;;  %3083 = vmatmul.mubr.bf16.gmra.mxu1 %v2284_v52  ;;  %v2098_v22 = vpop.permute.xlu1 %2097  ;;  %4141 = vmatprep.mubr.bf16.mxu0 %v3763_v62  ;;  %v2845_v9 = vadd.f32 %v2844_v40, %v10563_v41  ;;  %v3411_v62 = vmax.f32 %v2625_v31, 0.0  ;;  %v10801_v47 = vpop.f32.mrf.mxu0 }
 0x3f5   :  { %v2159_v48 = vsel %vm2155_vm3, %v2034_v28, %v2098_v22  ;;  %v2191_v15 = vsel %vm2155_vm3, %v2098_v22, %v2034_v28  ;;  %v2036_v45 = vpop.permute.xlu0 %2035  ;;  %v2846_v20 = vpop.f32.mrf.mxu1  ;;  %v2651_v28 = vadd.f32 %v10328_v17, %v10593_v44 }
 0x3f6   :  { %14215 = vst [vmem:[#allocation75_spill] sm:$0xff] %v10784_v11  ;;  %v2226_v26 = vmul.f32 %v2191_v15, %v14116_v25  ;;  %v2227_v52 = vmul.f32 %v2159_v48, %v14119_v1  ;;  %v10797_v54 = vpack.c.bf16 %v3498_v57, %v3496_v7  ;;  %v3762_v15 = vpack.c.bf16 %v3413_v16, %v3411_v62  ;;  %v14218_v7 = vld [vmem:[#allocation18_spill] sm:$0xff] }
 0x3f7   :  { %v2848_v61 = vpop.f32.mrf.mxu1  ;;  %v2847_v31 = vadd.f32 %v2846_v20, %v10593_v44  ;;  %v3765_v11 = vpack.c.bf16 %v3418_v58, %v3416_v8  ;;  %v3499_v14 = vmax.f32 %v2845_v9, 0.0  ;;  %v2647_v16 = vadd.f32 %v10290_v34, %v10593_v44  ;;  %v10814_v9 = vpop.f32.mrf.mxu0 }
 0x3f8   :  { %14217 = vst [vmem:[#allocation69_spill] sm:$0xff] %v10797_v54  ;;  %v2286_v49 = vpack.c.bf16 %v2226_v26, %v2224_v39  ;;  %v2849_v5 = vadd.f32 %v2848_v61, %v10563_v41  ;;  %v2038_v40 = vpop.permute.xlu1 %2037  ;;  %v2287_v22 = vpack.c.bf16 %v2227_v52, %v2225_v36  ;;  %v2635_v39 = vadd.f32 %v14218_v7, %v10563_v41  ;;  %v8872_v61 = vld [vmem:[#allocation2 + $0x4b0] ss:$8 sps:$4 sm:$0xff]  }
 0x3f9   :  { %v2100_v4 = vpop.permute.xlu0 %2099  ;;  %v2850_v48 = vpop.f32.mrf.mxu1  ;;  %v3417_v26 = vmax.f32 %v2639_v33, 0.0  ;;  %v3422_v58 = vmax.f32 %v2651_v28, 0.0  ;;  %v3500_v33 = vmax.f32 %v2847_v31, 0.0 }
 0x3fa   :  { %v3501_v38 = vmax.f32 %v2849_v5, 0.0  ;;  %v2192_v57 = vsel %vm2155_vm3, %v2100_v4, %v2036_v45  ;;  %v2851_v17 = vadd.f32 %v2850_v48, %v10593_v44  ;;  %3092 = vmatprep.mubr.bf16.mxu1 %v2287_v22  ;;  %v2160_v20 = vsel %vm2155_vm3, %v2036_v45, %v2100_v4  ;;  %v8874_v5 = vld [vmem:[#allocation2 + $0x4b4] ss:$8 sps:$4 sm:$0xff]   ;;  %v10833_v7 = vpop.f32.mrf.mxu0 }
 0x3fb   :  { %v2854_v36 = vpop.f32.mrf.mxu1  ;;  %4142 = vmatmul.mubr.bf16.gmra.mxu0 %v3762_v15  ;;  %v2228_v22 = vmul.f32 %v2192_v57, %v14127_v37  ;;  %5632 = vmatprep.subr.bf16.mxu1 %v8874_v5  ;;  %v3415_v31 = vmax.f32 %v2635_v39, 0.0  ;;  %v3420_v48 = vmax.f32 %v2647_v16, 0.0 }
 0x3fc   :  { %v10816_v52 = vpack.c.bf16 %v3501_v38, %v3499_v14  ;;  %v3502_v62 = vmax.f32 %v2851_v17, 0.0  ;;  %3093 = vmatmul.mubr.bf16.gmra.mxu1 %v2286_v49  ;;  %v2102_v8 = vpop.permute.xlu1 %2101  ;;  %4151 = vmatprep.mubr.bf16.mxu0 %v3765_v11  ;;  %v2229_v38 = vmul.f32 %v2160_v20, %v14136_v0  ;;  %v2855_v4 = vadd.f32 %v2854_v36, %v10563_v41 }
 0x3fd   :  { %v2161_v34 = vsel %vm2155_vm3, %v2038_v40, %v2102_v8  ;;  %v2193_v45 = vsel %vm2155_vm3, %v2102_v8, %v2038_v40  ;;  %v2040_v28 = vpop.permute.xlu0 %2039  ;;  %v2856_v15 = vpop.f32.mrf.mxu1  ;;  %v2649_v14 = vadd.f32 %v10311_v29, %v10563_v41  ;;  %5633 = vmatpush2.bf16.msra.mxu1 %v8872_v61  ;;  %v2661_v40 = vadd.f32 %v10405_v18, %v10593_v44 }
 0x3fe   :  { %14219 = vst [vmem:[#allocation16_spill] sm:$0xff] %v10816_v52  ;;  %v2230_v49 = vmul.f32 %v2193_v45, %v14135_v24  ;;  %v2231_v11 = vmul.f32 %v2161_v34, %v14138_v3  ;;  %v10829_v17 = vpack.c.bf16 %v3502_v62, %v3500_v33  ;;  %v3764_v5 = vpack.c.bf16 %v3417_v26, %v3415_v31 }
 0x3ff   :  { %v2858_v57 = vpop.f32.mrf.mxu1  ;;  %v2857_v39 = vadd.f32 %v2856_v15, %v10593_v44  ;;  %v3767_v29 = vpack.c.bf16 %v3422_v58, %v3420_v48  ;;  %v3503_v52 = vmax.f32 %v2855_v4, 0.0  ;;  %v2645_v33 = vadd.f32 %v10272_v27, %v10563_v41  ;;  %v10846_v4 = vpop.f32.mrf.mxu0  ;;  %v14222_v27 = vld [vmem:[#allocation19_spill] sm:$0xff] }
 0x400   :  { %14220 = vst [vmem:[#allocation14_spill] sm:$0xff] %v10829_v17  ;;  %v2288_v20 = vpack.c.bf16 %v2230_v49, %v2228_v22  ;;  %v2859_v36 = vadd.f32 %v2858_v57, %v10563_v41  ;;  %v2042_v8 = vpop.permute.xlu1 %2041  ;;  %v2289_v34 = vpack.c.bf16 %v2231_v11, %v2229_v38  ;;  %v2657_v22 = vadd.f32 %v10367_v51, %v10593_v44 }
 0x401   :  { %v2104_v16 = vpop.permute.xlu0 %2103  ;;  %v2860_v45 = vpop.f32.mrf.mxu1  ;;  %v3421_v58 = vmax.f32 %v2649_v14, 0.0  ;;  %v3426_v38 = vmax.f32 %v2661_v40, 0.0  ;;  %v3504_v48 = vmax.f32 %v2857_v39, 0.0 }
 0x402   :  { %v3505_v61 = vmax.f32 %v2859_v36, 0.0  ;;  %v2194_v62 = vsel %vm2155_vm3, %v2104_v16, %v2040_v28  ;;  %v2861_v18 = vadd.f32 %v2860_v45, %v10593_v44  ;;  %3102 = vmatprep.mubr.bf16.mxu1 %v2289_v34  ;;  %v2162_v26 = vsel %vm2155_vm3, %v2040_v28, %v2104_v16  ;;  %v14223_v34 = vld [vmem:[#allocation21_spill] sm:$0xff] }
 0x403   :  { %v2864_v15 = vpop.f32.mrf.mxu1  ;;  %4152 = vmatmul.mubr.bf16.gmra.mxu0 %v3764_v5  ;;  %v2232_v57 = vmul.f32 %v2194_v62, %v14222_v27  ;;  %v2233_v40 = vmul.f32 %v2162_v26, %v9396_v56  ;;  %v3419_v16 = vmax.f32 %v2645_v33, 0.0  ;;  %v3424_v39 = vmax.f32 %v2657_v22, 0.0  ;;  %v10865_v62 = vpop.f32.mrf.mxu0 }
 0x404   :  { %v10848_v49 = vpack.c.bf16 %v3505_v61, %v3503_v52  ;;  %v3506_v11 = vmax.f32 %v2861_v18, 0.0  ;;  %3103 = vmatmul.mubr.bf16.gmra.mxu1 %v2288_v20  ;;  %v2106_v31 = vpop.permute.xlu1 %2105  ;;  %4161 = vmatprep.mubr.bf16.mxu0 %v3767_v29  ;;  %v2865_v52 = vadd.f32 %v2864_v15, %v10563_v41  ;;  %v2659_v45 = vadd.f32 %v10386_v23, %v10563_v41 }
 0x405   :  { %v2163_v51 = vsel %vm2155_vm3, %v2042_v8, %v2106_v31  ;;  %v2195_v28 = vsel %vm2155_vm3, %v2106_v31, %v2042_v8  ;;  %v2044_v36 = vpop.permute.xlu0 %2043  ;;  %v2866_v14 = vpop.f32.mrf.mxu1  ;;  %v2671_v8 = vadd.f32 %v10477_v19, %v10593_v44 }
 0x406   :  { %14221 = vst [vmem:[#allocation66_spill] sm:$0xff] %v10848_v49  ;;  %v2234_v5 = vmul.f32 %v2195_v28, %v14223_v34  ;;  %v2235_v20 = vmul.f32 %v2163_v51, %v9402_v59  ;;  %v10861_v61 = vpack.c.bf16 %v3506_v11, %v3504_v48  ;;  %v3766_v28 = vpack.c.bf16 %v3421_v58, %v3419_v16 }
 0x407   :  { %v2868_v29 = vpop.f32.mrf.mxu1  ;;  %v2867_v33 = vadd.f32 %v2866_v14, %v10593_v44  ;;  %v3769_v49 = vpack.c.bf16 %v3426_v38, %v3424_v39  ;;  %v3507_v23 = vmax.f32 %v2865_v52, 0.0  ;;  %v2655_v48 = vadd.f32 %v10349_v2, %v10563_v41  ;;  %v14227_v2 = vld [vmem:[#allocation23_spill] sm:$0xff] }
 0x408   :  { %14224 = vst [vmem:[#allocation17_spill] sm:$0xff] %v10861_v61  ;;  %v2290_v18 = vpack.c.bf16 %v2234_v5, %v2232_v57  ;;  %v2869_v26 = vadd.f32 %v2868_v29, %v10563_v41  ;;  %v2046_v15 = vpop.permute.xlu1 %2045  ;;  %v2291_v31 = vpack.c.bf16 %v2235_v20, %v2233_v40  ;;  %v14225_v57 = vld [vmem:[#allocation77_spill] sm:$0xff]  ;;  %v3425_v38 = vmax.f32 %v2659_v45, 0.0  ;;  %v10878_v5 = vpop.f32.mrf.mxu0 }
 0x409   :  { %v2108_v22 = vpop.permute.xlu0 %2107  ;;  %v2870_v51 = vpop.f32.mrf.mxu1  ;;  %v2667_v40 = vadd.f32 %v14225_v57, %v10593_v44  ;;  %v3430_v52 = vmax.f32 %v2671_v8, 0.0  ;;  %v3508_v29 = vmax.f32 %v2867_v33, 0.0  ;;  %v14228_v8 = vld [vmem:[#allocation24_spill] sm:$0xff] }
 0x40a   :  { %v3509_v17 = vmax.f32 %v2869_v26, 0.0  ;;  %v2196_v11 = vsel %vm2155_vm3, %v2108_v22, %v2044_v36  ;;  %v2871_v19 = vadd.f32 %v2870_v51, %v10593_v44  ;;  %3112 = vmatprep.mubr.bf16.mxu1 %v2291_v31  ;;  %v2164_v58 = vsel %vm2155_vm3, %v2044_v36, %v2108_v22  ;;  %v14229_v51 = vld [vmem:[#allocation25_spill] sm:$0xff]  ;;  %v10897_v54 = vpop.f32.mrf.mxu0 }
 0x40b   :  { %v2874_v14 = vpop.f32.mrf.mxu1  ;;  %4162 = vmatmul.mubr.bf16.gmra.mxu0 %v3766_v28  ;;  %v2236_v26 = vmul.f32 %v2196_v11, %v14227_v2  ;;  %v2237_v22 = vmul.f32 %v2164_v58, %v14228_v8  ;;  %v3428_v33 = vmax.f32 %v2667_v40, 0.0  ;;  %v14231_v11 = vld [vmem:[#allocation74_spill] sm:$0xff] }
 0x40c   :  { %v10880_v20 = vpack.c.bf16 %v3509_v17, %v3507_v23  ;;  %v3510_v16 = vmax.f32 %v2871_v19, 0.0  ;;  %3113 = vmatmul.mubr.bf16.gmra.mxu1 %v2290_v18  ;;  %v2110_v39 = vpop.permute.xlu1 %2109  ;;  %4171 = vmatprep.mubr.bf16.mxu0 %v3769_v49  ;;  %v2875_v17 = vadd.f32 %v2874_v14, %v10563_v41  ;;  %v14230_v18 = vld [vmem:[#allocation26_spill] sm:$0xff]  ;;  %v3423_v49 = vmax.f32 %v2655_v48, 0.0 }
 0x40d   :  { %v2165_v31 = vsel %vm2155_vm3, %v2046_v15, %v2110_v39  ;;  %v2197_v36 = vsel %vm2155_vm3, %v2110_v39, %v2046_v15  ;;  %v2048_v28 = vpop.permute.xlu0 %2047  ;;  %v2876_v45 = vpop.f32.mrf.mxu1  ;;  %v2669_v57 = vadd.f32 %v14231_v11, %v10563_v41  ;;  %v14233_v15 = vld [vmem:[#allocation79_spill] sm:$0xff] }
 0x40e   :  { %14226 = vst [vmem:[#allocation70_spill] sm:$0xff] %v10880_v20  ;;  %v2238_v23 = vmul.f32 %v2197_v36, %v14229_v51  ;;  %v2239_v19 = vmul.f32 %v2165_v31, %v14230_v18  ;;  %v10893_v61 = vpack.c.bf16 %v3510_v16, %v3508_v29  ;;  %v2681_v39 = vadd.f32 %v14233_v15, %v10593_v44 }
 0x40f   :  { %v2878_v20 = vpop.f32.mrf.mxu1  ;;  %v3768_v2 = vpack.c.bf16 %v3425_v38, %v3423_v49  ;;  %v2877_v48 = vadd.f32 %v2876_v45, %v10593_v44  ;;  %v3771_v18 = vpack.c.bf16 %v3430_v52, %v3428_v33  ;;  %v3511_v11 = vmax.f32 %v2875_v17, 0.0 }
 0x410   :  { %14232 = vst [vmem:[#allocation78_spill] sm:$0xff] %v10893_v61  ;;  %v2292_v58 = vpack.c.bf16 %v2238_v23, %v2236_v26  ;;  %v2879_v14 = vadd.f32 %v2878_v20, %v10563_v41  ;;  %v2050_v8 = vpop.permute.xlu1 %2049  ;;  %v2293_v36 = vpack.c.bf16 %v2239_v19, %v2237_v22  ;;  %v14234_v26 = vld [vmem:[#allocation76_spill] sm:$0xff]  ;;  %v3429_v52 = vmax.f32 %v2669_v57, 0.0  ;;  %v10910_v19 = vpop.f32.mrf.mxu0 }
 0x411   :  { %v2112_v40 = vpop.permute.xlu0 %2111  ;;  %v2880_v31 = vpop.f32.mrf.mxu1  ;;  %v2665_v23 = vadd.f32 %v14234_v26, %v10563_v41  ;;  %v14235_v20 = vld [vmem:[#allocation80_spill] sm:$0xff]  ;;  %v3434_v17 = vmax.f32 %v2681_v39, 0.0 }
 0x412   :  { %v3513_v51 = vmax.f32 %v2879_v14, 0.0  ;;  %v2198_v16 = vsel %vm2155_vm3, %v2112_v40, %v2048_v28  ;;  %v2881_v29 = vadd.f32 %v2880_v31, %v10593_v44  ;;  %3122 = vmatprep.mubr.bf16.mxu1 %v2293_v36  ;;  %v2677_v22 = vadd.f32 %v14235_v20, %v10593_v44  ;;  %v14237_v36 = vld [vmem:[#allocation27_spill] sm:$0xff]  ;;  %v14238_v39 = vld [vmem:[#allocation28_spill] sm:$0xff] }
 0x413   :  { %v2166_v38 = vsel %vm2155_vm3, %v2048_v28, %v2112_v40  ;;  %v2884_v45 = vpop.f32.mrf.mxu1  ;;  %4172 = vmatmul.mubr.bf16.gmra.mxu0 %v3768_v2  ;;  %v3512_v14 = vmax.f32 %v2877_v48, 0.0  ;;  %v2240_v31 = vmul.f32 %v2198_v16, %v14237_v36  ;;  %v14241_v16 = vld [vmem:[#allocation81_spill] sm:$0xff] }
 0x414   :  { %v10912_v49 = vpack.c.bf16 %v3513_v51, %v3511_v11  ;;  %v3514_v33 = vmax.f32 %v2881_v29, 0.0  ;;  %3123 = vmatmul.mubr.bf16.gmra.mxu1 %v2292_v58  ;;  %v2114_v15 = vpop.permute.xlu1 %2113  ;;  %4181 = vmatprep.mubr.bf16.mxu0 %v3771_v18  ;;  %v2241_v40 = vmul.f32 %v2166_v38, %v14238_v39  ;;  %v2885_v51 = vadd.f32 %v2884_v45, %v10563_v41  ;;  %v14239_v11 = vld [vmem:[#allocation29_spill] sm:$0xff]  ;;  %v14240_v58 = vld [vmem:[#allocation30_spill] sm:$0xff] }
 0x415   :  { %v2167_v26 = vsel %vm2155_vm3, %v2050_v8, %v2114_v15  ;;  %v2199_v28 = vsel %vm2155_vm3, %v2114_v15, %v2050_v8  ;;  %v2052_v2 = vpop.permute.xlu0 %2051  ;;  %v2886_v57 = vpop.f32.mrf.mxu1  ;;  %v3427_v18 = vmax.f32 %v2665_v23, 0.0  ;;  %v3432_v48 = vmax.f32 %v2677_v22, 0.0 }
 0x416   :  { %14236 = vst [vmem:[#allocation18_spill] sm:$0xff] %v10912_v49  ;;  %v2242_v29 = vmul.f32 %v2199_v28, %v14239_v11  ;;  %v2243_v20 = vmul.f32 %v2167_v26, %v14240_v58  ;;  %v2679_v49 = vadd.f32 %v14241_v16, %v10563_v41  ;;  %v10925_v36 = vpack.c.bf16 %v3514_v33, %v3512_v14  ;;  %v10929_v15 = vpop.f32.mrf.mxu0  ;;  %v14243_v14 = vld [vmem:[#allocation82_spill] sm:$0xff] }
 0x417   :  { %v2888_v61 = vpop.f32.mrf.mxu1  ;;  %v2691_v8 = vadd.f32 %v10661_v53, %v10593_v44  ;;  %v3770_v11 = vpack.c.bf16 %v3429_v52, %v3427_v18  ;;  %v2887_v23 = vadd.f32 %v2886_v57, %v10593_v44  ;;  %v3773_v58 = vpack.c.bf16 %v3434_v17, %v3432_v48 }
 0x418   :  { %14242 = vst [vmem:[#allocation21_spill] sm:$0xff] %v10925_v36  ;;  %v2294_v38 = vpack.c.bf16 %v2242_v29, %v2240_v31  ;;  %v2889_v45 = vadd.f32 %v2888_v61, %v10563_v41  ;;  %v2054_v39 = vpop.permute.xlu1 %2053  ;;  %v2295_v28 = vpack.c.bf16 %v2243_v20, %v2241_v40  ;;  %v3515_v16 = vmax.f32 %v2885_v51, 0.0  ;;  %v14244_v61 = vld [vmem:[#allocation85_spill] sm:$0xff]  ;;  %v10942_v29 = vpop.f32.mrf.mxu0  ;;  %v14250_v36 = vld [vmem:[#allocation67_spill] sm:$0xff] }
 0x419   :  { %v2116_v22 = vpop.permute.xlu0 %2115  ;;  %v2890_v26 = vpop.f32.mrf.mxu1  ;;  %v2675_v31 = vadd.f32 %v14243_v14, %v10563_v41  ;;  %v2687_v40 = vadd.f32 %v14244_v61, %v10593_v44  ;;  %v3433_v17 = vmax.f32 %v2679_v49, 0.0  ;;  %v3438_v51 = vmax.f32 %v2691_v8, 0.0  ;;  %v8875_v8 = vld [vmem:[#allocation2 + $0x4a0] ss:$8 sps:$4 sm:$0xff]  }
 0x41a   :  { %v3517_v56 = vmax.f32 %v2889_v45, 0.0  ;;  %v2200_v33 = vsel %vm2155_vm3, %v2116_v22, %v2052_v2  ;;  %v2891_v53 = vadd.f32 %v2890_v26, %v10593_v44  ;;  %3132 = vmatprep.mubr.bf16.mxu1 %v2295_v28  ;;  %v2168_v52 = vsel %vm2155_vm3, %v2052_v2, %v2116_v22  ;;  %v14246_v28 = vld [vmem:[#allocation31_spill] sm:$0xff]  ;;  %v8877_v22 = vld [vmem:[#allocation2 + $0x4a4] ss:$8 sps:$4 sm:$0xff]   ;;  %v10961_v59 = vpop.f32.mrf.mxu0 }
 0x41b   :  { %v2894_v57 = vpop.f32.mrf.mxu1  ;;  %4182 = vmatmul.mubr.bf16.gmra.mxu0 %v3770_v11  ;;  %v3516_v45 = vmax.f32 %v2887_v23, 0.0  ;;  %v2244_v26 = vmul.f32 %v2200_v33, %v14246_v28  ;;  %v14247_v61 = vld [vmem:[#allocation32_spill] sm:$0xff]  ;;  %v3436_v33 = vmax.f32 %v2687_v40, 0.0  ;;  %v2689_v28 = vadd.f32 %v14250_v36, %v10563_v41  ;;  %5634 = vmatprep.subr.bf16.mxu1 %v8877_v22 }
 0x41c   :  { %v10944_v20 = vpack.c.bf16 %v3517_v56, %v3515_v16  ;;  %v3518_v18 = vmax.f32 %v2891_v53, 0.0  ;;  %3133 = vmatmul.mubr.bf16.gmra.mxu1 %v2294_v38  ;;  %v2118_v48 = vpop.permute.xlu1 %2117  ;;  %4191 = vmatprep.mubr.bf16.mxu0 %v3773_v58  ;;  %v2245_v56 = vmul.f32 %v2168_v52, %v14247_v61  ;;  %v2895_v16 = vadd.f32 %v2894_v57, %v10563_v41  ;;  %v14248_v38 = vld [vmem:[#allocation33_spill] sm:$0xff]  ;;  %v14249_v58 = vld [vmem:[#allocation34_spill] sm:$0xff] }
 0x41d   :  { %v2169_v14 = vsel %vm2155_vm3, %v2054_v39, %v2118_v48  ;;  %v2201_v2 = vsel %vm2155_vm3, %v2118_v48, %v2054_v39  ;;  %v2056_v11 = vpop.permute.xlu0 %2055  ;;  %v2896_v49 = vpop.f32.mrf.mxu1  ;;  %v2701_v48 = vadd.f32 %v10744_v63, %v10593_v44  ;;  %5635 = vmatpush2.bf16.msra.mxu1 %v8875_v8 }
 0x41e   :  { %14245 = vst [vmem:[#allocation77_spill] sm:$0xff] %v10944_v20  ;;  %v2246_v53 = vmul.f32 %v2201_v2, %v14248_v38  ;;  %v2247_v23 = vmul.f32 %v2169_v14, %v14249_v58  ;;  %v3431_v20 = vmax.f32 %v2675_v31, 0.0  ;;  %v10957_v39 = vpack.c.bf16 %v3518_v18, %v3516_v45 }
 0x41f   :  { %v2898_v27 = vpop.f32.mrf.mxu1  ;;  %v2897_v40 = vadd.f32 %v2896_v49, %v10593_v44  ;;  %v3775_v58 = vpack.c.bf16 %v3438_v51, %v3436_v33  ;;  %v3519_v22 = vmax.f32 %v2895_v16, 0.0  ;;  %v3437_v51 = vmax.f32 %v2689_v28, 0.0  ;;  %v10974_v16 = vpop.f32.mrf.mxu0 }
 0x420   :  { %14251 = vst [vmem:[#allocation74_spill] sm:$0xff] %v10957_v39  ;;  %v2296_v52 = vpack.c.bf16 %v2246_v53, %v2244_v26  ;;  %v2899_v57 = vadd.f32 %v2898_v27, %v10563_v41  ;;  %v2058_v2 = vpop.permute.xlu1 %2057  ;;  %v2297_v61 = vpack.c.bf16 %v2247_v23, %v2245_v56  ;;  %v3772_v31 = vpack.c.bf16 %v3433_v17, %v3431_v20  ;;  %v14252_v26 = vld [vmem:[#allocation11_spill] sm:$0xff] }
 0x421   :  { %v2120_v14 = vpop.permute.xlu0 %2119  ;;  %v2900_v36 = vpop.f32.mrf.mxu1  ;;  %v2685_v27 = vadd.f32 %v14252_v26, %v10563_v41  ;;  %v14253_v56 = vld [vmem:[#allocation83_spill] sm:$0xff]  ;;  %v3442_v49 = vmax.f32 %v2701_v48, 0.0  ;;  %v3520_v33 = vmax.f32 %v2897_v40, 0.0  ;;  %v14256_v48 = vld [vmem:[#allocation36_spill] sm:$0xff] }
 0x422   :  { %v3521_v18 = vmax.f32 %v2899_v57, 0.0  ;;  %v2202_v45 = vsel %vm2155_vm3, %v2120_v14, %v2056_v11  ;;  %v2901_v63 = vadd.f32 %v2900_v36, %v10593_v44  ;;  %3142 = vmatprep.mubr.bf16.mxu1 %v2297_v61  ;;  %v2697_v8 = vadd.f32 %v14253_v56, %v10593_v44  ;;  %v14255_v57 = vld [vmem:[#allocation35_spill] sm:$0xff] }
 0x423   :  { %v2170_v17 = vsel %vm2155_vm3, %v2056_v11, %v2120_v14  ;;  %v2904_v20 = vpop.f32.mrf.mxu1  ;;  %4192 = vmatmul.mubr.bf16.gmra.mxu0 %v3772_v31  ;;  %v2248_v36 = vmul.f32 %v2202_v45, %v14255_v57  ;;  %v2699_v45 = vadd.f32 %v10727_v13, %v10563_v41 }
 0x424   :  { %v10976_v53 = vpack.c.bf16 %v3521_v18, %v3519_v22  ;;  %v3522_v23 = vmax.f32 %v2901_v63, 0.0  ;;  %3143 = vmatmul.mubr.bf16.gmra.mxu1 %v2296_v52  ;;  %v2122_v61 = vpop.permute.xlu1 %2121  ;;  %4201 = vmatprep.mubr.bf16.mxu0 %v3775_v58  ;;  %v2249_v14 = vmul.f32 %v2170_v17, %v14256_v48  ;;  %v2905_v22 = vadd.f32 %v2904_v20, %v10563_v41  ;;  %v14257_v18 = vld [vmem:[#allocation37_spill] sm:$0xff]  ;;  %v14258_v52 = vld [vmem:[#allocation38_spill] sm:$0xff] }
 0x425   :  { %v2171_v26 = vsel %vm2155_vm3, %v2058_v2, %v2122_v61  ;;  %v2203_v11 = vsel %vm2155_vm3, %v2122_v61, %v2058_v2  ;;  %v2060_v31 = vpop.permute.xlu0 %2059  ;;  %v2906_v28 = vpop.f32.mrf.mxu1  ;;  %v3435_v58 = vmax.f32 %v2685_v27, 0.0  ;;  %v3440_v40 = vmax.f32 %v2697_v8, 0.0 }
 0x426   :  { %14254 = vst [vmem:[#allocation79_spill] sm:$0xff] %v10976_v53  ;;  %v2250_v63 = vmul.f32 %v2203_v11, %v14257_v18  ;;  %v2251_v56 = vmul.f32 %v2171_v26, %v14258_v52  ;;  %v10989_v39 = vpack.c.bf16 %v3522_v23, %v3520_v33  ;;  %v2711_v2 = vadd.f32 %v10814_v9, %v10593_v44  ;;  %v10993_v61 = vpop.f32.mrf.mxu0  ;;  %v14260_v33 = vld [vmem:[#allocation15_spill] sm:$0xff] }
 0x427   :  { %v2908_v53 = vpop.f32.mrf.mxu1  ;;  %v3774_v57 = vpack.c.bf16 %v3437_v51, %v3435_v58  ;;  %v2907_v27 = vadd.f32 %v2906_v28, %v10593_v44  ;;  %v3777_v52 = vpack.c.bf16 %v3442_v49, %v3440_v40  ;;  %v3523_v13 = vmax.f32 %v2905_v22, 0.0 }
 0x428   :  { %14259 = vst [vmem:[#allocation76_spill] sm:$0xff] %v10989_v39  ;;  %v2298_v17 = vpack.c.bf16 %v2250_v63, %v2248_v36  ;;  %v2909_v20 = vadd.f32 %v2908_v53, %v10563_v41  ;;  %v2062_v48 = vpop.permute.xlu1 %2061  ;;  %v2299_v11 = vpack.c.bf16 %v2251_v56, %v2249_v14  ;;  %v2695_v36 = vadd.f32 %v14260_v33, %v10563_v41  ;;  %v11006_v22 = vpop.f32.mrf.mxu0 }
 0x429   :  { %v2124_v8 = vpop.permute.xlu0 %2123  ;;  %v2910_v26 = vpop.f32.mrf.mxu1  ;;  %v2707_v53 = vadd.f32 %v10782_v50, %v10593_v44  ;;  %v3441_v49 = vmax.f32 %v2699_v45, 0.0  ;;  %v3446_v14 = vmax.f32 %v2711_v2, 0.0  ;;  %v3524_v40 = vmax.f32 %v2907_v27, 0.0  ;;  %v14263_v2 = vld [vmem:[#allocation40_spill] sm:$0xff] }
 0x42a   :  { %v3525_v18 = vmax.f32 %v2909_v20, 0.0  ;;  %v2204_v23 = vsel %vm2155_vm3, %v2124_v8, %v2060_v31  ;;  %v2911_v9 = vadd.f32 %v2910_v26, %v10593_v44  ;;  %3152 = vmatprep.mubr.bf16.mxu1 %v2299_v11  ;;  %v2172_v51 = vsel %vm2155_vm3, %v2060_v31, %v2124_v8  ;;  %v14262_v20 = vld [vmem:[#allocation39_spill] sm:$0xff]  ;;  %v14264_v26 = vld [vmem:[#allocation41_spill] sm:$0xff] }
 0x42b   :  { %v2914_v28 = vpop.f32.mrf.mxu1  ;;  %4202 = vmatmul.mubr.bf16.gmra.mxu0 %v3774_v57  ;;  %v2252_v11 = vmul.f32 %v2204_v23, %v14262_v20  ;;  %v2253_v8 = vmul.f32 %v2172_v51, %v14263_v2  ;;  %v3444_v27 = vmax.f32 %v2707_v53, 0.0  ;;  %v2709_v23 = vadd.f32 %v10801_v47, %v10563_v41 }
 0x42c   :  { %v11008_v63 = vpack.c.bf16 %v3525_v18, %v3523_v13  ;;  %v3526_v56 = vmax.f32 %v2911_v9, 0.0  ;;  %3153 = vmatmul.mubr.bf16.gmra.mxu1 %v2298_v17  ;;  %v2126_v58 = vpop.permute.xlu1 %2125  ;;  %4211 = vmatprep.mubr.bf16.mxu0 %v3777_v52  ;;  %v2915_v18 = vadd.f32 %v2914_v28, %v10563_v41  ;;  %v14265_v17 = vld [vmem:[#allocation42_spill] sm:$0xff]  ;;  %v3439_v52 = vmax.f32 %v2695_v36, 0.0 }
 0x42d   :  { %v2173_v50 = vsel %vm2155_vm3, %v2062_v48, %v2126_v58  ;;  %v2205_v31 = vsel %vm2155_vm3, %v2126_v58, %v2062_v48  ;;  %v2064_v57 = vpop.permute.xlu0 %2063  ;;  %v2916_v45 = vpop.f32.mrf.mxu1  ;;  %v2721_v48 = vadd.f32 %v10878_v5, %v10593_v44  ;;  %v3779_v20 = vpack.c.bf16 %v3446_v14, %v3444_v27 }
 0x42e   :  { %14261 = vst [vmem:[#allocation80_spill] sm:$0xff] %v11008_v63  ;;  %v2254_v13 = vmul.f32 %v2205_v31, %v14264_v26  ;;  %v2255_v9 = vmul.f32 %v2173_v50, %v14265_v17  ;;  %v11021_v63 = vpack.c.bf16 %v3526_v56, %v3524_v40  ;;  %v11025_v58 = vpop.f32.mrf.mxu0  ;;  %v3776_v2 = vpack.c.bf16 %v3441_v49, %v3439_v52 }
 0x42f   :  { %v2918_v33 = vpop.f32.mrf.mxu1  ;;  %v2917_v36 = vadd.f32 %v2916_v45, %v10593_v44  ;;  %v3527_v47 = vmax.f32 %v2915_v18, 0.0  ;;  %v2705_v40 = vadd.f32 %v10767_v43, %v10563_v41  ;;  %v3445_v14 = vmax.f32 %v2709_v23, 0.0  ;;  %v14268_v43 = vld [vmem:[#allocation43_spill] sm:$0xff] }
 0x430   :  { %14266 = vst [vmem:[#allocation81_spill] sm:$0xff] %v11021_v63  ;;  %v2300_v51 = vpack.c.bf16 %v2254_v13, %v2252_v11  ;;  %v2919_v28 = vadd.f32 %v2918_v33, %v10563_v41  ;;  %v2066_v39 = vpop.permute.xlu1 %2065  ;;  %v2301_v31 = vpack.c.bf16 %v2255_v9, %v2253_v8  ;;  %v2717_v11 = vadd.f32 %v10846_v4, %v10593_v44  ;;  %v11038_v18 = vpop.f32.mrf.mxu0 }
 0x431   :  { %v2128_v53 = vpop.permute.xlu0 %2127  ;;  %v2920_v50 = vpop.f32.mrf.mxu1  ;;  %v3450_v8 = vmax.f32 %v2721_v48, 0.0  ;;  %v3528_v27 = vmax.f32 %v2917_v36, 0.0  ;;  %v14269_v48 = vld [vmem:[#allocation44_spill] sm:$0xff] }
 0x432   :  { %v3529_v17 = vmax.f32 %v2919_v28, 0.0  ;;  %v2206_v56 = vsel %vm2155_vm3, %v2128_v53, %v2064_v57  ;;  %v2921_v5 = vadd.f32 %v2920_v50, %v10593_v44  ;;  %3162 = vmatprep.mubr.bf16.mxu1 %v2301_v31  ;;  %v2174_v49 = vsel %vm2155_vm3, %v2064_v57, %v2128_v53  ;;  %v14270_v31 = vld [vmem:[#allocation45_spill] sm:$0xff] }
 0x433   :  { %v2924_v45 = vpop.f32.mrf.mxu1  ;;  %4212 = vmatmul.mubr.bf16.gmra.mxu0 %v3776_v2  ;;  %v2256_v33 = vmul.f32 %v2206_v56, %v14268_v43  ;;  %v2257_v28 = vmul.f32 %v2174_v49, %v14269_v48  ;;  %v3448_v36 = vmax.f32 %v2717_v11, 0.0  ;;  %v8880_v43 = vld [vmem:[#allocation2 + $0x494] ss:$8 sps:$4 sm:$0xff]  }
 0x434   :  { %v11040_v13 = vpack.c.bf16 %v3529_v17, %v3527_v47  ;;  %v3530_v9 = vmax.f32 %v2921_v5, 0.0  ;;  %3163 = vmatmul.mubr.bf16.gmra.mxu1 %v2300_v51  ;;  %v2130_v52 = vpop.permute.xlu1 %2129  ;;  %4221 = vmatprep.mubr.bf16.mxu0 %v3779_v20  ;;  %v2925_v17 = vadd.f32 %v2924_v45, %v10563_v41  ;;  %v14271_v51 = vld [vmem:[#allocation46_spill] sm:$0xff]  ;;  %v3443_v20 = vmax.f32 %v2705_v40, 0.0 }
 0x435   :  { %v2175_v4 = vsel %vm2155_vm3, %v2066_v39, %v2130_v52  ;;  %v2207_v57 = vsel %vm2155_vm3, %v2130_v52, %v2066_v39  ;;  %v2068_v2 = vpop.permute.xlu0 %2067  ;;  %v2926_v23 = vpop.f32.mrf.mxu1  ;;  %v2719_v47 = vadd.f32 %v10865_v62, %v10563_v41  ;;  %v2731_v39 = vadd.f32 %v10942_v29, %v10593_v44  ;;  %v8878_v62 = vld [vmem:[#allocation2 + $0x490] ss:$8 sps:$4 sm:$0xff]   ;;  %5636 = vmatprep.subr.bf16.mxu1 %v8880_v43 }
 0x436   :  { %14267 = vst [vmem:[#allocation82_spill] sm:$0xff] %v11040_v13  ;;  %v2258_v53 = vmul.f32 %v2207_v57, %v14270_v31  ;;  %v2259_v50 = vmul.f32 %v2175_v4, %v14271_v51  ;;  %v11053_v5 = vpack.c.bf16 %v3530_v9, %v3528_v27  ;;  %v11057_v52 = vpop.f32.mrf.mxu0  ;;  %v3778_v63 = vpack.c.bf16 %v3445_v14, %v3443_v20 }
 0x437   :  { %v2928_v56 = vpop.f32.mrf.mxu1  ;;  %v2927_v40 = vadd.f32 %v2926_v23, %v10593_v44  ;;  %v3781_v48 = vpack.c.bf16 %v3450_v8, %v3448_v36  ;;  %v3531_v9 = vmax.f32 %v2925_v17, 0.0  ;;  %v2727_v14 = vadd.f32 %v10910_v19, %v10593_v44  ;;  %5637 = vmatpush2.bf16.msra.mxu1 %v8878_v62 }
 0x438   :  { %14272 = vst [vmem:[#allocation85_spill] sm:$0xff] %v11053_v5  ;;  %v2302_v49 = vpack.c.bf16 %v2258_v53, %v2256_v33  ;;  %v2929_v45 = vadd.f32 %v2928_v56, %v10563_v41  ;;  %v2070_v13 = vpop.permute.xlu1 %2069  ;;  %v2303_v57 = vpack.c.bf16 %v2259_v50, %v2257_v28  ;;  %v2715_v33 = vadd.f32 %v10833_v7, %v10563_v41  ;;  %v11070_v53 = vpop.f32.mrf.mxu0  ;;  %v14274_v56 = vld [vmem:[#allocation47_spill] sm:$0xff] }
 0x439   :  { %v2132_v11 = vpop.permute.xlu0 %2131  ;;  %v2930_v4 = vpop.f32.mrf.mxu1  ;;  %v3449_v28 = vmax.f32 %v2719_v47, 0.0  ;;  %v3454_v17 = vmax.f32 %v2731_v39, 0.0  ;;  %v3532_v7 = vmax.f32 %v2927_v40, 0.0  ;;  %v14275_v47 = vld [vmem:[#allocation48_spill] sm:$0xff] }
 0x43a   :  { %v3533_v27 = vmax.f32 %v2929_v45, 0.0  ;;  %v2208_v29 = vsel %vm2155_vm3, %v2132_v11, %v2068_v2  ;;  %v2931_v5 = vadd.f32 %v2930_v4, %v10593_v44  ;;  %3172 = vmatprep.mubr.bf16.mxu1 %v2303_v57  ;;  %v2176_v23 = vsel %vm2155_vm3, %v2068_v2, %v2132_v11  ;;  %v14277_v11 = vld [vmem:[#allocation50_spill] sm:$0xff]  ;;  %v11089_v62 = vpop.f32.mrf.mxu0 }
 0x43b   :  { %v2934_v8 = vpop.f32.mrf.mxu1  ;;  %4222 = vmatmul.mubr.bf16.gmra.mxu0 %v3778_v63  ;;  %v2260_v45 = vmul.f32 %v2208_v29, %v14274_v56  ;;  %v2261_v39 = vmul.f32 %v2176_v23, %v14275_v47  ;;  %v3447_v40 = vmax.f32 %v2715_v33, 0.0  ;;  %v3452_v4 = vmax.f32 %v2727_v14, 0.0 }
 0x43c   :  { %v11072_v50 = vpack.c.bf16 %v3533_v27, %v3531_v9  ;;  %v3534_v20 = vmax.f32 %v2931_v5, 0.0  ;;  %3173 = vmatmul.mubr.bf16.gmra.mxu1 %v2302_v49  ;;  %v2134_v36 = vpop.permute.xlu1 %2133  ;;  %4231 = vmatprep.mubr.bf16.mxu0 %v3781_v48  ;;  %v2935_v57 = vadd.f32 %v2934_v8, %v10563_v41  ;;  %v14276_v5 = vld [vmem:[#allocation49_spill] sm:$0xff]  ;;  %v2729_v9 = vadd.f32 %v10929_v15, %v10563_v41 }
 0x43d   :  { %v2177_v19 = vsel %vm2155_vm3, %v2070_v13, %v2134_v36  ;;  %v2209_v63 = vsel %vm2155_vm3, %v2134_v36, %v2070_v13  ;;  %v2072_v43 = vpop.permute.xlu0 %2071  ;;  %v2936_v2 = vpop.f32.mrf.mxu1  ;;  %v2741_v13 = vadd.f32 %v11006_v22, %v10593_v44  ;;  %v3783_v47 = vpack.c.bf16 %v3454_v17, %v3452_v4 }
 0x43e   :  { %14273 = vst [vmem:[#allocation33_spill] sm:$0xff] %v11072_v50  ;;  %v2262_v49 = vmul.f32 %v2209_v63, %v14276_v5  ;;  %v2263_v48 = vmul.f32 %v2177_v19, %v14277_v11  ;;  %v11085_v29 = vpack.c.bf16 %v3534_v20, %v3532_v7  ;;  %v3780_v50 = vpack.c.bf16 %v3449_v28, %v3447_v40 }
 0x43f   :  { %v2938_v27 = vpop.f32.mrf.mxu1  ;;  %v2937_v33 = vadd.f32 %v2936_v2, %v10593_v44  ;;  %v3535_v15 = vmax.f32 %v2935_v57, 0.0  ;;  %v2725_v7 = vadd.f32 %v10897_v54, %v10563_v41  ;;  %v3453_v17 = vmax.f32 %v2729_v9, 0.0  ;;  %v11102_v57 = vpop.f32.mrf.mxu0  ;;  %v14280_v54 = vld [vmem:[#allocation51_spill] sm:$0xff] }
 0x440   :  { %14278 = vst [vmem:[#allocation67_spill] sm:$0xff] %v11085_v29  ;;  %v2304_v23 = vpack.c.bf16 %v2262_v49, %v2260_v45  ;;  %v2939_v8 = vadd.f32 %v2938_v27, %v10563_v41  ;;  %v2074_v36 = vpop.permute.xlu1 %2073  ;;  %v2305_v63 = vpack.c.bf16 %v2263_v48, %v2261_v39  ;;  %v2737_v45 = vadd.f32 %v10974_v16, %v10593_v44 }
 0x441   :  { %v2136_v14 = vpop.permute.xlu0 %2135  ;;  %v2940_v19 = vpop.f32.mrf.mxu1  ;;  %v3458_v39 = vmax.f32 %v2741_v13, 0.0  ;;  %v3536_v4 = vmax.f32 %v2937_v33, 0.0  ;;  %v14281_v13 = vld [vmem:[#allocation52_spill] sm:$0xff] }
 0x442   :  { %v3537_v56 = vmax.f32 %v2939_v8, 0.0  ;;  %v2210_v20 = vsel %vm2155_vm3, %v2136_v14, %v2072_v43  ;;  %v2941_v22 = vadd.f32 %v2940_v19, %v10593_v44  ;;  %3182 = vmatprep.mubr.bf16.mxu1 %v2305_v63  ;;  %v2178_v28 = vsel %vm2155_vm3, %v2072_v43, %v2136_v14  ;;  %v14282_v63 = vld [vmem:[#allocation53_spill] sm:$0xff] }
 0x443   :  { %v2944_v2 = vpop.f32.mrf.mxu1  ;;  %4232 = vmatmul.mubr.bf16.gmra.mxu0 %v3780_v50  ;;  %v2264_v27 = vmul.f32 %v2210_v20, %v14280_v54  ;;  %v2265_v8 = vmul.f32 %v2178_v28, %v14281_v13  ;;  %v3456_v33 = vmax.f32 %v2737_v45, 0.0 }
 0x444   :  { %v11104_v49 = vpack.c.bf16 %v3537_v56, %v3535_v15  ;;  %v3538_v48 = vmax.f32 %v2941_v22, 0.0  ;;  %3183 = vmatmul.mubr.bf16.gmra.mxu1 %v2304_v23  ;;  %v2138_v40 = vpop.permute.xlu1 %2137  ;;  %4241 = vmatprep.mubr.bf16.mxu0 %v3783_v47  ;;  %v2945_v56 = vadd.f32 %v2944_v2, %v10563_v41  ;;  %v14283_v23 = vld [vmem:[#allocation54_spill] sm:$0xff]  ;;  %v3451_v47 = vmax.f32 %v2725_v7, 0.0 }
 0x445   :  { %v2179_v16 = vsel %vm2155_vm3, %v2074_v36, %v2138_v40  ;;  %v2211_v43 = vsel %vm2155_vm3, %v2138_v40, %v2074_v36  ;;  %v2076_v50 = vpop.permute.xlu0 %2075  ;;  %v2946_v9 = vpop.f32.mrf.mxu1  ;;  %v2739_v15 = vadd.f32 %v10993_v61, %v10563_v41  ;;  %v2751_v36 = vadd.f32 %v11070_v53, %v10593_v44 }
 0x446   :  { %14279 = vst [vmem:[#allocation11_spill] sm:$0xff] %v11104_v49  ;;  %v2266_v14 = vmul.f32 %v2211_v43, %v14282_v63  ;;  %v2267_v19 = vmul.f32 %v2179_v16, %v14283_v23  ;;  %v11117_v22 = vpack.c.bf16 %v3538_v48, %v3536_v4  ;;  %v11121_v40 = vpop.f32.mrf.mxu0  ;;  %v3782_v29 = vpack.c.bf16 %v3453_v17, %v3451_v47 }
 0x447   :  { %v2948_v20 = vpop.f32.mrf.mxu1  ;;  %v2947_v7 = vadd.f32 %v2946_v9, %v10593_v44  ;;  %v3785_v13 = vpack.c.bf16 %v3458_v39, %v3456_v33  ;;  %v3539_v61 = vmax.f32 %v2945_v56, 0.0  ;;  %v2735_v4 = vadd.f32 %v10961_v59, %v10563_v41 }
 0x448   :  { %14284 = vst [vmem:[#allocation83_spill] sm:$0xff] %v11117_v22  ;;  %v2306_v28 = vpack.c.bf16 %v2266_v14, %v2264_v27  ;;  %v2949_v2 = vadd.f32 %v2948_v20, %v10563_v41  ;;  %v2078_v49 = vpop.permute.xlu1 %2077  ;;  %v2307_v43 = vpack.c.bf16 %v2267_v19, %v2265_v8  ;;  %v2747_v27 = vadd.f32 %v11038_v18, %v10593_v44  ;;  %v2760_v56 = vpop.f32.mrf.mxu0  ;;  %v14286_v20 = vld [vmem:[#allocation55_spill] sm:$0xff] }
 0x449   :  { %v2140_v45 = vpop.permute.xlu0 %2139  ;;  %v2950_v16 = vpop.f32.mrf.mxu1  ;;  %v3457_v39 = vmax.f32 %v2739_v15, 0.0  ;;  %v3462_v8 = vmax.f32 %v2751_v36, 0.0  ;;  %v3540_v33 = vmax.f32 %v2947_v7, 0.0  ;;  %v14287_v15 = vld [vmem:[#allocation56_spill] sm:$0xff] }
 0x44a   :  { %v3541_v54 = vmax.f32 %v2949_v2, 0.0  ;;  %v2212_v48 = vsel %vm2155_vm3, %v2140_v45, %v2076_v50  ;;  %v2951_v53 = vadd.f32 %v2950_v16, %v10593_v44  ;;  %3192 = vmatprep.mubr.bf16.mxu1 %v2307_v43  ;;  %v2180_v17 = vsel %vm2155_vm3, %v2076_v50, %v2140_v45  ;;  %v14288_v43 = vld [vmem:[#allocation57_spill] sm:$0xff] }
 0x44b   :  { %v2954_v9 = vpop.f32.mrf.mxu1  ;;  %4242 = vmatmul.mubr.bf16.gmra.mxu0 %v3782_v29  ;;  %v2268_v59 = vmul.f32 %v2212_v48, %v14286_v20  ;;  %v2269_v36 = vmul.f32 %v2180_v17, %v14287_v15  ;;  %v3460_v7 = vmax.f32 %v2747_v27, 0.0 }
 0x44c   :  { %v11134_v14 = vpack.c.bf16 %v3541_v54, %v3539_v61  ;;  %v3542_v19 = vmax.f32 %v2951_v53, 0.0  ;;  %3193 = vmatmul.mubr.bf16.gmra.mxu1 %v2306_v28  ;;  %v2142_v47 = vpop.permute.xlu1 %2141  ;;  %4251 = vmatprep.mubr.bf16.mxu0 %v3785_v13  ;;  %v2955_v54 = vadd.f32 %v2954_v9, %v10563_v41  ;;  %v14289_v28 = vld [vmem:[#allocation58_spill] sm:$0xff]  ;;  %v3455_v13 = vmax.f32 %v2735_v4, 0.0 }
 0x44d   :  { %v2181_v18 = vsel %vm2155_vm3, %v2078_v49, %v2142_v47  ;;  %v2213_v50 = vsel %vm2155_vm3, %v2142_v47, %v2078_v49  ;;  %v2080_v2 = vpop.permute.xlu0 %2079  ;;  %v2956_v29 = vpop.f32.mrf.mxu1  ;;  %v2749_v61 = vadd.f32 %v11057_v52, %v10563_v41  ;;  %v2761_v49 = vadd.f32 %v2760_v56, %v10593_v44 }
 0x44e   :  { %14285 = vst [vmem:[#allocation15_spill] sm:$0xff] %v11134_v14  ;;  %v2270_v45 = vmul.f32 %v2213_v50, %v14288_v43  ;;  %v2271_v16 = vmul.f32 %v2181_v18, %v14289_v28  ;;  %v11147_v53 = vpack.c.bf16 %v3542_v19, %v3540_v33  ;;  %v3784_v9 = vpack.c.bf16 %v3457_v39, %v3455_v13  ;;  %v14293_v13 = vld [vmem:[#allocation60_spill] sm:$0xff] }
 0x44f   :  { %v2958_v48 = vpop.f32.mrf.mxu1  ;;  %v2957_v50 = vadd.f32 %v2956_v29, %v10593_v44  ;;  %v3787_v4 = vpack.c.bf16 %v3462_v8, %v3460_v7  ;;  %v3543_v27 = vmax.f32 %v2955_v54, 0.0  ;;  %v2745_v56 = vadd.f32 %v11025_v58, %v10563_v41 }
 0x450   :  { %14290 = vst [vmem:[#allocation41_spill] sm:$0xff] %v11147_v53  ;;  %v2308_v47 = vpack.c.bf16 %v2270_v45, %v2268_v59  ;;  %v2959_v14 = vadd.f32 %v2958_v48, %v10563_v41  ;;  %v2082_v17 = vpop.permute.xlu1 %2081  ;;  %v2309_v22 = vpack.c.bf16 %v2271_v16, %v2269_v36  ;;  %v2757_v33 = vadd.f32 %v11102_v57, %v10593_v44  ;;  %v14292_v45 = vld [vmem:[#allocation59_spill] sm:$0xff] }
 0x451   :  { %v2144_v15 = vpop.permute.xlu0 %2143  ;;  %v2960_v18 = vpop.f32.mrf.mxu1  ;;  %v3461_v8 = vmax.f32 %v2749_v61, 0.0  ;;  %v3466_v29 = vmax.f32 %v2761_v49, 0.0  ;;  %v14294_v61 = vld [vmem:[#allocation61_spill] sm:$0xff]  ;;  %v14295_v49 = vld [vmem:[#allocation62_spill] sm:$0xff] }
 0x452   :  { %v3545_v20 = vmax.f32 %v2959_v14, 0.0  ;;  %v2214_v52 = vsel %vm2155_vm3, %v2144_v15, %v2080_v2  ;;  %v2961_v19 = vadd.f32 %v2960_v18, %v10593_v44  ;;  %3202 = vmatprep.mubr.bf16.mxu1 %v2309_v22  ;;  %v2182_v39 = vsel %vm2155_vm3, %v2080_v2, %v2144_v15 }
 0x453   :  { %v2964_v59 = vpop.f32.mrf.mxu1  ;;  %4252 = vmatmul.mubr.bf16.gmra.mxu0 %v3784_v9  ;;  %v3544_v22 = vmax.f32 %v2957_v50, 0.0  ;;  %v2272_v16 = vmul.f32 %v2214_v52, %v14292_v45  ;;  %v2273_v7 = vmul.f32 %v2182_v39, %v14293_v13  ;;  %v3459_v9 = vmax.f32 %v2745_v56, 0.0 }
 0x454   :  { %v11161_v14 = vpack.c.bf16 %v3545_v20, %v3543_v27  ;;  %v3546_v36 = vmax.f32 %v2961_v19, 0.0  ;;  %3203 = vmatmul.mubr.bf16.gmra.mxu1 %v2308_v47  ;;  %v2146_v54 = vpop.permute.xlu1 %2145  ;;  %4261 = vmatprep.mubr.bf16.mxu0 %v3787_v4  ;;  %v2965_v20 = vadd.f32 %v2964_v59, %v10563_v41  ;;  %v3464_v50 = vmax.f32 %v2757_v33, 0.0  ;;  %v8881_v4 = vld [vmem:[#allocation2 + $0x480] ss:$8 sps:$4 sm:$0xff]   ;;  %v8883_v27 = vld [vmem:[#allocation2 + $0x484] ss:$8 sps:$4 sm:$0xff]  }
 0x455   :  { %v2183_v58 = vsel %vm2155_vm3, %v2082_v17, %v2146_v54  ;;  %v2215_v57 = vsel %vm2155_vm3, %v2146_v54, %v2082_v17  ;;  %v2084_v2 = vpop.permute.xlu0 %2083  ;;  %v2966_v15 = vpop.f32.mrf.mxu1  ;;  %v2759_v17 = vadd.f32 %v11121_v40, %v10563_v41  ;;  %v3786_v59 = vpack.c.bf16 %v3461_v8, %v3459_v9  ;;  %5638 = vmatprep.subr.bf16.mxu1 %v8883_v27 }
 0x456   :  { %14291 = vst [vmem:[#allocation45_spill] sm:$0xff] %v11161_v14  ;;  %v2274_v48 = vmul.f32 %v2215_v57, %v14294_v61  ;;  %v2275_v47 = vmul.f32 %v2183_v58, %v14295_v49  ;;  %v11172_v52 = vpack.c.bf16 %v3546_v36, %v3544_v22  ;;  %v2967_v57 = vadd.f32 %v2966_v15, %v10593_v44 }
 0x457   :  { %v2968_v18 = vpop.f32.mrf.mxu1  ;;  %v3789_v56 = vpack.c.bf16 %v3466_v29, %v3464_v50  ;;  %v3547_v33 = vmax.f32 %v2965_v20, 0.0  ;;  %5639 = vmatpush2.bf16.msra.mxu1 %v8881_v4  ;;  %v2755_v40 = vadd.f32 %v11089_v62, %v10563_v41  ;;  %v3465_v15 = vmax.f32 %v2759_v17, 0.0  ;;  %v14298_v4 = vld [vmem:[#allocation65_spill] sm:$0xff] }
 0x458   :  { %v2310_v19 = vpack.c.bf16 %v2274_v48, %v2272_v16  ;;  %v2969_v54 = vadd.f32 %v2968_v18, %v10563_v41  ;;  %v2086_v39 = vpop.permute.xlu1 %2085  ;;  %v2311_v14 = vpack.c.bf16 %v2275_v47, %v2273_v7  ;;  %v3548_v48 = vmax.f32 %v2967_v57, 0.0  ;;  %v14296_v47 = vld [vmem:[#allocation63_spill] sm:$0xff] }
 0x459   :  { %v2148_v53 = vpop.permute.xlu0 %2147  ;;  %v2970_v58 = vpop.f32.mrf.mxu1 }
 0x45a   :  { %v3549_v13 = vmax.f32 %v2969_v54, 0.0  ;;  %v2216_v36 = vsel %vm2155_vm3, %v2148_v53, %v2084_v2  ;;  %v2971_v22 = vadd.f32 %v2970_v58, %v10593_v44  ;;  %3212 = vmatprep.mubr.bf16.mxu1 %v2311_v14  ;;  %v2184_v8 = vsel %vm2155_vm3, %v2084_v2, %v2148_v53  ;;  %v14297_v2 = vld [vmem:[#allocation64_spill] sm:$0xff] }
 0x45b   :  { %v2974_v16 = vpop.f32.mrf.mxu1  ;;  %4262 = vmatmul.mubr.bf16.gmra.mxu0 %v3786_v59  ;;  %v2276_v9 = vmul.f32 %v2216_v36, %v14296_v47  ;;  %v2277_v18 = vmul.f32 %v2184_v8, %v14297_v2 }
 0x45c   :  { %v11185_v29 = vpack.c.bf16 %v3549_v13, %v3547_v33  ;;  %v3550_v7 = vmax.f32 %v2971_v22, 0.0  ;;  %3213 = vmatmul.mubr.bf16.gmra.mxu1 %v2310_v19  ;;  %v2150_v20 = vpop.permute.xlu1 %2149  ;;  %4271 = vmatprep.mubr.bf16.mxu0 %v3789_v56  ;;  %v2975_v13 = vadd.f32 %v2974_v16, %v10563_v41  ;;  %v3463_v19 = vmax.f32 %v2755_v40, 0.0 }
 0x45d   :  { %v2185_v14 = vsel %vm2155_vm3, %v2086_v39, %v2150_v20  ;;  %v2217_v62 = vsel %vm2155_vm3, %v2150_v20, %v2086_v39  ;;  %v2088_v50 = vpop.permute.xlu0 %2087  ;;  %v2976_v53 = vpop.f32.mrf.mxu1 }
 0x45e   :  { %v2278_v27 = vmul.f32 %v2217_v62, %v14298_v4  ;;  %v2279_v17 = vmul.f32 %v2185_v14, %v14186_v32  ;;  %v11196_v59 = vpack.c.bf16 %v3550_v7, %v3548_v48  ;;  %v3788_v39 = vpack.c.bf16 %v3465_v15, %v3463_v19 }
 0x45f   :  { %v2978_v54 = vpop.f32.mrf.mxu1  ;;  %v2977_v36 = vadd.f32 %v2976_v53, %v10593_v44  ;;  %v3551_v20 = vmax.f32 %v2975_v13, 0.0 }
 0x460   :  { %v2312_v57 = vpack.c.bf16 %v2278_v27, %v2276_v9  ;;  %v2979_v58 = vadd.f32 %v2978_v54, %v10563_v41  ;;  %v2090_v56 = vpop.permute.xlu1 %2089  ;;  %v2313_v33 = vpack.c.bf16 %v2279_v17, %v2277_v18 }
 0x461   :  { %v2152_v22 = vpop.permute.xlu0 %2151  ;;  %v2980_v8 = vpop.f32.mrf.mxu1  ;;  %v3552_v53 = vmax.f32 %v2977_v36, 0.0 }
 0x462   :  { %v3553_v16 = vmax.f32 %v2979_v58, 0.0  ;;  %v2218_v62 = vsel %vm2155_vm3, %v2152_v22, %v2088_v50  ;;  %v2981_v40 = vadd.f32 %v2980_v8, %v10593_v44  ;;  %3222 = vmatprep.mubr.bf16.mxu1 %v2313_v33  ;;  %v2186_v7 = vsel %vm2155_vm3, %v2088_v50, %v2152_v22 }
 0x463   :  { %v2984_v48 = vpop.f32.mrf.mxu1  ;;  %4272 = vmatmul.mubr.bf16.gmra.mxu0 %v3788_v39  ;;  %v2280_v18 = vmul.f32 %v2218_v62, %v14202_v30  ;;  %v2281_v19 = vmul.f32 %v2186_v7, %v14203_v35  ;;  %v2317_v33 = vmul.f32 %v9318_v12, %v9315_v10 }
 0x464   :  { %v11205_v9 = vpack.c.bf16 %v3553_v16, %v3551_v20  ;;  %v3554_v15 = vmax.f32 %v2981_v40, 0.0  ;;  %3223 = vmatmul.mubr.bf16.gmra.mxu1 %v2312_v57  ;;  %v2154_v14 = vpop.permute.xlu1 %2153  ;;  %v2985_v50 = vadd.f32 %v2984_v48, %v10563_v41  ;;  %v14299_v20 = vld [vmem:[#allocation10_spill] sm:$0xff] }
 0x465   :  { %v2187_v13 = vsel %vm2155_vm3, %v2090_v56, %v2154_v14  ;;  %v2219_v27 = vsel %vm2155_vm3, %v2154_v14, %v2090_v56  ;;  %v2986_v17 = vpop.f32.mrf.mxu1  ;;  %v2316_v16 = vmul.f32 %v14299_v20, %v9304_v6  ;;  %v2319_v6 = vmul.f32 %v14119_v1, %v14116_v25 }
 0x466   :  { %v2282_v54 = vmul.f32 %v2219_v27, %v14204_v21  ;;  %v2283_v58 = vmul.f32 %v2187_v13, %v14205_v55  ;;  %v11218_v39 = vpack.c.bf16 %v3554_v15, %v3552_v53  ;;  %v2987_v22 = vadd.f32 %v2986_v17, %v10593_v44 }
 0x467   :  { %v2988_v57 = vpop.f32.mrf.mxu1  ;;  %v3555_v62 = vmax.f32 %v2985_v50, 0.0  ;;  %v2348_v14 = vpack.c.bf16 %v2317_v33, %v2316_v16 }
 0x468   :  { %v2314_v36 = vpack.c.bf16 %v2282_v54, %v2280_v18  ;;  %v2989_v42 = vadd.f32 %v2988_v57, %v10563_v41  ;;  %v2315_v56 = vpack.c.bf16 %v2283_v58, %v2281_v19  ;;  %v3556_v10 = vmax.f32 %v2987_v22, 0.0 }
 0x469   :  { %v2990_v8 = vpop.f32.mrf.mxu1  ;;  %v2318_v54 = vmul.f32 %v14118_v60, %v14175_v46  ;;  %v2321_v60 = vmul.f32 %v14138_v3, %v14135_v24 }
 0x46a   :  { %v3557_v40 = vmax.f32 %v2989_v42, 0.0  ;;  %v2991_v7 = vadd.f32 %v2990_v8, %v10593_v44  ;;  %3232 = vmatprep.mubr.bf16.mxu1 %v2315_v56 }
 0x46b   :  { %v2994_v48 = vpop.f32.mrf.mxu1  ;;  %v2349_v22 = vpack.c.bf16 %v2319_v6, %v2318_v54 }
 0x46c   :  { %v11225_v12 = vpack.c.bf16 %v3557_v40, %v3555_v62  ;;  %v3558_v15 = vmax.f32 %v2991_v7, 0.0  ;;  %3233 = vmatmul.mubr.bf16.gmra.mxu1 %v2314_v36  ;;  %v2995_v18 = vadd.f32 %v2994_v48, %v10563_v41  ;;  %v2320_v7 = vmul.f32 %v14136_v0, %v14127_v37  ;;  %v14302_v37 = vld [vmem:[#allocation22_spill] sm:$0xff] }
 0x46d   :  { %3242 = vmatprep.mubr.bf16.mxu1 %v2348_v14  ;;  %v2996_v53 = vpop.f32.mrf.mxu1  ;;  %v2323_v0 = vmul.f32 %v14302_v37, %v14223_v34  ;;  %v14310_v37 = vld [vmem:[#allocation24_spill] sm:$0xff] }
 0x46e   :  { %v11228_v13 = vpack.c.bf16 %v3558_v15, %v3556_v10  ;;  %v2997_v17 = vadd.f32 %v2996_v53, %v10593_v44  ;;  %v3559_v58 = vmax.f32 %v2995_v18, 0.0  ;;  %v2350_v53 = vpack.c.bf16 %v2321_v60, %v2320_v7  ;;  %v14306_v7 = vld [vmem:[#allocation25_spill] sm:$0xff] }
 0x46f   :  { %v2998_v27 = vpop.f32.mrf.mxu1 }
 0x470   :  { %v2999_v19 = vadd.f32 %v2998_v27, %v10563_v41  ;;  %v3560_v42 = vmax.f32 %v2997_v17, 0.0 }
 0x471   :  { %v3000_v50 = vpop.f32.mrf.mxu1 }
 0x472   :  { %v3561_v57 = vmax.f32 %v2999_v19, 0.0  ;;  %v3001_v33 = vadd.f32 %v3000_v50, %v10593_v44 }
 0x473   :  { %v3004_v36 = vpop.f32.mrf.mxu1 }
 0x474   :  { %v11237_v56 = vpack.c.bf16 %v3561_v57, %v3559_v58  ;;  %v3562_v8 = vmax.f32 %v3001_v33, 0.0  ;;  %3243 = vmatmul.mubr.bf16.gmra.mxu1 %v2348_v14  ;;  %v3005_v1 = vadd.f32 %v3004_v36, %v10563_v41  ;;  %v14303_v57 = vld [vmem:[#allocation19_spill] sm:$0xff]  ;;  %v14304_v33 = vld [vmem:[#allocation20_spill] sm:$0xff] }
 0x475   :  { %3252 = vmatprep.mubr.bf16.mxu1 %v2349_v22  ;;  %v3006_v25 = vpop.f32.mrf.mxu1  ;;  %v2322_v36 = vmul.f32 %v14304_v33, %v14303_v57 }
 0x476   :  { %v11240_v20 = vpack.c.bf16 %v3562_v8, %v3560_v42  ;;  %v3007_v46 = vadd.f32 %v3006_v25, %v10593_v44  ;;  %v3563_v48 = vmax.f32 %v3005_v1, 0.0 }
 0x477   :  { %v3008_v16 = vpop.f32.mrf.mxu1  ;;  %v2351_v1 = vpack.c.bf16 %v2323_v0, %v2322_v36 }
 0x478   :  { %v3009_v62 = vadd.f32 %v3008_v16, %v10563_v41  ;;  %v3564_v18 = vmax.f32 %v3007_v46, 0.0 }
 0x479   :  { %v3010_v40 = vpop.f32.mrf.mxu1 }
 0x47a   :  { %v3565_v14 = vmax.f32 %v3009_v62, 0.0  ;;  %v3011_v10 = vadd.f32 %v3010_v40, %v10593_v44 }
 0x47b   :  { %v3014_v15 = vpop.f32.mrf.mxu1 }
 0x47c   :  { %v11249_v27 = vpack.c.bf16 %v3565_v14, %v3563_v48  ;;  %v3566_v6 = vmax.f32 %v3011_v10, 0.0  ;;  %3253 = vmatmul.mubr.bf16.gmra.mxu1 %v2349_v22  ;;  %v3015_v3 = vadd.f32 %v3014_v15, %v10563_v41  ;;  %v14307_v48 = vld [vmem:[#allocation26_spill] sm:$0xff] }
 0x47d   :  { %3262 = vmatprep.mubr.bf16.mxu1 %v2350_v53  ;;  %v3016_v24 = vpop.f32.mrf.mxu1  ;;  %v2325_v14 = vmul.f32 %v14307_v48, %v14306_v7 }
 0x47e   :  { %14300 = vst [vmem:[#allocation46_spill] sm:$0xff] %v11249_v27  ;;  %v11252_v17 = vpack.c.bf16 %v3566_v6, %v3564_v18  ;;  %v3017_v50 = vadd.f32 %v3016_v24, %v10593_v44  ;;  %v3567_v42 = vmax.f32 %v3015_v3, 0.0 }
 0x47f   :  { %v3018_v19 = vpop.f32.mrf.mxu1 }
 0x480   :  { %14301 = vst [vmem:[#allocation49_spill] sm:$0xff] %v11252_v17  ;;  %v3019_v54 = vadd.f32 %v3018_v19, %v10563_v41  ;;  %v3568_v16 = vmax.f32 %v3017_v50, 0.0  ;;  %v14309_v19 = vld [vmem:[#allocation23_spill] sm:$0xff] }
 0x481   :  { %v3020_v58 = vpop.f32.mrf.mxu1  ;;  %v2324_v0 = vmul.f32 %v14310_v37, %v14309_v19 }
 0x482   :  { %v3569_v22 = vmax.f32 %v3019_v54, 0.0  ;;  %v3021_v8 = vadd.f32 %v3020_v58, %v10593_v44 }
 0x483   :  { %v2764_v25 = vpop.f32.mrf.mxu0  ;;  %v2352_v36 = vpack.c.bf16 %v2325_v14, %v2324_v0 }
 0x484   :  { %v11261_v60 = vpack.c.bf16 %v3569_v22, %v3567_v42  ;;  %v3570_v46 = vmax.f32 %v3021_v8, 0.0  ;;  %v3024_v62 = vpop.f32.mrf.mxu1  ;;  %3263 = vmatmul.mubr.bf16.gmra.mxu1 %v2350_v53  ;;  %v2765_v53 = vadd.f32 %v2764_v25, %v10563_v41 }
 0x485   :  { %3272 = vmatprep.mubr.bf16.mxu1 %v2351_v1  ;;  %v2766_v34 = vpop.f32.mrf.mxu0  ;;  %v3025_v15 = vadd.f32 %v3024_v62, %v10563_v41 }
 0x486   :  { %14305 = vst [vmem:[#allocation50_spill] sm:$0xff] %v11261_v60  ;;  %v3026_v40 = vpop.f32.mrf.mxu1  ;;  %v11265_v10 = vpack.c.bf16 %v3570_v46, %v3568_v16  ;;  %v2767_v6 = vadd.f32 %v2766_v34, %v10593_v44  ;;  %v3467_v7 = vmax.f32 %v2765_v53, 0.0 }
 0x487   :  { %v2768_v18 = vpop.f32.mrf.mxu0  ;;  %v3027_v50 = vadd.f32 %v3026_v40, %v10593_v44  ;;  %v3571_v42 = vmax.f32 %v3025_v15, 0.0  ;;  %v14312_v15 = vld [vmem:[#allocation29_spill] sm:$0xff] }
 0x488   :  { %14308 = vst [vmem:[#allocation53_spill] sm:$0xff] %v11265_v10  ;;  %v2769_v24 = vadd.f32 %v2768_v18, %v10563_v41  ;;  %v3028_v3 = vpop.f32.mrf.mxu1  ;;  %v3468_v46 = vmax.f32 %v2767_v6, 0.0 }
 0x489   :  { %v3029_v54 = vadd.f32 %v3028_v3, %v10563_v41  ;;  %v2770_v58 = vpop.f32.mrf.mxu0  ;;  %v3572_v25 = vmax.f32 %v3027_v50, 0.0  ;;  %v14315_v50 = vld [vmem:[#allocation27_spill] sm:$0xff] }
 0x48a   :  { %v2771_v57 = vadd.f32 %v2770_v58, %v10593_v44  ;;  %v3030_v33 = vpop.f32.mrf.mxu1  ;;  %v3469_v22 = vmax.f32 %v2769_v24, 0.0  ;;  %v14313_v24 = vld [vmem:[#allocation30_spill] sm:$0xff] }
 0x48b   :  { %v3573_v8 = vmax.f32 %v3029_v54, 0.0  ;;  %v3031_v16 = vadd.f32 %v3030_v33, %v10593_v44  ;;  %v2327_v37 = vmul.f32 %v14313_v24, %v14312_v15  ;;  %v14316_v54 = vld [vmem:[#allocation28_spill] sm:$0xff] }
 0x48c   :  { %v3470_v62 = vmax.f32 %v2771_v57, 0.0  ;;  %v3034_v34 = vpop.f32.mrf.mxu1  ;;  %3273 = vmatmul.mubr.bf16.gmra.mxu1 %v2351_v1  ;;  %v3790_v19 = vpack.c.bf16 %v3469_v22, %v3467_v7  ;;  %v2326_v58 = vmul.f32 %v14316_v54, %v14315_v50 }
 0x48d   :  { %v11277_v48 = vpack.c.bf16 %v3573_v8, %v3571_v42  ;;  %v3574_v40 = vmax.f32 %v3031_v16, 0.0  ;;  %3282 = vmatprep.mubr.bf16.mxu1 %v2352_v36  ;;  %v3035_v14 = vadd.f32 %v3034_v34, %v10563_v41 }
 0x48e   :  { %v3036_v18 = vpop.f32.mrf.mxu1  ;;  %v3791_v3 = vpack.c.bf16 %v3470_v62, %v3468_v46  ;;  %v2353_v16 = vpack.c.bf16 %v2327_v37, %v2326_v58 }
 0x48f   :  { %14311 = vst [vmem:[#allocation54_spill] sm:$0xff] %v11277_v48  ;;  %v11282_v0 = vpack.c.bf16 %v3574_v40, %v3572_v25  ;;  %v3037_v1 = vadd.f32 %v3036_v18, %v10593_v44  ;;  %v3575_v33 = vmax.f32 %v3035_v14, 0.0  ;;  %v14318_v18 = vld [vmem:[#allocation34_spill] sm:$0xff] }
 0x490   :  { %v3038_v6 = vpop.f32.mrf.mxu1  ;;  %4281 = vmatprep.mubr.bf16.mxu0 %v3791_v3  ;;  %v2329_v3 = vmul.f32 %v14318_v18, %v14248_v38 }
 0x491   :  { %14314 = vst [vmem:[#allocation57_spill] sm:$0xff] %v11282_v0  ;;  %v3039_v53 = vadd.f32 %v3038_v6, %v10563_v41  ;;  %4282 = vmatmul.mubr.bf16.gmra.mxu0 %v3790_v19  ;;  %v3576_v62 = vmax.f32 %v3037_v1, 0.0  ;;  %v14320_v6 = vld [vmem:[#allocation31_spill] sm:$0xff]  ;;  %v14321_v1 = vld [vmem:[#allocation32_spill] sm:$0xff] }
 0x492   :  { %v3040_v57 = vpop.f32.mrf.mxu1 }
 0x493   :  { %v3577_v42 = vmax.f32 %v3039_v53, 0.0  ;;  %v3041_v22 = vadd.f32 %v3040_v57, %v10593_v44  ;;  %v2774_v8 = vpop.f32.mrf.mxu0  ;;  %v2328_v53 = vmul.f32 %v14321_v1, %v14320_v6 }
 0x494   :  { %v3044_v46 = vpop.f32.mrf.mxu1  ;;  %3283 = vmatmul.mubr.bf16.gmra.mxu1 %v2352_v36  ;;  %v2775_v50 = vadd.f32 %v2774_v8, %v10563_v41 }
 0x495   :  { %v11289_v34 = vpack.c.bf16 %v3577_v42, %v3575_v33  ;;  %v3578_v7 = vmax.f32 %v3041_v22, 0.0  ;;  %3292 = vmatprep.mubr.bf16.mxu1 %v2353_v16  ;;  %v2776_v25 = vpop.f32.mrf.mxu0  ;;  %v3045_v19 = vadd.f32 %v3044_v46, %v10563_v41  ;;  %v2354_v42 = vpack.c.bf16 %v2329_v3, %v2328_v53 }
 0x496   :  { %v3046_v40 = vpop.f32.mrf.mxu1  ;;  %v2777_v24 = vadd.f32 %v2776_v25, %v10593_v44  ;;  %v3471_v6 = vmax.f32 %v2775_v50, 0.0 }
 0x497   :  { %14317 = vst [vmem:[#allocation58_spill] sm:$0xff] %v11289_v34  ;;  %v2778_v14 = vpop.f32.mrf.mxu0  ;;  %v11294_v15 = vpack.c.bf16 %v3578_v7, %v3576_v62  ;;  %v3047_v54 = vadd.f32 %v3046_v40, %v10593_v44  ;;  %v3579_v22 = vmax.f32 %v3045_v19, 0.0  ;;  %v14323_v19 = vld [vmem:[#allocation37_spill] sm:$0xff] }
 0x498   :  { %v2779_v37 = vadd.f32 %v2778_v14, %v10563_v41  ;;  %v3048_v36 = vpop.f32.mrf.mxu1  ;;  %v3472_v25 = vmax.f32 %v2777_v24, 0.0 }
 0x499   :  { %14319 = vst [vmem:[#allocation59_spill] sm:$0xff] %v11294_v15  ;;  %v3049_v58 = vadd.f32 %v3048_v36, %v10563_v41  ;;  %v2780_v38 = vpop.f32.mrf.mxu0  ;;  %v3580_v8 = vmax.f32 %v3047_v54, 0.0  ;;  %v14326_v54 = vld [vmem:[#allocation35_spill] sm:$0xff] }
 0x49a   :  { %v2781_v57 = vadd.f32 %v2780_v38, %v10593_v44  ;;  %v3050_v33 = vpop.f32.mrf.mxu1  ;;  %v3473_v46 = vmax.f32 %v2779_v37, 0.0  ;;  %v14324_v37 = vld [vmem:[#allocation38_spill] sm:$0xff] }
 0x49b   :  { %v3581_v62 = vmax.f32 %v3049_v58, 0.0  ;;  %v3051_v7 = vadd.f32 %v3050_v33, %v10593_v44  ;;  %v2331_v53 = vmul.f32 %v14324_v37, %v14323_v19 }
 0x49c   :  { %v3474_v18 = vmax.f32 %v2781_v57, 0.0  ;;  %v3054_v14 = vpop.f32.mrf.mxu1  ;;  %3293 = vmatmul.mubr.bf16.gmra.mxu1 %v2353_v16  ;;  %v3792_v38 = vpack.c.bf16 %v3473_v46, %v3471_v6  ;;  %v14327_v57 = vld [vmem:[#allocation36_spill] sm:$0xff] }
 0x49d   :  { %v11305_v1 = vpack.c.bf16 %v3581_v62, %v3579_v22  ;;  %v3582_v40 = vmax.f32 %v3051_v7, 0.0  ;;  %3302 = vmatprep.mubr.bf16.mxu1 %v2354_v42  ;;  %v3055_v3 = vadd.f32 %v3054_v14, %v10563_v41  ;;  %v2330_v33 = vmul.f32 %v14327_v57, %v14326_v54  ;;  %v14332_v54 = vld [vmem:[#allocation40_spill] sm:$0xff] }
 0x49e   :  { %v3056_v36 = vpop.f32.mrf.mxu1  ;;  %v3793_v34 = vpack.c.bf16 %v3474_v18, %v3472_v25 }
 0x49f   :  { %14322 = vst [vmem:[#allocation61_spill] sm:$0xff] %v11305_v1  ;;  %v11310_v58 = vpack.c.bf16 %v3582_v40, %v3580_v8  ;;  %v3057_v16 = vadd.f32 %v3056_v36, %v10593_v44  ;;  %v3583_v62 = vmax.f32 %v3055_v3, 0.0  ;;  %v2355_v18 = vpack.c.bf16 %v2331_v53, %v2330_v33 }
 0x4a0   :  { %v3058_v24 = vpop.f32.mrf.mxu1  ;;  %4291 = vmatprep.mubr.bf16.mxu0 %v3793_v34 }
 0x4a1   :  { %14325 = vst [vmem:[#allocation62_spill] sm:$0xff] %v11310_v58  ;;  %v3059_v50 = vadd.f32 %v3058_v24, %v10563_v41  ;;  %4292 = vmatmul.mubr.bf16.gmra.mxu0 %v3792_v38  ;;  %v3584_v6 = vmax.f32 %v3057_v16, 0.0  ;;  %v14329_v38 = vld [vmem:[#allocation42_spill] sm:$0xff]  ;;  %v14331_v16 = vld [vmem:[#allocation39_spill] sm:$0xff] }
 0x4a2   :  { %v3060_v22 = vpop.f32.mrf.mxu1  ;;  %v2333_v19 = vmul.f32 %v14329_v38, %v14264_v26  ;;  %v2332_v57 = vmul.f32 %v14332_v54, %v14331_v16 }
 0x4a3   :  { %v3585_v46 = vmax.f32 %v3059_v50, 0.0  ;;  %v3061_v7 = vadd.f32 %v3060_v22, %v10593_v44  ;;  %v2784_v25 = vpop.f32.mrf.mxu0 }
 0x4a4   :  { %v3064_v14 = vpop.f32.mrf.mxu1  ;;  %3303 = vmatmul.mubr.bf16.gmra.mxu1 %v2354_v42  ;;  %v2785_v33 = vadd.f32 %v2784_v25, %v10563_v41 }
 0x4a5   :  { %v11317_v8 = vpack.c.bf16 %v3585_v46, %v3583_v62  ;;  %v3586_v34 = vmax.f32 %v3061_v7, 0.0  ;;  %3312 = vmatprep.mubr.bf16.mxu1 %v2355_v18  ;;  %v2786_v40 = vpop.f32.mrf.mxu0  ;;  %v3065_v37 = vadd.f32 %v3064_v14, %v10563_v41  ;;  %v2356_v14 = vpack.c.bf16 %v2333_v19, %v2332_v57 }
 0x4a6   :  { %v3066_v36 = vpop.f32.mrf.mxu1  ;;  %v2787_v50 = vadd.f32 %v2786_v40, %v10593_v44  ;;  %v3475_v25 = vmax.f32 %v2785_v33, 0.0 }
 0x4a7   :  { %14328 = vst [vmem:[#allocation63_spill] sm:$0xff] %v11317_v8  ;;  %v2788_v3 = vpop.f32.mrf.mxu0  ;;  %v11322_v24 = vpack.c.bf16 %v3586_v34, %v3584_v6  ;;  %v3067_v22 = vadd.f32 %v3066_v36, %v10593_v44  ;;  %v3587_v6 = vmax.f32 %v3065_v37, 0.0 }
 0x4a8   :  { %v2789_v53 = vadd.f32 %v2788_v3, %v10563_v41  ;;  %v3068_v42 = vpop.f32.mrf.mxu1  ;;  %v3476_v8 = vmax.f32 %v2787_v50, 0.0  ;;  %v2335_v50 = vmul.f32 %v14271_v51, %v14270_v31 }
 0x4a9   :  { %14330 = vst [vmem:[#allocation64_spill] sm:$0xff] %v11322_v24  ;;  %v3069_v62 = vadd.f32 %v3068_v42, %v10563_v41  ;;  %v2790_v26 = vpop.f32.mrf.mxu0  ;;  %v3588_v36 = vmax.f32 %v3067_v22, 0.0 }
 0x4aa   :  { %v2791_v46 = vadd.f32 %v2790_v26, %v10593_v44  ;;  %v3070_v7 = vpop.f32.mrf.mxu1  ;;  %v3477_v34 = vmax.f32 %v2789_v53, 0.0 }
 0x4ab   :  { %v3589_v40 = vmax.f32 %v3069_v62, 0.0  ;;  %v3071_v38 = vadd.f32 %v3070_v7, %v10593_v44  ;;  %v11333_v3 = vpop.f32.mrf.mxu0 }
 0x4ac   :  { %v3478_v16 = vmax.f32 %v2791_v46, 0.0  ;;  %v3074_v54 = vpop.f32.mrf.mxu1  ;;  %3313 = vmatmul.mubr.bf16.gmra.mxu1 %v2355_v18  ;;  %v3794_v53 = vpack.c.bf16 %v3477_v34, %v3475_v25 }
 0x4ad   :  { %v11335_v24 = vpack.c.bf16 %v3589_v40, %v3587_v6  ;;  %v3590_v42 = vmax.f32 %v3071_v38, 0.0  ;;  %3322 = vmatprep.mubr.bf16.mxu1 %v2356_v14  ;;  %v11337_v26 = vpop.f32.mrf.mxu0  ;;  %v3075_v57 = vadd.f32 %v3074_v54, %v10563_v41  ;;  %v14336_v6 = vld [vmem:[#allocation44_spill] sm:$0xff] }
 0x4ae   :  { %v3076_v19 = vpop.f32.mrf.mxu1  ;;  %v3795_v37 = vpack.c.bf16 %v3478_v16, %v3476_v8  ;;  %v14335_v8 = vld [vmem:[#allocation43_spill] sm:$0xff]  ;;  %v14337_v38 = vld [vmem:[#allocation12_spill] sm:$0xff] }
 0x4af   :  { %14333 = vst [vmem:[#allocation65_spill] sm:$0xff] %v11335_v24  ;;  %v11340_v62 = vpop.f32.mrf.mxu0  ;;  %v11344_v46 = vpack.c.bf16 %v3590_v42, %v3588_v36  ;;  %v3077_v33 = vadd.f32 %v3076_v19, %v10593_v44  ;;  %v2334_v34 = vmul.f32 %v14336_v6, %v14335_v8  ;;  %v3591_v16 = vmax.f32 %v3075_v57, 0.0 }
 0x4b0   :  { %v3078_v18 = vpop.f32.mrf.mxu1  ;;  %4301 = vmatprep.mubr.bf16.mxu0 %v3795_v37  ;;  %v2337_v57 = vmul.f32 %v14277_v11, %v14276_v5 }
 0x4b1   :  { %14334 = vst [vmem:[#allocation10_spill] sm:$0xff] %v11344_v46  ;;  %v3079_v22 = vadd.f32 %v3078_v18, %v10563_v41  ;;  %v11348_v7 = vpop.f32.mrf.mxu0  ;;  %4302 = vmatmul.mubr.bf16.gmra.mxu0 %v3794_v53  ;;  %v2357_v25 = vpack.c.bf16 %v2335_v50, %v2334_v34  ;;  %v3592_v42 = vmax.f32 %v3077_v33, 0.0 }
 0x4b2   :  { %v3080_v40 = vpop.f32.mrf.mxu1  ;;  %4311 = vmatprep.mubr.bf16.mxu0 %v14337_v38  ;;  %v14341_v38 = vld [vmem:[#allocation47_spill] sm:$0xff] }
 0x4b3   :  { %v3593_v54 = vmax.f32 %v3079_v22, 0.0  ;;  %v3081_v31 = vadd.f32 %v3080_v40, %v10593_v44  ;;  %v11354_v51 = vpop.f32.mrf.mxu0  ;;  %v14340_v40 = vld [vmem:[#allocation86_spill] sm:$0xff] }
 0x4b4   :  { %v3084_v36 = vpop.f32.mrf.mxu1  ;;  %3323 = vmatmul.mubr.bf16.gmra.mxu1 %v2356_v14 }
 0x4b5   :  { %v11356_v19 = vpack.c.bf16 %v3593_v54, %v3591_v16  ;;  %v3594_v37 = vmax.f32 %v3081_v31, 0.0  ;;  %3332 = vmatprep.mubr.bf16.mxu1 %v2357_v25  ;;  %v11358_v53 = vpop.f32.mrf.mxu0  ;;  %v3085_v8 = vadd.f32 %v3084_v36, %v10563_v41  ;;  %v14342_v16 = vld [vmem:[#allocation48_spill] sm:$0xff]  ;;  %v14343_v36 = vld [vmem:[#allocation13_spill] sm:$0xff] }
 0x4b6   :  { %v3086_v18 = vpop.f32.mrf.mxu1  ;;  %v2336_v54 = vmul.f32 %v14342_v16, %v14341_v38 }
 0x4b7   :  { %14338 = vst [vmem:[#allocation22_spill] sm:$0xff] %v11356_v19  ;;  %v11361_v6 = vpop.f32.mrf.mxu0  ;;  %v11365_v22 = vpack.c.bf16 %v3594_v37, %v3592_v42  ;;  %v3087_v14 = vadd.f32 %v3086_v18, %v10593_v44  ;;  %v3595_v19 = vmax.f32 %v3085_v8, 0.0  ;;  %v2339_v8 = vmul.f32 %v14283_v23, %v14282_v63 }
 0x4b8   :  { %v3088_v50 = vpop.f32.mrf.mxu1  ;;  %v2358_v42 = vpack.c.bf16 %v2337_v57, %v2336_v54  ;;  %v14347_v54 = vld [vmem:[#allocation51_spill] sm:$0xff] }
 0x4b9   :  { %14339 = vst [vmem:[#allocation19_spill] sm:$0xff] %v11365_v22  ;;  %v3089_v33 = vadd.f32 %v3088_v50, %v10563_v41  ;;  %v11369_v34 = vpop.f32.mrf.mxu0  ;;  %4312 = vmatmul.mubr.bf16.gmra.mxu0 %v14340_v40  ;;  %v3596_v18 = vmax.f32 %v3087_v14, 0.0  ;;  %v14346_v14 = vld [vmem:[#allocation84_spill] sm:$0xff] }
 0x4ba   :  { %v3090_v31 = vpop.f32.mrf.mxu1  ;;  %4321 = vmatprep.mubr.bf16.mxu0 %v14343_v36 }
 0x4bb   :  { %v3597_v24 = vmax.f32 %v3089_v33, 0.0  ;;  %v3091_v5 = vadd.f32 %v3090_v31, %v10593_v44  ;;  %v11376_v11 = vpop.f32.mrf.mxu0  ;;  %v14348_v31 = vld [vmem:[#allocation52_spill] sm:$0xff] }
 0x4bc   :  { %v3094_v37 = vpop.f32.mrf.mxu1  ;;  %3333 = vmatmul.mubr.bf16.gmra.mxu1 %v2357_v25 }
 0x4bd   :  { %v11378_v50 = vpack.c.bf16 %v3597_v24, %v3595_v19  ;;  %v3598_v22 = vmax.f32 %v3091_v5, 0.0  ;;  %3342 = vmatprep.mubr.bf16.mxu1 %v2358_v42  ;;  %v11380_v40 = vpop.f32.mrf.mxu0  ;;  %v3095_v16 = vadd.f32 %v3094_v37, %v10563_v41  ;;  %v2338_v5 = vmul.f32 %v14348_v31, %v14347_v54 }
 0x4be   :  { %v3096_v38 = vpop.f32.mrf.mxu1 }
 0x4bf   :  { %14344 = vst [vmem:[#allocation20_spill] sm:$0xff] %v11378_v50  ;;  %v11383_v36 = vpop.f32.mrf.mxu0  ;;  %v11387_v33 = vpack.c.bf16 %v3598_v22, %v3596_v18  ;;  %v3097_v25 = vadd.f32 %v3096_v38, %v10593_v44  ;;  %v14349_v50 = vld [vmem:[#allocation68_spill] sm:$0xff]  ;;  %v3599_v46 = vmax.f32 %v3095_v16, 0.0  ;;  %v2359_v22 = vpack.c.bf16 %v2339_v8, %v2338_v5 }
 0x4c0   :  { %v3098_v57 = vpop.f32.mrf.mxu1  ;;  %v2341_v8 = vmul.f32 %v14289_v28, %v14288_v43  ;;  %v14355_v28 = vld [vmem:[#allocation72_spill] sm:$0xff] }
 0x4c1   :  { %14345 = vst [vmem:[#allocation25_spill] sm:$0xff] %v11387_v33  ;;  %v3099_v24 = vadd.f32 %v3098_v57, %v10563_v41  ;;  %v11391_v19 = vpop.f32.mrf.mxu0  ;;  %4322 = vmatmul.mubr.bf16.gmra.mxu0 %v14346_v14  ;;  %v3600_v38 = vmax.f32 %v3097_v25, 0.0 }
 0x4c2   :  { %v3100_v37 = vpop.f32.mrf.mxu1  ;;  %4331 = vmatprep.mubr.bf16.mxu0 %v14349_v50  ;;  %v8884_v50 = vld [vmem:[%s13862_s4 + $0x78] sm:$0xff]  }
 0x4c3   :  { %v3601_v1 = vmax.f32 %v3099_v24, 0.0  ;;  %v3101_v63 = vadd.f32 %v3100_v37, %v10593_v44  ;;  %v11398_v23 = vpop.f32.mrf.mxu0  ;;  %8381 = vmatprep.subr.bf16.mxu0 %v8884_v50  ;;  %v14352_v37 = vld [vmem:[#allocation73_spill] sm:$0xff] }
 0x4c4   :  { %v3104_v18 = vpop.f32.mrf.mxu1  ;;  %3343 = vmatmul.mubr.bf16.gmra.mxu1 %v2358_v42 }
 0x4c5   :  { %v11400_v57 = vpack.c.bf16 %v3601_v1, %v3599_v46  ;;  %v3602_v33 = vmax.f32 %v3101_v63, 0.0  ;;  %3352 = vmatprep.mubr.bf16.mxu1 %v2359_v22  ;;  %v11402_v14 = vpop.f32.mrf.mxu0  ;;  %v3105_v24 = vadd.f32 %v3104_v18, %v10563_v41  ;;  %v8885_v1 = vld [vmem:[%s13862_s4 + $0x38] sm:$0xff]   ;;  %v14354_v18 = vld [vmem:[#allocation56_spill] sm:$0xff] }
 0x4c6   :  { %v3106_v16 = vpop.f32.mrf.mxu1  ;;  %v14353_v63 = vld [vmem:[#allocation55_spill] sm:$0xff]  ;;  %8382 = vmatpush3.bf16.msra.mxu0 %v8885_v1 }
 0x4c7   :  { %14350 = vst [vmem:[#allocation26_spill] sm:$0xff] %v11400_v57  ;;  %v11408_v54 = vpop.f32.mrf.mxu0  ;;  %v11415_v46 = vpack.c.bf16 %v3602_v33, %v3600_v38  ;;  %v3107_v25 = vadd.f32 %v3106_v16, %v10593_v44  ;;  %v2340_v57 = vmul.f32 %v14354_v18, %v14353_v63  ;;  %v3603_v50 = vmax.f32 %v3105_v24, 0.0 }
 0x4c8   :  { %v3108_v42 = vpop.f32.mrf.mxu1  ;;  %v2343_v24 = vmul.f32 %v14295_v49, %v14294_v61 }
 0x4c9   :  { %14351 = vst [vmem:[#allocation23_spill] sm:$0xff] %v11415_v46  ;;  %v3109_v31 = vadd.f32 %v3108_v42, %v10563_v41  ;;  %v11419_v5 = vpop.f32.mrf.mxu0  ;;  %4332 = vmatmul.mubr.bf16.gmra.mxu0 %v14352_v37  ;;  %v2360_v16 = vpack.c.bf16 %v2341_v8, %v2340_v57  ;;  %v3604_v42 = vmax.f32 %v3107_v25, 0.0  ;;  %v14358_v25 = vld [vmem:[#allocation71_spill] sm:$0xff] }
 0x4ca   :  { %v3110_v43 = vpop.f32.mrf.mxu1  ;;  %4341 = vmatprep.mubr.bf16.mxu0 %v14355_v28 }
 0x4cb   :  { %v3605_v58 = vmax.f32 %v3109_v31, 0.0  ;;  %v3111_v33 = vadd.f32 %v3110_v43, %v10593_v44  ;;  %v11426_v38 = vpop.f32.mrf.mxu0  ;;  %v14359_v43 = vld [vmem:[#allocation60_spill] sm:$0xff] }
 0x4cc   :  { %v3114_v46 = vpop.f32.mrf.mxu1  ;;  %3353 = vmatmul.mubr.bf16.gmra.mxu1 %v2359_v22  ;;  %v2342_v28 = vmul.f32 %v14359_v43, %v14292_v45 }
 0x4cd   :  { %v11428_v15 = vpack.c.bf16 %v3605_v58, %v3603_v50  ;;  %v3606_v37 = vmax.f32 %v3111_v33, 0.0  ;;  %3362 = vmatprep.mubr.bf16.mxu1 %v2360_v16  ;;  %v11430_v48 = vpop.f32.mrf.mxu0  ;;  %v3115_v18 = vadd.f32 %v3114_v46, %v10563_v41  ;;  %v14360_v50 = vld [vmem:[#allocation69_spill] sm:$0xff] }
 0x4ce   :  { %v3116_v63 = vpop.f32.mrf.mxu1 }
 0x4cf   :  { %14356 = vst [vmem:[#allocation24_spill] sm:$0xff] %v11428_v15  ;;  %v11433_v1 = vpop.f32.mrf.mxu0  ;;  %v11437_v31 = vpack.c.bf16 %v3606_v37, %v3604_v42  ;;  %v3117_v22 = vadd.f32 %v3116_v63, %v10593_v44  ;;  %v3607_v33 = vmax.f32 %v3115_v18, 0.0  ;;  %v2361_v42 = vpack.c.bf16 %v2343_v24, %v2342_v28  ;;  %v14363_v28 = vld [vmem:[#allocation75_spill] sm:$0xff] }
 0x4d0   :  { %v3118_v57 = vpop.f32.mrf.mxu1  ;;  %v2345_v18 = vmul.f32 %v14186_v32, %v14298_v4 }
 0x4d1   :  { %14357 = vst [vmem:[#allocation29_spill] sm:$0xff] %v11437_v31  ;;  %v3119_v58 = vadd.f32 %v3118_v57, %v10563_v41  ;;  %v11441_v8 = vpop.f32.mrf.mxu0  ;;  %4342 = vmatmul.mubr.bf16.gmra.mxu0 %v14358_v25  ;;  %v3608_v63 = vmax.f32 %v3117_v22, 0.0 }
 0x4d2   :  { %v3120_v46 = vpop.f32.mrf.mxu1  ;;  %4351 = vmatprep.mubr.bf16.mxu0 %v14360_v50 }
 0x4d3   :  { %v3609_v15 = vmax.f32 %v3119_v58, 0.0  ;;  %v3121_v61 = vadd.f32 %v3120_v46, %v10593_v44  ;;  %v11448_v49 = vpop.f32.mrf.mxu0  ;;  %v2344_v46 = vmul.f32 %v14297_v2, %v14296_v47  ;;  %v8260_v2 = vld [vmem:[%s13861_s3 + $0x4] ss:$8 sm:$0x3] }
 0x4d4   :  { %v3124_v37 = vpop.f32.mrf.mxu1  ;;  %3363 = vmatmul.mubr.bf16.gmra.mxu1 %v2360_v16 }
 0x4d5   :  { %v11450_v57 = vpack.c.bf16 %v3609_v15, %v3607_v33  ;;  %v3610_v31 = vmax.f32 %v3121_v61, 0.0  ;;  %3372 = vmatprep.mubr.bf16.mxu1 %v2361_v42  ;;  %v11452_v25 = vpop.f32.mrf.mxu0  ;;  %v3125_v43 = vadd.f32 %v3124_v37, %v10563_v41  ;;  %v14364_v61 = vld [vmem:[#allocation14_spill] sm:$0xff] }
 0x4d6   :  { %v3126_v45 = vpop.f32.mrf.mxu1 }
 0x4d7   :  { %14361 = vst [vmem:[#allocation30_spill] sm:$0xff] %v11450_v57  ;;  %v11455_v50 = vpop.f32.mrf.mxu0  ;;  %v11459_v58 = vpack.c.bf16 %v3610_v31, %v3608_v63  ;;  %v3127_v16 = vadd.f32 %v3126_v45, %v10593_v44  ;;  %v3611_v37 = vmax.f32 %v3125_v43, 0.0  ;;  %v2362_v31 = vpack.c.bf16 %v2345_v18, %v2344_v46 }
 0x4d8   :  { %v3128_v24 = vpop.f32.mrf.mxu1  ;;  %v2347_v18 = vmul.f32 %v14205_v55, %v14204_v21 }
 0x4d9   :  { %14362 = vst [vmem:[#allocation27_spill] sm:$0xff] %v11459_v58  ;;  %v3129_v15 = vadd.f32 %v3128_v24, %v10563_v41  ;;  %v11463_v22 = vpop.f32.mrf.mxu0  ;;  %4352 = vmatmul.mubr.bf16.gmra.mxu0 %v14363_v28  ;;  %v3612_v45 = vmax.f32 %v3127_v16, 0.0 }
 0x4da   :  { %v3130_v33 = vpop.f32.mrf.mxu1  ;;  %4361 = vmatprep.mubr.bf16.mxu0 %v14364_v61 }
 0x4db   :  { %v3613_v57 = vmax.f32 %v3129_v15, 0.0  ;;  %v3131_v32 = vadd.f32 %v3130_v33, %v10593_v44  ;;  %v11470_v4 = vpop.f32.mrf.mxu0 }
 0x4dc   :  { %v3134_v63 = vpop.f32.mrf.mxu1  ;;  %3373 = vmatmul.mubr.bf16.gmra.mxu1 %v2361_v42 }
 0x4dd   :  { %v11472_v24 = vpack.c.bf16 %v3613_v57, %v3611_v37  ;;  %v3614_v58 = vmax.f32 %v3131_v32, 0.0  ;;  %3382 = vmatprep.mubr.bf16.mxu1 %v2362_v31  ;;  %v11474_v28 = vpop.f32.mrf.mxu0  ;;  %v3135_v43 = vadd.f32 %v3134_v63, %v10563_v41  ;;  %v14367_v57 = vld [vmem:[#allocation8_spill] sm:$0xff]  ;;  %v2346_v63 = vmul.f32 %v14203_v35, %v14202_v30 }
 0x4de   :  { %v3136_v47 = vpop.f32.mrf.mxu1  ;;  %v11487_v16 = vrot.slane %v8260_v2, %v14367_v57  ;;  %v14368_v32 = vld [vmem:[#allocation16_spill] sm:$0xff] }
 0x4df   :  { %14365 = vst [vmem:[#allocation28_spill] sm:$0xff] %v11472_v24  ;;  %v11480_v15 = vpop.f32.mrf.mxu0  ;;  %v11484_v42 = vpack.c.bf16 %v3614_v58, %v3612_v45  ;;  %v3137_v33 = vadd.f32 %v3136_v47, %v10593_v44  ;;  %v14369_v58 = vld [vmem:[#allocation17_spill] sm:$0xff]  ;;  %v3615_v45 = vmax.f32 %v3135_v43, 0.0 }
 0x4e0   :  { %v3138_v46 = vpop.f32.mrf.mxu1  ;;  %v4130_v21 = vadd.f32 %v11348_v7, %v11487_v16 }
 0x4e1   :  { %14366 = vst [vmem:[#allocation34_spill] sm:$0xff] %v11484_v42  ;;  %v3139_v61 = vadd.f32 %v3138_v46, %v10563_v41  ;;  %v11491_v37 = vpop.f32.mrf.mxu0  ;;  %4362 = vmatmul.mubr.bf16.gmra.mxu0 %v14368_v32  ;;  %v2363_v46 = vpack.c.bf16 %v2347_v18, %v2346_v63  ;;  %v4126_v42 = vadd.f32 %v11337_v26, %v11487_v16  ;;  %v3616_v0 = vmax.f32 %v3137_v33, 0.0  ;;  %v14372_v18 = vld [vmem:[#allocation9_spill] sm:$0xff] }
 0x4e2   :  { %v3140_v55 = vpop.f32.mrf.mxu1  ;;  %4371 = vmatprep.mubr.bf16.mxu0 %v14369_v58  ;;  %v4925_v58 = vmax.f32 %v4130_v21, 0.0  ;;  %v11514_v63 = vrot.slane %v8260_v2, %v14372_v18  ;;  %v4140_v2 = vadd.f32 %v11369_v34, %v11487_v16 }
 0x4e3   :  { %v3617_v57 = vmax.f32 %v3139_v61, 0.0  ;;  %v3141_v24 = vadd.f32 %v3140_v55, %v10593_v44  ;;  %v11500_v47 = vpop.f32.mrf.mxu0  ;;  %v4923_v26 = vmax.f32 %v4126_v42, 0.0 }
 0x4e4   :  { %v3144_v32 = vpop.f32.mrf.mxu1  ;;  %3383 = vmatmul.mubr.bf16.gmra.mxu1 %v2362_v31  ;;  %v4128_v21 = vadd.f32 %v11340_v62, %v11514_v63  ;;  %v4136_v62 = vadd.f32 %v11358_v53, %v11487_v16 }
 0x4e5   :  { %v11504_v30 = vpack.c.bf16 %v3617_v57, %v3615_v45  ;;  %v3618_v35 = vmax.f32 %v3141_v24, 0.0  ;;  %3392 = vmatprep.mubr.bf16.mxu1 %v2363_v46  ;;  %v11506_v7 = vpop.f32.mrf.mxu0  ;;  %v3145_v61 = vadd.f32 %v3144_v32, %v10563_v41  ;;  %v14373_v45 = vld [vmem:[#allocation66_spill] sm:$0xff] }
 0x4e6   :  { %v3146_v43 = vpop.f32.mrf.mxu1  ;;  %v4927_v17 = vmax.f32 %v4136_v62, 0.0 }
 0x4e7   :  { %14370 = vst [vmem:[#allocation31_spill] sm:$0xff] %v11504_v30  ;;  %v11509_v55 = vpop.f32.mrf.mxu0  ;;  %v11511_v60 = vpack.c.bf16 %v3618_v35, %v3616_v0  ;;  %v3147_v57 = vadd.f32 %v3146_v43, %v10593_v44  ;;  %v14374_v30 = vld [vmem:[#allocation78_spill] sm:$0xff]  ;;  %v5278_v0 = vpack.c.bf16 %v4925_v58, %v4923_v26  ;;  %v3619_v42 = vmax.f32 %v3145_v61, 0.0 }
 0x4e8   :  { %v3148_v31 = vpop.f32.mrf.mxu1  ;;  %v4924_v61 = vmax.f32 %v4128_v21, 0.0 }
 0x4e9   :  { %14371 = vst [vmem:[#allocation32_spill] sm:$0xff] %v11511_v60  ;;  %v3149_v24 = vadd.f32 %v3148_v31, %v10563_v41  ;;  %v11518_v33 = vpop.f32.mrf.mxu0  ;;  %4372 = vmatmul.mubr.bf16.gmra.mxu0 %v14373_v45  ;;  %v4124_v31 = vadd.f32 %v11333_v3, %v11514_v63  ;;  %v3620_v60 = vmax.f32 %v3147_v57, 0.0 }
 0x4ea   :  { %v3150_v32 = vpop.f32.mrf.mxu1  ;;  %4381 = vmatprep.mubr.bf16.mxu0 %v14374_v30 }
 0x4eb   :  { %v3621_v35 = vmax.f32 %v3149_v24, 0.0  ;;  %v3151_v43 = vadd.f32 %v3150_v32, %v10593_v44  ;;  %v11527_v18 = vpop.f32.mrf.mxu0  ;;  %v4929_v24 = vmax.f32 %v4140_v2, 0.0  ;;  %v4138_v2 = vadd.f32 %v11361_v6, %v11514_v63 }
 0x4ec   :  { %v3154_v45 = vpop.f32.mrf.mxu1  ;;  %3393 = vmatmul.mubr.bf16.gmra.mxu1 %v2363_v46  ;;  %v4922_v46 = vmax.f32 %v4124_v31, 0.0 }
 0x4ed   :  { %v11533_v30 = vpack.c.bf16 %v3621_v35, %v3619_v42  ;;  %v3622_v58 = vmax.f32 %v3151_v43, 0.0  ;;  %5640 = vmatprep.mubr.bf16.mxu1 %v5278_v0  ;;  %v11535_v34 = vpop.f32.mrf.mxu0  ;;  %v3155_v32 = vadd.f32 %v3154_v45, %v10563_v41  ;;  %v14377_v0 = vld [vmem:[#allocation70_spill] sm:$0xff]  ;;  %v4150_v35 = vadd.f32 %v11391_v19, %v11487_v16  ;;  %v14378_v43 = vld [vmem:[#allocation21_spill] sm:$0xff] }
 0x4ee   :  { %v3156_v26 = vpop.f32.mrf.mxu1  ;;  %v5277_v21 = vpack.c.bf16 %v4924_v61, %v4922_v46  ;;  %v4146_v61 = vadd.f32 %v11380_v40, %v11487_v16 }
 0x4ef   :  { %14375 = vst [vmem:[#allocation37_spill] sm:$0xff] %v11533_v30  ;;  %v11538_v10 = vpop.f32.mrf.mxu0  ;;  %v11540_v3 = vpack.c.bf16 %v3622_v58, %v3620_v60  ;;  %v3157_v53 = vadd.f32 %v3156_v26, %v10593_v44  ;;  %v3623_v31 = vmax.f32 %v3155_v32, 0.0  ;;  %v4134_v26 = vadd.f32 %v11354_v51, %v11514_v63 }
 0x4f0   :  { %v3158_v27 = vpop.f32.mrf.mxu1  ;;  %v4931_v40 = vmax.f32 %v4146_v61, 0.0 }
 0x4f1   :  { %14376 = vst [vmem:[#allocation38_spill] sm:$0xff] %v11540_v3  ;;  %v3159_v57 = vadd.f32 %v3158_v27, %v10563_v41  ;;  %v11544_v42 = vpop.f32.mrf.mxu0  ;;  %4382 = vmatmul.mubr.bf16.gmra.mxu0 %v14377_v0  ;;  %v5280_v27 = vpack.c.bf16 %v4929_v24, %v4927_v17  ;;  %v3624_v46 = vmax.f32 %v3157_v53, 0.0  ;;  %v4926_v30 = vmax.f32 %v4134_v26, 0.0 }
 0x4f2   :  { %v3160_v60 = vpop.f32.mrf.mxu1  ;;  %4391 = vmatprep.mubr.bf16.mxu0 %v14378_v43  ;;  %v4160_v26 = vadd.f32 %v11419_v5, %v11487_v16 }
 0x4f3   :  { %v3625_v45 = vmax.f32 %v3159_v57, 0.0  ;;  %v3161_v62 = vadd.f32 %v3160_v60, %v10593_v44  ;;  %v11553_v58 = vpop.f32.mrf.mxu0  ;;  %v4928_v57 = vmax.f32 %v4138_v2, 0.0  ;;  %v4933_v60 = vmax.f32 %v4150_v35, 0.0 }
 0x4f4   :  { %v3164_v6 = vpop.f32.mrf.mxu1  ;;  %5641 = vmatmul.mubr.bf16.vlgmr.msra.gmra.mxu1 %v5277_v21  ;;  %v4148_v35 = vadd.f32 %v11383_v36, %v11514_v63  ;;  %v4156_v36 = vadd.f32 %v11402_v14, %v11487_v16 }
 0x4f5   :  { %v11559_v19 = vpack.c.bf16 %v3625_v45, %v3623_v31  ;;  %v3626_v0 = vmax.f32 %v3161_v62, 0.0  ;;  %5650 = vmatprep.mubr.bf16.mxu1 %v5280_v27  ;;  %v11561_v32 = vpop.f32.mrf.mxu0  ;;  %v3165_v17 = vadd.f32 %v3164_v6, %v10563_v41  ;;  %v14381_v45 = vld [vmem:[#allocation18_spill] sm:$0xff]  ;;  %v5279_v2 = vpack.c.bf16 %v4928_v57, %v4926_v30 }
 0x4f6   :  { %v3166_v43 = vpop.f32.mrf.mxu1  ;;  %v14382_v27 = vld [vmem:[#allocation74_spill] sm:$0xff]  ;;  %v5282_v6 = vpack.c.bf16 %v4933_v60, %v4931_v40 }
 0x4f7   :  { %14379 = vst [vmem:[#allocation35_spill] sm:$0xff] %v11559_v19  ;;  %v11564_v24 = vpop.f32.mrf.mxu0  ;;  %v11566_v51 = vpack.c.bf16 %v3626_v0, %v3624_v46  ;;  %v3167_v53 = vadd.f32 %v3166_v43, %v10593_v44  ;;  %v3627_v61 = vmax.f32 %v3165_v17, 0.0  ;;  %v4144_v43 = vadd.f32 %v11376_v11, %v11514_v63 }
 0x4f8   :  { %v3168_v3 = vpop.f32.mrf.mxu1  ;;  %v4932_v17 = vmax.f32 %v4148_v35, 0.0 }
 0x4f9   :  { %14380 = vst [vmem:[#allocation36_spill] sm:$0xff] %v11566_v51  ;;  %v3169_v21 = vadd.f32 %v3168_v3, %v10563_v41  ;;  %v11570_v31 = vpop.f32.mrf.mxu0  ;;  %4392 = vmatmul.mubr.bf16.gmra.mxu0 %v14381_v45  ;;  %v3628_v57 = vmax.f32 %v3167_v53, 0.0  ;;  %v4935_v51 = vmax.f32 %v4156_v36, 0.0 }
 0x4fa   :  { %v3170_v62 = vpop.f32.mrf.mxu1  ;;  %4401 = vmatprep.mubr.bf16.mxu0 %v14382_v27 }
 0x4fb   :  { %v3629_v46 = vmax.f32 %v3169_v21, 0.0  ;;  %v3171_v0 = vadd.f32 %v3170_v62, %v10593_v44  ;;  %v11579_v3 = vpop.f32.mrf.mxu0  ;;  %v4937_v21 = vmax.f32 %v4160_v26, 0.0  ;;  %v4158_v26 = vadd.f32 %v11408_v54, %v11514_v63 }
 0x4fc   :  { %v3174_v30 = vpop.f32.mrf.mxu1  ;;  %5651 = vmatmul.mubr.bf16.gmra.mxu1 %v5279_v2  ;;  %v4930_v2 = vmax.f32 %v4144_v43, 0.0 }
 0x4fd   :  { %v11585_v45 = vpack.c.bf16 %v3629_v46, %v3627_v61  ;;  %v3630_v60 = vmax.f32 %v3171_v0, 0.0  ;;  %5660 = vmatprep.mubr.bf16.mxu1 %v5282_v6  ;;  %v11587_v5 = vpop.f32.mrf.mxu0  ;;  %v3175_v62 = vadd.f32 %v3174_v30, %v10563_v41  ;;  %v14384_v6 = vld [vmem:[#allocation77_spill] sm:$0xff]  ;;  %v4170_v46 = vadd.f32 %v11441_v8, %v11487_v16  ;;  %v14385_v30 = vld [vmem:[#allocation76_spill] sm:$0xff] }
 0x4fe   :  { %v3176_v40 = vpop.f32.mrf.mxu1  ;;  %v5281_v35 = vpack.c.bf16 %v4932_v17, %v4930_v2  ;;  %v4166_v17 = vadd.f32 %v11430_v48, %v11487_v16 }
 0x4ff   :  { %14383 = vst [vmem:[#allocation42_spill] sm:$0xff] %v11585_v45  ;;  %v11590_v27 = vpop.f32.mrf.mxu0  ;;  %v11592_v11 = vpack.c.bf16 %v3630_v60, %v3628_v57  ;;  %v3177_v14 = vadd.f32 %v3176_v40, %v10593_v44  ;;  %v3631_v43 = vmax.f32 %v3175_v62, 0.0  ;;  %v5284_v60 = vpack.c.bf16 %v4937_v21, %v4935_v51 }
 0x500   :  { %v3178_v19 = vpop.f32.mrf.mxu1  ;;  %v4936_v62 = vmax.f32 %v4158_v26, 0.0  ;;  %v4168_v26 = vadd.f32 %v11433_v1, %v11514_v63 }
 0x501   :  { %v3179_v53 = vadd.f32 %v3178_v19, %v10563_v41  ;;  %v11596_v61 = vpop.f32.mrf.mxu0  ;;  %4402 = vmatmul.mubr.bf16.gmra.mxu0 %v14384_v6  ;;  %v4154_v19 = vadd.f32 %v11398_v23, %v11514_v63  ;;  %v3632_v54 = vmax.f32 %v3177_v14, 0.0 }
 0x502   :  { %v3180_v0 = vpop.f32.mrf.mxu1  ;;  %4411 = vmatprep.mubr.bf16.mxu0 %v14385_v30 }
 0x503   :  { %v3633_v36 = vmax.f32 %v3179_v53, 0.0  ;;  %v3181_v57 = vadd.f32 %v3180_v0, %v10593_v44  ;;  %v11611_v6 = vpop.f32.mrf.mxu0  ;;  %v4941_v53 = vmax.f32 %v4170_v46, 0.0  ;;  %v4934_v23 = vmax.f32 %v4154_v19, 0.0 }
 0x504   :  { %v3184_v40 = vpop.f32.mrf.mxu1  ;;  %5661 = vmatmul.mubr.bf16.gmra.mxu1 %v5281_v35  ;;  %v4939_v0 = vmax.f32 %v4166_v17, 0.0  ;;  %v4180_v19 = vadd.f32 %v11463_v22, %v11487_v16  ;;  %v4940_v22 = vmax.f32 %v4168_v26, 0.0  ;;  %v4178_v26 = vadd.f32 %v11455_v50, %v11514_v63 }
 0x505   :  { %v11609_v2 = vpack.c.bf16 %v3633_v36, %v3631_v43  ;;  %v3634_v8 = vmax.f32 %v3181_v57, 0.0  ;;  %5670 = vmatprep.mubr.bf16.mxu1 %v5284_v60  ;;  %v3185_v51 = vadd.f32 %v3184_v40, %v10563_v41  ;;  %v11617_v35 = vpop.f32.mrf.mxu0  ;;  %v14386_v43 = vld [vmem:[#allocation79_spill] sm:$0xff]  ;;  %v5283_v36 = vpack.c.bf16 %v4936_v62, %v4934_v23  ;;  %v14387_v57 = vld [vmem:[#allocation81_spill] sm:$0xff] }
 0x506   :  { %v3186_v30 = vpop.f32.mrf.mxu1  ;;  %v5286_v60 = vpack.c.bf16 %v4941_v53, %v4939_v0  ;;  %v4176_v62 = vadd.f32 %v11452_v25, %v11487_v16  ;;  %v4945_v0 = vmax.f32 %v4180_v19, 0.0 }
 0x507   :  { %v11614_v21 = vpack.c.bf16 %v3634_v8, %v3632_v54  ;;  %v3187_v48 = vadd.f32 %v3186_v30, %v10593_v44  ;;  %v3635_v17 = vmax.f32 %v3185_v51, 0.0  ;;  %v11633_v23 = vpop.f32.mrf.mxu0 }
 0x508   :  { %v3188_v45 = vpop.f32.mrf.mxu1 }
 0x509   :  { %v3189_v14 = vadd.f32 %v3188_v45, %v10563_v41  ;;  %4412 = vmatmul.mubr.bf16.gmra.mxu0 %v14386_v43  ;;  %v4164_v45 = vadd.f32 %v11426_v38, %v11514_v63  ;;  %v3636_v1 = vmax.f32 %v3187_v48, 0.0 }
 0x50a   :  { %v3190_v46 = vpop.f32.mrf.mxu1  ;;  %4421 = vmatprep.mubr.bf16.mxu0 %v14387_v57  ;;  %v11638_v57 = vpop.f32.mrf.mxu0 }
 0x50b   :  { %v3637_v40 = vmax.f32 %v3189_v14, 0.0  ;;  %v3191_v54 = vadd.f32 %v3190_v46, %v10593_v44  ;;  %v4938_v38 = vmax.f32 %v4164_v45, 0.0 }
 0x50c   :  { %v3194_v8 = vpop.f32.mrf.mxu1  ;;  %5671 = vmatmul.mubr.bf16.gmra.mxu1 %v5283_v36  ;;  %v4943_v36 = vmax.f32 %v4176_v62, 0.0  ;;  %v11653_v50 = vpop.f32.mrf.mxu0 }
 0x50d   :  { %v11631_v30 = vpack.c.bf16 %v3637_v40, %v3635_v17  ;;  %v3638_v53 = vmax.f32 %v3191_v54, 0.0  ;;  %5680 = vmatprep.mubr.bf16.mxu1 %v5286_v60  ;;  %v3195_v14 = vadd.f32 %v3194_v8, %v10563_v41  ;;  %v14388_v17 = vld [vmem:[#allocation80_spill] sm:$0xff]  ;;  %v5285_v40 = vpack.c.bf16 %v4940_v22, %v4938_v38  ;;  %v14389_v54 = vld [vmem:[#allocation85_spill] sm:$0xff] }
 0x50e   :  { %v3196_v51 = vpop.f32.mrf.mxu1  ;;  %v4190_v60 = vadd.f32 %v11491_v37, %v11487_v16  ;;  %v4186_v22 = vadd.f32 %v11474_v28, %v11487_v16  ;;  %v8887_v28 = vld [vmem:[%s13862_s4 + $0x30] sm:$0xff]  }
 0x50f   :  { %v11636_v43 = vpack.c.bf16 %v3638_v53, %v3636_v1  ;;  %v3197_v25 = vadd.f32 %v3196_v51, %v10593_v44  ;;  %v3639_v45 = vmax.f32 %v3195_v14, 0.0  ;;  %v5288_v1 = vpack.c.bf16 %v4945_v0, %v4943_v36  ;;  %v8886_v14 = vld [vmem:[%s13862_s4 + $0x70] sm:$0xff]  }
 0x510   :  { %v3198_v46 = vpop.f32.mrf.mxu1  ;;  %v4174_v53 = vadd.f32 %v11448_v49, %v11514_v63  ;;  %v4944_v0 = vmax.f32 %v4178_v26, 0.0  ;;  %v4949_v36 = vmax.f32 %v4190_v60, 0.0  ;;  %8383 = vmatprep.subr.bf16.mxu0 %v8886_v14  ;;  %v14390_v60 = vld [vmem:[#allocation82_spill] sm:$0xff] }
 0x511   :  { %v3199_v48 = vadd.f32 %v3198_v46, %v10563_v41  ;;  %4422 = vmatmul.mubr.bf16.gmra.mxu0 %v14388_v17  ;;  %v3640_v38 = vmax.f32 %v3197_v25, 0.0 }
 0x512   :  { %v3200_v19 = vpop.f32.mrf.mxu1  ;;  %4431 = vmatprep.mubr.bf16.mxu0 %v14389_v54  ;;  %v4942_v25 = vmax.f32 %v4174_v53, 0.0  ;;  %v11666_v54 = vpop.f32.mrf.mxu0  ;;  %8384 = vmatpush3.bf16.msra.mxu0 %v8887_v28  ;;  %v4200_v53 = vadd.f32 %v11518_v33, %v11487_v16 }
 0x513   :  { %v3641_v8 = vmax.f32 %v3199_v48, 0.0  ;;  %v3201_v62 = vadd.f32 %v3200_v19, %v10593_v44 }
 0x514   :  { %v3204_v51 = vpop.f32.mrf.mxu1  ;;  %5681 = vmatmul.mubr.bf16.gmra.mxu1 %v5285_v40  ;;  %v4947_v40 = vmax.f32 %v4186_v22, 0.0 }
 0x515   :  { %v11655_v37 = vpack.c.bf16 %v3641_v8, %v3639_v45  ;;  %v3642_v46 = vmax.f32 %v3201_v62, 0.0  ;;  %5690 = vmatprep.mubr.bf16.mxu1 %v5288_v1  ;;  %v3205_v49 = vadd.f32 %v3204_v51, %v10563_v41  ;;  %v5287_v8 = vpack.c.bf16 %v4944_v0, %v4942_v25  ;;  %v14391_v51 = vld [vmem:[#allocation67_spill] sm:$0xff]  ;;  %v11681_v0 = vpop.f32.mrf.mxu0 }
 0x516   :  { %v3206_v48 = vpop.f32.mrf.mxu1  ;;  %v4188_v62 = vadd.f32 %v11480_v15, %v11514_v63  ;;  %v4196_v15 = vadd.f32 %v11506_v7, %v11487_v16 }
 0x517   :  { %v11664_v17 = vpack.c.bf16 %v3642_v46, %v3640_v38  ;;  %v3207_v45 = vadd.f32 %v3206_v48, %v10593_v44  ;;  %v5290_v38 = vpack.c.bf16 %v4949_v36, %v4947_v40  ;;  %v3643_v22 = vmax.f32 %v3205_v49, 0.0 }
 0x518   :  { %v3208_v19 = vpop.f32.mrf.mxu1  ;;  %v4184_v48 = vadd.f32 %v11470_v4, %v11514_v63  ;;  %v4948_v33 = vmax.f32 %v4188_v62, 0.0  ;;  %v4953_v40 = vmax.f32 %v4200_v53, 0.0  ;;  %v4198_v62 = vadd.f32 %v11509_v55, %v11514_v63 }
 0x519   :  { %v3209_v26 = vadd.f32 %v3208_v19, %v10563_v41  ;;  %4432 = vmatmul.mubr.bf16.gmra.mxu0 %v14390_v60  ;;  %v3644_v25 = vmax.f32 %v3207_v45, 0.0 }
 0x51a   :  { %v3210_v1 = vpop.f32.mrf.mxu1  ;;  %4441 = vmatprep.mubr.bf16.mxu0 %v14391_v51  ;;  %v4946_v4 = vmax.f32 %v4184_v48, 0.0  ;;  %v11688_v51 = vpop.f32.mrf.mxu0 }
 0x51b   :  { %v3645_v46 = vmax.f32 %v3209_v26, 0.0  ;;  %v3211_v14 = vadd.f32 %v3210_v1, %v10593_v44 }
 0x51c   :  { %v3214_v19 = vpop.f32.mrf.mxu1  ;;  %5691 = vmatmul.mubr.bf16.gmra.mxu1 %v5287_v8  ;;  %v4951_v8 = vmax.f32 %v4196_v15, 0.0  ;;  %v11703_v55 = vpop.f32.mrf.mxu0 }
 0x51d   :  { %v11683_v36 = vpack.c.bf16 %v3645_v46, %v3643_v22  ;;  %v3646_v28 = vmax.f32 %v3211_v14, 0.0  ;;  %5700 = vmatprep.mubr.bf16.mxu1 %v5290_v38  ;;  %v3215_v26 = vadd.f32 %v3214_v19, %v10563_v41  ;;  %v14392_v22 = vld [vmem:[#allocation33_spill] sm:$0xff]  ;;  %v5289_v46 = vpack.c.bf16 %v4948_v33, %v4946_v4  ;;  %v14393_v14 = vld [vmem:[#allocation83_spill] sm:$0xff] }
 0x51e   :  { %v3216_v49 = vpop.f32.mrf.mxu1  ;;  %v4210_v38 = vadd.f32 %v11544_v42, %v11487_v16  ;;  %v4206_v33 = vadd.f32 %v11535_v34, %v11487_v16  ;;  %v11710_v34 = vpop.f32.mrf.mxu0 }
 0x51f   :  { %v11686_v60 = vpack.c.bf16 %v3646_v28, %v3644_v25  ;;  %v3217_v7 = vadd.f32 %v3216_v49, %v10593_v44  ;;  %v3647_v48 = vmax.f32 %v3215_v26, 0.0  ;;  %v5292_v25 = vpack.c.bf16 %v4953_v40, %v4951_v8 }
 0x520   :  { %v3218_v1 = vpop.f32.mrf.mxu1  ;;  %v4194_v28 = vadd.f32 %v11500_v47, %v11514_v63  ;;  %v4952_v26 = vmax.f32 %v4198_v62, 0.0  ;;  %v4208_v62 = vadd.f32 %v11538_v10, %v11514_v63  ;;  %v11725_v10 = vpop.f32.mrf.mxu0 }
 0x521   :  { %v3219_v45 = vadd.f32 %v3218_v1, %v10563_v41  ;;  %4442 = vmatmul.mubr.bf16.gmra.mxu0 %v14392_v22  ;;  %v3648_v4 = vmax.f32 %v3217_v7, 0.0 }
 0x522   :  { %v3220_v53 = vpop.f32.mrf.mxu1  ;;  %4451 = vmatprep.mubr.bf16.mxu0 %v14393_v14  ;;  %v4950_v47 = vmax.f32 %v4194_v28, 0.0  ;;  %v4220_v28 = vadd.f32 %v11570_v31, %v11487_v16  ;;  %v4956_v31 = vmax.f32 %v4208_v62, 0.0  ;;  %v4218_v62 = vadd.f32 %v11564_v24, %v11514_v63 }
 0x523   :  { %v3649_v19 = vmax.f32 %v3219_v45, 0.0  ;;  %v3221_v15 = vadd.f32 %v3220_v53, %v10593_v44  ;;  %v4957_v45 = vmax.f32 %v4210_v38, 0.0  ;;  %v4955_v53 = vmax.f32 %v4206_v33, 0.0 }
 0x524   :  { %v3224_v49 = vpop.f32.mrf.mxu1  ;;  %5701 = vmatmul.mubr.bf16.gmra.mxu1 %v5289_v46 }
 0x525   :  { %v11705_v42 = vpack.c.bf16 %v3649_v19, %v3647_v48  ;;  %v3650_v1 = vmax.f32 %v3221_v15, 0.0  ;;  %5710 = vmatprep.mubr.bf16.mxu1 %v5292_v25  ;;  %v3225_v40 = vadd.f32 %v3224_v49, %v10563_v41  ;;  %v14394_v48 = vld [vmem:[#allocation11_spill] sm:$0xff]  ;;  %v5291_v19 = vpack.c.bf16 %v4952_v26, %v4950_v47  ;;  %v14395_v15 = vld [vmem:[#allocation41_spill] sm:$0xff] }
 0x526   :  { %v3226_v22 = vpop.f32.mrf.mxu1  ;;  %v5294_v25 = vpack.c.bf16 %v4957_v45, %v4955_v53  ;;  %v4216_v26 = vadd.f32 %v11561_v32, %v11487_v16  ;;  %v4961_v53 = vmax.f32 %v4220_v28, 0.0 }
 0x527   :  { %v11708_v8 = vpack.c.bf16 %v3650_v1, %v3648_v4  ;;  %v3227_v46 = vadd.f32 %v3226_v22, %v10593_v44  ;;  %v3651_v33 = vmax.f32 %v3225_v40, 0.0  ;;  %v4204_v1 = vadd.f32 %v11527_v18, %v11514_v63 }
 0x528   :  { %v3228_v14 = vpop.f32.mrf.mxu1 }
 0x529   :  { %v3229_v7 = vadd.f32 %v3228_v14, %v10563_v41  ;;  %4452 = vmatmul.mubr.bf16.gmra.mxu0 %v14394_v48  ;;  %v3652_v47 = vmax.f32 %v3227_v46, 0.0  ;;  %v4954_v18 = vmax.f32 %v4204_v1, 0.0 }
 0x52a   :  { %v3230_v38 = vpop.f32.mrf.mxu1  ;;  %4461 = vmatprep.mubr.bf16.mxu0 %v14395_v15  ;;  %v11732_v15 = vpop.f32.mrf.mxu0 }
 0x52b   :  { %v3653_v49 = vmax.f32 %v3229_v7, 0.0  ;;  %v3231_v4 = vadd.f32 %v3230_v38, %v10593_v44 }
 0x52c   :  { %v3234_v22 = vpop.f32.mrf.mxu1  ;;  %5711 = vmatmul.mubr.bf16.gmra.mxu1 %v5291_v19  ;;  %v4959_v19 = vmax.f32 %v4216_v26, 0.0  ;;  %v11747_v24 = vpop.f32.mrf.mxu0 }
 0x52d   :  { %v11727_v14 = vpack.c.bf16 %v3653_v49, %v3651_v33  ;;  %v3654_v45 = vmax.f32 %v3231_v4, 0.0  ;;  %5720 = vmatprep.mubr.bf16.mxu1 %v5294_v25  ;;  %v3235_v7 = vadd.f32 %v3234_v22, %v10563_v41  ;;  %v14396_v33 = vld [vmem:[#allocation15_spill] sm:$0xff]  ;;  %v5293_v49 = vpack.c.bf16 %v4956_v31, %v4954_v18 }
 0x52e   :  { %v3236_v40 = vpop.f32.mrf.mxu1  ;;  %v4230_v25 = vadd.f32 %v11596_v61, %v11487_v16  ;;  %v5296_v26 = vpack.c.bf16 %v4961_v53, %v4959_v19 }
 0x52f   :  { %v11730_v48 = vpack.c.bf16 %v3654_v45, %v3652_v47  ;;  %v3237_v32 = vadd.f32 %v3236_v40, %v10593_v44  ;;  %v3655_v4 = vmax.f32 %v3235_v7, 0.0  ;;  %v4214_v47 = vadd.f32 %v11553_v58, %v11514_v63 }
 0x530   :  { %v3238_v38 = vpop.f32.mrf.mxu1  ;;  %v4226_v45 = vadd.f32 %v11587_v5, %v11487_v16  ;;  %v4965_v7 = vmax.f32 %v4230_v25, 0.0  ;;  %v11754_v5 = vpop.f32.mrf.mxu0 }
 0x531   :  { %v3239_v46 = vadd.f32 %v3238_v38, %v10563_v41  ;;  %4462 = vmatmul.mubr.bf16.gmra.mxu0 %v14396_v33  ;;  %v3656_v40 = vmax.f32 %v3237_v32, 0.0  ;;  %v4958_v58 = vmax.f32 %v4214_v47, 0.0 }
 0x532   :  { %v3240_v28 = vpop.f32.mrf.mxu1  ;;  %4471 = vmatprep.mubr.bf16.mxu0 %v11172_v52  ;;  %v4960_v52 = vmax.f32 %v4218_v62, 0.0  ;;  %v4228_v62 = vadd.f32 %v11590_v27, %v11514_v63  ;;  %v11769_v27 = vpop.f32.mrf.mxu0 }
 0x533   :  { %v3657_v1 = vmax.f32 %v3239_v46, 0.0  ;;  %v3241_v22 = vadd.f32 %v3240_v28, %v10593_v44  ;;  %v4963_v46 = vmax.f32 %v4226_v45, 0.0  ;;  %v14397_v28 = vld [vmem:[#allocation45_spill] sm:$0xff] }
 0x534   :  { %v3244_v31 = vpop.f32.mrf.mxu1  ;;  %5721 = vmatmul.mubr.bf16.gmra.mxu1 %v5293_v49 }
 0x535   :  { %v11749_v61 = vpack.c.bf16 %v3657_v1, %v3655_v4  ;;  %v3658_v18 = vmax.f32 %v3241_v22, 0.0  ;;  %5730 = vmatprep.mubr.bf16.mxu1 %v5296_v26  ;;  %v3245_v53 = vadd.f32 %v3244_v31, %v10563_v41  ;;  %v5295_v4 = vpack.c.bf16 %v4960_v52, %v4958_v58 }
 0x536   :  { %v3246_v38 = vpop.f32.mrf.mxu1  ;;  %v5298_v1 = vpack.c.bf16 %v4965_v7, %v4963_v46  ;;  %v4240_v22 = vadd.f32 %v11638_v57, %v11487_v16  ;;  %v4224_v31 = vadd.f32 %v11579_v3, %v11514_v63  ;;  %v4964_v57 = vmax.f32 %v4228_v62, 0.0 }
 0x537   :  { %v11752_v19 = vpack.c.bf16 %v3658_v18, %v3656_v40  ;;  %v3247_v49 = vadd.f32 %v3246_v38, %v10593_v44  ;;  %v3659_v26 = vmax.f32 %v3245_v53, 0.0  ;;  %v4236_v18 = vadd.f32 %v11617_v35, %v11487_v16 }
 0x538   :  { %v3248_v33 = vpop.f32.mrf.mxu1  ;;  %v4969_v53 = vmax.f32 %v4240_v22, 0.0  ;;  %v4962_v3 = vmax.f32 %v4224_v31, 0.0  ;;  %v4238_v62 = vadd.f32 %v11633_v23, %v11514_v63  ;;  %v4234_v31 = vadd.f32 %v11611_v6, %v11514_v63 }
 0x539   :  { %v3249_v32 = vadd.f32 %v3248_v33, %v10563_v41  ;;  %4472 = vmatmul.mubr.bf16.gmra.mxu0 %v14397_v28  ;;  %v3660_v52 = vmax.f32 %v3247_v49, 0.0  ;;  %v11776_v28 = vpop.f32.mrf.mxu0 }
 0x53a   :  { %v3250_v25 = vpop.f32.mrf.mxu1  ;;  %4481 = vmatprep.mubr.bf16.mxu0 %v11196_v59  ;;  %v4966_v6 = vmax.f32 %v4234_v31, 0.0 }
 0x53b   :  { %v3661_v47 = vmax.f32 %v3249_v32, 0.0  ;;  %v3251_v45 = vadd.f32 %v3250_v25, %v10593_v44  ;;  %v4967_v32 = vmax.f32 %v4236_v18, 0.0  ;;  %v4250_v25 = vadd.f32 %v11688_v51, %v11487_v16  ;;  %v11791_v23 = vpop.f32.mrf.mxu0 }
 0x53c   :  { %v3254_v40 = vpop.f32.mrf.mxu1  ;;  %5731 = vmatmul.mubr.bf16.gmra.mxu1 %v5295_v4  ;;  %v5297_v4 = vpack.c.bf16 %v4964_v57, %v4962_v3 }
 0x53d   :  { %v11771_v59 = vpack.c.bf16 %v3661_v47, %v3659_v26  ;;  %v3662_v7 = vmax.f32 %v3251_v45, 0.0  ;;  %5740 = vmatprep.mubr.bf16.mxu1 %v5298_v1  ;;  %v3255_v58 = vadd.f32 %v3254_v40, %v10563_v41  ;;  %v5300_v45 = vpack.c.bf16 %v4969_v53, %v4967_v32 }
 0x53e   :  { %v3256_v38 = vpop.f32.mrf.mxu1 }
 0x53f   :  { %v11774_v46 = vpack.c.bf16 %v3662_v7, %v3660_v52  ;;  %v3257_v35 = vadd.f32 %v3256_v38, %v10593_v44  ;;  %v3663_v22 = vmax.f32 %v3255_v58, 0.0  ;;  %v4973_v7 = vmax.f32 %v4250_v25, 0.0 }
 0x540   :  { %v3258_v33 = vpop.f32.mrf.mxu1  ;;  %v4260_v25 = vadd.f32 %v11732_v15, %v11487_v16 }
 0x541   :  { %v3259_v49 = vadd.f32 %v3258_v33, %v10563_v41  ;;  %4482 = vmatmul.mubr.bf16.gmra.mxu0 %v11185_v29  ;;  %v4246_v29 = vadd.f32 %v11666_v54, %v11487_v16  ;;  %v3664_v18 = vmax.f32 %v3257_v35, 0.0  ;;  %v11798_v54 = vpop.f32.mrf.mxu0 }
 0x542   :  { %v3260_v1 = vpop.f32.mrf.mxu1  ;;  %4491 = vmatprep.mubr.bf16.mxu0 %v11218_v39  ;;  %v4968_v39 = vmax.f32 %v4238_v62, 0.0 }
 0x543   :  { %v3665_v26 = vmax.f32 %v3259_v49, 0.0  ;;  %v3261_v47 = vadd.f32 %v3260_v1, %v10593_v44  ;;  %v4971_v58 = vmax.f32 %v4246_v29, 0.0  ;;  %v4248_v49 = vadd.f32 %v11681_v0, %v11514_v63  ;;  %v11813_v0 = vpop.f32.mrf.mxu0 }
 0x544   :  { %v3264_v40 = vpop.f32.mrf.mxu1  ;;  %5741 = vmatmul.mubr.bf16.gmra.mxu1 %v5297_v4  ;;  %v5299_v35 = vpack.c.bf16 %v4968_v39, %v4966_v6 }
 0x545   :  { %v11793_v51 = vpack.c.bf16 %v3665_v26, %v3663_v22  ;;  %v3666_v52 = vmax.f32 %v3261_v47, 0.0  ;;  %5750 = vmatprep.mubr.bf16.mxu1 %v5300_v45  ;;  %v3265_v38 = vadd.f32 %v3264_v40, %v10563_v41  ;;  %v5302_v62 = vpack.c.bf16 %v4973_v7, %v4971_v58 }
 0x546   :  { %v3266_v57 = vpop.f32.mrf.mxu1  ;;  %v4244_v47 = vadd.f32 %v11653_v50, %v11514_v63  ;;  %v4972_v15 = vmax.f32 %v4248_v49, 0.0 }
 0x547   :  { %v11796_v53 = vpack.c.bf16 %v3666_v52, %v3664_v18  ;;  %v3267_v33 = vadd.f32 %v3266_v57, %v10593_v44  ;;  %v3667_v1 = vmax.f32 %v3265_v38, 0.0  ;;  %v4977_v18 = vmax.f32 %v4260_v25, 0.0  ;;  %v4279_v38 = vpop.f32.mrf.mxu0 }
 0x548   :  { %v3268_v3 = vpop.f32.mrf.mxu1  ;;  %v4970_v50 = vmax.f32 %v4244_v47, 0.0 }
 0x549   :  { %v3269_v32 = vadd.f32 %v3268_v3, %v10563_v41  ;;  %4492 = vmatmul.mubr.bf16.gmra.mxu0 %v11205_v9  ;;  %v4256_v9 = vadd.f32 %v11710_v34, %v11487_v16  ;;  %v3668_v31 = vmax.f32 %v3267_v33, 0.0  ;;  %v4258_v3 = vadd.f32 %v11725_v10, %v11514_v63 }
 0x54a   :  { %v3270_v4 = vpop.f32.mrf.mxu1  ;;  %4501 = vmatprep.mubr.bf16.mxu0 %v11228_v13  ;;  %v5301_v58 = vpack.c.bf16 %v4972_v15, %v4970_v50  ;;  %v4270_v33 = vadd.f32 %v11776_v28, %v11487_v16  ;;  %v4268_v50 = vadd.f32 %v11769_v27, %v11514_v63 }
 0x54b   :  { %v3669_v22 = vmax.f32 %v3269_v32, 0.0  ;;  %v3271_v26 = vadd.f32 %v3270_v4, %v10593_v44  ;;  %v4975_v57 = vmax.f32 %v4256_v9, 0.0 }
 0x54c   :  { %v3274_v45 = vpop.f32.mrf.mxu1  ;;  %5751 = vmatmul.mubr.bf16.gmra.mxu1 %v5299_v35  ;;  %v4981_v47 = vmax.f32 %v4270_v33, 0.0 }
 0x54d   :  { %v11815_v13 = vpack.c.bf16 %v3669_v22, %v3667_v1  ;;  %v3670_v29 = vmax.f32 %v3271_v26, 0.0  ;;  %5760 = vmatprep.mubr.bf16.mxu1 %v5302_v62  ;;  %v3275_v52 = vadd.f32 %v3274_v45, %v10563_v41  ;;  %v5304_v25 = vpack.c.bf16 %v4977_v18, %v4975_v57  ;;  %v14398_v57 = vld [vmem:[#allocation49_spill] sm:$0xff] }
 0x54e   :  { %v3276_v40 = vpop.f32.mrf.mxu1  ;;  %v4266_v1 = vadd.f32 %v11754_v5, %v11487_v16 }
 0x54f   :  { %v11818_v39 = vpack.c.bf16 %v3670_v29, %v3668_v31  ;;  %v3277_v34 = vadd.f32 %v3276_v40, %v10593_v44  ;;  %v3671_v35 = vmax.f32 %v3275_v52, 0.0 }
 0x550   :  { %v3278_v7 = vpop.f32.mrf.mxu1 }
 0x551   :  { %v3279_v6 = vadd.f32 %v3278_v7, %v10563_v41  ;;  %4502 = vmatmul.mubr.bf16.gmra.mxu0 %v11225_v12  ;;  %v11829_v62 = vpop.f32.mrf.mxu0  ;;  %v4254_v12 = vadd.f32 %v11703_v55, %v11514_v63  ;;  %v3672_v22 = vmax.f32 %v3277_v34, 0.0  ;;  %v4979_v55 = vmax.f32 %v4266_v1, 0.0 }
 0x552   :  { %v3280_v32 = vpop.f32.mrf.mxu1  ;;  %4511 = vmatprep.mubr.bf16.mxu0 %v11240_v20  ;;  %v4976_v20 = vmax.f32 %v4258_v3, 0.0 }
 0x553   :  { %v3673_v49 = vmax.f32 %v3279_v6, 0.0  ;;  %v3281_v4 = vadd.f32 %v3280_v32, %v10593_v44  ;;  %v4285_v31 = vpop.f32.mrf.mxu0  ;;  %v4974_v15 = vmax.f32 %v4254_v12, 0.0  ;;  %v5306_v34 = vpack.c.bf16 %v4981_v47, %v4979_v55 }
 0x554   :  { %v3284_v10 = vpop.f32.mrf.mxu1  ;;  %5761 = vmatmul.mubr.bf16.gmra.mxu1 %v5301_v58  ;;  %v4280_v6 = vadd.f32 %v4279_v38, %v11487_v16  ;;  %v4980_v12 = vmax.f32 %v4268_v50, 0.0 }
 0x555   :  { %v11835_v28 = vpack.c.bf16 %v3673_v49, %v3671_v35  ;;  %v3674_v26 = vmax.f32 %v3281_v4, 0.0  ;;  %5770 = vmatprep.mubr.bf16.mxu1 %v5304_v25  ;;  %v3285_v9 = vadd.f32 %v3284_v10, %v10563_v41  ;;  %v5303_v52 = vpack.c.bf16 %v4976_v20, %v4974_v15  ;;  %v4287_v3 = vpop.f32.mrf.mxu0  ;;  %v14401_v15 = vld [vmem:[#allocation46_spill] sm:$0xff] }
 0x556   :  { %v3286_v45 = vpop.f32.mrf.mxu1  ;;  %v4264_v35 = vadd.f32 %v11747_v24, %v11514_v63  ;;  %v4985_v1 = vmax.f32 %v4280_v6, 0.0 }
 0x557   :  { %v11838_v29 = vpack.c.bf16 %v3674_v26, %v3672_v22  ;;  %v3287_v5 = vadd.f32 %v3286_v45, %v10593_v44  ;;  %v3675_v58 = vmax.f32 %v3285_v9, 0.0  ;;  %v4289_v10 = vpop.f32.mrf.mxu0 }
 0x558   :  { %v3288_v40 = vpop.f32.mrf.mxu1  ;;  %v4978_v20 = vmax.f32 %v4264_v35, 0.0 }
 0x559   :  { %v3289_v18 = vadd.f32 %v3288_v40, %v10563_v41  ;;  %4512 = vmatmul.mubr.bf16.gmra.mxu0 %v11237_v56  ;;  %v4276_v56 = vadd.f32 %v11798_v54, %v11487_v16  ;;  %v3676_v27 = vmax.f32 %v3287_v5, 0.0  ;;  %v4278_v40 = vadd.f32 %v11813_v0, %v11514_v63 }
 0x55a   :  { %v3290_v7 = vpop.f32.mrf.mxu1  ;;  %4521 = vmatprep.mubr.bf16.mxu0 %v14398_v57  ;;  %v5305_v55 = vpack.c.bf16 %v4980_v12, %v4978_v20  ;;  %v4290_v5 = vadd.f32 %v4289_v10, %v11487_v16 }
 0x55b   :  { %v3677_v33 = vmax.f32 %v3289_v18, 0.0  ;;  %v3291_v32 = vadd.f32 %v3290_v7, %v10593_v44  ;;  %v4983_v47 = vmax.f32 %v4276_v56, 0.0 }
 0x55c   :  { %v3294_v49 = vpop.f32.mrf.mxu1  ;;  %5771 = vmatmul.mubr.bf16.gmra.mxu1 %v5303_v52  ;;  %v14402_v52 = vld [vmem:[#allocation53_spill] sm:$0xff]  ;;  %v4989_v12 = vmax.f32 %v4290_v5, 0.0 }
 0x55d   :  { %v11852_v4 = vpack.c.bf16 %v3677_v33, %v3675_v58  ;;  %v3678_v25 = vmax.f32 %v3291_v32, 0.0  ;;  %5780 = vmatprep.mubr.bf16.mxu1 %v5306_v34  ;;  %v3295_v22 = vadd.f32 %v3294_v49, %v10563_v41  ;;  %v5308_v6 = vpack.c.bf16 %v4985_v1, %v4983_v47  ;;  %v14406_v5 = vld [vmem:[#allocation57_spill] sm:$0xff] }
 0x55e   :  { %v3296_v38 = vpop.f32.mrf.mxu1  ;;  %v4274_v58 = vadd.f32 %v11791_v23, %v11514_v63  ;;  %v4286_v33 = vadd.f32 %v4285_v31, %v11487_v16  ;;  %v8889_v23 = vld [vmem:[%s13862_s4 + $0x28] sm:$0xff]  }
 0x55f   :  { %14399 = vst [vmem:[#allocation39_spill] sm:$0xff] %v11852_v4  ;;  %v11855_v26 = vpack.c.bf16 %v3678_v25, %v3676_v27  ;;  %v3297_v45 = vadd.f32 %v3296_v38, %v10593_v44  ;;  %v3679_v50 = vmax.f32 %v3295_v22, 0.0  ;;  %v8888_v27 = vld [vmem:[%s13862_s4 + $0x68] sm:$0xff]   ;;  %v4984_v25 = vmax.f32 %v4278_v40, 0.0 }
 0x560   :  { %v3298_v24 = vpop.f32.mrf.mxu1  ;;  %8385 = vmatprep.subr.bf16.mxu0 %v8888_v27  ;;  %v4982_v10 = vmax.f32 %v4274_v58, 0.0  ;;  %v4987_v22 = vmax.f32 %v4286_v33, 0.0 }
 0x561   :  { %14400 = vst [vmem:[#allocation40_spill] sm:$0xff] %v11855_v26  ;;  %v3299_v54 = vadd.f32 %v3298_v24, %v10563_v41  ;;  %v11859_v9 = vpop.f32.mrf.mxu0  ;;  %4522 = vmatmul.mubr.bf16.gmra.mxu0 %v14401_v15  ;;  %v3680_v35 = vmax.f32 %v3297_v45, 0.0  ;;  %v14456_v26 = vld [vmem:[#allocation42_spill] sm:$0xff] }
 0x562   :  { %v3300_v18 = vpop.f32.mrf.mxu1  ;;  %4531 = vmatprep.mubr.bf16.mxu0 %v14402_v52  ;;  %v5307_v15 = vpack.c.bf16 %v4984_v25, %v4982_v10  ;;  %8386 = vmatpush3.bf16.msra.mxu0 %v8889_v23 }
 0x563   :  { %v3681_v7 = vmax.f32 %v3299_v54, 0.0  ;;  %v3301_v57 = vadd.f32 %v3300_v18, %v10593_v44  ;;  %v4295_v34 = vpop.f32.mrf.mxu0  ;;  %v14405_v54 = vld [vmem:[#allocation50_spill] sm:$0xff]  ;;  %v5310_v18 = vpack.c.bf16 %v4989_v12, %v4987_v22 }
 0x564   :  { %v3304_v32 = vpop.f32.mrf.mxu1  ;;  %5781 = vmatmul.mubr.bf16.gmra.mxu1 %v5305_v55  ;;  %v4288_v55 = vadd.f32 %v4287_v3, %v11514_v63  ;;  %v4296_v33 = vadd.f32 %v4295_v34, %v11487_v16 }
 0x565   :  { %v11870_v0 = vpack.c.bf16 %v3681_v7, %v3679_v50  ;;  %v3682_v49 = vmax.f32 %v3301_v57, 0.0  ;;  %5790 = vmatprep.mubr.bf16.mxu1 %v5308_v6  ;;  %v4297_v56 = vpop.f32.mrf.mxu0  ;;  %v3305_v1 = vadd.f32 %v3304_v32, %v10563_v41  ;;  %v4284_v6 = vadd.f32 %v11829_v62, %v11514_v63 }
 0x566   :  { %v3306_v38 = vpop.f32.mrf.mxu1  ;;  %v4991_v10 = vmax.f32 %v4296_v33, 0.0 }
 0x567   :  { %14403 = vst [vmem:[#allocation43_spill] sm:$0xff] %v11870_v0  ;;  %v11879_v31 = vpack.c.bf16 %v3682_v49, %v3680_v35  ;;  %v4299_v24 = vpop.f32.mrf.mxu0  ;;  %v3307_v47 = vadd.f32 %v3306_v38, %v10593_v44  ;;  %v3683_v52 = vmax.f32 %v3305_v1, 0.0  ;;  %v4988_v49 = vmax.f32 %v4288_v55, 0.0  ;;  %v14453_v0 = vld [vmem:[#allocation35_spill] sm:$0xff] }
 0x568   :  { %v3308_v20 = vpop.f32.mrf.mxu1  ;;  %v4300_v7 = vadd.f32 %v4299_v24, %v11487_v16  ;;  %v4986_v1 = vmax.f32 %v4284_v6, 0.0 }
 0x569   :  { %14404 = vst [vmem:[#allocation44_spill] sm:$0xff] %v11879_v31  ;;  %v3309_v45 = vadd.f32 %v3308_v20, %v10563_v41  ;;  %4532 = vmatmul.mubr.bf16.gmra.mxu0 %v14405_v54  ;;  %v3684_v32 = vmax.f32 %v3307_v47, 0.0  ;;  %v14409_v20 = vld [vmem:[#allocation54_spill] sm:$0xff]  ;;  %v4298_v47 = vadd.f32 %v4297_v56, %v11514_v63  ;;  %v14410_v54 = vld [vmem:[#allocation59_spill] sm:$0xff] }
 0x56a   :  { %v3310_v40 = vpop.f32.mrf.mxu1  ;;  %4541 = vmatprep.mubr.bf16.mxu0 %v14406_v5  ;;  %v4993_v25 = vmax.f32 %v4300_v7, 0.0  ;;  %v5309_v24 = vpack.c.bf16 %v4988_v49, %v4986_v1 }
 0x56b   :  { %v3685_v50 = vmax.f32 %v3309_v45, 0.0  ;;  %v3311_v57 = vadd.f32 %v3310_v40, %v10593_v44 }
 0x56c   :  { %v3314_v58 = vpop.f32.mrf.mxu1  ;;  %5791 = vmatmul.mubr.bf16.gmra.mxu1 %v5307_v15 }
 0x56d   :  { %v11891_v3 = vpack.c.bf16 %v3685_v50, %v3683_v52  ;;  %v3686_v35 = vmax.f32 %v3311_v57, 0.0  ;;  %5800 = vmatprep.mubr.bf16.mxu1 %v5310_v18  ;;  %v3315_v12 = vadd.f32 %v3314_v58, %v10563_v41  ;;  %v5312_v18 = vpack.c.bf16 %v4993_v25, %v4991_v10 }
 0x56e   :  { %v3316_v27 = vpop.f32.mrf.mxu1  ;;  %v4294_v52 = vadd.f32 %v11859_v9, %v11514_v63  ;;  %v4992_v58 = vmax.f32 %v4298_v47, 0.0 }
 0x56f   :  { %14407 = vst [vmem:[#allocation12_spill] sm:$0xff] %v11891_v3  ;;  %v11894_v38 = vpack.c.bf16 %v3686_v35, %v3684_v32  ;;  %v3317_v62 = vadd.f32 %v3316_v27, %v10593_v44  ;;  %v3687_v15 = vmax.f32 %v3315_v12, 0.0 }
 0x570   :  { %v3318_v23 = vpop.f32.mrf.mxu1  ;;  %v4990_v25 = vmax.f32 %v4294_v52, 0.0 }
 0x571   :  { %14408 = vst [vmem:[#allocation86_spill] sm:$0xff] %v11894_v38  ;;  %v3319_v22 = vadd.f32 %v3318_v23, %v10563_v41  ;;  %v4303_v34 = vpop.f32.mrf.mxu0  ;;  %4542 = vmatmul.mubr.bf16.gmra.mxu0 %v14409_v20  ;;  %v3688_v7 = vmax.f32 %v3317_v62, 0.0  ;;  %v14413_v62 = vld [vmem:[#allocation58_spill] sm:$0xff] }
 0x572   :  { %v3320_v45 = vpop.f32.mrf.mxu1  ;;  %4551 = vmatprep.mubr.bf16.mxu0 %v14410_v54  ;;  %v14414_v54 = vld [vmem:[#allocation62_spill] sm:$0xff] }
 0x573   :  { %v3689_v55 = vmax.f32 %v3319_v22, 0.0  ;;  %v3321_v40 = vadd.f32 %v3320_v45, %v10593_v44  ;;  %v4305_v5 = vpop.f32.mrf.mxu0  ;;  %v5311_v22 = vpack.c.bf16 %v4992_v58, %v4990_v25 }
 0x574   :  { %v3324_v50 = vpop.f32.mrf.mxu1  ;;  %5801 = vmatmul.mubr.bf16.gmra.mxu1 %v5309_v24  ;;  %v4306_v33 = vadd.f32 %v4305_v5, %v11487_v16 }
 0x575   :  { %v11904_v57 = vpack.c.bf16 %v3689_v55, %v3687_v15  ;;  %v3690_v6 = vmax.f32 %v3321_v40, 0.0  ;;  %5810 = vmatprep.mubr.bf16.mxu1 %v5312_v18  ;;  %v4307_v56 = vpop.f32.mrf.mxu0  ;;  %v3325_v35 = vadd.f32 %v3324_v50, %v10563_v41  ;;  %v4304_v18 = vadd.f32 %v4303_v34, %v11514_v63 }
 0x576   :  { %v3326_v32 = vpop.f32.mrf.mxu1  ;;  %v4995_v20 = vmax.f32 %v4306_v33, 0.0  ;;  %v4308_v24 = vadd.f32 %v4307_v56, %v11514_v63 }
 0x577   :  { %14411 = vst [vmem:[#allocation47_spill] sm:$0xff] %v11904_v57  ;;  %v4309_v49 = vpop.f32.mrf.mxu0  ;;  %v11908_v27 = vpack.c.bf16 %v3690_v6, %v3688_v7  ;;  %v3327_v1 = vadd.f32 %v3326_v32, %v10593_v44  ;;  %v3691_v15 = vmax.f32 %v3325_v35, 0.0  ;;  %v14451_v57 = vld [vmem:[#allocation37_spill] sm:$0xff] }
 0x578   :  { %v3328_v12 = vpop.f32.mrf.mxu1  ;;  %v4310_v9 = vadd.f32 %v4309_v49, %v11487_v16  ;;  %v4996_v56 = vmax.f32 %v4308_v24, 0.0 }
 0x579   :  { %14412 = vst [vmem:[#allocation48_spill] sm:$0xff] %v11908_v27  ;;  %v3329_v23 = vadd.f32 %v3328_v12, %v10563_v41  ;;  %v4313_v10 = vpop.f32.mrf.mxu0  ;;  %4552 = vmatmul.mubr.bf16.gmra.mxu0 %v14413_v62  ;;  %v3692_v7 = vmax.f32 %v3327_v1, 0.0 }
 0x57a   :  { %v4997_v47 = vmax.f32 %v4310_v9, 0.0  ;;  %v3330_v45 = vpop.f32.mrf.mxu1  ;;  %4561 = vmatprep.mubr.bf16.mxu0 %v14414_v54  ;;  %v4994_v9 = vmax.f32 %v4304_v18, 0.0 }
 0x57b   :  { %v3693_v55 = vmax.f32 %v3329_v23, 0.0  ;;  %v3331_v40 = vadd.f32 %v3330_v45, %v10593_v44  ;;  %v4315_v5 = vpop.f32.mrf.mxu0 }
 0x57c   :  { %v3334_v52 = vpop.f32.mrf.mxu1  ;;  %5811 = vmatmul.mubr.bf16.gmra.mxu1 %v5311_v22  ;;  %v5314_v50 = vpack.c.bf16 %v4997_v47, %v4995_v20  ;;  %v4316_v32 = vadd.f32 %v4315_v5, %v11487_v16  ;;  %v14417_v20 = vld [vmem:[#allocation61_spill] sm:$0xff]  ;;  %v5313_v24 = vpack.c.bf16 %v4996_v56, %v4994_v9 }
 0x57d   :  { %v11918_v6 = vpack.c.bf16 %v3693_v55, %v3691_v15  ;;  %v3694_v58 = vmax.f32 %v3331_v40, 0.0  ;;  %v4317_v33 = vpop.f32.mrf.mxu0  ;;  %v3335_v35 = vadd.f32 %v3334_v52, %v10563_v41  ;;  %v14418_v55 = vld [vmem:[#allocation64_spill] sm:$0xff] }
 0x57e   :  { %v3336_v49 = vpop.f32.mrf.mxu1  ;;  %5820 = vmatprep.mubr.bf16.mxu1 %v5314_v50  ;;  %v4999_v47 = vmax.f32 %v4316_v32, 0.0  ;;  %v4318_v45 = vadd.f32 %v4317_v33, %v11514_v63  ;;  %v4314_v50 = vadd.f32 %v4313_v10, %v11514_v63 }
 0x57f   :  { %14415 = vst [vmem:[#allocation13_spill] sm:$0xff] %v11918_v6  ;;  %v4319_v25 = vpop.f32.mrf.mxu0  ;;  %v11922_v12 = vpack.c.bf16 %v3694_v58, %v3692_v7  ;;  %v3337_v1 = vadd.f32 %v3336_v49, %v10593_v44  ;;  %v3695_v40 = vmax.f32 %v3335_v35, 0.0 }
 0x580   :  { %v3338_v34 = vpop.f32.mrf.mxu1  ;;  %v4320_v23 = vadd.f32 %v4319_v25, %v11487_v16  ;;  %v5000_v33 = vmax.f32 %v4318_v45, 0.0 }
 0x581   :  { %14416 = vst [vmem:[#allocation84_spill] sm:$0xff] %v11922_v12  ;;  %v3339_v62 = vadd.f32 %v3338_v34, %v10563_v41  ;;  %v4323_v22 = vpop.f32.mrf.mxu0  ;;  %4562 = vmatmul.mubr.bf16.gmra.mxu0 %v14417_v20  ;;  %v3696_v49 = vmax.f32 %v3337_v1, 0.0  ;;  %v4998_v20 = vmax.f32 %v4314_v50, 0.0 }
 0x582   :  { %v5001_v54 = vmax.f32 %v4320_v23, 0.0  ;;  %v3340_v15 = vpop.f32.mrf.mxu1  ;;  %4571 = vmatprep.mubr.bf16.mxu0 %v14418_v55 }
 0x583   :  { %v3697_v5 = vmax.f32 %v3339_v62, 0.0  ;;  %v3341_v18 = vadd.f32 %v3340_v15, %v10593_v44  ;;  %v4325_v52 = vpop.f32.mrf.mxu0  ;;  %v14421_v15 = vld [vmem:[#allocation63_spill] sm:$0xff]  ;;  %v5315_v45 = vpack.c.bf16 %v5000_v33, %v4998_v20 }
 0x584   :  { %v3344_v7 = vpop.f32.mrf.mxu1  ;;  %5821 = vmatmul.mubr.bf16.gmra.mxu1 %v5313_v24  ;;  %v5316_v58 = vpack.c.bf16 %v5001_v54, %v4999_v47  ;;  %v4326_v9 = vadd.f32 %v4325_v52, %v11487_v16  ;;  %v14422_v52 = vld [vmem:[#allocation10_spill] sm:$0xff] }
 0x585   :  { %v11932_v25 = vpack.c.bf16 %v3697_v5, %v3695_v40  ;;  %v3698_v56 = vmax.f32 %v3341_v18, 0.0  ;;  %v4327_v32 = vpop.f32.mrf.mxu0  ;;  %v3345_v35 = vadd.f32 %v3344_v7, %v10563_v41 }
 0x586   :  { %v3346_v34 = vpop.f32.mrf.mxu1  ;;  %5830 = vmatprep.mubr.bf16.mxu1 %v5316_v58  ;;  %v5003_v55 = vmax.f32 %v4326_v9, 0.0  ;;  %v4328_v40 = vadd.f32 %v4327_v32, %v11514_v63 }
 0x587   :  { %14419 = vst [vmem:[#allocation51_spill] sm:$0xff] %v11932_v25  ;;  %v4329_v23 = vpop.f32.mrf.mxu0  ;;  %v11936_v62 = vpack.c.bf16 %v3698_v56, %v3696_v49  ;;  %v3347_v1 = vadd.f32 %v3346_v34, %v10593_v44  ;;  %v3699_v7 = vmax.f32 %v3345_v35, 0.0  ;;  %v4324_v56 = vadd.f32 %v4323_v22, %v11514_v63  ;;  %v14449_v25 = vld [vmem:[#allocation31_spill] sm:$0xff] }
 0x588   :  { %v3348_v10 = vpop.f32.mrf.mxu1  ;;  %v4330_v24 = vadd.f32 %v4329_v23, %v11487_v16  ;;  %v5004_v32 = vmax.f32 %v4328_v40, 0.0 }
 0x589   :  { %14420 = vst [vmem:[#allocation52_spill] sm:$0xff] %v11936_v62  ;;  %v3349_v47 = vadd.f32 %v3348_v10, %v10563_v41  ;;  %v4333_v54 = vpop.f32.mrf.mxu0  ;;  %4572 = vmatmul.mubr.bf16.gmra.mxu0 %v14421_v15  ;;  %v3700_v10 = vmax.f32 %v3347_v1, 0.0 }
 0x58a   :  { %v5005_v5 = vmax.f32 %v4330_v24, 0.0  ;;  %v3350_v18 = vpop.f32.mrf.mxu1  ;;  %4581 = vmatprep.mubr.bf16.mxu0 %v14422_v52  ;;  %v5002_v52 = vmax.f32 %v4324_v56, 0.0 }
 0x58b   :  { %v3701_v50 = vmax.f32 %v3349_v47, 0.0  ;;  %v3351_v58 = vadd.f32 %v3350_v18, %v10593_v44  ;;  %v4335_v49 = vpop.f32.mrf.mxu0 }
 0x58c   :  { %v3354_v34 = vpop.f32.mrf.mxu1  ;;  %5831 = vmatmul.mubr.bf16.gmra.mxu1 %v5315_v45  ;;  %v5318_v23 = vpack.c.bf16 %v5005_v5, %v5003_v55  ;;  %v4336_v20 = vadd.f32 %v4335_v49, %v11487_v16  ;;  %v5317_v40 = vpack.c.bf16 %v5004_v32, %v5002_v52 }
 0x58d   :  { %v11946_v15 = vpack.c.bf16 %v3701_v50, %v3699_v7  ;;  %v3702_v33 = vmax.f32 %v3351_v58, 0.0  ;;  %v4337_v9 = vpop.f32.mrf.mxu0  ;;  %v3355_v35 = vadd.f32 %v3354_v34, %v10563_v41  ;;  %v14425_v7 = vld [vmem:[#allocation65_spill] sm:$0xff] }
 0x58e   :  { %v3356_v24 = vpop.f32.mrf.mxu1  ;;  %5840 = vmatprep.mubr.bf16.mxu1 %v5318_v23  ;;  %v5007_v50 = vmax.f32 %v4336_v20, 0.0  ;;  %v4338_v58 = vadd.f32 %v4337_v9, %v11514_v63  ;;  %v14426_v23 = vld [vmem:[#allocation19_spill] sm:$0xff] }
 0x58f   :  { %14423 = vst [vmem:[#allocation68_spill] sm:$0xff] %v11946_v15  ;;  %v4339_v47 = vpop.f32.mrf.mxu0  ;;  %v11950_v18 = vpack.c.bf16 %v3702_v33, %v3700_v10  ;;  %v3357_v1 = vadd.f32 %v3356_v24, %v10593_v44  ;;  %v3703_v10 = vmax.f32 %v3355_v35, 0.0  ;;  %v4334_v24 = vadd.f32 %v4333_v54, %v11514_v63 }
 0x590   :  { %v3358_v22 = vpop.f32.mrf.mxu1  ;;  %v4340_v45 = vadd.f32 %v4339_v47, %v11487_v16  ;;  %v5008_v9 = vmax.f32 %v4338_v58, 0.0 }
 0x591   :  { %14424 = vst [vmem:[#allocation73_spill] sm:$0xff] %v11950_v18  ;;  %v3359_v55 = vadd.f32 %v3358_v22, %v10563_v41  ;;  %v4343_v5 = vpop.f32.mrf.mxu0  ;;  %4582 = vmatmul.mubr.bf16.gmra.mxu0 %v14425_v7  ;;  %v3704_v18 = vmax.f32 %v3357_v1, 0.0 }
 0x592   :  { %v5009_v49 = vmax.f32 %v4340_v45, 0.0  ;;  %v3360_v34 = vpop.f32.mrf.mxu1  ;;  %4591 = vmatprep.mubr.bf16.mxu0 %v14426_v23  ;;  %v5006_v23 = vmax.f32 %v4334_v24, 0.0 }
 0x593   :  { %v3705_v56 = vmax.f32 %v3359_v55, 0.0  ;;  %v3361_v33 = vadd.f32 %v3360_v34, %v10593_v44  ;;  %v4345_v47 = vpop.f32.mrf.mxu0 }
 0x594   :  { %v3364_v15 = vpop.f32.mrf.mxu1  ;;  %5841 = vmatmul.mubr.bf16.gmra.mxu1 %v5317_v40  ;;  %v5320_v22 = vpack.c.bf16 %v5009_v49, %v5007_v50  ;;  %v4346_v52 = vadd.f32 %v4345_v47, %v11487_v16  ;;  %v5319_v58 = vpack.c.bf16 %v5008_v9, %v5006_v23 }
 0x595   :  { %v11960_v7 = vpack.c.bf16 %v3705_v56, %v3703_v10  ;;  %v3706_v32 = vmax.f32 %v3361_v33, 0.0  ;;  %v4347_v20 = vpop.f32.mrf.mxu0  ;;  %v3365_v35 = vadd.f32 %v3364_v15, %v10563_v41  ;;  %v14429_v10 = vld [vmem:[#allocation22_spill] sm:$0xff] }
 0x596   :  { %v3366_v45 = vpop.f32.mrf.mxu1  ;;  %5850 = vmatprep.mubr.bf16.mxu1 %v5320_v22  ;;  %v5011_v56 = vmax.f32 %v4346_v52, 0.0  ;;  %v4348_v33 = vadd.f32 %v4347_v20, %v11514_v63  ;;  %v14430_v22 = vld [vmem:[#allocation25_spill] sm:$0xff] }
 0x597   :  { %14427 = vst [vmem:[#allocation55_spill] sm:$0xff] %v11960_v7  ;;  %v4349_v55 = vpop.f32.mrf.mxu0  ;;  %v11964_v34 = vpack.c.bf16 %v3706_v32, %v3704_v18  ;;  %v3367_v1 = vadd.f32 %v3366_v45, %v10593_v44  ;;  %v3707_v18 = vmax.f32 %v3365_v35, 0.0  ;;  %v4344_v45 = vadd.f32 %v4343_v5, %v11514_v63 }
 0x598   :  { %v3368_v54 = vpop.f32.mrf.mxu1  ;;  %v4350_v40 = vadd.f32 %v4349_v55, %v11487_v16  ;;  %v5012_v20 = vmax.f32 %v4348_v33, 0.0 }
 0x599   :  { %14428 = vst [vmem:[#allocation56_spill] sm:$0xff] %v11964_v34  ;;  %v3369_v50 = vadd.f32 %v3368_v54, %v10563_v41  ;;  %v4353_v49 = vpop.f32.mrf.mxu0  ;;  %4592 = vmatmul.mubr.bf16.gmra.mxu0 %v14429_v10  ;;  %v3708_v34 = vmax.f32 %v3367_v1, 0.0 }
 0x59a   :  { %v5013_v47 = vmax.f32 %v4350_v40, 0.0  ;;  %v3370_v15 = vpop.f32.mrf.mxu1  ;;  %4601 = vmatprep.mubr.bf16.mxu0 %v14430_v22  ;;  %v5010_v22 = vmax.f32 %v4344_v45, 0.0 }
 0x59b   :  { %v3709_v24 = vmax.f32 %v3369_v50, 0.0  ;;  %v3371_v32 = vadd.f32 %v3370_v15, %v10593_v44  ;;  %v4355_v55 = vpop.f32.mrf.mxu0 }
 0x59c   :  { %v3374_v7 = vpop.f32.mrf.mxu1  ;;  %5851 = vmatmul.mubr.bf16.gmra.mxu1 %v5319_v58  ;;  %v5322_v54 = vpack.c.bf16 %v5013_v47, %v5011_v56  ;;  %v4356_v23 = vadd.f32 %v4355_v55, %v11487_v16  ;;  %v5321_v33 = vpack.c.bf16 %v5012_v20, %v5010_v22 }
 0x59d   :  { %v11974_v10 = vpack.c.bf16 %v3709_v24, %v3707_v18  ;;  %v3710_v9 = vmax.f32 %v3371_v32, 0.0  ;;  %v4357_v52 = vpop.f32.mrf.mxu0  ;;  %v3375_v35 = vadd.f32 %v3374_v7, %v10563_v41  ;;  %v14433_v18 = vld [vmem:[#allocation20_spill] sm:$0xff] }
 0x59e   :  { %v3376_v40 = vpop.f32.mrf.mxu1  ;;  %5860 = vmatprep.mubr.bf16.mxu1 %v5322_v54  ;;  %v5015_v24 = vmax.f32 %v4356_v23, 0.0  ;;  %v4358_v32 = vadd.f32 %v4357_v52, %v11514_v63  ;;  %v14434_v54 = vld [vmem:[#allocation23_spill] sm:$0xff] }
 0x59f   :  { %14431 = vst [vmem:[#allocation72_spill] sm:$0xff] %v11974_v10  ;;  %v4359_v50 = vpop.f32.mrf.mxu0  ;;  %v11978_v15 = vpack.c.bf16 %v3710_v9, %v3708_v34  ;;  %v3377_v1 = vadd.f32 %v3376_v40, %v10593_v44  ;;  %v3711_v34 = vmax.f32 %v3375_v35, 0.0  ;;  %v4354_v40 = vadd.f32 %v4353_v49, %v11514_v63 }
 0x5a0   :  { %v3378_v5 = vpop.f32.mrf.mxu1  ;;  %v4360_v58 = vadd.f32 %v4359_v50, %v11487_v16  ;;  %v5016_v52 = vmax.f32 %v4358_v32, 0.0 }
 0x5a1   :  { %14432 = vst [vmem:[#allocation71_spill] sm:$0xff] %v11978_v15  ;;  %v3379_v56 = vadd.f32 %v3378_v5, %v10563_v41  ;;  %v4363_v47 = vpop.f32.mrf.mxu0  ;;  %4602 = vmatmul.mubr.bf16.gmra.mxu0 %v14433_v18  ;;  %v3712_v15 = vmax.f32 %v3377_v1, 0.0 }
 0x5a2   :  { %v5017_v55 = vmax.f32 %v4360_v58, 0.0  ;;  %v3380_v7 = vpop.f32.mrf.mxu1  ;;  %4611 = vmatprep.mubr.bf16.mxu0 %v14434_v54  ;;  %v5014_v54 = vmax.f32 %v4354_v40, 0.0 }
 0x5a3   :  { %v3713_v45 = vmax.f32 %v3379_v56, 0.0  ;;  %v3381_v9 = vadd.f32 %v3380_v7, %v10593_v44  ;;  %v4365_v50 = vpop.f32.mrf.mxu0 }
 0x5a4   :  { %v3384_v10 = vpop.f32.mrf.mxu1  ;;  %5861 = vmatmul.mubr.bf16.gmra.mxu1 %v5321_v33  ;;  %v5324_v5 = vpack.c.bf16 %v5017_v55, %v5015_v24  ;;  %v4366_v22 = vadd.f32 %v4365_v50, %v11487_v16  ;;  %v5323_v32 = vpack.c.bf16 %v5016_v52, %v5014_v54 }
 0x5a5   :  { %v11988_v18 = vpack.c.bf16 %v3713_v45, %v3711_v34  ;;  %v3714_v20 = vmax.f32 %v3381_v9, 0.0  ;;  %v4367_v23 = vpop.f32.mrf.mxu0  ;;  %v3385_v35 = vadd.f32 %v3384_v10, %v10563_v41  ;;  %v14437_v34 = vld [vmem:[#allocation26_spill] sm:$0xff] }
 0x5a6   :  { %v3386_v58 = vpop.f32.mrf.mxu1  ;;  %5870 = vmatprep.mubr.bf16.mxu1 %v5324_v5  ;;  %v5019_v45 = vmax.f32 %v4366_v22, 0.0  ;;  %v4368_v9 = vadd.f32 %v4367_v23, %v11514_v63  ;;  %v14438_v5 = vld [vmem:[#allocation29_spill] sm:$0xff] }
 0x5a7   :  { %14435 = vst [vmem:[#allocation60_spill] sm:$0xff] %v11988_v18  ;;  %v4369_v56 = vpop.f32.mrf.mxu0  ;;  %v11992_v7 = vpack.c.bf16 %v3714_v20, %v3712_v15  ;;  %v3387_v1 = vadd.f32 %v3386_v58, %v10593_v44  ;;  %v3715_v15 = vmax.f32 %v3385_v35, 0.0  ;;  %v4364_v58 = vadd.f32 %v4363_v47, %v11514_v63 }
 0x5a8   :  { %v3388_v49 = vpop.f32.mrf.mxu1  ;;  %v4370_v33 = vadd.f32 %v4369_v56, %v11487_v16  ;;  %v5020_v23 = vmax.f32 %v4368_v9, 0.0 }
 0x5a9   :  { %14436 = vst [vmem:[#allocation69_spill] sm:$0xff] %v11992_v7  ;;  %v3389_v24 = vadd.f32 %v3388_v49, %v10563_v41  ;;  %v4373_v55 = vpop.f32.mrf.mxu0  ;;  %4612 = vmatmul.mubr.bf16.gmra.mxu0 %v14437_v34  ;;  %v3716_v7 = vmax.f32 %v3387_v1, 0.0 }
 0x5aa   :  { %v5021_v50 = vmax.f32 %v4370_v33, 0.0  ;;  %v3390_v10 = vpop.f32.mrf.mxu1  ;;  %4621 = vmatprep.mubr.bf16.mxu0 %v14438_v5  ;;  %v5018_v5 = vmax.f32 %v4364_v58, 0.0 }
 0x5ab   :  { %v3717_v40 = vmax.f32 %v3389_v24, 0.0  ;;  %v3391_v20 = vadd.f32 %v3390_v10, %v10593_v44  ;;  %v4375_v56 = vpop.f32.mrf.mxu0 }
 0x5ac   :  { %v3394_v18 = vpop.f32.mrf.mxu1  ;;  %5871 = vmatmul.mubr.bf16.gmra.mxu1 %v5323_v32  ;;  %v5326_v49 = vpack.c.bf16 %v5021_v50, %v5019_v45  ;;  %v4376_v54 = vadd.f32 %v4375_v56, %v11487_v16  ;;  %v5325_v9 = vpack.c.bf16 %v5020_v23, %v5018_v5  ;;  %v8890_v5 = vld [vmem:[%s13862_s4 + $0x60] sm:$0xff]  }
 0x5ad   :  { %v12002_v34 = vpack.c.bf16 %v3717_v40, %v3715_v15  ;;  %v3718_v52 = vmax.f32 %v3391_v20, 0.0  ;;  %v4377_v22 = vpop.f32.mrf.mxu0  ;;  %v3395_v35 = vadd.f32 %v3394_v18, %v10563_v41  ;;  %v14441_v15 = vld [vmem:[#allocation24_spill] sm:$0xff]  ;;  %8387 = vmatprep.subr.bf16.mxu0 %v8890_v5 }
 0x5ae   :  { %v3396_v33 = vpop.f32.mrf.mxu1  ;;  %5880 = vmatprep.mubr.bf16.mxu1 %v5326_v49  ;;  %v5023_v40 = vmax.f32 %v4376_v54, 0.0  ;;  %v4378_v20 = vadd.f32 %v4377_v22, %v11514_v63  ;;  %v14442_v49 = vld [vmem:[#allocation27_spill] sm:$0xff] }
 0x5af   :  { %14439 = vst [vmem:[#allocation75_spill] sm:$0xff] %v12002_v34  ;;  %v4379_v24 = vpop.f32.mrf.mxu0  ;;  %v12006_v10 = vpack.c.bf16 %v3718_v52, %v3716_v7  ;;  %v3397_v1 = vadd.f32 %v3396_v33, %v10593_v44  ;;  %v3719_v7 = vmax.f32 %v3395_v35, 0.0  ;;  %v4374_v33 = vadd.f32 %v4373_v55, %v11514_v63 }
 0x5b0   :  { %v3398_v47 = vpop.f32.mrf.mxu1  ;;  %v4380_v32 = vadd.f32 %v4379_v24, %v11487_v16  ;;  %v5024_v35 = vmax.f32 %v4378_v20, 0.0 }
 0x5b1   :  { %14440 = vst [vmem:[#allocation14_spill] sm:$0xff] %v12006_v10  ;;  %v3399_v45 = vadd.f32 %v3398_v47, %v10563_v41  ;;  %v4383_v50 = vpop.f32.mrf.mxu0  ;;  %4622 = vmatmul.mubr.bf16.gmra.mxu0 %v14441_v15  ;;  %v3720_v47 = vmax.f32 %v3397_v1, 0.0  ;;  %v5022_v15 = vmax.f32 %v4374_v33, 0.0  ;;  %v8891_v33 = vld [vmem:[%s13862_s4 + $0x20] sm:$0xff]  }
 0x5b2   :  { %v5025_v56 = vmax.f32 %v4380_v32, 0.0  ;;  %v3400_v18 = vpop.f32.mrf.mxu1  ;;  %4631 = vmatprep.mubr.bf16.mxu0 %v14442_v49  ;;  %8388 = vmatpush3.bf16.msra.mxu0 %v8891_v33 }
 0x5b3   :  { %v3721_v58 = vmax.f32 %v3399_v45, 0.0  ;;  %v3401_v52 = vadd.f32 %v3400_v18, %v10593_v44  ;;  %v4385_v24 = vpop.f32.mrf.mxu0  ;;  %v5327_v18 = vpack.c.bf16 %v5024_v35, %v5022_v15 }
 0x5b4   :  { %v12016_v34 = vpop.f32.mrf.mxu1  ;;  %5881 = vmatmul.mubr.bf16.gmra.mxu1 %v5325_v9  ;;  %v5328_v41 = vpack.c.bf16 %v5025_v56, %v5023_v40  ;;  %v4386_v32 = vadd.f32 %v4385_v24, %v11487_v16  ;;  %v14445_v56 = vld [vmem:[#allocation30_spill] sm:$0xff] }
 0x5b5   :  { %v12018_v23 = vpack.c.bf16 %v3721_v58, %v3719_v7  ;;  %v3722_v54 = vmax.f32 %v3401_v52, 0.0  ;;  %v4387_v22 = vpop.f32.mrf.mxu0  ;;  %v14446_v52 = vld [vmem:[#allocation34_spill] sm:$0xff] }
 0x5b6   :  { %v12024_v44 = vpop.f32.mrf.mxu1  ;;  %5890 = vmatprep.mubr.bf16.mxu1 %v5328_v41  ;;  %v5027_v49 = vmax.f32 %v4386_v32, 0.0  ;;  %v4388_v20 = vadd.f32 %v4387_v22, %v11514_v63  ;;  %v4384_v41 = vadd.f32 %v4383_v50, %v11514_v63  ;;  %v14447_v50 = vld [vmem:[#allocation28_spill] sm:$0xff] }
 0x5b7   :  { %14443 = vst [vmem:[#allocation16_spill] sm:$0xff] %v12018_v23  ;;  %v4389_v55 = vpop.f32.mrf.mxu0  ;;  %v12026_v45 = vpack.c.bf16 %v3722_v54, %v3720_v47 }
 0x5b8   :  { %v4390_v1 = vadd.f32 %v4389_v55, %v11487_v16  ;;  %v12029_v9 = vpop.f32.mrf.mxu1  ;;  %v5028_v35 = vmax.f32 %v4388_v20, 0.0  ;;  %v5026_v15 = vmax.f32 %v4384_v41, 0.0 }
 0x5b9   :  { %14444 = vst [vmem:[#allocation17_spill] sm:$0xff] %v12026_v45  ;;  %v4393_v40 = vpop.f32.mrf.mxu0  ;;  %4632 = vmatmul.mubr.bf16.gmra.mxu0 %v14445_v56 }
 0x5ba   :  { %v5029_v7 = vmax.f32 %v4390_v1, 0.0  ;;  %v12033_v58 = vpop.f32.mrf.mxu1  ;;  %4641 = vmatprep.mubr.bf16.mxu0 %v14446_v52  ;;  %v5329_v23 = vpack.c.bf16 %v5028_v35, %v5026_v15 }
 0x5bb   :  { %v4395_v24 = vpop.f32.mrf.mxu0 }
 0x5bc   :  { %v12040_v47 = vpop.f32.mrf.mxu1  ;;  %5891 = vmatmul.mubr.bf16.gmra.mxu1 %v5327_v18  ;;  %v5330_v54 = vpack.c.bf16 %v5029_v7, %v5027_v49  ;;  %v4396_v22 = vadd.f32 %v4395_v24, %v11487_v16  ;;  %v14448_v24 = vld [vmem:[#allocation32_spill] sm:$0xff] }
 0x5bd   :  { %v4397_v5 = vpop.f32.mrf.mxu0 }
 0x5be   :  { %v12043_v32 = vpop.f32.mrf.mxu1  ;;  %5900 = vmatprep.mubr.bf16.mxu1 %v5330_v54  ;;  %v5031_v18 = vmax.f32 %v4396_v22, 0.0  ;;  %v4398_v49 = vadd.f32 %v4397_v5, %v11514_v63  ;;  %v4394_v54 = vadd.f32 %v4393_v40, %v11514_v63 }
 0x5bf   :  { %v4399_v55 = vpop.f32.mrf.mxu0 }
 0x5c0   :  { %v4400_v1 = vadd.f32 %v4399_v55, %v11487_v16  ;;  %v12046_v56 = vpop.f32.mrf.mxu1  ;;  %v5032_v10 = vmax.f32 %v4398_v49, 0.0  ;;  %v5030_v22 = vmax.f32 %v4394_v54, 0.0 }
 0x5c1   :  { %v4403_v52 = vpop.f32.mrf.mxu0  ;;  %4642 = vmatmul.mubr.bf16.gmra.mxu0 %v14447_v50 }
 0x5c2   :  { %v5033_v7 = vmax.f32 %v4400_v1, 0.0  ;;  %v12050_v20 = vpop.f32.mrf.mxu1  ;;  %4651 = vmatprep.mubr.bf16.mxu0 %v14448_v24  ;;  %v5331_v40 = vpack.c.bf16 %v5032_v10, %v5030_v22 }
 0x5c3   :  { %v4405_v33 = vpop.f32.mrf.mxu0 }
 0x5c4   :  { %v12054_v41 = vpop.f32.mrf.mxu1  ;;  %5901 = vmatmul.mubr.bf16.gmra.mxu1 %v5329_v23  ;;  %v5332_v55 = vpack.c.bf16 %v5033_v7, %v5031_v18  ;;  %v4406_v50 = vadd.f32 %v4405_v33, %v11487_v16  ;;  %v14450_v7 = vld [vmem:[#allocation38_spill] sm:$0xff] }
 0x5c5   :  { %v4407_v45 = vpop.f32.mrf.mxu0 }
 0x5c6   :  { %v12057_v35 = vpop.f32.mrf.mxu1  ;;  %5910 = vmatprep.mubr.bf16.mxu1 %v5332_v55  ;;  %v5035_v62 = vmax.f32 %v4406_v50, 0.0  ;;  %v4408_v23 = vadd.f32 %v4407_v45, %v11514_v63  ;;  %v4404_v55 = vadd.f32 %v4403_v52, %v11514_v63 }
 0x5c7   :  { %v4409_v5 = vpop.f32.mrf.mxu0 }
 0x5c8   :  { %v4410_v15 = vadd.f32 %v4409_v5, %v11487_v16  ;;  %v12060_v1 = vpop.f32.mrf.mxu1  ;;  %v5036_v12 = vmax.f32 %v4408_v23, 0.0  ;;  %v5034_v50 = vmax.f32 %v4404_v55, 0.0 }
 0x5c9   :  { %v4413_v24 = vpop.f32.mrf.mxu0  ;;  %4652 = vmatmul.mubr.bf16.gmra.mxu0 %v14449_v25 }
 0x5ca   :  { %v5037_v18 = vmax.f32 %v4410_v15, 0.0  ;;  %v12064_v49 = vpop.f32.mrf.mxu1  ;;  %4661 = vmatprep.mubr.bf16.mxu0 %v14450_v7  ;;  %v5333_v52 = vpack.c.bf16 %v5036_v12, %v5034_v50 }
 0x5cb   :  { %v4415_v33 = vpop.f32.mrf.mxu0 }
 0x5cc   :  { %v12068_v54 = vpop.f32.mrf.mxu1  ;;  %5911 = vmatmul.mubr.bf16.gmra.mxu1 %v5331_v40  ;;  %v5334_v5 = vpack.c.bf16 %v5037_v18, %v5035_v62  ;;  %v4416_v25 = vadd.f32 %v4415_v33, %v11487_v16  ;;  %v14452_v18 = vld [vmem:[#allocation36_spill] sm:$0xff] }
 0x5cd   :  { %v4417_v6 = vpop.f32.mrf.mxu0 }
 0x5ce   :  { %v12071_v10 = vpop.f32.mrf.mxu1  ;;  %5920 = vmatprep.mubr.bf16.mxu1 %v5334_v5  ;;  %v5039_v27 = vmax.f32 %v4416_v25, 0.0  ;;  %v4418_v62 = vadd.f32 %v4417_v6, %v11514_v63  ;;  %v4414_v5 = vadd.f32 %v4413_v24, %v11514_v63 }
 0x5cf   :  { %v4419_v45 = vpop.f32.mrf.mxu0 }
 0x5d0   :  { %v4420_v22 = vadd.f32 %v4419_v45, %v11487_v16  ;;  %v12074_v15 = vpop.f32.mrf.mxu1  ;;  %v5040_v38 = vmax.f32 %v4418_v62, 0.0  ;;  %v5038_v25 = vmax.f32 %v4414_v5, 0.0 }
 0x5d1   :  { %v4423_v7 = vpop.f32.mrf.mxu0  ;;  %4662 = vmatmul.mubr.bf16.gmra.mxu0 %v14451_v57 }
 0x5d2   :  { %v5041_v40 = vmax.f32 %v4420_v22, 0.0  ;;  %v12078_v23 = vpop.f32.mrf.mxu1  ;;  %4671 = vmatprep.mubr.bf16.mxu0 %v14452_v18  ;;  %v5335_v24 = vpack.c.bf16 %v5040_v38, %v5038_v25 }
 0x5d3   :  { %v4425_v33 = vpop.f32.mrf.mxu0 }
 0x5d4   :  { %v12082_v55 = vpop.f32.mrf.mxu1  ;;  %5921 = vmatmul.mubr.bf16.gmra.mxu1 %v5333_v52  ;;  %v5336_v45 = vpack.c.bf16 %v5041_v40, %v5039_v27  ;;  %v4426_v57 = vadd.f32 %v4425_v33, %v11487_v16  ;;  %v4424_v33 = vadd.f32 %v4423_v7, %v11514_v63 }
 0x5d5   :  { %v4427_v3 = vpop.f32.mrf.mxu0 }
 0x5d6   :  { %v12085_v12 = vpop.f32.mrf.mxu1  ;;  %5930 = vmatprep.mubr.bf16.mxu1 %v5336_v45  ;;  %v5043_v31 = vmax.f32 %v4426_v57, 0.0  ;;  %v4428_v27 = vadd.f32 %v4427_v3, %v11514_v63  ;;  %v5042_v57 = vmax.f32 %v4424_v33, 0.0 }
 0x5d7   :  { %v4429_v6 = vpop.f32.mrf.mxu0 }
 0x5d8   :  { %v4430_v50 = vadd.f32 %v4429_v6, %v11487_v16  ;;  %v12088_v22 = vpop.f32.mrf.mxu1  ;;  %v5044_v4 = vmax.f32 %v4428_v27, 0.0 }
 0x5d9   :  { %v4433_v18 = vpop.f32.mrf.mxu0  ;;  %4672 = vmatmul.mubr.bf16.gmra.mxu0 %v14453_v0 }
 0x5da   :  { %v5045_v52 = vmax.f32 %v4430_v50, 0.0  ;;  %v12092_v62 = vpop.f32.mrf.mxu1  ;;  %4681 = vmatprep.mubr.bf16.mxu0 %v11592_v11  ;;  %v5337_v7 = vpack.c.bf16 %v5044_v4, %v5042_v57 }
 0x5db   :  { %v4435_v40 = vpop.f32.mrf.mxu0 }
 0x5dc   :  { %v12096_v5 = vpop.f32.mrf.mxu1  ;;  %5931 = vmatmul.mubr.bf16.gmra.mxu1 %v5335_v24  ;;  %v5338_v45 = vpack.c.bf16 %v5045_v52, %v5043_v31  ;;  %v4436_v0 = vadd.f32 %v4435_v40, %v11487_v16  ;;  %v4434_v40 = vadd.f32 %v4433_v18, %v11514_v63 }
 0x5dd   :  { %14454 = vst [vmem:[#allocation66_spill] sm:$0xff] %v12096_v5  ;;  %v4437_v6 = vpop.f32.mrf.mxu0 }
 0x5de   :  { %v12099_v38 = vpop.f32.mrf.mxu1  ;;  %5940 = vmatprep.mubr.bf16.mxu1 %v5338_v45  ;;  %v5047_v5 = vmax.f32 %v4436_v0, 0.0  ;;  %v4438_v31 = vadd.f32 %v4437_v6, %v11514_v63  ;;  %v5046_v0 = vmax.f32 %v4434_v40, 0.0 }
 0x5df   :  { %v4439_v3 = vpop.f32.mrf.mxu0 }
 0x5e0   :  { %v4440_v25 = vadd.f32 %v4439_v3, %v11487_v16  ;;  %v12102_v50 = vpop.f32.mrf.mxu1 }
 0x5e1   :  { %14455 = vst [vmem:[#allocation78_spill] sm:$0xff] %v12102_v50  ;;  %v4443_v11 = vpop.f32.mrf.mxu0  ;;  %4682 = vmatmul.mubr.bf16.gmra.mxu0 %v14456_v26  ;;  %v5048_v50 = vmax.f32 %v4438_v31, 0.0 }
 0x5e2   :  { %v5049_v24 = vmax.f32 %v4440_v25, 0.0  ;;  %v12106_v27 = vpop.f32.mrf.mxu1  ;;  %4691 = vmatprep.mubr.bf16.mxu0 %v11614_v21 }
 0x5e3   :  { %v4445_v52 = vpop.f32.mrf.mxu0  ;;  %v5339_v18 = vpack.c.bf16 %v5048_v50, %v5046_v0 }
 0x5e4   :  { %v12110_v33 = vpop.f32.mrf.mxu1  ;;  %5941 = vmatmul.mubr.bf16.gmra.mxu1 %v5337_v7  ;;  %v5340_v45 = vpack.c.bf16 %v5049_v24, %v5047_v5  ;;  %v4446_v26 = vadd.f32 %v4445_v52, %v11487_v16  ;;  %v4444_v52 = vadd.f32 %v4443_v11, %v11514_v63 }
 0x5e5   :  { %14457 = vst [vmem:[#allocation70_spill] sm:$0xff] %v12110_v33  ;;  %v4447_v3 = vpop.f32.mrf.mxu0 }
 0x5e6   :  { %v12113_v4 = vpop.f32.mrf.mxu1  ;;  %5950 = vmatprep.mubr.bf16.mxu1 %v5340_v45  ;;  %v5051_v33 = vmax.f32 %v4446_v26, 0.0  ;;  %v4448_v5 = vadd.f32 %v4447_v3, %v11514_v63  ;;  %v5050_v26 = vmax.f32 %v4444_v52, 0.0 }
 0x5e7   :  { %v4449_v6 = vpop.f32.mrf.mxu0 }
 0x5e8   :  { %v4450_v57 = vadd.f32 %v4449_v6, %v11487_v16  ;;  %v12116_v25 = vpop.f32.mrf.mxu1 }
 0x5e9   :  { %14458 = vst [vmem:[#allocation21_spill] sm:$0xff] %v12116_v25  ;;  %v4453_v21 = vpop.f32.mrf.mxu0  ;;  %4692 = vmatmul.mubr.bf16.gmra.mxu0 %v11609_v2  ;;  %v5052_v25 = vmax.f32 %v4448_v5, 0.0 }
 0x5ea   :  { %v5053_v7 = vmax.f32 %v4450_v57, 0.0  ;;  %v12120_v31 = vpop.f32.mrf.mxu1  ;;  %4701 = vmatprep.mubr.bf16.mxu0 %v11636_v43 }
 0x5eb   :  { %v4455_v24 = vpop.f32.mrf.mxu0  ;;  %v5341_v11 = vpack.c.bf16 %v5052_v25, %v5050_v26 }
 0x5ec   :  { %v12124_v40 = vpop.f32.mrf.mxu1  ;;  %5951 = vmatmul.mubr.bf16.gmra.mxu1 %v5339_v18  ;;  %v5342_v45 = vpack.c.bf16 %v5053_v7, %v5051_v33  ;;  %v4456_v2 = vadd.f32 %v4455_v24, %v11487_v16  ;;  %v4454_v24 = vadd.f32 %v4453_v21, %v11514_v63 }
 0x5ed   :  { %14459 = vst [vmem:[#allocation18_spill] sm:$0xff] %v12124_v40  ;;  %v4457_v6 = vpop.f32.mrf.mxu0 }
 0x5ee   :  { %v12127_v50 = vpop.f32.mrf.mxu1  ;;  %5960 = vmatprep.mubr.bf16.mxu1 %v5342_v45  ;;  %v5055_v40 = vmax.f32 %v4456_v2, 0.0  ;;  %v4458_v33 = vadd.f32 %v4457_v6, %v11514_v63  ;;  %v5054_v2 = vmax.f32 %v4454_v24, 0.0 }
 0x5ef   :  { %v4459_v3 = vpop.f32.mrf.mxu0 }
 0x5f0   :  { %v4460_v0 = vadd.f32 %v4459_v3, %v11487_v16  ;;  %v12130_v57 = vpop.f32.mrf.mxu1 }
 0x5f1   :  { %14460 = vst [vmem:[#allocation74_spill] sm:$0xff] %v12130_v57  ;;  %v4463_v43 = vpop.f32.mrf.mxu0  ;;  %4702 = vmatmul.mubr.bf16.gmra.mxu0 %v11631_v30  ;;  %v5056_v57 = vmax.f32 %v4458_v33, 0.0 }
 0x5f2   :  { %v5057_v18 = vmax.f32 %v4460_v0, 0.0  ;;  %v12134_v5 = vpop.f32.mrf.mxu1  ;;  %4711 = vmatprep.mubr.bf16.mxu0 %v11664_v17 }
 0x5f3   :  { %v4465_v7 = vpop.f32.mrf.mxu0  ;;  %v5343_v21 = vpack.c.bf16 %v5056_v57, %v5054_v2 }
 0x5f4   :  { %v12138_v52 = vpop.f32.mrf.mxu1  ;;  %5961 = vmatmul.mubr.bf16.gmra.mxu1 %v5341_v11  ;;  %v5344_v45 = vpack.c.bf16 %v5057_v18, %v5055_v40  ;;  %v4466_v30 = vadd.f32 %v4465_v7, %v11487_v16  ;;  %v4464_v7 = vadd.f32 %v4463_v43, %v11514_v63 }
 0x5f5   :  { %14461 = vst [vmem:[#allocation77_spill] sm:$0xff] %v12138_v52  ;;  %v4467_v3 = vpop.f32.mrf.mxu0 }
 0x5f6   :  { %v12141_v25 = vpop.f32.mrf.mxu1  ;;  %5970 = vmatprep.mubr.bf16.mxu1 %v5344_v45  ;;  %v5059_v52 = vmax.f32 %v4466_v30, 0.0  ;;  %v4468_v40 = vadd.f32 %v4467_v3, %v11514_v63  ;;  %v5058_v30 = vmax.f32 %v4464_v7, 0.0 }
 0x5f7   :  { %v4469_v6 = vpop.f32.mrf.mxu0 }
 0x5f8   :  { %v4470_v26 = vadd.f32 %v4469_v6, %v11487_v16  ;;  %v12144_v0 = vpop.f32.mrf.mxu1 }
 0x5f9   :  { %14462 = vst [vmem:[#allocation76_spill] sm:$0xff] %v12144_v0  ;;  %v4473_v17 = vpop.f32.mrf.mxu0  ;;  %4712 = vmatmul.mubr.bf16.gmra.mxu0 %v11655_v37  ;;  %v5060_v0 = vmax.f32 %v4468_v40, 0.0 }
 0x5fa   :  { %v5061_v11 = vmax.f32 %v4470_v26, 0.0  ;;  %v12148_v33 = vpop.f32.mrf.mxu1  ;;  %4721 = vmatprep.mubr.bf16.mxu0 %v11686_v60 }
 0x5fb   :  { %v4475_v18 = vpop.f32.mrf.mxu0  ;;  %v5345_v43 = vpack.c.bf16 %v5060_v0, %v5058_v30 }
 0x5fc   :  { %v12152_v24 = vpop.f32.mrf.mxu1  ;;  %5971 = vmatmul.mubr.bf16.gmra.mxu1 %v5343_v21  ;;  %v5346_v45 = vpack.c.bf16 %v5061_v11, %v5059_v52  ;;  %v4476_v37 = vadd.f32 %v4475_v18, %v11487_v16  ;;  %v4474_v18 = vadd.f32 %v4473_v17, %v11514_v63  ;;  %v8892_v17 = vld [vmem:[%s13862_s4 + $0x58] sm:$0xff]  }
 0x5fd   :  { %14463 = vst [vmem:[#allocation79_spill] sm:$0xff] %v12152_v24  ;;  %v4477_v6 = vpop.f32.mrf.mxu0  ;;  %8389 = vmatprep.subr.bf16.mxu0 %v8892_v17 }
 0x5fe   :  { %v12155_v57 = vpop.f32.mrf.mxu1  ;;  %5980 = vmatprep.mubr.bf16.mxu1 %v5346_v45  ;;  %v5063_v24 = vmax.f32 %v4476_v37, 0.0  ;;  %v4478_v52 = vadd.f32 %v4477_v6, %v11514_v63  ;;  %v5062_v37 = vmax.f32 %v4474_v18, 0.0 }
 0x5ff   :  { %v4479_v3 = vpop.f32.mrf.mxu0 }
 0x600   :  { %v4480_v2 = vadd.f32 %v4479_v3, %v11487_v16  ;;  %v12158_v26 = vpop.f32.mrf.mxu1 }
 0x601   :  { %14464 = vst [vmem:[#allocation81_spill] sm:$0xff] %v12158_v26  ;;  %v4483_v60 = vpop.f32.mrf.mxu0  ;;  %4722 = vmatmul.mubr.bf16.gmra.mxu0 %v11683_v36  ;;  %v5064_v26 = vmax.f32 %v4478_v52, 0.0 }
 0x602   :  { %v5065_v21 = vmax.f32 %v4480_v2, 0.0  ;;  %v12162_v40 = vpop.f32.mrf.mxu1  ;;  %4731 = vmatprep.mubr.bf16.mxu0 %v11708_v8 }
 0x603   :  { %v4485_v11 = vpop.f32.mrf.mxu0 }
 0x604   :  { %v12166_v7 = vpop.f32.mrf.mxu1  ;;  %5981 = vmatmul.mubr.bf16.gmra.mxu1 %v5345_v43  ;;  %v5348_v45 = vpack.c.bf16 %v5065_v21, %v5063_v24  ;;  %v4486_v36 = vadd.f32 %v4485_v11, %v11487_v16  ;;  %v5347_v24 = vpack.c.bf16 %v5064_v26, %v5062_v37 }
 0x605   :  { %v4487_v3 = vpop.f32.mrf.mxu0 }
 0x606   :  { %v12169_v0 = vpop.f32.mrf.mxu1  ;;  %5990 = vmatprep.mubr.bf16.mxu1 %v5348_v45  ;;  %v5067_v43 = vmax.f32 %v4486_v36, 0.0  ;;  %v4488_v52 = vadd.f32 %v4487_v3, %v11514_v63  ;;  %v8893_v45 = vld [vmem:[%s13862_s4 + $0x18] sm:$0xff]  }
 0x607   :  { %14465 = vst [vmem:[#allocation80_spill] sm:$0xff] %v12169_v0  ;;  %v4489_v6 = vpop.f32.mrf.mxu0  ;;  %8390 = vmatpush3.bf16.msra.mxu0 %v8893_v45 }
 0x608   :  { %v4490_v30 = vadd.f32 %v4489_v6, %v11487_v16  ;;  %v12172_v2 = vpop.f32.mrf.mxu1  ;;  %v5068_v3 = vmax.f32 %v4488_v52, 0.0 }
 0x609   :  { %14466 = vst [vmem:[#allocation85_spill] sm:$0xff] %v12172_v2  ;;  %v4493_v8 = vpop.f32.mrf.mxu0  ;;  %4732 = vmatmul.mubr.bf16.gmra.mxu0 %v11705_v42  ;;  %v4484_v42 = vadd.f32 %v4483_v60, %v11514_v63 }
 0x60a   :  { %v5069_v21 = vmax.f32 %v4490_v30, 0.0  ;;  %v12179_v11 = vpop.f32.mrf.mxu1  ;;  %4741 = vmatprep.mubr.bf16.mxu0 %v11730_v48  ;;  %v4494_v45 = vadd.f32 %v4493_v8, %v11514_v63 }
 0x60b   :  { %14467 = vst [vmem:[#allocation82_spill] sm:$0xff] %v12179_v11  ;;  %v4495_v18 = vpop.f32.mrf.mxu0  ;;  %v5066_v17 = vmax.f32 %v4484_v42, 0.0 }
 0x60c   :  { %v12186_v6 = vpop.f32.mrf.mxu1  ;;  %5991 = vmatmul.mubr.bf16.gmra.mxu1 %v5347_v24  ;;  %v5350_v26 = vpack.c.bf16 %v5069_v21, %v5067_v43  ;;  %v4496_v37 = vadd.f32 %v4495_v18, %v11487_v16 }
 0x60d   :  { %v4497_v36 = vpop.f32.mrf.mxu0  ;;  %v5349_v60 = vpack.c.bf16 %v5068_v3, %v5066_v17 }
 0x60e   :  { %v12189_v30 = vpop.f32.mrf.mxu1  ;;  %6000 = vmatprep.mubr.bf16.mxu1 %v5350_v26  ;;  %v5071_v24 = vmax.f32 %v4496_v37, 0.0  ;;  %v4498_v43 = vadd.f32 %v4497_v36, %v11514_v63 }
 0x60f   :  { %v4499_v48 = vpop.f32.mrf.mxu0 }
 0x610   :  { %v4500_v11 = vadd.f32 %v4499_v48, %v11487_v16  ;;  %v12192_v2 = vpop.f32.mrf.mxu1 }
 0x611   :  { %14468 = vst [vmem:[#allocation67_spill] sm:$0xff] %v12192_v2  ;;  %v4503_v0 = vpop.f32.mrf.mxu0  ;;  %4742 = vmatmul.mubr.bf16.gmra.mxu0 %v11727_v14  ;;  %v5072_v2 = vmax.f32 %v4498_v43, 0.0 }
 0x612   :  { %v5073_v21 = vmax.f32 %v4500_v11, 0.0  ;;  %v12196_v52 = vpop.f32.mrf.mxu1  ;;  %4751 = vmatprep.mubr.bf16.mxu0 %v11752_v19  ;;  %v5070_v11 = vmax.f32 %v4494_v45, 0.0 }
 0x613   :  { %v4505_v18 = vpop.f32.mrf.mxu0 }
 0x614   :  { %v12200_v42 = vpop.f32.mrf.mxu1  ;;  %6001 = vmatmul.mubr.bf16.gmra.mxu1 %v5349_v60  ;;  %v5352_v26 = vpack.c.bf16 %v5073_v21, %v5071_v24  ;;  %v4506_v14 = vadd.f32 %v4505_v18, %v11487_v16  ;;  %v5351_v8 = vpack.c.bf16 %v5072_v2, %v5070_v11  ;;  %v4504_v18 = vadd.f32 %v4503_v0, %v11514_v63 }
 0x615   :  { %14469 = vst [vmem:[#allocation33_spill] sm:$0xff] %v12200_v42  ;;  %v4507_v48 = vpop.f32.mrf.mxu0 }
 0x616   :  { %v12203_v3 = vpop.f32.mrf.mxu1  ;;  %6010 = vmatprep.mubr.bf16.mxu1 %v5352_v26  ;;  %v5075_v42 = vmax.f32 %v4506_v14, 0.0  ;;  %v4508_v60 = vadd.f32 %v4507_v48, %v11514_v63  ;;  %v5074_v14 = vmax.f32 %v4504_v18, 0.0 }
 0x617   :  { %v4509_v36 = vpop.f32.mrf.mxu0 }
 0x618   :  { %v4510_v37 = vadd.f32 %v4509_v36, %v11487_v16  ;;  %v12206_v17 = vpop.f32.mrf.mxu1 }
 0x619   :  { %14470 = vst [vmem:[#allocation83_spill] sm:$0xff] %v12206_v17  ;;  %v4513_v19 = vpop.f32.mrf.mxu0  ;;  %4752 = vmatmul.mubr.bf16.gmra.mxu0 %v11749_v61  ;;  %v5076_v17 = vmax.f32 %v4508_v60, 0.0 }
 0x61a   :  { %v5077_v24 = vmax.f32 %v4510_v37, 0.0  ;;  %v12210_v43 = vpop.f32.mrf.mxu1  ;;  %4761 = vmatprep.mubr.bf16.mxu0 %v11774_v46  ;;  %v8293_v46 = vld [vmem:[%s13861_s3 + $0x5] ss:$8 sm:$0x3] }
 0x61b   :  { %v4515_v21 = vpop.f32.mrf.mxu0 }
 0x61c   :  { %v12214_v45 = vpop.f32.mrf.mxu1  ;;  %6011 = vmatmul.mubr.bf16.gmra.mxu1 %v5351_v8  ;;  %v5354_v26 = vpack.c.bf16 %v5077_v24, %v5075_v42  ;;  %v4516_v61 = vadd.f32 %v4515_v21, %v11487_v16  ;;  %v5353_v42 = vpack.c.bf16 %v5076_v17, %v5074_v14 }
 0x61d   :  { %14471 = vst [vmem:[#allocation11_spill] sm:$0xff] %v12214_v45  ;;  %v4517_v36 = vpop.f32.mrf.mxu0 }
 0x61e   :  { %v12217_v2 = vpop.f32.mrf.mxu1  ;;  %6020 = vmatprep.mubr.bf16.mxu1 %v5354_v26  ;;  %v5079_v8 = vmax.f32 %v4516_v61, 0.0  ;;  %v4518_v60 = vadd.f32 %v4517_v36, %v11514_v63  ;;  %v14475_v26 = vld [vmem:[#allocation9_spill] sm:$0xff] }
 0x61f   :  { %14472 = vst [vmem:[#allocation41_spill] sm:$0xff] %v12217_v2  ;;  %v4519_v48 = vpop.f32.mrf.mxu0 }
 0x620   :  { %v4520_v11 = vadd.f32 %v4519_v48, %v11487_v16  ;;  %v12220_v37 = vpop.f32.mrf.mxu1  ;;  %v12231_v48 = vrot.slane %v8293_v46, %v14475_v26  ;;  %v5080_v36 = vmax.f32 %v4518_v60, 0.0 }
 0x621   :  { %14473 = vst [vmem:[#allocation15_spill] sm:$0xff] %v12220_v37  ;;  %v4523_v0 = vpop.f32.mrf.mxu0  ;;  %4762 = vmatmul.mubr.bf16.gmra.mxu0 %v11771_v59  ;;  %v4514_v37 = vadd.f32 %v4513_v19, %v11514_v63  ;;  %v14477_v59 = vld [vmem:[#allocation8_spill] sm:$0xff] }
 0x622   :  { %v5081_v24 = vmax.f32 %v4520_v11, 0.0  ;;  %v12227_v21 = vpop.f32.mrf.mxu1  ;;  %4771 = vmatprep.mubr.bf16.mxu0 %v11796_v53  ;;  %v12237_v17 = vrot.slane %v8293_v46, %v14477_v59  ;;  %v12244_v26 = vadd.f32 %v12016_v34, %v12231_v48  ;;  %v12263_v34 = vadd.f32 %v12040_v47, %v12231_v48 }
 0x623   :  { %14474 = vst [vmem:[#allocation45_spill] sm:$0xff] %v12227_v21  ;;  %v4525_v18 = vpop.f32.mrf.mxu0  ;;  %v5078_v19 = vmax.f32 %v4514_v37, 0.0 }
 0x624   :  { %v12234_v2 = vpop.f32.mrf.mxu1  ;;  %6021 = vmatmul.mubr.bf16.gmra.mxu1 %v5353_v42  ;;  %v5356_v45 = vpack.c.bf16 %v5081_v24, %v5079_v8  ;;  %v4526_v14 = vadd.f32 %v4525_v18, %v11487_v16  ;;  %v12251_v46 = vadd.f32 %v12024_v44, %v12237_v17  ;;  %v12255_v8 = vadd.f32 %v12029_v9, %v12231_v48 }
 0x625   :  { %14476 = vst [vmem:[#allocation49_spill] sm:$0xff] %v12234_v2  ;;  %v4527_v61 = vpop.f32.mrf.mxu0  ;;  %v5355_v60 = vpack.c.bf16 %v5080_v36, %v5078_v19 }
 0x626   :  { %v12240_v11 = vpop.f32.mrf.mxu1  ;;  %6030 = vmatprep.mubr.bf16.mxu1 %v5356_v45  ;;  %v12259_v45 = vadd.f32 %v12033_v58, %v12237_v17  ;;  %v5083_v24 = vmax.f32 %v4526_v14, 0.0  ;;  %v4528_v44 = vadd.f32 %v4527_v61, %v11514_v63  ;;  %v4524_v58 = vadd.f32 %v4523_v0, %v11514_v63 }
 0x627   :  { %14478 = vst [vmem:[#allocation46_spill] sm:$0xff] %v12240_v11  ;;  %v4529_v53 = vpop.f32.mrf.mxu0  ;;  %v12283_v0 = vadd.f32 %v12043_v32, %v12237_v17  ;;  %v12303_v32 = vadd.f32 %v12060_v1, %v12231_v48  ;;  %v12322_v1 = vadd.f32 %v12074_v15, %v12231_v48  ;;  %v12334_v15 = vadd.f32 %v12078_v23, %v12237_v17 }
 0x628   :  { %v4530_v2 = vadd.f32 %v4529_v53, %v11487_v16  ;;  %v12247_v42 = vpop.f32.mrf.mxu1  ;;  %v5084_v19 = vmax.f32 %v4528_v44, 0.0  ;;  %v12295_v44 = vadd.f32 %v12054_v41, %v12231_v48  ;;  %v12314_v41 = vadd.f32 %v12068_v54, %v12231_v48 }
 0x629   :  { %14479 = vst [vmem:[#allocation53_spill] sm:$0xff] %v12247_v42  ;;  %v4533_v37 = vpop.f32.mrf.mxu0  ;;  %4772 = vmatmul.mubr.bf16.gmra.mxu0 %v11793_v51 }
 0x62a   :  { %v5085_v18 = vmax.f32 %v4530_v2, 0.0  ;;  %v12267_v59 = vpop.f32.mrf.mxu1  ;;  %4781 = vmatprep.mubr.bf16.mxu0 %v11818_v39 }
 0x62b   :  { %14480 = vst [vmem:[#allocation50_spill] sm:$0xff] %v12267_v59  ;;  %v4535_v9 = vpop.f32.mrf.mxu0 }
 0x62c   :  { %v12271_v53 = vpop.f32.mrf.mxu1  ;;  %6031 = vmatmul.mubr.bf16.gmra.mxu1 %v5355_v60  ;;  %v5358_v47 = vpack.c.bf16 %v5085_v18, %v5083_v24  ;;  %v4536_v39 = vadd.f32 %v4535_v9, %v11487_v16  ;;  %v12287_v60 = vadd.f32 %v12046_v56, %v12231_v48  ;;  %v12291_v24 = vadd.f32 %v12050_v20, %v12237_v17 }
 0x62d   :  { %14481 = vst [vmem:[#allocation57_spill] sm:$0xff] %v12271_v53  ;;  %v4537_v14 = vpop.f32.mrf.mxu0  ;;  %v12299_v9 = vadd.f32 %v12057_v35, %v12237_v17  ;;  %v12310_v20 = vadd.f32 %v12064_v49, %v12237_v17  ;;  %v12318_v35 = vadd.f32 %v12071_v10, %v12237_v17  ;;  %v14485_v53 = vld [vmem:[#allocation40_spill] sm:$0xff] }
 0x62e   :  { %v12279_v59 = vpop.f32.mrf.mxu1  ;;  %6040 = vmatprep.mubr.bf16.mxu1 %v5358_v47  ;;  %v5082_v47 = vmax.f32 %v4524_v58, 0.0  ;;  %v5087_v2 = vmax.f32 %v4536_v39, 0.0  ;;  %v4538_v49 = vadd.f32 %v4537_v14, %v11514_v63  ;;  %v4534_v39 = vadd.f32 %v4533_v37, %v11514_v63 }
 0x62f   :  { %14482 = vst [vmem:[#allocation54_spill] sm:$0xff] %v12279_v59  ;;  %v4539_v18 = vpop.f32.mrf.mxu0 }
 0x630   :  { %v4540_v56 = vadd.f32 %v4539_v18, %v11487_v16  ;;  %v12306_v61 = vpop.f32.mrf.mxu1  ;;  %v5357_v18 = vpack.c.bf16 %v5084_v19, %v5082_v47 }
 0x631   :  { %14483 = vst [vmem:[#allocation59_spill] sm:$0xff] %v12306_v61  ;;  %v4543_v58 = vpop.f32.mrf.mxu0  ;;  %4782 = vmatmul.mubr.bf16.gmra.mxu0 %v11815_v13  ;;  %v5088_v61 = vmax.f32 %v4538_v49, 0.0  ;;  %v12358_v49 = vadd.f32 %v12088_v22, %v12231_v48 }
 0x632   :  { %v5089_v36 = vmax.f32 %v4540_v56, 0.0  ;;  %v12326_v51 = vpop.f32.mrf.mxu1  ;;  %4791 = vmatprep.mubr.bf16.mxu0 %v11838_v29 }
 0x633   :  { %14484 = vst [vmem:[#allocation58_spill] sm:$0xff] %v12326_v51  ;;  %v4545_v13 = vpop.f32.mrf.mxu0  ;;  %v12354_v51 = vadd.f32 %v12085_v12, %v12237_v17 }
 0x634   :  { %v5802_v47 = vpop.f32.mrf.mxu1  ;;  %6041 = vmatmul.mubr.bf16.gmra.mxu1 %v5357_v18  ;;  %v5360_v29 = vpack.c.bf16 %v5089_v36, %v5087_v2  ;;  %v4546_v14 = vadd.f32 %v4545_v13, %v11487_v16  ;;  %v12349_v2 = vadd.f32 %v12082_v55, %v12231_v48  ;;  %v5086_v13 = vmax.f32 %v4534_v39, 0.0 }
 0x635   :  { %v5803_v54 = vadd.f32 %v5802_v47, %v12231_v48  ;;  %v4547_v23 = vpop.f32.mrf.mxu0  ;;  %v12363_v55 = vadd.f32 %v12092_v62, %v12237_v17 }
 0x636   :  { %v5804_v37 = vpop.f32.mrf.mxu1  ;;  %6050 = vmatprep.mubr.bf16.mxu1 %v5360_v29  ;;  %v5359_v12 = vpack.c.bf16 %v5088_v61, %v5086_v13  ;;  %v5091_v56 = vmax.f32 %v4546_v14, 0.0  ;;  %v4548_v22 = vadd.f32 %v4547_v23, %v11514_v63  ;;  %v4544_v61 = vadd.f32 %v4543_v58, %v11514_v63 }
 0x637   :  { %v6505_v18 = vmax.f32 %v5803_v54, 0.0  ;;  %v5805_v42 = vadd.f32 %v5804_v37, %v12237_v17  ;;  %v4549_v47 = vpop.f32.mrf.mxu0 }
 0x638   :  { %v4550_v29 = vadd.f32 %v4549_v47, %v11487_v16  ;;  %v5806_v36 = vpop.f32.mrf.mxu1  ;;  %v14486_v47 = vmax.f32 %v12244_v26, 0.0 }
 0x639   :  { %v6761_v54 = vmul.f32 2.0, %v6505_v18  ;;  %v6506_v19 = vmax.f32 %v5805_v42, 0.0  ;;  %v5807_v37 = vadd.f32 %v5806_v36, %v12231_v48  ;;  %v4553_v10 = vpop.f32.mrf.mxu0  ;;  %4792 = vmatmul.mubr.bf16.gmra.mxu0 %v11835_v28 }
 0x63a   :  { %v5093_v59 = vmax.f32 %v4550_v29, 0.0  ;;  %v5808_v39 = vpop.f32.mrf.mxu1  ;;  %4801 = vmatprep.mubr.bf16.mxu0 %v14485_v53  ;;  %v14487_v53 = vmax.f32 %v12251_v46, 0.0 }
 0x63b   :  { %v12371_v11 = vadd.f32 %v6761_v54, %v14486_v47  ;;  %v6762_v62 = vmul.f32 2.0, %v6506_v19  ;;  %v6507_v18 = vmax.f32 %v5807_v37, 0.0  ;;  %v5809_v42 = vadd.f32 %v5808_v39, %v12237_v17  ;;  %v4555_v36 = vpop.f32.mrf.mxu0  ;;  %v14492_v39 = vld [vmem:[#allocation39_spill] sm:$0xff] }
 0x63c   :  { %v5812_v14 = vpop.f32.mrf.mxu1  ;;  %6051 = vmatmul.mubr.bf16.gmra.mxu1 %v5359_v12  ;;  %v5362_v23 = vpack.c.bf16 %v5093_v59, %v5091_v56  ;;  %v5092_v47 = vmax.f32 %v4548_v22, 0.0  ;;  %v4556_v28 = vadd.f32 %v4555_v36, %v11487_v16  ;;  %v14488_v59 = vmax.f32 %v12255_v8, 0.0 }
 0x63d   :  { %v12379_v13 = vadd.f32 %v6762_v62, %v14487_v53  ;;  %v6763_v26 = vmul.f32 2.0, %v6507_v18  ;;  %v6508_v29 = vmax.f32 %v5809_v42, 0.0  ;;  %v5813_v19 = vadd.f32 %v5812_v14, %v12231_v48  ;;  %v4557_v54 = vpop.f32.mrf.mxu0  ;;  %v14490_v42 = vld [vmem:[#allocation66_spill] sm:$0xff] }
 0x63e   :  { %v5814_v58 = vpop.f32.mrf.mxu1  ;;  %6060 = vmatprep.mubr.bf16.mxu1 %v5362_v23  ;;  %v12392_v14 = vadd.f32 %v14490_v42, %v12231_v48  ;;  %v12396_v22 = vadd.f32 %v12099_v38, %v12237_v17  ;;  %v5090_v36 = vmax.f32 %v4544_v61, 0.0  ;;  %v14491_v8 = vmax.f32 %v12259_v45, 0.0 }
 0x63f   :  { %v12387_v56 = vadd.f32 %v6763_v26, %v14488_v59  ;;  %v6764_v46 = vmul.f32 2.0, %v6508_v29  ;;  %v6509_v12 = vmax.f32 %v5813_v19, 0.0  ;;  %v5815_v62 = vadd.f32 %v5814_v58, %v12237_v17  ;;  %v4559_v18 = vpop.f32.mrf.mxu0 }
 0x640   :  { %v4560_v23 = vadd.f32 %v4559_v18, %v11487_v16  ;;  %v5816_v53 = vpop.f32.mrf.mxu1  ;;  %v5361_v42 = vpack.c.bf16 %v5092_v47, %v5090_v36  ;;  %v5095_v37 = vmax.f32 %v4556_v28, 0.0  ;;  %v4558_v38 = vadd.f32 %v4557_v54, %v11514_v63 }
 0x641   :  { %14489 = vst [vmem:[#allocation62_spill] sm:$0xff] %v12387_v56  ;;  %v12401_v26 = vadd.f32 %v6764_v46, %v14491_v8  ;;  %v6765_v29 = vmul.f32 2.0, %v6509_v12  ;;  %v6510_v19 = vmax.f32 %v5815_v62, 0.0  ;;  %v5817_v58 = vadd.f32 %v5816_v53, %v12231_v48  ;;  %v4563_v59 = vpop.f32.mrf.mxu0  ;;  %4802 = vmatmul.mubr.bf16.gmra.mxu0 %v14492_v39  ;;  %v14493_v56 = vld [vmem:[#allocation44_spill] sm:$0xff]  ;;  %v14502_v39 = vld [vmem:[#allocation43_spill] sm:$0xff] }
 0x642   :  { %v5097_v21 = vmax.f32 %v4560_v23, 0.0  ;;  %v5818_v61 = vpop.f32.mrf.mxu1  ;;  %4811 = vmatprep.mubr.bf16.mxu0 %v14493_v56  ;;  %v14494_v18 = vmax.f32 %v12263_v34, 0.0  ;;  %v4554_v28 = vadd.f32 %v4553_v10, %v11514_v63  ;;  %v14495_v56 = vmax.f32 %v12283_v0, 0.0 }
 0x643   :  { %v6766_v46 = vmul.f32 2.0, %v6510_v19  ;;  %v6511_v12 = vmax.f32 %v5817_v58, 0.0  ;;  %v5819_v62 = vadd.f32 %v5818_v61, %v12237_v17  ;;  %v4565_v53 = vpop.f32.mrf.mxu0  ;;  %v14497_v58 = vld [vmem:[#allocation78_spill] sm:$0xff]  ;;  %v5096_v10 = vmax.f32 %v4558_v38, 0.0 }
 0x644   :  { %v12409_v45 = vadd.f32 %v6765_v29, %v14494_v18  ;;  %v5822_v54 = vpop.f32.mrf.mxu1  ;;  %6061 = vmatmul.mubr.bf16.gmra.mxu1 %v5361_v42  ;;  %v5364_v47 = vpack.c.bf16 %v5097_v21, %v5095_v37  ;;  %v12422_v61 = vadd.f32 %v14497_v58, %v12231_v48  ;;  %v12426_v18 = vadd.f32 %v12106_v27, %v12237_v17 }
 0x645   :  { %v12417_v36 = vadd.f32 %v6766_v46, %v14495_v56  ;;  %v6767_v34 = vmul.f32 2.0, %v6511_v12  ;;  %v6512_v23 = vmax.f32 %v5819_v62, 0.0  ;;  %v5823_v29 = vadd.f32 %v5822_v54, %v12231_v48  ;;  %v4567_v19 = vpop.f32.mrf.mxu0  ;;  %v14500_v56 = vld [vmem:[#allocation70_spill] sm:$0xff] }
 0x646   :  { %v4566_v21 = vadd.f32 %v4565_v53, %v11487_v16  ;;  %v5824_v37 = vpop.f32.mrf.mxu1  ;;  %6070 = vmatprep.mubr.bf16.mxu1 %v5364_v47  ;;  %v14498_v0 = vmax.f32 %v12287_v60, 0.0  ;;  %v12436_v58 = vadd.f32 %v14500_v56, %v12231_v48  ;;  %v12440_v27 = vadd.f32 %v12113_v4, %v12237_v17 }
 0x647   :  { %14496 = vst [vmem:[#allocation61_spill] sm:$0xff] %v12417_v36  ;;  %v6768_v46 = vmul.f32 2.0, %v6512_v23  ;;  %v6513_v12 = vmax.f32 %v5823_v29, 0.0  ;;  %v5825_v62 = vadd.f32 %v5824_v37, %v12237_v17  ;;  %v4569_v54 = vpop.f32.mrf.mxu0  ;;  %v5094_v38 = vmax.f32 %v4554_v28, 0.0  ;;  %v14503_v36 = vld [vmem:[#allocation86_spill] sm:$0xff] }
 0x648   :  { %v12431_v42 = vadd.f32 %v6767_v34, %v14498_v0  ;;  %v4570_v53 = vadd.f32 %v4569_v54, %v11487_v16  ;;  %v5826_v47 = vpop.f32.mrf.mxu1  ;;  %v14501_v60 = vmax.f32 %v12291_v24, 0.0  ;;  %v5099_v8 = vmax.f32 %v4566_v21, 0.0 }
 0x649   :  { %v6769_v23 = vmul.f32 2.0, %v6513_v12  ;;  %v6514_v29 = vmax.f32 %v5825_v62, 0.0  ;;  %v5827_v37 = vadd.f32 %v5826_v47, %v12231_v48  ;;  %v4573_v0 = vpop.f32.mrf.mxu0  ;;  %4812 = vmatmul.mubr.bf16.gmra.mxu0 %v14502_v39  ;;  %v5363_v56 = vpack.c.bf16 %v5096_v10, %v5094_v38 }
 0x64a   :  { %14499 = vst [vmem:[#allocation64_spill] sm:$0xff] %v12431_v42  ;;  %v12445_v34 = vadd.f32 %v6768_v46, %v14501_v60  ;;  %v4568_v4 = vadd.f32 %v4567_v19, %v11514_v63  ;;  %v5101_v42 = vmax.f32 %v4570_v53, 0.0  ;;  %v5828_v28 = vpop.f32.mrf.mxu1  ;;  %4821 = vmatprep.mubr.bf16.mxu0 %v14503_v36  ;;  %v14504_v54 = vmax.f32 %v12295_v44, 0.0 }
 0x64b   :  { %v6770_v46 = vmul.f32 2.0, %v6514_v29  ;;  %v6515_v12 = vmax.f32 %v5827_v37, 0.0  ;;  %v5829_v62 = vadd.f32 %v5828_v28, %v12237_v17  ;;  %v4575_v47 = vpop.f32.mrf.mxu0  ;;  %v4564_v10 = vadd.f32 %v4563_v59, %v11514_v63  ;;  %v14510_v28 = vld [vmem:[#allocation12_spill] sm:$0xff] }
 0x64c   :  { %v12453_v24 = vadd.f32 %v6769_v23, %v14504_v54  ;;  %v5832_v19 = vpop.f32.mrf.mxu1  ;;  %6071 = vmatmul.mubr.bf16.gmra.mxu1 %v5363_v56  ;;  %v5366_v21 = vpack.c.bf16 %v5101_v42, %v5099_v8  ;;  %v14505_v36 = vmax.f32 %v12299_v9, 0.0  ;;  %v5100_v54 = vmax.f32 %v4568_v4, 0.0 }
 0x64d   :  { %v6771_v44 = vmul.f32 2.0, %v6515_v12  ;;  %v6516_v53 = vmax.f32 %v5829_v62, 0.0  ;;  %v5833_v23 = vadd.f32 %v5832_v19, %v12231_v48  ;;  %v4577_v29 = vpop.f32.mrf.mxu0  ;;  %v4576_v39 = vadd.f32 %v4575_v47, %v11487_v16  ;;  %v14508_v62 = vld [vmem:[#allocation21_spill] sm:$0xff] }
 0x64e   :  { %v12461_v38 = vadd.f32 %v6770_v46, %v14505_v36  ;;  %v5834_v59 = vpop.f32.mrf.mxu1  ;;  %6080 = vmatprep.mubr.bf16.mxu1 %v5366_v21  ;;  %v14506_v8 = vmax.f32 %v12303_v32, 0.0  ;;  %v12474_v19 = vadd.f32 %v14508_v62, %v12231_v48  ;;  %v12478_v4 = vadd.f32 %v12120_v31, %v12237_v17 }
 0x64f   :  { %v6772_v9 = vmul.f32 2.0, %v6516_v53  ;;  %v6517_v56 = vmax.f32 %v5833_v23, 0.0  ;;  %v5835_v46 = vadd.f32 %v5834_v59, %v12237_v17  ;;  %v4579_v12 = vpop.f32.mrf.mxu0  ;;  %v5098_v47 = vmax.f32 %v4564_v10, 0.0 }
 0x650   :  { %v12469_v42 = vadd.f32 %v6771_v44, %v14506_v8  ;;  %v4580_v21 = vadd.f32 %v4579_v12, %v11487_v16  ;;  %v5836_v36 = vpop.f32.mrf.mxu1  ;;  %v14509_v32 = vmax.f32 %v12310_v20, 0.0  ;;  %v5103_v37 = vmax.f32 %v4576_v39, 0.0 }
 0x651   :  { %v6773_v53 = vmul.f32 2.0, %v6517_v56  ;;  %v6518_v23 = vmax.f32 %v5835_v46, 0.0  ;;  %v5837_v59 = vadd.f32 %v5836_v36, %v12231_v48  ;;  %v4583_v8 = vpop.f32.mrf.mxu0  ;;  %4822 = vmatmul.mubr.bf16.gmra.mxu0 %v14510_v28  ;;  %v5365_v62 = vpack.c.bf16 %v5100_v54, %v5098_v47 }
 0x652   :  { %14507 = vst [vmem:[#allocation63_spill] sm:$0xff] %v12469_v42  ;;  %v12483_v44 = vadd.f32 %v6772_v9, %v14509_v32  ;;  %v4578_v31 = vadd.f32 %v4577_v29, %v11514_v63  ;;  %v5105_v60 = vmax.f32 %v4580_v21, 0.0  ;;  %v5838_v10 = vpop.f32.mrf.mxu1  ;;  %v14511_v42 = vld [vmem:[#allocation48_spill] sm:$0xff]  ;;  %v14512_v12 = vmax.f32 %v12314_v41, 0.0 }
 0x653   :  { %4831 = vmatprep.mubr.bf16.mxu0 %v14511_v42  ;;  %v6774_v9 = vmul.f32 2.0, %v6518_v23  ;;  %v6519_v56 = vmax.f32 %v5837_v59, 0.0  ;;  %v5839_v46 = vadd.f32 %v5838_v10, %v12237_v17  ;;  %v4585_v36 = vpop.f32.mrf.mxu0  ;;  %v4574_v39 = vadd.f32 %v4573_v0, %v11514_v63  ;;  %v14514_v59 = vld [vmem:[#allocation18_spill] sm:$0xff] }
 0x654   :  { %v12491_v20 = vadd.f32 %v6773_v53, %v14512_v12  ;;  %v5842_v29 = vpop.f32.mrf.mxu1  ;;  %6081 = vmatmul.mubr.bf16.gmra.mxu1 %v5365_v62  ;;  %v5368_v54 = vpack.c.bf16 %v5105_v60, %v5103_v37  ;;  %v14513_v42 = vmax.f32 %v12318_v35, 0.0  ;;  %v12504_v10 = vadd.f32 %v14514_v59, %v12231_v48 }
 0x655   :  { %v6775_v41 = vmul.f32 2.0, %v6519_v56  ;;  %v6520_v21 = vmax.f32 %v5839_v46, 0.0  ;;  %v5843_v53 = vadd.f32 %v5842_v29, %v12231_v48  ;;  %v4587_v23 = vpop.f32.mrf.mxu0  ;;  %v12508_v12 = vadd.f32 %v12127_v50, %v12237_v17 }
 0x656   :  { %v12499_v47 = vadd.f32 %v6774_v9, %v14513_v42  ;;  %v5104_v0 = vmax.f32 %v4578_v31, 0.0  ;;  %v4586_v60 = vadd.f32 %v4585_v36, %v11487_v16  ;;  %v5844_v37 = vpop.f32.mrf.mxu1  ;;  %6090 = vmatprep.mubr.bf16.mxu1 %v5368_v54  ;;  %v14515_v35 = vmax.f32 %v12322_v1, 0.0  ;;  %v14516_v42 = vld [vmem:[#allocation74_spill] sm:$0xff] }
 0x657   :  { %v6776_v9 = vmul.f32 2.0, %v6520_v21  ;;  %v6521_v56 = vmax.f32 %v5843_v53, 0.0  ;;  %v5845_v46 = vadd.f32 %v5844_v37, %v12237_v17  ;;  %v4589_v29 = vpop.f32.mrf.mxu0  ;;  %v12518_v59 = vadd.f32 %v14516_v42, %v12231_v48  ;;  %v14519_v42 = vld [vmem:[#allocation47_spill] sm:$0xff] }
 0x658   :  { %v12513_v62 = vadd.f32 %v6775_v41, %v14515_v35  ;;  %v12522_v50 = vadd.f32 %v12134_v5, %v12237_v17  ;;  %v5102_v31 = vmax.f32 %v4574_v39, 0.0  ;;  %v4590_v36 = vadd.f32 %v4589_v29, %v11487_v16  ;;  %v5846_v54 = vpop.f32.mrf.mxu1  ;;  %v8894_v5 = vld [vmem:[%s13862_s4 + $0x50] sm:$0xff]  }
 0x659   :  { %v14517_v1 = vmax.f32 %v12334_v15, 0.0  ;;  %v6777_v21 = vmul.f32 2.0, %v6521_v56  ;;  %v6522_v53 = vmax.f32 %v5845_v46, 0.0  ;;  %v5847_v37 = vadd.f32 %v5846_v54, %v12231_v48  ;;  %v12530_v35 = vpop.f32.mrf.mxu0  ;;  %4832 = vmatmul.mubr.bf16.gmra.mxu0 %v14519_v42  ;;  %8391 = vmatprep.subr.bf16.mxu0 %v8894_v5 }
 0x65a   :  { %v5367_v39 = vpack.c.bf16 %v5104_v0, %v5102_v31  ;;  %v5107_v28 = vmax.f32 %v4586_v60, 0.0  ;;  %v4588_v29 = vadd.f32 %v4587_v23, %v11514_v63  ;;  %v5109_v32 = vmax.f32 %v4590_v36, 0.0  ;;  %v5848_v15 = vpop.f32.mrf.mxu1  ;;  %v8895_v0 = vld [vmem:[%s13862_s4 + $0x10] sm:$0xff]  }
 0x65b   :  { %v12527_v41 = vadd.f32 %v6776_v9, %v14517_v1  ;;  %v14520_v9 = vld [vmem:[#allocation84_spill] sm:$0xff]  ;;  %v14521_v56 = vmax.f32 %v12349_v2, 0.0  ;;  %v6778_v54 = vmul.f32 2.0, %v6522_v53  ;;  %v6523_v1 = vmax.f32 %v5847_v37, 0.0  ;;  %8392 = vmatpush3.bf16.msra.mxu0 %v8895_v0 }
 0x65c   :  { %4841 = vmatprep.mubr.bf16.mxu0 %v14520_v9  ;;  %v5849_v42 = vadd.f32 %v5848_v15, %v12237_v17  ;;  %v4584_v31 = vadd.f32 %v4583_v8, %v11514_v63  ;;  %v5852_v36 = vpop.f32.mrf.mxu1  ;;  %6091 = vmatmul.mubr.bf16.gmra.mxu1 %v5367_v39  ;;  %v5370_v2 = vpack.c.bf16 %v5109_v32, %v5107_v28  ;;  %v5108_v60 = vmax.f32 %v4588_v29, 0.0 }
 0x65d   :  { %14518 = vst [vmem:[#allocation10_spill] sm:$0xff] %v12527_v41  ;;  %v12540_v46 = vadd.f32 %v6777_v21, %v14521_v56  ;;  %v4595_v41 = vpop.f32.mrf.mxu0  ;;  %v14523_v21 = vmax.f32 %v12354_v51, 0.0  ;;  %v6779_v37 = vmul.f32 2.0, %v6523_v1  ;;  %v5853_v5 = vadd.f32 %v5852_v36, %v12231_v48 }
 0x65e   :  { %v6524_v15 = vmax.f32 %v5849_v42, 0.0  ;;  %v4596_v8 = vadd.f32 %v4595_v41, %v11487_v16  ;;  %6100 = vmatprep.mubr.bf16.mxu1 %v5370_v2  ;;  %v14524_v32 = vmax.f32 %v12358_v49, 0.0  ;;  %v14526_v42 = vld [vmem:[#allocation77_spill] sm:$0xff]  ;;  %v12568_v29 = vadd.f32 %v12141_v25, %v12237_v17 }
 0x65f   :  { %14522 = vst [vmem:[#allocation65_spill] sm:$0xff] %v12540_v46  ;;  %v12551_v53 = vadd.f32 %v6778_v54, %v14523_v21  ;;  %v4597_v9 = vpop.f32.mrf.mxu0  ;;  %v5854_v46 = vpop.f32.mrf.mxu1  ;;  %v6525_v39 = vmax.f32 %v5853_v5, 0.0  ;;  %v12564_v0 = vadd.f32 %v14526_v42, %v12231_v48  ;;  %v5106_v41 = vmax.f32 %v4584_v31, 0.0 }
 0x660   :  { %v12559_v51 = vadd.f32 %v6779_v37, %v14524_v32  ;;  %v6780_v28 = vmul.f32 2.0, %v6524_v15  ;;  %v5855_v54 = vadd.f32 %v5854_v46, %v12237_v17  ;;  %v14527_v49 = vmax.f32 %v12363_v55, 0.0  ;;  %v14528_v32 = vld [vmem:[#allocation13_spill] sm:$0xff] }
 0x661   :  { %v4599_v1 = vpop.f32.mrf.mxu0  ;;  %v5856_v2 = vpop.f32.mrf.mxu1  ;;  %v6781_v37 = vmul.f32 2.0, %v6525_v39  ;;  %4842 = vmatmul.mubr.bf16.gmra.mxu0 %v14528_v32  ;;  %v5369_v42 = vpack.c.bf16 %v5108_v60, %v5106_v41  ;;  %v5111_v23 = vmax.f32 %v4596_v8, 0.0  ;;  %v4598_v25 = vadd.f32 %v4597_v9, %v11514_v63  ;;  %v14533_v32 = vld [vmem:[#allocation76_spill] sm:$0xff]  ;;  %v14538_v60 = vld [vmem:[#allocation51_spill] sm:$0xff] }
 0x662   :  { %14525 = vst [vmem:[#allocation19_spill] sm:$0xff] %v12559_v51  ;;  %v4600_v36 = vadd.f32 %v4599_v1, %v11487_v16  ;;  %v12573_v21 = vadd.f32 %v6780_v28, %v14527_v49  ;;  %v6526_v15 = vmax.f32 %v5855_v54, 0.0  ;;  %v5857_v46 = vadd.f32 %v5856_v2, %v12231_v48  ;;  %v14529_v51 = vld [vmem:[#allocation52_spill] sm:$0xff] }
 0x663   :  { %v4603_v5 = vpop.f32.mrf.mxu0  ;;  %v5858_v31 = vpop.f32.mrf.mxu1  ;;  %4851 = vmatprep.mubr.bf16.mxu0 %v14529_v51  ;;  %v14530_v1 = vmax.f32 %v12392_v14, 0.0  ;;  %v4594_v9 = vadd.f32 %v12530_v35, %v11514_v63  ;;  %v14531_v51 = vmax.f32 %v12396_v22, 0.0  ;;  %v5112_v35 = vmax.f32 %v4598_v25, 0.0 }
 0x664   :  { %v5113_v56 = vmax.f32 %v4600_v36, 0.0  ;;  %v6782_v28 = vmul.f32 2.0, %v6526_v15  ;;  %v6527_v39 = vmax.f32 %v5857_v46, 0.0  ;;  %v5859_v54 = vadd.f32 %v5858_v31, %v12237_v17  ;;  %6101 = vmatmul.mubr.bf16.gmra.mxu1 %v5369_v42 }
 0x665   :  { %v12581_v55 = vadd.f32 %v6781_v37, %v14530_v1  ;;  %v4605_v2 = vpop.f32.mrf.mxu0  ;;  %v5862_v8 = vpop.f32.mrf.mxu1  ;;  %v12595_v31 = vadd.f32 %v14533_v32, %v12231_v48  ;;  %v12599_v1 = vadd.f32 %v12148_v33, %v12237_v17  ;;  %v14534_v22 = vmax.f32 %v12422_v61, 0.0 }
 0x666   :  { %v5372_v41 = vpack.c.bf16 %v5113_v56, %v5111_v23  ;;  %v12590_v14 = vadd.f32 %v6782_v28, %v14531_v51  ;;  %v6783_v36 = vmul.f32 2.0, %v6527_v39  ;;  %v6528_v37 = vmax.f32 %v5859_v54, 0.0  ;;  %v14536_v51 = vld [vmem:[#allocation79_spill] sm:$0xff] }
 0x667   :  { %v5863_v15 = vadd.f32 %v5862_v8, %v12231_v48  ;;  %v4607_v46 = vpop.f32.mrf.mxu0  ;;  %v4606_v23 = vadd.f32 %v4605_v2, %v11487_v16  ;;  %v5864_v56 = vpop.f32.mrf.mxu1  ;;  %v12609_v32 = vadd.f32 %v14536_v51, %v12231_v48  ;;  %v12613_v33 = vadd.f32 %v12155_v57, %v12237_v17 }
 0x668   :  { %14532 = vst [vmem:[#allocation22_spill] sm:$0xff] %v12590_v14  ;;  %6110 = vmatprep.mubr.bf16.mxu1 %v5372_v41  ;;  %v12604_v42 = vadd.f32 %v6783_v36, %v14534_v22  ;;  %v6784_v28 = vmul.f32 2.0, %v6528_v37  ;;  %v5865_v54 = vadd.f32 %v5864_v56, %v12237_v17  ;;  %v5110_v25 = vmax.f32 %v4594_v9, 0.0  ;;  %v14539_v14 = vld [vmem:[#allocation73_spill] sm:$0xff] }
 0x669   :  { %v6529_v39 = vmax.f32 %v5863_v15, 0.0  ;;  %v4609_v8 = vpop.f32.mrf.mxu0  ;;  %v5866_v41 = vpop.f32.mrf.mxu1  ;;  %v14537_v61 = vmax.f32 %v12426_v18, 0.0  ;;  %4852 = vmatmul.mubr.bf16.gmra.mxu0 %v14538_v60  ;;  %v5115_v49 = vmax.f32 %v4606_v23, 0.0  ;;  %v4608_v57 = vadd.f32 %v4607_v46, %v11514_v63 }
 0x66a   :  { %14535 = vst [vmem:[#allocation25_spill] sm:$0xff] %v12604_v42  ;;  %v4610_v2 = vadd.f32 %v4609_v8, %v11487_v16  ;;  %v6530_v15 = vmax.f32 %v5865_v54, 0.0  ;;  %v5867_v56 = vadd.f32 %v5866_v41, %v12231_v48  ;;  %v5371_v51 = vpack.c.bf16 %v5112_v35, %v5110_v25  ;;  %4861 = vmatprep.mubr.bf16.mxu0 %v14539_v14 }
 0x66b   :  { %v12618_v36 = vadd.f32 %v6784_v28, %v14537_v61  ;;  %v6785_v37 = vmul.f32 2.0, %v6529_v39  ;;  %v4613_v22 = vpop.f32.mrf.mxu0  ;;  %v5868_v9 = vpop.f32.mrf.mxu1  ;;  %v14540_v8 = vmax.f32 %v12436_v58, 0.0  ;;  %v4604_v35 = vadd.f32 %v4603_v5, %v11514_v63 }
 0x66c   :  { %v5117_v42 = vmax.f32 %v4610_v2, 0.0  ;;  %v6786_v28 = vmul.f32 2.0, %v6530_v15  ;;  %v6531_v39 = vmax.f32 %v5867_v56, 0.0  ;;  %v5869_v54 = vadd.f32 %v5868_v9, %v12237_v17  ;;  %6111 = vmatmul.mubr.bf16.gmra.mxu1 %v5371_v51  ;;  %v14546_v9 = vld [vmem:[#allocation68_spill] sm:$0xff] }
 0x66d   :  { %v12626_v18 = vadd.f32 %v6785_v37, %v14540_v8  ;;  %v4615_v41 = vpop.f32.mrf.mxu0  ;;  %v5872_v46 = vpop.f32.mrf.mxu1  ;;  %v14541_v14 = vmax.f32 %v12440_v27, 0.0  ;;  %v5116_v8 = vmax.f32 %v4608_v57, 0.0  ;;  %v12651_v57 = vadd.f32 %v12162_v40, %v12237_v17 }
 0x66e   :  { %v5374_v23 = vpack.c.bf16 %v5117_v42, %v5115_v49  ;;  %v6787_v58 = vmul.f32 2.0, %v6531_v39  ;;  %v6532_v2 = vmax.f32 %v5869_v54, 0.0  ;;  %v5873_v37 = vadd.f32 %v5872_v46, %v12231_v48  ;;  %v14544_v54 = vld [vmem:[#allocation81_spill] sm:$0xff] }
 0x66f   :  { %v12634_v25 = vadd.f32 %v6786_v28, %v14541_v14  ;;  %v4617_v15 = vpop.f32.mrf.mxu0  ;;  %v4616_v60 = vadd.f32 %v4615_v41, %v11487_v16  ;;  %v5874_v5 = vpop.f32.mrf.mxu1  ;;  %v14542_v49 = vmax.f32 %v12474_v19, 0.0  ;;  %v12647_v46 = vadd.f32 %v14544_v54, %v12231_v48 }
 0x670   :  { %6120 = vmatprep.mubr.bf16.mxu1 %v5374_v23  ;;  %v6788_v27 = vmul.f32 2.0, %v6532_v2  ;;  %v6533_v51 = vmax.f32 %v5873_v37, 0.0  ;;  %v5875_v28 = vadd.f32 %v5874_v5, %v12237_v17  ;;  %v5114_v41 = vmax.f32 %v4604_v35, 0.0 }
 0x671   :  { %v12642_v42 = vadd.f32 %v6787_v58, %v14542_v49  ;;  %v4619_v39 = vpop.f32.mrf.mxu0  ;;  %v5876_v14 = vpop.f32.mrf.mxu1  ;;  %v14545_v19 = vmax.f32 %v12478_v4, 0.0  ;;  %4862 = vmatmul.mubr.bf16.gmra.mxu0 %v14546_v9  ;;  %v5119_v56 = vmax.f32 %v4616_v60, 0.0  ;;  %v4618_v40 = vadd.f32 %v4617_v15, %v11514_v63 }
 0x672   :  { %v4620_v23 = vadd.f32 %v4619_v39, %v11487_v16  ;;  %v6789_v2 = vmul.f32 2.0, %v6533_v51  ;;  %v6534_v37 = vmax.f32 %v5875_v28, 0.0  ;;  %v5877_v5 = vadd.f32 %v5876_v14, %v12231_v48 }
 0x673   :  { %14543 = vst [vmem:[#allocation20_spill] sm:$0xff] %v12642_v42  ;;  %v12656_v58 = vadd.f32 %v6788_v27, %v14545_v19  ;;  %v4623_v49 = vpop.f32.mrf.mxu0  ;;  %v5373_v54 = vpack.c.bf16 %v5116_v8, %v5114_v41  ;;  %v5878_v35 = vpop.f32.mrf.mxu1  ;;  %v14547_v42 = vld [vmem:[#allocation56_spill] sm:$0xff]  ;;  %v14548_v39 = vmax.f32 %v12504_v10, 0.0  ;;  %v4614_v60 = vadd.f32 %v4613_v22, %v11514_v63  ;;  %v14558_v19 = vld [vmem:[#allocation55_spill] sm:$0xff] }
 0x674   :  { %v5121_v61 = vmax.f32 %v4620_v23, 0.0  ;;  %4871 = vmatprep.mubr.bf16.mxu0 %v14547_v42  ;;  %v6790_v27 = vmul.f32 2.0, %v6534_v37  ;;  %v6535_v51 = vmax.f32 %v5877_v5, 0.0  ;;  %v5879_v28 = vadd.f32 %v5878_v35, %v12237_v17  ;;  %v14552_v35 = vld [vmem:[#allocation80_spill] sm:$0xff] }
 0x675   :  { %v12664_v4 = vadd.f32 %v6789_v2, %v14548_v39  ;;  %v4625_v14 = vpop.f32.mrf.mxu0  ;;  %v5882_v15 = vpop.f32.mrf.mxu1  ;;  %6121 = vmatmul.mubr.bf16.gmra.mxu1 %v5373_v54  ;;  %v14550_v42 = vmax.f32 %v12508_v12, 0.0  ;;  %v12677_v5 = vadd.f32 %v12166_v7, %v12231_v48  ;;  %v12681_v39 = vadd.f32 %v14552_v35, %v12237_v17  ;;  %v14555_v7 = vld [vmem:[#allocation85_spill] sm:$0xff]  ;;  %v14556_v35 = vld [vmem:[#allocation82_spill] sm:$0xff] }
 0x676   :  { %v5376_v8 = vpack.c.bf16 %v5121_v61, %v5119_v56  ;;  %v6791_v10 = vmul.f32 2.0, %v6535_v51  ;;  %v6536_v23 = vmax.f32 %v5879_v28, 0.0  ;;  %v5883_v2 = vadd.f32 %v5882_v15, %v12231_v48 }
 0x677   :  { %14549 = vst [vmem:[#allocation23_spill] sm:$0xff] %v12664_v4  ;;  %v12672_v41 = vadd.f32 %v6790_v27, %v14550_v42  ;;  %v4627_v37 = vpop.f32.mrf.mxu0  ;;  %v5120_v22 = vmax.f32 %v4618_v40, 0.0  ;;  %v4626_v61 = vadd.f32 %v4625_v14, %v11487_v16  ;;  %v5884_v56 = vpop.f32.mrf.mxu1  ;;  %v14553_v12 = vmax.f32 %v12518_v59, 0.0  ;;  %v14559_v4 = vld [vmem:[#allocation71_spill] sm:$0xff] }
 0x678   :  { %6130 = vmatprep.mubr.bf16.mxu1 %v5376_v8  ;;  %v6792_v27 = vmul.f32 2.0, %v6536_v23  ;;  %v6537_v51 = vmax.f32 %v5883_v2, 0.0  ;;  %v5885_v28 = vadd.f32 %v5884_v56, %v12237_v17  ;;  %v12691_v42 = vadd.f32 %v14555_v7, %v12231_v48 }
 0x679   :  { %14551 = vst [vmem:[#allocation26_spill] sm:$0xff] %v12672_v41  ;;  %v12686_v54 = vadd.f32 %v6791_v10, %v14553_v12  ;;  %v4629_v15 = vpop.f32.mrf.mxu0  ;;  %v12695_v40 = vadd.f32 %v14556_v35, %v12237_v17  ;;  %v5118_v14 = vmax.f32 %v4614_v60, 0.0  ;;  %v5886_v9 = vpop.f32.mrf.mxu1  ;;  %v14557_v59 = vmax.f32 %v12522_v50, 0.0  ;;  %4872 = vmatmul.mubr.bf16.gmra.mxu0 %v14558_v19 }
 0x67a   :  { %v4630_v8 = vadd.f32 %v4629_v15, %v11487_v16  ;;  %v6793_v23 = vmul.f32 2.0, %v6537_v51  ;;  %v6538_v2 = vmax.f32 %v5885_v28, 0.0  ;;  %v5887_v56 = vadd.f32 %v5886_v9, %v12231_v48  ;;  %4881 = vmatprep.mubr.bf16.mxu0 %v14559_v4 }
 0x67b   :  { %14554 = vst [vmem:[#allocation29_spill] sm:$0xff] %v12686_v54  ;;  %v12700_v10 = vadd.f32 %v6792_v27, %v14557_v59  ;;  %v4633_v12 = vpop.f32.mrf.mxu0  ;;  %v5375_v7 = vpack.c.bf16 %v5120_v22, %v5118_v14  ;;  %v5123_v54 = vmax.f32 %v4626_v61, 0.0  ;;  %v4628_v35 = vadd.f32 %v4627_v37, %v11514_v63  ;;  %v5888_v60 = vpop.f32.mrf.mxu1  ;;  %v14565_v59 = vld [vmem:[#allocation69_spill] sm:$0xff] }
 0x67c   :  { %v5125_v41 = vmax.f32 %v4630_v8, 0.0  ;;  %v14560_v15 = vmax.f32 %v12564_v0, 0.0  ;;  %v6794_v27 = vmul.f32 2.0, %v6538_v2  ;;  %v6539_v51 = vmax.f32 %v5887_v56, 0.0 }
 0x67d   :  { %v5889_v28 = vadd.f32 %v5888_v60, %v12237_v17  ;;  %v4635_v9 = vpop.f32.mrf.mxu0  ;;  %v4624_v22 = vadd.f32 %v4623_v49, %v11514_v63  ;;  %v5892_v37 = vpop.f32.mrf.mxu1  ;;  %6131 = vmatmul.mubr.bf16.gmra.mxu1 %v5375_v7  ;;  %v14561_v4 = vmax.f32 %v12568_v29, 0.0 }
 0x67e   :  { %v12708_v50 = vadd.f32 %v6793_v23, %v14560_v15  ;;  %v5378_v61 = vpack.c.bf16 %v5125_v41, %v5123_v54  ;;  %v6795_v0 = vmul.f32 2.0, %v6539_v51  ;;  %v5893_v23 = vadd.f32 %v5892_v37, %v12231_v48 }
 0x67f   :  { %v12716_v14 = vadd.f32 %v6794_v27, %v14561_v4  ;;  %v6540_v8 = vmax.f32 %v5889_v28, 0.0  ;;  %v4637_v2 = vpop.f32.mrf.mxu0  ;;  %v5124_v15 = vmax.f32 %v4628_v35, 0.0  ;;  %v4636_v19 = vadd.f32 %v4635_v9, %v11487_v16  ;;  %v5894_v49 = vpop.f32.mrf.mxu1 }
 0x680   :  { %6140 = vmatprep.mubr.bf16.mxu1 %v5378_v61  ;;  %v14562_v41 = vmax.f32 %v12595_v31, 0.0  ;;  %v6541_v7 = vmax.f32 %v5893_v23, 0.0  ;;  %v5895_v27 = vadd.f32 %v5894_v49, %v12237_v17  ;;  %v12729_v28 = vadd.f32 %v12186_v6, %v12231_v48 }
 0x681   :  { %v6796_v29 = vmul.f32 2.0, %v6540_v8  ;;  %v4639_v51 = vpop.f32.mrf.mxu0  ;;  %v12733_v35 = vadd.f32 %v12189_v30, %v12237_v17  ;;  %v5122_v9 = vmax.f32 %v4624_v22, 0.0  ;;  %v5896_v61 = vpop.f32.mrf.mxu1  ;;  %v14563_v31 = vmax.f32 %v12599_v1, 0.0 }
 0x682   :  { %v12724_v54 = vadd.f32 %v6795_v0, %v14562_v41  ;;  %v4640_v37 = vadd.f32 %v4639_v51, %v11487_v16  ;;  %v6797_v0 = vmul.f32 2.0, %v6541_v7  ;;  %v6542_v8 = vmax.f32 %v5895_v27, 0.0  ;;  %v14564_v41 = vld [vmem:[#allocation72_spill] sm:$0xff] }
 0x683   :  { %v12738_v4 = vadd.f32 %v6796_v29, %v14563_v31  ;;  %v5897_v23 = vadd.f32 %v5896_v61, %v12231_v48  ;;  %v4643_v49 = vpop.f32.mrf.mxu0  ;;  %4882 = vmatmul.mubr.bf16.gmra.mxu0 %v14564_v41  ;;  %v5377_v6 = vpack.c.bf16 %v5124_v15, %v5122_v9  ;;  %v5127_v60 = vmax.f32 %v4636_v19, 0.0  ;;  %v5898_v22 = vpop.f32.mrf.mxu1  ;;  %v14569_v41 = vld [vmem:[#allocation67_spill] sm:$0xff]  ;;  %v14574_v15 = vld [vmem:[#allocation60_spill] sm:$0xff] }
 0x684   :  { %v4638_v30 = vadd.f32 %v4637_v2, %v11514_v63  ;;  %v5129_v56 = vmax.f32 %v4640_v37, 0.0  ;;  %4891 = vmatprep.mubr.bf16.mxu0 %v14565_v59  ;;  %v14566_v51 = vmax.f32 %v12609_v32, 0.0  ;;  %v6798_v29 = vmul.f32 2.0, %v6542_v8 }
 0x685   :  { %v6543_v7 = vmax.f32 %v5897_v23, 0.0  ;;  %v5899_v27 = vadd.f32 %v5898_v22, %v12237_v17  ;;  %v4645_v61 = vpop.f32.mrf.mxu0  ;;  %v4634_v19 = vadd.f32 %v4633_v12, %v11514_v63  ;;  %v5902_v2 = vpop.f32.mrf.mxu1  ;;  %6141 = vmatmul.mubr.bf16.gmra.mxu1 %v5377_v6  ;;  %v14567_v59 = vmax.f32 %v12613_v33, 0.0 }
 0x686   :  { %v12746_v1 = vadd.f32 %v6797_v0, %v14566_v51  ;;  %v5380_v9 = vpack.c.bf16 %v5129_v56, %v5127_v60  ;;  %v5903_v8 = vadd.f32 %v5902_v2, %v12231_v48  ;;  %v12759_v22 = vadd.f32 %v14569_v41, %v12231_v48 }
 0x687   :  { %v12754_v37 = vadd.f32 %v6798_v29, %v14567_v59  ;;  %v6799_v32 = vmul.f32 2.0, %v6543_v7  ;;  %v6544_v0 = vmax.f32 %v5899_v27, 0.0  ;;  %v4647_v23 = vpop.f32.mrf.mxu0  ;;  %v12763_v51 = vadd.f32 %v12196_v52, %v12237_v17  ;;  %v5904_v60 = vpop.f32.mrf.mxu1  ;;  %v14572_v59 = vld [vmem:[#allocation33_spill] sm:$0xff] }
 0x688   :  { %v5128_v12 = vmax.f32 %v4638_v30, 0.0  ;;  %v4646_v56 = vadd.f32 %v4645_v61, %v11487_v16  ;;  %6150 = vmatprep.mubr.bf16.mxu1 %v5380_v9  ;;  %v14570_v33 = vmax.f32 %v12647_v46, 0.0  ;;  %v6545_v7 = vmax.f32 %v5903_v8, 0.0 }
 0x689   :  { %14568 = vst [vmem:[#allocation24_spill] sm:$0xff] %v12754_v37  ;;  %v6800_v29 = vmul.f32 2.0, %v6544_v0  ;;  %v5905_v27 = vadd.f32 %v5904_v60, %v12237_v17  ;;  %v4649_v2 = vpop.f32.mrf.mxu0  ;;  %v12773_v41 = vadd.f32 %v14572_v59, %v12231_v48  ;;  %v12777_v52 = vadd.f32 %v12203_v3, %v12237_v17  ;;  %v5906_v9 = vpop.f32.mrf.mxu1  ;;  %v14575_v37 = vld [vmem:[#allocation14_spill] sm:$0xff] }
 0x68a   :  { %v12768_v6 = vadd.f32 %v6799_v32, %v14570_v33  ;;  %v5126_v30 = vmax.f32 %v4634_v19, 0.0  ;;  %v4650_v61 = vadd.f32 %v4649_v2, %v11487_v16  ;;  %v14573_v46 = vmax.f32 %v12651_v57, 0.0 }
 0x68b   :  { %v6801_v0 = vmul.f32 2.0, %v6545_v7  ;;  %v6546_v8 = vmax.f32 %v5905_v27, 0.0  ;;  %v5907_v60 = vadd.f32 %v5906_v9, %v12231_v48  ;;  %v4653_v33 = vpop.f32.mrf.mxu0  ;;  %4892 = vmatmul.mubr.bf16.gmra.mxu0 %v14574_v15  ;;  %v5131_v31 = vmax.f32 %v4646_v56, 0.0  ;;  %v5908_v19 = vpop.f32.mrf.mxu1 }
 0x68c   :  { %14571 = vst [vmem:[#allocation27_spill] sm:$0xff] %v12768_v6  ;;  %v12782_v32 = vadd.f32 %v6800_v29, %v14573_v46  ;;  %v5379_v59 = vpack.c.bf16 %v5128_v12, %v5126_v30  ;;  %v4648_v3 = vadd.f32 %v4647_v23, %v11514_v63  ;;  %v5133_v6 = vmax.f32 %v4650_v61, 0.0  ;;  %4901 = vmatprep.mubr.bf16.mxu0 %v14575_v37 }
 0x68d   :  { %v14576_v2 = vmax.f32 %v12677_v5, 0.0  ;;  %v6802_v29 = vmul.f32 2.0, %v6546_v8  ;;  %v6547_v7 = vmax.f32 %v5907_v60, 0.0  ;;  %v5909_v27 = vadd.f32 %v5908_v19, %v12237_v17  ;;  %v4655_v9 = vpop.f32.mrf.mxu0  ;;  %v5912_v23 = vpop.f32.mrf.mxu1 }
 0x68e   :  { %v6487_v46 = vmax.f32 %v12759_v22, 0.0  ;;  %v4644_v12 = vadd.f32 %v4643_v49, %v11514_v63  ;;  %6151 = vmatmul.mubr.bf16.gmra.mxu1 %v5379_v59  ;;  %v5382_v56 = vpack.c.bf16 %v5133_v6, %v5131_v31  ;;  %v14577_v37 = vmax.f32 %v12681_v39, 0.0  ;;  %v14583_v22 = vld [vmem:[#allocation75_spill] sm:$0xff] }
 0x68f   :  { %v12790_v57 = vadd.f32 %v6801_v0, %v14576_v2  ;;  %v6803_v5 = vmul.f32 2.0, %v6547_v7  ;;  %v6548_v61 = vmax.f32 %v5909_v27, 0.0  ;;  %v5913_v0 = vadd.f32 %v5912_v23, %v12231_v48  ;;  %v4657_v8 = vpop.f32.mrf.mxu0  ;;  %v5914_v49 = vpop.f32.mrf.mxu1  ;;  %v14580_v27 = vld [vmem:[#allocation83_spill] sm:$0xff] }
 0x690   :  { %v12798_v30 = vadd.f32 %v6802_v29, %v14577_v37  ;;  %v5132_v19 = vmax.f32 %v4648_v3, 0.0  ;;  %v4656_v2 = vadd.f32 %v4655_v9, %v11487_v16  ;;  %6160 = vmatprep.mubr.bf16.mxu1 %v5382_v56  ;;  %v14578_v31 = vmax.f32 %v12691_v42, 0.0 }
 0x691   :  { %v6804_v39 = vmul.f32 2.0, %v6548_v61  ;;  %v6549_v59 = vmax.f32 %v5913_v0, 0.0  ;;  %v5915_v29 = vadd.f32 %v5914_v49, %v12237_v17  ;;  %v4659_v7 = vpop.f32.mrf.mxu0  ;;  %v12811_v23 = vadd.f32 %v14580_v27, %v12231_v48  ;;  %v5916_v37 = vpop.f32.mrf.mxu1 }
 0x692   :  { %v12806_v6 = vadd.f32 %v6803_v5, %v14578_v31  ;;  %v12815_v3 = vadd.f32 %v12210_v43, %v12237_v17  ;;  %v5130_v9 = vmax.f32 %v4644_v12, 0.0  ;;  %v4660_v56 = vadd.f32 %v4659_v7, %v11487_v16 }
 0x693   :  { %v14581_v42 = vmax.f32 %v12695_v40, 0.0  ;;  %v6805_v61 = vmul.f32 2.0, %v6549_v59  ;;  %v6550_v0 = vmax.f32 %v5915_v29, 0.0  ;;  %v5917_v49 = vadd.f32 %v5916_v37, %v12231_v48  ;;  %v4663_v31 = vpop.f32.mrf.mxu0  ;;  %4902 = vmatmul.mubr.bf16.gmra.mxu0 %v14583_v22  ;;  %v5918_v12 = vpop.f32.mrf.mxu1 }
 0x694   :  { %14579 = vst [vmem:[#allocation30_spill] sm:$0xff] %v12806_v6  ;;  %v5381_v27 = vpack.c.bf16 %v5132_v19, %v5130_v9  ;;  %v5135_v60 = vmax.f32 %v4656_v2, 0.0  ;;  %v4658_v43 = vadd.f32 %v4657_v8, %v11514_v63  ;;  %v5137_v15 = vmax.f32 %v4660_v56, 0.0  ;;  %v14584_v6 = vld [vmem:[#allocation17_spill] sm:$0xff] }
 0x695   :  { %v12820_v5 = vadd.f32 %v6804_v39, %v14581_v42  ;;  %4911 = vmatprep.mubr.bf16.mxu0 %v14584_v6  ;;  %v14585_v7 = vmax.f32 %v12729_v28, 0.0  ;;  %v6806_v39 = vmul.f32 2.0, %v6550_v0  ;;  %v6551_v59 = vmax.f32 %v5917_v49, 0.0  ;;  %v4665_v37 = vpop.f32.mrf.mxu0  ;;  %v5922_v8 = vpop.f32.mrf.mxu1  ;;  %v14589_v49 = vld [vmem:[#allocation11_spill] sm:$0xff] }
 0x696   :  { %v5919_v29 = vadd.f32 %v5918_v12, %v12237_v17  ;;  %v6491_v42 = vmax.f32 %v12811_v23, 0.0  ;;  %v4654_v19 = vadd.f32 %v4653_v33, %v11514_v63  ;;  %6161 = vmatmul.mubr.bf16.gmra.mxu1 %v5381_v27  ;;  %v5384_v2 = vpack.c.bf16 %v5137_v15, %v5135_v60  ;;  %v14590_v23 = vld [vmem:[#allocation41_spill] sm:$0xff] }
 0x697   :  { %14582 = vst [vmem:[#allocation34_spill] sm:$0xff] %v12820_v5  ;;  %v12828_v40 = vadd.f32 %v6805_v61, %v14585_v7  ;;  %v14587_v6 = vmax.f32 %v12733_v35, 0.0  ;;  %v6807_v28 = vmul.f32 2.0, %v6551_v59  ;;  %v5923_v61 = vadd.f32 %v5922_v8, %v12231_v48  ;;  %v4667_v0 = vpop.f32.mrf.mxu0  ;;  %v5924_v60 = vpop.f32.mrf.mxu1  ;;  %v14592_v8 = vld [vmem:[#allocation15_spill] sm:$0xff] }
 0x698   :  { %v6552_v56 = vmax.f32 %v5919_v29, 0.0  ;;  %v12841_v12 = vadd.f32 %v14589_v49, %v12231_v48  ;;  %v12845_v7 = vadd.f32 %v14590_v23, %v12237_v17  ;;  %v5136_v33 = vmax.f32 %v4658_v43, 0.0  ;;  %6170 = vmatprep.mubr.bf16.mxu1 %v5384_v2  ;;  %v14593_v49 = vld [vmem:[#allocation45_spill] sm:$0xff] }
 0x699   :  { %14586 = vst [vmem:[#allocation28_spill] sm:$0xff] %v12828_v40  ;;  %v12836_v9 = vadd.f32 %v6806_v39, %v14587_v6  ;;  %v4666_v15 = vadd.f32 %v4665_v37, %v11487_v16  ;;  %v12848_v35 = vadd.f32 %v6807_v28, %v6487_v46  ;;  %v6553_v39 = vmax.f32 %v5923_v61, 0.0  ;;  %v4669_v29 = vpop.f32.mrf.mxu0  ;;  %v5926_v22 = vpop.f32.mrf.mxu1 }
 0x69a   :  { %v6808_v27 = vmul.f32 2.0, %v6552_v56  ;;  %v5925_v59 = vadd.f32 %v5924_v60, %v12237_v17  ;;  %v12853_v6 = vadd.f32 %v14592_v8, %v12231_v48  ;;  %v12857_v23 = vadd.f32 %v14593_v49, %v12237_v17 }
 0x69b   :  { %14588 = vst [vmem:[#allocation32_spill] sm:$0xff] %v12836_v9  ;;  %14591 = vst [vmem:[#allocation31_spill] sm:$0xff] %v12848_v35  ;;  %v5134_v43 = vmax.f32 %v4654_v19, 0.0  ;;  %v4670_v37 = vadd.f32 %v4669_v29, %v11487_v16  ;;  %v14594_v46 = vmax.f32 %v12763_v51, 0.0  ;;  %v6809_v28 = vmul.f32 2.0, %v6553_v39  ;;  %v4673_v60 = vpop.f32.mrf.mxu0  ;;  %v14595_v35 = vld [vmem:[#allocation16_spill] sm:$0xff]  ;;  %v5928_v19 = vpop.f32.mrf.mxu1 }
 0x69c   :  { %v6554_v56 = vmax.f32 %v5925_v59, 0.0  ;;  %v5927_v61 = vadd.f32 %v5926_v22, %v12231_v48  ;;  %4912 = vmatmul.mubr.bf16.gmra.mxu0 %v14595_v35  ;;  %v5139_v9 = vmax.f32 %v4666_v15, 0.0  ;;  %v4668_v49 = vadd.f32 %v4667_v0, %v11514_v63 }
 0x69d   :  { %v12862_v2 = vadd.f32 %v6808_v27, %v14594_v46  ;;  %v5383_v8 = vpack.c.bf16 %v5136_v33, %v5134_v43  ;;  %v5141_v40 = vmax.f32 %v4670_v37, 0.0  ;;  %v14596_v29 = vmax.f32 %v12773_v41, 0.0  ;;  %v4675_v59 = vpop.f32.mrf.mxu0  ;;  %v5932_v15 = vpop.f32.mrf.mxu1 }
 0x69e   :  { %v6810_v51 = vmul.f32 2.0, %v6554_v56  ;;  %v6555_v27 = vmax.f32 %v5927_v61, 0.0  ;;  %v5929_v39 = vadd.f32 %v5928_v19, %v12237_v17  ;;  %v6493_v22 = vmax.f32 %v12841_v12, 0.0 }
 0x69f   :  { %v12869_v5 = vadd.f32 %v6809_v28, %v14596_v29  ;;  %v6494_v46 = vmax.f32 %v12845_v7, 0.0  ;;  %v4664_v33 = vadd.f32 %v4663_v31, %v11514_v63  ;;  %6171 = vmatmul.mubr.bf16.gmra.mxu1 %v5383_v8  ;;  %v5386_v0 = vpack.c.bf16 %v5141_v40, %v5139_v9  ;;  %v4677_v56 = vpop.f32.mrf.mxu0  ;;  %v5934_v31 = vpop.f32.mrf.mxu1 }
 0x6a0   :  { %v14598_v35 = vmax.f32 %v12777_v52, 0.0  ;;  %v6811_v41 = vmul.f32 2.0, %v6555_v27  ;;  %v6556_v37 = vmax.f32 %v5929_v39, 0.0  ;;  %v5933_v28 = vadd.f32 %v5932_v15, %v12231_v48  ;;  %v14602_v39 = vld [vmem:[#allocation46_spill] sm:$0xff] }
 0x6a1   :  { %14597 = vst [vmem:[#allocation38_spill] sm:$0xff] %v12869_v5  ;;  %v6495_v61 = vmax.f32 %v12853_v6, 0.0  ;;  %v6496_v12 = vmax.f32 %v12857_v23, 0.0  ;;  %v5140_v19 = vmax.f32 %v4668_v49, 0.0  ;;  %v4676_v7 = vadd.f32 %v4675_v59, %v11487_v16  ;;  %6180 = vmatprep.mubr.bf16.mxu1 %v5386_v0  ;;  %v4679_v29 = vpop.f32.mrf.mxu0  ;;  %v5936_v59 = vpop.f32.mrf.mxu1 }
 0x6a2   :  { %v12877_v43 = vadd.f32 %v6810_v51, %v14598_v35  ;;  %v12883_v8 = vadd.f32 %v6811_v41, %v6491_v42  ;;  %v6812_v40 = vmul.f32 2.0, %v6556_v37  ;;  %v6557_v52 = vmax.f32 %v5933_v28, 0.0  ;;  %v14601_v51 = vld [vmem:[#allocation49_spill] sm:$0xff] }
 0x6a3   :  { %v5935_v9 = vadd.f32 %v5934_v31, %v12237_v17  ;;  %v5783_v27 = vadd.f32 %v14601_v51, %v12231_v48  ;;  %v12890_v6 = vadd.f32 %v14602_v39, %v12237_v17  ;;  %v5138_v23 = vmax.f32 %v4664_v33, 0.0  ;;  %v4683_v37 = vpop.f32.mrf.mxu0  ;;  %v5938_v39 = vpop.f32.mrf.mxu1 }
 0x6a4   :  { %14599 = vst [vmem:[#allocation37_spill] sm:$0xff] %v12877_v43  ;;  %14600 = vst [vmem:[#allocation36_spill] sm:$0xff] %v12883_v8  ;;  %v4680_v49 = vadd.f32 %v4679_v29, %v11487_v16  ;;  %v14603_v15 = vmax.f32 %v12815_v3, 0.0  ;;  %v6813_v0 = vmul.f32 2.0, %v6557_v52  ;;  %v5937_v41 = vadd.f32 %v5936_v59, %v12231_v48 }
 0x6a5   :  { %v6558_v35 = vmax.f32 %v5935_v9, 0.0  ;;  %v5385_v28 = vpack.c.bf16 %v5140_v19, %v5138_v23  ;;  %v5143_v31 = vmax.f32 %v4676_v7, 0.0  ;;  %v4678_v51 = vadd.f32 %v4677_v56, %v11514_v63  ;;  %v4685_v3 = vpop.f32.mrf.mxu0  ;;  %v5942_v59 = vpop.f32.mrf.mxu1 }
 0x6a6   :  { %v12895_v42 = vadd.f32 %v6812_v40, %v14603_v15  ;;  %v5145_v8 = vmax.f32 %v4680_v49, 0.0  ;;  %v12899_v43 = vadd.f32 %v6813_v0, %v6493_v22  ;;  %v6559_v29 = vmax.f32 %v5937_v41, 0.0  ;;  %v14605_v15 = vld [vmem:[#allocation53_spill] sm:$0xff] }
 0x6a7   :  { %v6814_v33 = vmul.f32 2.0, %v6558_v35  ;;  %v5939_v5 = vadd.f32 %v5938_v39, %v12237_v17  ;;  %v6497_v40 = vmax.f32 %v5783_v27, 0.0  ;;  %v6498_v52 = vmax.f32 %v12890_v6, 0.0  ;;  %6181 = vmatmul.mubr.bf16.gmra.mxu1 %v5385_v28  ;;  %v4687_v49 = vpop.f32.mrf.mxu0  ;;  %v14606_v35 = vld [vmem:[#allocation50_spill] sm:$0xff]  ;;  %v14608_v39 = vld [vmem:[#allocation57_spill] sm:$0xff] }
 0x6a8   :  { %v4674_v9 = vadd.f32 %v4673_v60, %v11514_v63  ;;  %v5388_v19 = vpack.c.bf16 %v5145_v8, %v5143_v31  ;;  %v6815_v56 = vmul.f32 2.0, %v6559_v29  ;;  %v5943_v22 = vadd.f32 %v5942_v59, %v12231_v48  ;;  %v5944_v60 = vpop.f32.mrf.mxu1  ;;  %v14609_v29 = vld [vmem:[#allocation54_spill] sm:$0xff] }
 0x6a9   :  { %v12904_v7 = vadd.f32 %v6814_v33, %v6494_v46  ;;  %v6560_v23 = vmax.f32 %v5939_v5, 0.0  ;;  %v5787_v0 = vadd.f32 %v14605_v15, %v12231_v48  ;;  %v5789_v27 = vadd.f32 %v14606_v35, %v12237_v17  ;;  %v4689_v31 = vpop.f32.mrf.mxu0 }
 0x6aa   :  { %v5144_v41 = vmax.f32 %v4678_v51, 0.0  ;;  %v4686_v6 = vadd.f32 %v4685_v3, %v11487_v16  ;;  %6190 = vmatprep.mubr.bf16.mxu1 %v5388_v19  ;;  %v12912_v28 = vadd.f32 %v6815_v56, %v6495_v61  ;;  %v6561_v8 = vmax.f32 %v5943_v22, 0.0  ;;  %v5946_v3 = vpop.f32.mrf.mxu1  ;;  %v8896_v22 = vld [vmem:[%s13862_s4 + $0x48] sm:$0xff]  }
 0x6ab   :  { %14604 = vst [vmem:[#allocation35_spill] sm:$0xff] %v12904_v7  ;;  %v6816_v46 = vmul.f32 2.0, %v6560_v23  ;;  %v5945_v5 = vadd.f32 %v5944_v60, %v12237_v17  ;;  %v5793_v33 = vadd.f32 %v14608_v39, %v12231_v48  ;;  %v12919_v59 = vadd.f32 %v14609_v29, %v12237_v17  ;;  %v4693_v23 = vpop.f32.mrf.mxu0  ;;  %8393 = vmatprep.subr.bf16.mxu0 %v8896_v22 }
 0x6ac   :  { %14607 = vst [vmem:[#allocation42_spill] sm:$0xff] %v12912_v28  ;;  %v5142_v15 = vmax.f32 %v4674_v9, 0.0  ;;  %v4690_v51 = vadd.f32 %v4689_v31, %v11487_v16  ;;  %v6817_v61 = vmul.f32 2.0, %v6561_v8  ;;  %v5947_v56 = vadd.f32 %v5946_v3, %v12231_v48  ;;  %v5948_v9 = vpop.f32.mrf.mxu1 }
 0x6ad   :  { %v12922_v35 = vadd.f32 %v6816_v46, %v6496_v12  ;;  %v6562_v19 = vmax.f32 %v5945_v5, 0.0  ;;  %v5147_v39 = vmax.f32 %v4686_v6, 0.0  ;;  %v4688_v29 = vadd.f32 %v4687_v49, %v11514_v63  ;;  %v4695_v8 = vpop.f32.mrf.mxu0  ;;  %v8897_v5 = vld [vmem:[%s13862_s4 + $0x8] sm:$0xff]  }
 0x6ae   :  { %v5387_v60 = vpack.c.bf16 %v5144_v41, %v5142_v15  ;;  %v5149_v28 = vmax.f32 %v4690_v51, 0.0  ;;  %v12929_v7 = vadd.f32 %v6817_v61, %v6497_v40  ;;  %v6563_v12 = vmax.f32 %v5947_v56, 0.0  ;;  %v5952_v6 = vpop.f32.mrf.mxu1  ;;  %8394 = vmatpush3.bf16.msra.mxu0 %v8897_v5 }
 0x6af   :  { %14610 = vst [vmem:[#allocation9_spill] sm:$0xff] %v12922_v35  ;;  %v6818_v31 = vmul.f32 2.0, %v6562_v19  ;;  %v5949_v46 = vadd.f32 %v5948_v9, %v12237_v17  ;;  %v6499_v3 = vmax.f32 %v5787_v0, 0.0  ;;  %v6500_v35 = vmax.f32 %v5789_v27, 0.0  ;;  %v4697_v19 = vpop.f32.mrf.mxu0 }
 0x6b0   :  { %14611 = vst [vmem:[#allocation8_spill] sm:$0xff] %v12929_v7  ;;  %v4684_v41 = vadd.f32 %v4683_v37, %v11514_v63  ;;  %6191 = vmatmul.mubr.bf16.gmra.mxu1 %v5387_v60  ;;  %v5390_v49 = vpack.c.bf16 %v5149_v28, %v5147_v39  ;;  %v6819_v40 = vmul.f32 2.0, %v6563_v12  ;;  %v5953_v61 = vadd.f32 %v5952_v6, %v12231_v48  ;;  %v5954_v27 = vpop.f32.mrf.mxu1 }
 0x6b1   :  { %v12936_v15 = vadd.f32 %v6818_v31, %v6498_v52  ;;  %v6564_v51 = vmax.f32 %v5949_v46, 0.0  ;;  %v6501_v56 = vmax.f32 %v5793_v33, 0.0  ;;  %v6502_v22 = vmax.f32 %v12919_v59, 0.0  ;;  %v4699_v39 = vpop.f32.mrf.mxu0  ;;  %v14614_v31 = vld [vmem:[#allocation59_spill] sm:$0xff]  ;;  %v14615_v46 = vld [vmem:[#allocation58_spill] sm:$0xff] }
 0x6b2   :  { %v5148_v9 = vmax.f32 %v4688_v29, 0.0  ;;  %v4696_v0 = vadd.f32 %v4695_v8, %v11487_v16  ;;  %6200 = vmatprep.mubr.bf16.mxu1 %v5390_v49  ;;  %v12941_v37 = vadd.f32 %v6819_v40, %v6499_v3  ;;  %v6565_v28 = vmax.f32 %v5953_v61, 0.0  ;;  %v5956_v29 = vpop.f32.mrf.mxu1 }
 0x6b3   :  { %14612 = vst [vmem:[#allocation40_spill] sm:$0xff] %v12936_v15  ;;  %v6820_v60 = vmul.f32 2.0, %v6564_v51  ;;  %v5955_v52 = vadd.f32 %v5954_v27, %v12237_v17  ;;  %v5797_v12 = vadd.f32 %v14614_v31, %v12231_v48  ;;  %v5799_v33 = vadd.f32 %v14615_v46, %v12237_v17  ;;  %v4703_v40 = vpop.f32.mrf.mxu0 }
 0x6b4   :  { %14613 = vst [vmem:[#allocation66_spill] sm:$0xff] %v12941_v37  ;;  %v5146_v5 = vmax.f32 %v4684_v41, 0.0  ;;  %v4700_v59 = vadd.f32 %v4699_v39, %v11487_v16  ;;  %v6821_v6 = vmul.f32 2.0, %v6565_v28  ;;  %v5957_v49 = vadd.f32 %v5956_v29, %v12231_v48  ;;  %v5958_v31 = vpop.f32.mrf.mxu1 }
 0x6b5   :  { %v12949_v8 = vadd.f32 %v6820_v60, %v6500_v35  ;;  %v6566_v3 = vmax.f32 %v5955_v52, 0.0  ;;  %v5151_v61 = vmax.f32 %v4696_v0, 0.0  ;;  %v4698_v27 = vadd.f32 %v4697_v19, %v11514_v63  ;;  %v4705_v7 = vpop.f32.mrf.mxu0 }
 0x6b6   :  { %v5389_v51 = vpack.c.bf16 %v5148_v9, %v5146_v5  ;;  %v5153_v37 = vmax.f32 %v4700_v59, 0.0  ;;  %v12953_v15 = vadd.f32 %v6821_v6, %v6501_v56  ;;  %v6567_v41 = vmax.f32 %v5957_v49, 0.0  ;;  %v5962_v28 = vpop.f32.mrf.mxu1 }
 0x6b7   :  { %v6822_v46 = vmul.f32 2.0, %v6566_v3  ;;  %v5959_v39 = vadd.f32 %v5958_v31, %v12237_v17  ;;  %v6503_v35 = vmax.f32 %v5797_v12, 0.0  ;;  %v4694_v60 = vadd.f32 %v4693_v23, %v11514_v63  ;;  %v4707_v5 = vpop.f32.mrf.mxu0 }
 0x6b8   :  { %6201 = vmatmul.mubr.bf16.gmra.mxu1 %v5389_v51  ;;  %v5392_v52 = vpack.c.bf16 %v5153_v37, %v5151_v61  ;;  %v6823_v9 = vmul.f32 2.0, %v6567_v41  ;;  %v5963_v19 = vadd.f32 %v5962_v28, %v12231_v48  ;;  %v6504_v56 = vmax.f32 %v5799_v33, 0.0  ;;  %v5964_v3 = vpop.f32.mrf.mxu1 }
 0x6b9   :  { %v12957_v29 = vadd.f32 %v6822_v46, %v6502_v22  ;;  %v6568_v0 = vmax.f32 %v5959_v39, 0.0  ;;  %v5152_v59 = vmax.f32 %v4698_v27, 0.0  ;;  %v4706_v6 = vadd.f32 %v4705_v7, %v11487_v16  ;;  %v4709_v37 = vpop.f32.mrf.mxu0 }
 0x6ba   :  { %6210 = vmatprep.mubr.bf16.mxu1 %v5392_v52  ;;  %v12961_v49 = vadd.f32 %v6823_v9, %v6503_v35  ;;  %v6569_v23 = vmax.f32 %v5963_v19, 0.0  ;;  %v5965_v51 = vadd.f32 %v5964_v3, %v12237_v17  ;;  %v5150_v22 = vmax.f32 %v4694_v60, 0.0  ;;  %v5966_v31 = vpop.f32.mrf.mxu1 }
 0x6bb   :  { %v6824_v12 = vmul.f32 2.0, %v6568_v0  ;;  %v4710_v61 = vadd.f32 %v4709_v37, %v11487_v16  ;;  %v5967_v27 = vadd.f32 %v5966_v31, %v12231_v48  ;;  %v4713_v7 = vpop.f32.mrf.mxu0  ;;  %v5155_v28 = vmax.f32 %v4706_v6, 0.0 }
 0x6bc   :  { %v6889_v41 = vmul.f32 2.0, %v6569_v23  ;;  %v6570_v33 = vmax.f32 %v5965_v51, 0.0  ;;  %v5391_v39 = vpack.c.bf16 %v5152_v59, %v5150_v22  ;;  %v4708_v35 = vadd.f32 %v4707_v5, %v11514_v63  ;;  %v5968_v9 = vpop.f32.mrf.mxu1 }
 0x6bd   :  { %v12965_v46 = vadd.f32 %v6824_v12, %v6504_v56  ;;  %v5157_v52 = vmax.f32 %v4710_v61, 0.0  ;;  %v6571_v19 = vmax.f32 %v5967_v27, 0.0  ;;  %v5969_v3 = vadd.f32 %v5968_v9, %v12237_v17  ;;  %v4715_v56 = vpop.f32.mrf.mxu0 }
 0x6be   :  { %v12970_v0 = vadd.f32 %v6889_v41, %v12371_v11  ;;  %v6890_v60 = vmul.f32 2.0, %v6570_v33  ;;  %v4704_v12 = vadd.f32 %v4703_v40, %v11514_v63  ;;  %v5972_v23 = vpop.f32.mrf.mxu1  ;;  %v5156_v11 = vmax.f32 %v4708_v35, 0.0  ;;  %v14616_v41 = vld [vmem:[#allocation62_spill] sm:$0xff] }
 0x6bf   :  { %v5394_v51 = vpack.c.bf16 %v5157_v52, %v5155_v28  ;;  %v6891_v6 = vmul.f32 2.0, %v6571_v19  ;;  %v6572_v5 = vmax.f32 %v5969_v3, 0.0  ;;  %v5973_v37 = vadd.f32 %v5972_v23, %v12231_v48  ;;  %v4717_v22 = vpop.f32.mrf.mxu0 }
 0x6c0   :  { %6211 = vmatmul.mubr.bf16.gmra.mxu1 %v5391_v39  ;;  %v12975_v59 = vadd.f32 %v6890_v60, %v12379_v13  ;;  %v4716_v61 = vadd.f32 %v4715_v56, %v11487_v16  ;;  %v5974_v31 = vpop.f32.mrf.mxu1  ;;  %v5154_v13 = vmax.f32 %v4704_v12, 0.0 }
 0x6c1   :  { %6220 = vmatprep.mubr.bf16.mxu1 %v5394_v51  ;;  %v12980_v33 = vadd.f32 %v6891_v6, %v14616_v41  ;;  %v6892_v40 = vmul.f32 2.0, %v6572_v5  ;;  %v6573_v27 = vmax.f32 %v5973_v37, 0.0  ;;  %v5975_v39 = vadd.f32 %v5974_v31, %v12237_v17  ;;  %v4719_v28 = vpop.f32.mrf.mxu0 }
 0x6c2   :  { %v4720_v52 = vadd.f32 %v4719_v28, %v11487_v16  ;;  %v5976_v9 = vpop.f32.mrf.mxu1  ;;  %v5393_v23 = vpack.c.bf16 %v5156_v11, %v5154_v13  ;;  %v5159_v51 = vmax.f32 %v4716_v61, 0.0  ;;  %v4718_v6 = vadd.f32 %v4717_v22, %v11514_v63 }
 0x6c3   :  { %v12985_v60 = vadd.f32 %v6892_v40, %v12401_v26  ;;  %v6893_v35 = vmul.f32 2.0, %v6573_v27  ;;  %v6574_v19 = vmax.f32 %v5975_v39, 0.0  ;;  %v5977_v3 = vadd.f32 %v5976_v9, %v12231_v48  ;;  %v4723_v56 = vpop.f32.mrf.mxu0  ;;  %v14618_v9 = vld [vmem:[#allocation61_spill] sm:$0xff] }
 0x6c4   :  { %v5161_v5 = vmax.f32 %v4720_v52, 0.0  ;;  %v5978_v37 = vpop.f32.mrf.mxu1  ;;  %v4714_v40 = vadd.f32 %v4713_v7, %v11514_v63 }
 0x6c5   :  { %v12990_v31 = vadd.f32 %v6893_v35, %v12409_v45  ;;  %v6894_v12 = vmul.f32 2.0, %v6574_v19  ;;  %v6575_v41 = vmax.f32 %v5977_v3, 0.0  ;;  %v5979_v28 = vadd.f32 %v5978_v37, %v12237_v17  ;;  %v4725_v26 = vpop.f32.mrf.mxu0  ;;  %v14619_v3 = vld [vmem:[#allocation64_spill] sm:$0xff] }
 0x6c6   :  { %v5982_v27 = vpop.f32.mrf.mxu1  ;;  %v5396_v39 = vpack.c.bf16 %v5161_v5, %v5159_v51  ;;  %v5160_v45 = vmax.f32 %v4718_v6, 0.0  ;;  %v4726_v35 = vadd.f32 %v4725_v26, %v11487_v16  ;;  %v5158_v5 = vmax.f32 %v4714_v40, 0.0 }
 0x6c7   :  { %14617 = vst [vmem:[#allocation39_spill] sm:$0xff] %v12990_v31  ;;  %v12995_v11 = vadd.f32 %v6894_v12, %v14618_v9  ;;  %v6895_v61 = vmul.f32 2.0, %v6575_v41  ;;  %v6576_v22 = vmax.f32 %v5979_v28, 0.0  ;;  %v5983_v13 = vadd.f32 %v5982_v27, %v12231_v48  ;;  %v4727_v52 = vpop.f32.mrf.mxu0 }
 0x6c8   :  { %6221 = vmatmul.mubr.bf16.gmra.mxu1 %v5393_v23  ;;  %v5984_v19 = vpop.f32.mrf.mxu1  ;;  %v5395_v9 = vpack.c.bf16 %v5160_v45, %v5158_v5 }
 0x6c9   :  { %6230 = vmatprep.mubr.bf16.mxu1 %v5396_v39  ;;  %v13000_v37 = vadd.f32 %v6895_v61, %v14619_v3  ;;  %v6896_v7 = vmul.f32 2.0, %v6576_v22  ;;  %v6577_v31 = vmax.f32 %v5983_v13, 0.0  ;;  %v5985_v23 = vadd.f32 %v5984_v19, %v12237_v17  ;;  %v4729_v51 = vpop.f32.mrf.mxu0 }
 0x6ca   :  { %v4730_v12 = vadd.f32 %v4729_v51, %v11487_v16  ;;  %v5986_v41 = vpop.f32.mrf.mxu1  ;;  %v5163_v61 = vmax.f32 %v4726_v35, 0.0  ;;  %v4728_v22 = vadd.f32 %v4727_v52, %v11514_v63 }
 0x6cb   :  { %14620 = vst [vmem:[#allocation44_spill] sm:$0xff] %v13000_v37  ;;  %v13005_v28 = vadd.f32 %v6896_v7, %v12445_v34  ;;  %v6897_v6 = vmul.f32 2.0, %v6577_v31  ;;  %v6578_v27 = vmax.f32 %v5985_v23, 0.0  ;;  %v5987_v26 = vadd.f32 %v5986_v41, %v12231_v48  ;;  %v4733_v39 = vpop.f32.mrf.mxu0 }
 0x6cc   :  { %v5165_v13 = vmax.f32 %v4730_v12, 0.0  ;;  %v5988_v3 = vpop.f32.mrf.mxu1  ;;  %v4724_v31 = vadd.f32 %v4723_v56, %v11514_v63 }
 0x6cd   :  { %v13010_v19 = vadd.f32 %v6897_v6, %v12453_v24  ;;  %v6898_v40 = vmul.f32 2.0, %v6578_v27  ;;  %v6579_v51 = vmax.f32 %v5987_v26, 0.0  ;;  %v5989_v37 = vadd.f32 %v5988_v3, %v12237_v17  ;;  %v4735_v34 = vpop.f32.mrf.mxu0  ;;  %v14621_v27 = vld [vmem:[#allocation63_spill] sm:$0xff] }
 0x6ce   :  { %v5992_v7 = vpop.f32.mrf.mxu1  ;;  %v5398_v23 = vpack.c.bf16 %v5165_v13, %v5163_v61  ;;  %v5164_v24 = vmax.f32 %v4728_v22, 0.0  ;;  %v4736_v41 = vadd.f32 %v4735_v34, %v11487_v16 }
 0x6cf   :  { %v13015_v45 = vadd.f32 %v6898_v40, %v12461_v38  ;;  %v6899_v35 = vmul.f32 2.0, %v6579_v51  ;;  %v6580_v52 = vmax.f32 %v5989_v37, 0.0  ;;  %v5993_v5 = vadd.f32 %v5992_v7, %v12231_v48  ;;  %v4737_v12 = vpop.f32.mrf.mxu0 }
 0x6d0   :  { %6231 = vmatmul.mubr.bf16.gmra.mxu1 %v5395_v9  ;;  %v5994_v6 = vpop.f32.mrf.mxu1  ;;  %v5162_v38 = vmax.f32 %v4724_v31, 0.0 }
 0x6d1   :  { %6240 = vmatprep.mubr.bf16.mxu1 %v5398_v23  ;;  %v13020_v26 = vadd.f32 %v6899_v35, %v14621_v27  ;;  %v6900_v56 = vmul.f32 2.0, %v6580_v52  ;;  %v6581_v3 = vmax.f32 %v5993_v5, 0.0  ;;  %v5995_v9 = vadd.f32 %v5994_v6, %v12237_v17  ;;  %v4739_v61 = vpop.f32.mrf.mxu0 }
 0x6d2   :  { %v4740_v13 = vadd.f32 %v4739_v61, %v11487_v16  ;;  %v5996_v37 = vpop.f32.mrf.mxu1  ;;  %v5397_v23 = vpack.c.bf16 %v5164_v24, %v5162_v38  ;;  %v5167_v35 = vmax.f32 %v4736_v41, 0.0  ;;  %v4738_v52 = vadd.f32 %v4737_v12, %v11514_v63 }
 0x6d3   :  { %14622 = vst [vmem:[#allocation78_spill] sm:$0xff] %v13020_v26  ;;  %v13025_v40 = vadd.f32 %v6900_v56, %v12483_v44  ;;  %v6901_v22 = vmul.f32 2.0, %v6581_v3  ;;  %v6582_v51 = vmax.f32 %v5995_v9, 0.0  ;;  %v5997_v34 = vadd.f32 %v5996_v37, %v12231_v48  ;;  %v4743_v7 = vpop.f32.mrf.mxu0 }
 0x6d4   :  { %v5169_v5 = vmax.f32 %v4740_v13, 0.0  ;;  %v5998_v27 = vpop.f32.mrf.mxu1  ;;  %v4734_v56 = vadd.f32 %v4733_v39, %v11514_v63 }
 0x6d5   :  { %v13030_v6 = vadd.f32 %v6901_v22, %v12491_v20  ;;  %v6902_v31 = vmul.f32 2.0, %v6582_v51  ;;  %v6583_v61 = vmax.f32 %v5997_v34, 0.0  ;;  %v5999_v26 = vadd.f32 %v5998_v27, %v12237_v17  ;;  %v4745_v44 = vpop.f32.mrf.mxu0  ;;  %v14625_v27 = vld [vmem:[#allocation10_spill] sm:$0xff] }
 0x6d6   :  { %v6002_v3 = vpop.f32.mrf.mxu1  ;;  %v5400_v9 = vpack.c.bf16 %v5169_v5, %v5167_v35  ;;  %v5168_v20 = vmax.f32 %v4738_v52, 0.0  ;;  %v4746_v37 = vadd.f32 %v4745_v44, %v11487_v16 }
 0x6d7   :  { %v13035_v24 = vadd.f32 %v6902_v31, %v12499_v47  ;;  %v6903_v41 = vmul.f32 2.0, %v6583_v61  ;;  %v6584_v12 = vmax.f32 %v5999_v26, 0.0  ;;  %v6003_v38 = vadd.f32 %v6002_v3, %v12231_v48  ;;  %v4747_v13 = vpop.f32.mrf.mxu0 }
 0x6d8   :  { %6241 = vmatmul.mubr.bf16.gmra.mxu1 %v5397_v23  ;;  %v6004_v22 = vpop.f32.mrf.mxu1  ;;  %v5166_v47 = vmax.f32 %v4734_v56, 0.0 }
 0x6d9   :  { %14623 = vst [vmem:[#allocation70_spill] sm:$0xff] %v13035_v24  ;;  %6250 = vmatprep.mubr.bf16.mxu1 %v5400_v9  ;;  %v13040_v51 = vadd.f32 %v6903_v41, %v12513_v62  ;;  %v6904_v39 = vmul.f32 2.0, %v6584_v12  ;;  %v6585_v34 = vmax.f32 %v6003_v38, 0.0  ;;  %v6005_v23 = vadd.f32 %v6004_v22, %v12237_v17  ;;  %v4749_v35 = vpop.f32.mrf.mxu0  ;;  %v14626_v22 = vld [vmem:[#allocation65_spill] sm:$0xff] }
 0x6da   :  { %v4750_v5 = vadd.f32 %v4749_v35, %v11487_v16  ;;  %v6006_v26 = vpop.f32.mrf.mxu1  ;;  %v5399_v9 = vpack.c.bf16 %v5168_v20, %v5166_v47  ;;  %v5171_v62 = vmax.f32 %v4746_v37, 0.0  ;;  %v4748_v41 = vadd.f32 %v4747_v13, %v11514_v63 }
 0x6db   :  { %14624 = vst [vmem:[#allocation43_spill] sm:$0xff] %v13040_v51  ;;  %v13045_v31 = vadd.f32 %v6904_v39, %v14625_v27  ;;  %v6905_v52 = vmul.f32 2.0, %v6585_v34  ;;  %v6586_v61 = vmax.f32 %v6005_v23, 0.0  ;;  %v6007_v44 = vadd.f32 %v6006_v26, %v12231_v48  ;;  %v4753_v3 = vpop.f32.mrf.mxu0 }
 0x6dc   :  { %v5173_v12 = vmax.f32 %v4750_v5, 0.0  ;;  %v6008_v38 = vpop.f32.mrf.mxu1  ;;  %v4744_v34 = vadd.f32 %v4743_v7, %v11514_v63  ;;  %v5172_v27 = vmax.f32 %v4748_v41, 0.0 }
 0x6dd   :  { %v13050_v51 = vadd.f32 %v6905_v52, %v14626_v22  ;;  %v6906_v56 = vmul.f32 2.0, %v6586_v61  ;;  %v6587_v35 = vmax.f32 %v6007_v44, 0.0  ;;  %v6009_v24 = vadd.f32 %v6008_v38, %v12237_v17  ;;  %v4755_v39 = vpop.f32.mrf.mxu0  ;;  %v14627_v44 = vld [vmem:[#allocation19_spill] sm:$0xff] }
 0x6de   :  { %v6012_v23 = vpop.f32.mrf.mxu1  ;;  %v5402_v26 = vpack.c.bf16 %v5173_v12, %v5171_v62  ;;  %v4756_v52 = vadd.f32 %v4755_v39, %v11487_v16 }
 0x6df   :  { %v13055_v20 = vadd.f32 %v6906_v56, %v12551_v53  ;;  %v6907_v37 = vmul.f32 2.0, %v6587_v35  ;;  %v6588_v13 = vmax.f32 %v6009_v24, 0.0  ;;  %v6013_v47 = vadd.f32 %v6012_v23, %v12231_v48  ;;  %v4757_v5 = vpop.f32.mrf.mxu0 }
 0x6e0   :  { %6251 = vmatmul.mubr.bf16.gmra.mxu1 %v5399_v9  ;;  %v6014_v61 = vpop.f32.mrf.mxu1  ;;  %v5170_v53 = vmax.f32 %v4744_v34, 0.0 }
 0x6e1   :  { %6260 = vmatprep.mubr.bf16.mxu1 %v5402_v26  ;;  %v13060_v38 = vadd.f32 %v6907_v37, %v14627_v44  ;;  %v6908_v7 = vmul.f32 2.0, %v6588_v13  ;;  %v6589_v22 = vmax.f32 %v6013_v47, 0.0  ;;  %v6015_v9 = vadd.f32 %v6014_v61, %v12237_v17  ;;  %v4759_v62 = vpop.f32.mrf.mxu0 }
 0x6e2   :  { %v4760_v12 = vadd.f32 %v4759_v62, %v11487_v16  ;;  %v6016_v24 = vpop.f32.mrf.mxu1  ;;  %v5401_v26 = vpack.c.bf16 %v5172_v27, %v5170_v53  ;;  %v5175_v37 = vmax.f32 %v4756_v52, 0.0  ;;  %v4758_v13 = vadd.f32 %v4757_v5, %v11514_v63 }
 0x6e3   :  { %14628 = vst [vmem:[#allocation86_spill] sm:$0xff] %v13060_v38  ;;  %v13065_v56 = vadd.f32 %v6908_v7, %v12573_v21  ;;  %v6909_v41 = vmul.f32 2.0, %v6589_v22  ;;  %v6590_v35 = vmax.f32 %v6015_v9, 0.0  ;;  %v6017_v39 = vadd.f32 %v6016_v24, %v12231_v48  ;;  %v4763_v23 = vpop.f32.mrf.mxu0  ;;  %v14630_v24 = vld [vmem:[#allocation22_spill] sm:$0xff] }
 0x6e4   :  { %v5177_v47 = vmax.f32 %v4760_v12, 0.0  ;;  %v6018_v44 = vpop.f32.mrf.mxu1  ;;  %v4754_v7 = vadd.f32 %v4753_v3, %v11514_v63 }
 0x6e5   :  { %v13070_v61 = vadd.f32 %v6909_v41, %v12581_v55  ;;  %v6910_v34 = vmul.f32 2.0, %v6590_v35  ;;  %v6591_v62 = vmax.f32 %v6017_v39, 0.0  ;;  %v6019_v38 = vadd.f32 %v6018_v44, %v12237_v17  ;;  %v4765_v21 = vpop.f32.mrf.mxu0  ;;  %v14631_v39 = vld [vmem:[#allocation25_spill] sm:$0xff] }
 0x6e6   :  { %v6022_v22 = vpop.f32.mrf.mxu1  ;;  %v5404_v9 = vpack.c.bf16 %v5177_v47, %v5175_v37  ;;  %v5176_v55 = vmax.f32 %v4758_v13, 0.0  ;;  %v4766_v41 = vadd.f32 %v4765_v21, %v11487_v16  ;;  %v5174_v47 = vmax.f32 %v4754_v7, 0.0 }
 0x6e7   :  { %14629 = vst [vmem:[#allocation21_spill] sm:$0xff] %v13070_v61  ;;  %v13075_v27 = vadd.f32 %v6910_v34, %v14630_v24  ;;  %v6911_v52 = vmul.f32 2.0, %v6591_v62  ;;  %v6592_v5 = vmax.f32 %v6019_v38, 0.0  ;;  %v6023_v53 = vadd.f32 %v6022_v22, %v12231_v48  ;;  %v4767_v12 = vpop.f32.mrf.mxu0 }
 0x6e8   :  { %6261 = vmatmul.mubr.bf16.gmra.mxu1 %v5401_v26  ;;  %v6024_v35 = vpop.f32.mrf.mxu1  ;;  %v5403_v24 = vpack.c.bf16 %v5176_v55, %v5174_v47 }
 0x6e9   :  { %6270 = vmatprep.mubr.bf16.mxu1 %v5404_v9  ;;  %v13080_v44 = vadd.f32 %v6911_v52, %v14631_v39  ;;  %v6912_v3 = vmul.f32 2.0, %v6592_v5  ;;  %v6593_v61 = vmax.f32 %v6023_v53, 0.0  ;;  %v6025_v26 = vadd.f32 %v6024_v35, %v12237_v17  ;;  %v4769_v37 = vpop.f32.mrf.mxu0 }
 0x6ea   :  { %v4770_v34 = vadd.f32 %v4769_v37, %v11487_v16  ;;  %v6026_v38 = vpop.f32.mrf.mxu1  ;;  %v5179_v52 = vmax.f32 %v4766_v41, 0.0  ;;  %v4768_v5 = vadd.f32 %v4767_v12, %v11514_v63 }
 0x6eb   :  { %14632 = vst [vmem:[#allocation12_spill] sm:$0xff] %v13080_v44  ;;  %v13085_v62 = vadd.f32 %v6912_v3, %v12618_v36  ;;  %v6913_v13 = vmul.f32 2.0, %v6593_v61  ;;  %v6594_v22 = vmax.f32 %v6025_v26, 0.0  ;;  %v6027_v21 = vadd.f32 %v6026_v38, %v12231_v48  ;;  %v4773_v9 = vpop.f32.mrf.mxu0 }
 0x6ec   :  { %v5181_v53 = vmax.f32 %v4770_v34, 0.0  ;;  %v6028_v39 = vpop.f32.mrf.mxu1  ;;  %v4764_v61 = vadd.f32 %v4763_v23, %v11514_v63 }
 0x6ed   :  { %v13090_v35 = vadd.f32 %v6913_v13, %v12626_v18  ;;  %v6914_v7 = vmul.f32 2.0, %v6594_v22  ;;  %v6595_v37 = vmax.f32 %v6027_v21, 0.0  ;;  %v6029_v44 = vadd.f32 %v6028_v39, %v12237_v17  ;;  %v4775_v36 = vpop.f32.mrf.mxu0  ;;  %v14634_v22 = vld [vmem:[#allocation20_spill] sm:$0xff] }
 0x6ee   :  { %v6032_v3 = vpop.f32.mrf.mxu1  ;;  %v5406_v26 = vpack.c.bf16 %v5181_v53, %v5179_v52  ;;  %v5180_v18 = vmax.f32 %v4768_v5, 0.0  ;;  %v4776_v38 = vadd.f32 %v4775_v36, %v11487_v16 }
 0x6ef   :  { %v13095_v55 = vadd.f32 %v6914_v7, %v12634_v25  ;;  %v6915_v41 = vmul.f32 2.0, %v6595_v37  ;;  %v6596_v12 = vmax.f32 %v6029_v44, 0.0  ;;  %v6033_v47 = vadd.f32 %v6032_v3, %v12231_v48  ;;  %v4777_v34 = vpop.f32.mrf.mxu0 }
 0x6f0   :  { %6271 = vmatmul.mubr.bf16.gmra.mxu1 %v5403_v24  ;;  %v6034_v13 = vpop.f32.mrf.mxu1  ;;  %v5178_v25 = vmax.f32 %v4764_v61, 0.0 }
 0x6f1   :  { %14633 = vst [vmem:[#allocation48_spill] sm:$0xff] %v13095_v55  ;;  %6280 = vmatprep.mubr.bf16.mxu1 %v5406_v26  ;;  %v13100_v21 = vadd.f32 %v6915_v41, %v14634_v22  ;;  %v6916_v23 = vmul.f32 2.0, %v6596_v12  ;;  %v6597_v39 = vmax.f32 %v6033_v47, 0.0  ;;  %v6035_v24 = vadd.f32 %v6034_v13, %v12237_v17  ;;  %v4779_v52 = vpop.f32.mrf.mxu0  ;;  %v14636_v13 = vld [vmem:[#allocation23_spill] sm:$0xff] }
 0x6f2   :  { %v4780_v53 = vadd.f32 %v4779_v52, %v11487_v16  ;;  %v6036_v44 = vpop.f32.mrf.mxu1  ;;  %v5405_v26 = vpack.c.bf16 %v5180_v18, %v5178_v25  ;;  %v5183_v41 = vmax.f32 %v4776_v38, 0.0  ;;  %v4778_v12 = vadd.f32 %v4777_v34, %v11514_v63 }
 0x6f3   :  { %14635 = vst [vmem:[#allocation18_spill] sm:$0xff] %v13100_v21  ;;  %v13105_v7 = vadd.f32 %v6916_v23, %v12656_v58  ;;  %v6917_v5 = vmul.f32 2.0, %v6597_v39  ;;  %v6598_v37 = vmax.f32 %v6035_v24, 0.0  ;;  %v6037_v36 = vadd.f32 %v6036_v44, %v12231_v48  ;;  %v4783_v3 = vpop.f32.mrf.mxu0  ;;  %v14638_v44 = vld [vmem:[#allocation26_spill] sm:$0xff] }
 0x6f4   :  { %v5185_v47 = vmax.f32 %v4780_v53, 0.0  ;;  %v6038_v22 = vpop.f32.mrf.mxu1  ;;  %v4774_v23 = vadd.f32 %v4773_v9, %v11514_v63 }
 0x6f5   :  { %v13110_v21 = vadd.f32 %v6917_v5, %v14636_v13  ;;  %v6918_v61 = vmul.f32 2.0, %v6598_v37  ;;  %v6599_v52 = vmax.f32 %v6037_v36, 0.0  ;;  %v6039_v55 = vadd.f32 %v6038_v22, %v12237_v17  ;;  %v4785_v58 = vpop.f32.mrf.mxu0  ;;  %v14639_v22 = vld [vmem:[#allocation29_spill] sm:$0xff] }
 0x6f6   :  { %v6042_v39 = vpop.f32.mrf.mxu1  ;;  %v5408_v24 = vpack.c.bf16 %v5185_v47, %v5183_v41  ;;  %v5184_v5 = vmax.f32 %v4778_v12, 0.0  ;;  %v4786_v37 = vadd.f32 %v4785_v58, %v11487_v16  ;;  %v5182_v47 = vmax.f32 %v4774_v23, 0.0 }
 0x6f7   :  { %14637 = vst [vmem:[#allocation74_spill] sm:$0xff] %v13110_v21  ;;  %v13115_v18 = vadd.f32 %v6918_v61, %v14638_v44  ;;  %v6919_v38 = vmul.f32 2.0, %v6599_v52  ;;  %v6600_v34 = vmax.f32 %v6039_v55, 0.0  ;;  %v6043_v25 = vadd.f32 %v6042_v39, %v12231_v48  ;;  %v4787_v53 = vpop.f32.mrf.mxu0  ;;  %v8898_v44 = vld [vmem:[%s13862_s4 + $0x40] sm:$0xff]  }
 0x6f8   :  { %6281 = vmatmul.mubr.bf16.gmra.mxu1 %v5405_v26  ;;  %v6044_v36 = vpop.f32.mrf.mxu1  ;;  %8395 = vmatprep.subr.bf16.mxu0 %v8898_v44 }
 0x6f9   :  { %6290 = vmatprep.mubr.bf16.mxu1 %v5408_v24  ;;  %v13120_v13 = vadd.f32 %v6919_v38, %v14639_v22  ;;  %v6920_v9 = vmul.f32 2.0, %v6600_v34  ;;  %v6601_v21 = vmax.f32 %v6043_v25, 0.0  ;;  %v6045_v26 = vadd.f32 %v6044_v36, %v12237_v17  ;;  %v4789_v41 = vpop.f32.mrf.mxu0 }
 0x6fa   :  { %v4790_v61 = vadd.f32 %v4789_v41, %v11487_v16  ;;  %v6046_v55 = vpop.f32.mrf.mxu1  ;;  %v5407_v38 = vpack.c.bf16 %v5184_v5, %v5182_v47  ;;  %v5187_v34 = vmax.f32 %v4786_v37, 0.0  ;;  %v4788_v25 = vadd.f32 %v4787_v53, %v11514_v63  ;;  %v8899_v41 = vld [vmem:[%s13862_s4] sm:$0xff]  }
 0x6fb   :  { %v13125_v52 = vadd.f32 %v6920_v9, %v12700_v10  ;;  %v6921_v12 = vmul.f32 2.0, %v6601_v21  ;;  %v6602_v39 = vmax.f32 %v6045_v26, 0.0  ;;  %v6047_v58 = vadd.f32 %v6046_v55, %v12231_v48  ;;  %v4793_v24 = vpop.f32.mrf.mxu0  ;;  %8396 = vmatpush3.bf16.msra.mxu0 %v8899_v41 }
 0x6fc   :  { %v5189_v23 = vmax.f32 %v4790_v61, 0.0  ;;  %v6048_v36 = vpop.f32.mrf.mxu1  ;;  %v4784_v5 = vadd.f32 %v4783_v3, %v11514_v63 }
 0x6fd   :  { %v13133_v22 = vadd.f32 %v6921_v12, %v12708_v50  ;;  %v6922_v10 = vmul.f32 2.0, %v6602_v39  ;;  %v6603_v9 = vmax.f32 %v6047_v58, 0.0  ;;  %v6049_v21 = vadd.f32 %v6048_v36, %v12237_v17  ;;  %v4795_v26 = vpop.f32.mrf.mxu0 }
 0x6fe   :  { %v6052_v37 = vpop.f32.mrf.mxu1  ;;  %v5410_v53 = vpack.c.bf16 %v5189_v23, %v5187_v34  ;;  %v5188_v39 = vmax.f32 %v4788_v25, 0.0  ;;  %v4796_v58 = vadd.f32 %v4795_v26, %v11487_v16  ;;  %v5186_v23 = vmax.f32 %v4784_v5, 0.0 }
 0x6ff   :  { %v13141_v47 = vadd.f32 %v6922_v10, %v12716_v14  ;;  %v6923_v50 = vmul.f32 2.0, %v6603_v9  ;;  %v6604_v61 = vmax.f32 %v6049_v21, 0.0  ;;  %v6053_v55 = vadd.f32 %v6052_v37, %v12231_v48  ;;  %v4797_v12 = vpop.f32.mrf.mxu0 }
 0x700   :  { %6291 = vmatmul.mubr.bf16.gmra.mxu1 %v5407_v38  ;;  %v6054_v44 = vpop.f32.mrf.mxu1 }
 0x701   :  { %6300 = vmatprep.mubr.bf16.mxu1 %v5410_v53  ;;  %v13146_v36 = vadd.f32 %v6923_v50, %v12724_v54  ;;  %v6924_v3 = vmul.f32 2.0, %v6604_v61  ;;  %v6605_v38 = vmax.f32 %v6053_v55, 0.0  ;;  %v6055_v34 = vadd.f32 %v6054_v44, %v12237_v17  ;;  %v4799_v14 = vpop.f32.mrf.mxu0 }
 0x702   :  { %v4800_v10 = vadd.f32 %v4799_v14, %v11487_v16  ;;  %v6056_v9 = vpop.f32.mrf.mxu1  ;;  %v5409_v53 = vpack.c.bf16 %v5188_v39, %v5186_v23  ;;  %v5191_v54 = vmax.f32 %v4796_v58, 0.0  ;;  %v4798_v50 = vadd.f32 %v4797_v12, %v11514_v63 }
 0x703   :  { %14640 = vst [vmem:[#allocation47_spill] sm:$0xff] %v13146_v36  ;;  %v13151_v21 = vadd.f32 %v6924_v3, %v12738_v4  ;;  %v6925_v25 = vmul.f32 2.0, %v6605_v38  ;;  %v6606_v41 = vmax.f32 %v6055_v34, 0.0  ;;  %v6057_v26 = vadd.f32 %v6056_v9, %v12231_v48  ;;  %v4803_v37 = vpop.f32.mrf.mxu0  ;;  %v14642_v9 = vld [vmem:[#allocation24_spill] sm:$0xff] }
 0x704   :  { %v5193_v61 = vmax.f32 %v4800_v10, 0.0  ;;  %v6058_v55 = vpop.f32.mrf.mxu1  ;;  %v4794_v3 = vadd.f32 %v4793_v24, %v11514_v63 }
 0x705   :  { %v13156_v44 = vadd.f32 %v6925_v25, %v12746_v1  ;;  %v6926_v5 = vmul.f32 2.0, %v6606_v41  ;;  %v6607_v14 = vmax.f32 %v6057_v26, 0.0  ;;  %v6059_v36 = vadd.f32 %v6058_v55, %v12237_v17  ;;  %v4805_v4 = vpop.f32.mrf.mxu0  ;;  %v14643_v26 = vld [vmem:[#allocation27_spill] sm:$0xff] }
 0x706   :  { %v6062_v38 = vpop.f32.mrf.mxu1  ;;  %v5412_v34 = vpack.c.bf16 %v5193_v61, %v5191_v54  ;;  %v5192_v1 = vmax.f32 %v4798_v50, 0.0  ;;  %v4806_v25 = vadd.f32 %v4805_v4, %v11487_v16  ;;  %v5190_v61 = vmax.f32 %v4794_v3, 0.0 }
 0x707   :  { %14641 = vst [vmem:[#allocation84_spill] sm:$0xff] %v13156_v44  ;;  %v13161_v39 = vadd.f32 %v6926_v5, %v14642_v9  ;;  %v6927_v58 = vmul.f32 2.0, %v6607_v14  ;;  %v6608_v12 = vmax.f32 %v6059_v36, 0.0  ;;  %v6063_v23 = vadd.f32 %v6062_v38, %v12231_v48  ;;  %v4807_v10 = vpop.f32.mrf.mxu0 }
 0x708   :  { %6301 = vmatmul.mubr.bf16.gmra.mxu1 %v5409_v53  ;;  %v6064_v41 = vpop.f32.mrf.mxu1  ;;  %v5411_v9 = vpack.c.bf16 %v5192_v1, %v5190_v61 }
 0x709   :  { %6310 = vmatprep.mubr.bf16.mxu1 %v5412_v34  ;;  %v13166_v55 = vadd.f32 %v6927_v58, %v14643_v26  ;;  %v6928_v24 = vmul.f32 2.0, %v6608_v12  ;;  %v6609_v44 = vmax.f32 %v6063_v23, 0.0  ;;  %v6065_v53 = vadd.f32 %v6064_v41, %v12237_v17  ;;  %v4809_v54 = vpop.f32.mrf.mxu0 }
 0x70a   :  { %v4810_v5 = vadd.f32 %v4809_v54, %v11487_v16  ;;  %v6066_v36 = vpop.f32.mrf.mxu1  ;;  %v5195_v58 = vmax.f32 %v4806_v25, 0.0  ;;  %v4808_v12 = vadd.f32 %v4807_v10, %v11514_v63 }
 0x70b   :  { %14644 = vst [vmem:[#allocation77_spill] sm:$0xff] %v13166_v55  ;;  %v13171_v14 = vadd.f32 %v6928_v24, %v12782_v32  ;;  %v6929_v50 = vmul.f32 2.0, %v6609_v44  ;;  %v6610_v38 = vmax.f32 %v6065_v53, 0.0  ;;  %v6067_v4 = vadd.f32 %v6066_v36, %v12231_v48  ;;  %v4813_v34 = vpop.f32.mrf.mxu0 }
 0x70c   :  { %v5197_v23 = vmax.f32 %v4810_v5, 0.0  ;;  %v6068_v26 = vpop.f32.mrf.mxu1  ;;  %v4804_v44 = vadd.f32 %v4803_v37, %v11514_v63 }
 0x70d   :  { %v13176_v41 = vadd.f32 %v6929_v50, %v12790_v57  ;;  %v6930_v3 = vmul.f32 2.0, %v6610_v38  ;;  %v6611_v54 = vmax.f32 %v6067_v4, 0.0  ;;  %v6069_v55 = vadd.f32 %v6068_v26, %v12237_v17  ;;  %v4815_v32 = vpop.f32.mrf.mxu0  ;;  %v14647_v38 = vld [vmem:[#allocation30_spill] sm:$0xff] }
 0x70e   :  { %v6072_v24 = vpop.f32.mrf.mxu1  ;;  %v5414_v53 = vpack.c.bf16 %v5197_v23, %v5195_v58  ;;  %v5196_v57 = vmax.f32 %v4808_v12, 0.0  ;;  %v4816_v36 = vadd.f32 %v4815_v32, %v11487_v16 }
 0x70f   :  { %14645 = vst [vmem:[#allocation13_spill] sm:$0xff] %v13176_v41  ;;  %v13181_v1 = vadd.f32 %v6930_v3, %v12798_v30  ;;  %v6931_v25 = vmul.f32 2.0, %v6611_v54  ;;  %v6612_v10 = vmax.f32 %v6069_v55, 0.0  ;;  %v6073_v61 = vadd.f32 %v6072_v24, %v12231_v48  ;;  %v4817_v5 = vpop.f32.mrf.mxu0  ;;  %v14649_v3 = vld [vmem:[#allocation34_spill] sm:$0xff] }
 0x710   :  { %6311 = vmatmul.mubr.bf16.gmra.mxu1 %v5411_v9  ;;  %v6074_v50 = vpop.f32.mrf.mxu1  ;;  %v5194_v30 = vmax.f32 %v4804_v44, 0.0 }
 0x711   :  { %14646 = vst [vmem:[#allocation52_spill] sm:$0xff] %v13181_v1  ;;  %6320 = vmatprep.mubr.bf16.mxu1 %v5414_v53  ;;  %v13186_v4 = vadd.f32 %v6931_v25, %v14647_v38  ;;  %v6932_v37 = vmul.f32 2.0, %v6612_v10  ;;  %v6613_v26 = vmax.f32 %v6073_v61, 0.0  ;;  %v6075_v9 = vadd.f32 %v6074_v50, %v12237_v17  ;;  %v4819_v58 = vpop.f32.mrf.mxu0  ;;  %v14650_v50 = vld [vmem:[#allocation28_spill] sm:$0xff] }
 0x712   :  { %v4820_v23 = vadd.f32 %v4819_v58, %v11487_v16  ;;  %v6076_v55 = vpop.f32.mrf.mxu1  ;;  %v5413_v1 = vpack.c.bf16 %v5196_v57, %v5194_v30  ;;  %v5199_v25 = vmax.f32 %v4816_v36, 0.0  ;;  %v4818_v10 = vadd.f32 %v4817_v5, %v11514_v63 }
 0x713   :  { %14648 = vst [vmem:[#allocation76_spill] sm:$0xff] %v13186_v4  ;;  %v13191_v54 = vadd.f32 %v6932_v37, %v14649_v3  ;;  %v6933_v12 = vmul.f32 2.0, %v6613_v26  ;;  %v6614_v24 = vmax.f32 %v6075_v9, 0.0  ;;  %v6077_v32 = vadd.f32 %v6076_v55, %v12231_v48  ;;  %v4823_v53 = vpop.f32.mrf.mxu0  ;;  %v14652_v3 = vld [vmem:[#allocation32_spill] sm:$0xff] }
 0x714   :  { %v5201_v61 = vmax.f32 %v4820_v23, 0.0  ;;  %v6078_v38 = vpop.f32.mrf.mxu1  ;;  %v4814_v26 = vadd.f32 %v4813_v34, %v11514_v63 }
 0x715   :  { %v13196_v4 = vadd.f32 %v6933_v12, %v14650_v50  ;;  %v6934_v44 = vmul.f32 2.0, %v6614_v24  ;;  %v6615_v58 = vmax.f32 %v6077_v32, 0.0  ;;  %v6079_v41 = vadd.f32 %v6078_v38, %v12237_v17  ;;  %v4825_v37 = vpop.f32.mrf.mxu0  ;;  %v14654_v38 = vld [vmem:[#allocation31_spill] sm:$0xff] }
 0x716   :  { %v6082_v9 = vpop.f32.mrf.mxu1  ;;  %v5416_v55 = vpack.c.bf16 %v5201_v61, %v5199_v25  ;;  %v5200_v12 = vmax.f32 %v4818_v10, 0.0  ;;  %v4826_v24 = vadd.f32 %v4825_v37, %v11487_v16  ;;  %v5198_v61 = vmax.f32 %v4814_v26, 0.0 }
 0x717   :  { %14651 = vst [vmem:[#allocation79_spill] sm:$0xff] %v13196_v4  ;;  %v13201_v57 = vadd.f32 %v6934_v44, %v14652_v3  ;;  %v6935_v36 = vmul.f32 2.0, %v6615_v58  ;;  %v6616_v5 = vmax.f32 %v6079_v41, 0.0  ;;  %v6083_v30 = vadd.f32 %v6082_v9, %v12231_v48  ;;  %v4827_v23 = vpop.f32.mrf.mxu0 }
 0x718   :  { %6321 = vmatmul.mubr.bf16.gmra.mxu1 %v5413_v1  ;;  %v6084_v32 = vpop.f32.mrf.mxu1  ;;  %v5415_v3 = vpack.c.bf16 %v5200_v12, %v5198_v61 }
 0x719   :  { %14653 = vst [vmem:[#allocation51_spill] sm:$0xff] %v13201_v57  ;;  %6330 = vmatprep.mubr.bf16.mxu1 %v5416_v55  ;;  %v13206_v50 = vadd.f32 %v6935_v36, %v14654_v38  ;;  %v6936_v34 = vmul.f32 2.0, %v6616_v5  ;;  %v6617_v4 = vmax.f32 %v6083_v30, 0.0  ;;  %v6085_v1 = vadd.f32 %v6084_v32, %v12237_v17  ;;  %v4829_v25 = vpop.f32.mrf.mxu0  ;;  %v14656_v32 = vld [vmem:[#allocation38_spill] sm:$0xff] }
 0x71a   :  { %v4830_v44 = vadd.f32 %v4829_v25, %v11487_v16  ;;  %v6086_v41 = vpop.f32.mrf.mxu1  ;;  %v5203_v36 = vmax.f32 %v4826_v24, 0.0  ;;  %v4828_v5 = vadd.f32 %v4827_v23, %v11514_v63 }
 0x71b   :  { %14655 = vst [vmem:[#allocation73_spill] sm:$0xff] %v13206_v50  ;;  %v13211_v58 = vadd.f32 %v6936_v34, %v12862_v2  ;;  %v6937_v10 = vmul.f32 2.0, %v6617_v4  ;;  %v6618_v9 = vmax.f32 %v6085_v1, 0.0  ;;  %v6087_v37 = vadd.f32 %v6086_v41, %v12231_v48  ;;  %v4833_v55 = vpop.f32.mrf.mxu0  ;;  %v14658_v41 = vld [vmem:[#allocation37_spill] sm:$0xff] }
 0x71c   :  { %v5205_v30 = vmax.f32 %v4830_v44, 0.0  ;;  %v6088_v38 = vpop.f32.mrf.mxu1  ;;  %v4824_v4 = vadd.f32 %v4823_v53, %v11514_v63 }
 0x71d   :  { %v13216_v50 = vadd.f32 %v6937_v10, %v14656_v32  ;;  %v6938_v26 = vmul.f32 2.0, %v6618_v9  ;;  %v6619_v25 = vmax.f32 %v6087_v37, 0.0  ;;  %v6089_v57 = vadd.f32 %v6088_v38, %v12237_v17  ;;  %v4835_v2 = vpop.f32.mrf.mxu0  ;;  %v14659_v38 = vld [vmem:[#allocation36_spill] sm:$0xff] }
 0x71e   :  { %v6092_v34 = vpop.f32.mrf.mxu1  ;;  %v5418_v1 = vpack.c.bf16 %v5205_v30, %v5203_v36  ;;  %v5204_v10 = vmax.f32 %v4828_v5, 0.0  ;;  %v4836_v9 = vadd.f32 %v4835_v2, %v11487_v16  ;;  %v5202_v30 = vmax.f32 %v4824_v4, 0.0 }
 0x71f   :  { %14657 = vst [vmem:[#allocation81_spill] sm:$0xff] %v13216_v50  ;;  %v13221_v12 = vadd.f32 %v6938_v26, %v14658_v41  ;;  %v6939_v24 = vmul.f32 2.0, %v6619_v25  ;;  %v6620_v23 = vmax.f32 %v6089_v57, 0.0  ;;  %v6093_v61 = vadd.f32 %v6092_v34, %v12231_v48  ;;  %v4837_v44 = vpop.f32.mrf.mxu0 }
 0x720   :  { %6331 = vmatmul.mubr.bf16.gmra.mxu1 %v5415_v3  ;;  %v6094_v37 = vpop.f32.mrf.mxu1  ;;  %v5417_v41 = vpack.c.bf16 %v5204_v10, %v5202_v30 }
 0x721   :  { %6340 = vmatprep.mubr.bf16.mxu1 %v5418_v1  ;;  %v13226_v32 = vadd.f32 %v6939_v24, %v14659_v38  ;;  %v6940_v53 = vmul.f32 2.0, %v6620_v23  ;;  %v6621_v50 = vmax.f32 %v6093_v61, 0.0  ;;  %v6095_v3 = vadd.f32 %v6094_v37, %v12237_v17  ;;  %v4839_v36 = vpop.f32.mrf.mxu0 }
 0x722   :  { %v4840_v26 = vadd.f32 %v4839_v36, %v11487_v16  ;;  %v6096_v57 = vpop.f32.mrf.mxu1  ;;  %v5207_v24 = vmax.f32 %v4836_v9, 0.0  ;;  %v4838_v23 = vadd.f32 %v4837_v44, %v11514_v63 }
 0x723   :  { %14660 = vst [vmem:[#allocation68_spill] sm:$0xff] %v13226_v32  ;;  %v13231_v25 = vadd.f32 %v6940_v53, %v12895_v42  ;;  %v6941_v5 = vmul.f32 2.0, %v6621_v50  ;;  %v6622_v34 = vmax.f32 %v6095_v3, 0.0  ;;  %v6097_v2 = vadd.f32 %v6096_v57, %v12231_v48  ;;  %v4843_v1 = vpop.f32.mrf.mxu0  ;;  %v14663_v57 = vld [vmem:[#allocation35_spill] sm:$0xff] }
 0x724   :  { %v5209_v61 = vmax.f32 %v4840_v26, 0.0  ;;  %v6098_v38 = vpop.f32.mrf.mxu1  ;;  %v4834_v50 = vadd.f32 %v4833_v55, %v11514_v63 }
 0x725   :  { %14661 = vst [vmem:[#allocation56_spill] sm:$0xff] %v13231_v25  ;;  %v13236_v37 = vadd.f32 %v6941_v5, %v12899_v43  ;;  %v6942_v4 = vmul.f32 2.0, %v6622_v34  ;;  %v6623_v36 = vmax.f32 %v6097_v2, 0.0  ;;  %v6099_v32 = vadd.f32 %v6098_v38, %v12237_v17  ;;  %v4845_v42 = vpop.f32.mrf.mxu0  ;;  %v14665_v2 = vld [vmem:[#allocation42_spill] sm:$0xff] }
 0x726   :  { %v6102_v53 = vpop.f32.mrf.mxu1  ;;  %v5420_v3 = vpack.c.bf16 %v5209_v61, %v5207_v24  ;;  %v5208_v43 = vmax.f32 %v4838_v23, 0.0  ;;  %v4846_v5 = vadd.f32 %v4845_v42, %v11487_v16  ;;  %v5206_v61 = vmax.f32 %v4834_v50, 0.0 }
 0x727   :  { %14662 = vst [vmem:[#allocation80_spill] sm:$0xff] %v13236_v37  ;;  %v13241_v10 = vadd.f32 %v6942_v4, %v14663_v57  ;;  %v6943_v9 = vmul.f32 2.0, %v6623_v36  ;;  %v6624_v44 = vmax.f32 %v6099_v32, 0.0  ;;  %v6103_v30 = vadd.f32 %v6102_v53, %v12231_v48  ;;  %v4847_v26 = vpop.f32.mrf.mxu0  ;;  %v14667_v36 = vld [vmem:[#allocation9_spill] sm:$0xff] }
 0x728   :  { %6341 = vmatmul.mubr.bf16.gmra.mxu1 %v5417_v41  ;;  %v6104_v34 = vpop.f32.mrf.mxu1 }
 0x729   :  { %14664 = vst [vmem:[#allocation85_spill] sm:$0xff] %v13241_v10  ;;  %6350 = vmatprep.mubr.bf16.mxu1 %v5420_v3  ;;  %v13246_v38 = vadd.f32 %v6943_v9, %v14665_v2  ;;  %v6944_v55 = vmul.f32 2.0, %v6624_v44  ;;  %v6625_v37 = vmax.f32 %v6103_v30, 0.0  ;;  %v6105_v41 = vadd.f32 %v6104_v34, %v12237_v17  ;;  %v4849_v24 = vpop.f32.mrf.mxu0  ;;  %v14668_v34 = vld [vmem:[#allocation8_spill] sm:$0xff] }
 0x72a   :  { %v4850_v4 = vadd.f32 %v4849_v24, %v11487_v16  ;;  %v6106_v32 = vpop.f32.mrf.mxu1  ;;  %v5419_v10 = vpack.c.bf16 %v5208_v43, %v5206_v61  ;;  %v5211_v9 = vmax.f32 %v4846_v5, 0.0  ;;  %v4848_v44 = vadd.f32 %v4847_v26, %v11514_v63 }
 0x72b   :  { %14666 = vst [vmem:[#allocation82_spill] sm:$0xff] %v13246_v38  ;;  %v13251_v53 = vadd.f32 %v6944_v55, %v14667_v36  ;;  %v6945_v23 = vmul.f32 2.0, %v6625_v37  ;;  %v6626_v57 = vmax.f32 %v6105_v41, 0.0  ;;  %v6107_v42 = vadd.f32 %v6106_v32, %v12231_v48  ;;  %v4853_v3 = vpop.f32.mrf.mxu0  ;;  %v14670_v36 = vld [vmem:[#allocation40_spill] sm:$0xff] }
 0x72c   :  { %v5213_v30 = vmax.f32 %v4850_v4, 0.0  ;;  %v6108_v2 = vpop.f32.mrf.mxu1  ;;  %v4844_v37 = vadd.f32 %v4843_v1, %v11514_v63 }
 0x72d   :  { %v13256_v38 = vadd.f32 %v6945_v23, %v14668_v34  ;;  %v6946_v50 = vmul.f32 2.0, %v6626_v57  ;;  %v6627_v24 = vmax.f32 %v6107_v42, 0.0  ;;  %v6109_v25 = vadd.f32 %v6108_v2, %v12237_v17  ;;  %v4855_v55 = vpop.f32.mrf.mxu0  ;;  %v14671_v2 = vld [vmem:[#allocation66_spill] sm:$0xff] }
 0x72e   :  { %v6112_v41 = vpop.f32.mrf.mxu1  ;;  %v5422_v32 = vpack.c.bf16 %v5213_v30, %v5211_v9  ;;  %v5212_v23 = vmax.f32 %v4848_v44, 0.0  ;;  %v4856_v57 = vadd.f32 %v4855_v55, %v11487_v16  ;;  %v5210_v30 = vmax.f32 %v4844_v37, 0.0 }
 0x72f   :  { %14669 = vst [vmem:[#allocation55_spill] sm:$0xff] %v13256_v38  ;;  %v13261_v43 = vadd.f32 %v6946_v50, %v14670_v36  ;;  %v6947_v5 = vmul.f32 2.0, %v6627_v24  ;;  %v6628_v26 = vmax.f32 %v6109_v25, 0.0  ;;  %v6113_v61 = vadd.f32 %v6112_v41, %v12231_v48  ;;  %v4857_v4 = vpop.f32.mrf.mxu0 }
 0x730   :  { %6351 = vmatmul.mubr.bf16.gmra.mxu1 %v5419_v10  ;;  %v6114_v42 = vpop.f32.mrf.mxu1  ;;  %v5421_v36 = vpack.c.bf16 %v5212_v23, %v5210_v30 }
 0x731   :  { %6360 = vmatprep.mubr.bf16.mxu1 %v5422_v32  ;;  %v13266_v34 = vadd.f32 %v6947_v5, %v14671_v2  ;;  %v6948_v1 = vmul.f32 2.0, %v6628_v26  ;;  %v6629_v38 = vmax.f32 %v6113_v61, 0.0  ;;  %v6115_v10 = vadd.f32 %v6114_v42, %v12237_v17  ;;  %v4859_v9 = vpop.f32.mrf.mxu0 }
 0x732   :  { %v4860_v50 = vadd.f32 %v4859_v9, %v11487_v16  ;;  %v6116_v25 = vpop.f32.mrf.mxu1  ;;  %v5215_v5 = vmax.f32 %v4856_v57, 0.0  ;;  %v4858_v26 = vadd.f32 %v4857_v4, %v11514_v63 }
 0x733   :  { %14672 = vst [vmem:[#allocation71_spill] sm:$0xff] %v13266_v34  ;;  %v13271_v24 = vadd.f32 %v6948_v1, %v12949_v8  ;;  %v6949_v44 = vmul.f32 2.0, %v6629_v38  ;;  %v6630_v41 = vmax.f32 %v6115_v10, 0.0  ;;  %v6117_v55 = vadd.f32 %v6116_v25, %v12231_v48  ;;  %v4863_v32 = vpop.f32.mrf.mxu0 }
 0x734   :  { %v5217_v61 = vmax.f32 %v4860_v50, 0.0  ;;  %v6118_v2 = vpop.f32.mrf.mxu1  ;;  %v4854_v38 = vadd.f32 %v4853_v3, %v11514_v63 }
 0x735   :  { %v13276_v42 = vadd.f32 %v6949_v44, %v12953_v15  ;;  %v6950_v37 = vmul.f32 2.0, %v6630_v41  ;;  %v6631_v9 = vmax.f32 %v6117_v55, 0.0  ;;  %v6119_v34 = vadd.f32 %v6118_v2, %v12237_v17  ;;  %v4865_v8 = vpop.f32.mrf.mxu0 }
 0x736   :  { %v6122_v1 = vpop.f32.mrf.mxu1  ;;  %v5424_v10 = vpack.c.bf16 %v5217_v61, %v5215_v5  ;;  %v5216_v15 = vmax.f32 %v4858_v26, 0.0  ;;  %v4866_v25 = vadd.f32 %v4865_v8, %v11487_v16 }
 0x737   :  { %v13281_v23 = vadd.f32 %v6950_v37, %v12957_v29  ;;  %v6951_v57 = vmul.f32 2.0, %v6631_v9  ;;  %v6632_v4 = vmax.f32 %v6119_v34, 0.0  ;;  %v6123_v30 = vadd.f32 %v6122_v1, %v12231_v48  ;;  %v4867_v50 = vpop.f32.mrf.mxu0 }
 0x738   :  { %6361 = vmatmul.mubr.bf16.gmra.mxu1 %v5421_v36  ;;  %v6124_v44 = vpop.f32.mrf.mxu1  ;;  %v5214_v29 = vmax.f32 %v4854_v38, 0.0 }
 0x739   :  { %6370 = vmatprep.mubr.bf16.mxu1 %v5424_v10  ;;  %v13286_v41 = vadd.f32 %v6951_v57, %v12961_v49  ;;  %v6952_v3 = vmul.f32 2.0, %v6632_v4  ;;  %v6633_v55 = vmax.f32 %v6123_v30, 0.0  ;;  %v6125_v36 = vadd.f32 %v6124_v44, %v12237_v17  ;;  %v4869_v5 = vpop.f32.mrf.mxu0 }
 0x73a   :  { %v4870_v61 = vadd.f32 %v4869_v5, %v11487_v16  ;;  %v6126_v34 = vpop.f32.mrf.mxu1  ;;  %v5423_v1 = vpack.c.bf16 %v5216_v15, %v5214_v29  ;;  %v5219_v49 = vmax.f32 %v4866_v25, 0.0  ;;  %v4868_v10 = vadd.f32 %v4867_v50, %v11514_v63 }
 0x73b   :  { %v13291_v2 = vadd.f32 %v6952_v3, %v12965_v46  ;;  %v7017_v26 = vmul.f32 2.0, %v6633_v55  ;;  %v6634_v37 = vmax.f32 %v6125_v36, 0.0  ;;  %v6127_v9 = vadd.f32 %v6126_v34, %v12231_v48  ;;  %v4873_v8 = vpop.f32.mrf.mxu0 }
 0x73c   :  { %v5221_v57 = vmax.f32 %v4870_v61, 0.0  ;;  %v6128_v4 = vpop.f32.mrf.mxu1  ;;  %v4864_v3 = vadd.f32 %v4863_v32, %v11514_v63 }
 0x73d   :  { %v13296_v30 = vadd.f32 %v7017_v26, %v12970_v0  ;;  %v7018_v38 = vmul.f32 2.0, %v6634_v37  ;;  %v6635_v44 = vmax.f32 %v6127_v9, 0.0  ;;  %v6129_v5 = vadd.f32 %v6128_v4, %v12237_v17  ;;  %v4875_v46 = vpop.f32.mrf.mxu0 }
 0x73e   :  { %v6132_v55 = vpop.f32.mrf.mxu1  ;;  %v5426_v36 = vpack.c.bf16 %v5221_v57, %v5219_v49  ;;  %v5220_v0 = vmax.f32 %v4868_v10, 0.0  ;;  %v4876_v34 = vadd.f32 %v4875_v46, %v11487_v16 }
 0x73f   :  { %v13301_v15 = vadd.f32 %v7018_v38, %v12975_v59  ;;  %v7019_v25 = vmul.f32 2.0, %v6635_v44  ;;  %v6636_v50 = vmax.f32 %v6129_v5, 0.0  ;;  %v6133_v29 = vadd.f32 %v6132_v55, %v12231_v48  ;;  %v4877_v61 = vpop.f32.mrf.mxu0 }
 0x740   :  { %6371 = vmatmul.mubr.bf16.gmra.mxu1 %v5423_v1  ;;  %v6134_v26 = vpop.f32.mrf.mxu1  ;;  %v5218_v59 = vmax.f32 %v4864_v3, 0.0 }
 0x741   :  { %14673 = vst [vmem:[#allocation72_spill] sm:$0xff] %v13301_v15  ;;  %6380 = vmatprep.mubr.bf16.mxu1 %v5426_v36  ;;  %v13306_v37 = vadd.f32 %v7019_v25, %v12980_v33  ;;  %v7020_v32 = vmul.f32 2.0, %v6636_v50  ;;  %v6637_v9 = vmax.f32 %v6133_v29, 0.0  ;;  %v6135_v1 = vadd.f32 %v6134_v26, %v12237_v17  ;;  %v4879_v49 = vpop.f32.mrf.mxu0  ;;  %v14674_v29 = vld [vmem:[#allocation39_spill] sm:$0xff] }
 0x742   :  { %v4880_v57 = vadd.f32 %v4879_v49, %v11487_v16  ;;  %v6136_v4 = vpop.f32.mrf.mxu1  ;;  %v5425_v55 = vpack.c.bf16 %v5220_v0, %v5218_v59  ;;  %v5223_v33 = vmax.f32 %v4876_v34, 0.0  ;;  %v4878_v36 = vadd.f32 %v4877_v61, %v11514_v63 }
 0x743   :  { %v13311_v38 = vadd.f32 %v7020_v32, %v12985_v60  ;;  %v7021_v10 = vmul.f32 2.0, %v6637_v9  ;;  %v6638_v44 = vmax.f32 %v6135_v1, 0.0  ;;  %v6137_v5 = vadd.f32 %v6136_v4, %v12231_v48  ;;  %v4883_v46 = vpop.f32.mrf.mxu0 }
 0x744   :  { %v5225_v25 = vmax.f32 %v4880_v57, 0.0  ;;  %v6138_v50 = vpop.f32.mrf.mxu1  ;;  %v4874_v32 = vadd.f32 %v4873_v8, %v11514_v63  ;;  %v5224_v4 = vmax.f32 %v4878_v36, 0.0 }
 0x745   :  { %v13316_v26 = vadd.f32 %v7021_v10, %v14674_v29  ;;  %v7022_v3 = vmul.f32 2.0, %v6638_v44  ;;  %v6639_v49 = vmax.f32 %v6137_v5, 0.0  ;;  %v6139_v15 = vadd.f32 %v6138_v50, %v12237_v17  ;;  %v4885_v60 = vpop.f32.mrf.mxu0  ;;  %v14676_v5 = vld [vmem:[#allocation44_spill] sm:$0xff] }
 0x746   :  { %v6142_v9 = vpop.f32.mrf.mxu1  ;;  %v5428_v1 = vpack.c.bf16 %v5225_v25, %v5223_v33  ;;  %v4886_v10 = vadd.f32 %v4885_v60, %v11487_v16 }
 0x747   :  { %v13321_v0 = vadd.f32 %v7022_v3, %v12995_v11  ;;  %v7023_v34 = vmul.f32 2.0, %v6639_v49  ;;  %v6640_v61 = vmax.f32 %v6139_v15, 0.0  ;;  %v6143_v59 = vadd.f32 %v6142_v9, %v12231_v48  ;;  %v4887_v57 = vpop.f32.mrf.mxu0 }
 0x748   :  { %6381 = vmatmul.mubr.bf16.gmra.mxu1 %v5425_v55  ;;  %v6144_v44 = vpop.f32.mrf.mxu1  ;;  %v5222_v11 = vmax.f32 %v4874_v32, 0.0 }
 0x749   :  { %14675 = vst [vmem:[#allocation69_spill] sm:$0xff] %v13321_v0  ;;  %6390 = vmatprep.mubr.bf16.mxu1 %v5428_v1  ;;  %v13326_v50 = vadd.f32 %v7023_v34, %v14676_v5  ;;  %v7024_v8 = vmul.f32 2.0, %v6640_v61  ;;  %v6641_v29 = vmax.f32 %v6143_v59, 0.0  ;;  %v6145_v55 = vadd.f32 %v6144_v44, %v12237_v17  ;;  %v4889_v33 = vpop.f32.mrf.mxu0 }
 0x74a   :  { %v4890_v25 = vadd.f32 %v4889_v33, %v11487_v16  ;;  %v6146_v15 = vpop.f32.mrf.mxu1  ;;  %v5427_v1 = vpack.c.bf16 %v5224_v4, %v5222_v11  ;;  %v5227_v34 = vmax.f32 %v4886_v10, 0.0  ;;  %v4888_v61 = vadd.f32 %v4887_v57, %v11514_v63 }
 0x74b   :  { %v13331_v3 = vadd.f32 %v7024_v8, %v13005_v28  ;;  %v7025_v36 = vmul.f32 2.0, %v6641_v29  ;;  %v6642_v49 = vmax.f32 %v6145_v55, 0.0  ;;  %v6147_v60 = vadd.f32 %v6146_v15, %v12231_v48  ;;  %v4893_v9 = vpop.f32.mrf.mxu0 }
 0x74c   :  { %v5229_v59 = vmax.f32 %v4890_v25, 0.0  ;;  %v6148_v5 = vpop.f32.mrf.mxu1  ;;  %v4884_v8 = vadd.f32 %v4883_v46, %v11514_v63 }
 0x74d   :  { %v13336_v44 = vadd.f32 %v7025_v36, %v13010_v19  ;;  %v7026_v32 = vmul.f32 2.0, %v6642_v49  ;;  %v6643_v33 = vmax.f32 %v6147_v60, 0.0  ;;  %v6149_v0 = vadd.f32 %v6148_v5, %v12237_v17  ;;  %v4895_v28 = vpop.f32.mrf.mxu0  ;;  %v14678_v49 = vld [vmem:[#allocation78_spill] sm:$0xff] }
 0x74e   :  { %v6152_v29 = vpop.f32.mrf.mxu1  ;;  %v5430_v55 = vpack.c.bf16 %v5229_v59, %v5227_v34  ;;  %v5228_v19 = vmax.f32 %v4888_v61, 0.0  ;;  %v4896_v15 = vadd.f32 %v4895_v28, %v11487_v16 }
 0x74f   :  { %v13341_v4 = vadd.f32 %v7026_v32, %v13015_v45  ;;  %v7027_v10 = vmul.f32 2.0, %v6643_v33  ;;  %v6644_v57 = vmax.f32 %v6149_v0, 0.0  ;;  %v6153_v11 = vadd.f32 %v6152_v29, %v12231_v48  ;;  %v4897_v25 = vpop.f32.mrf.mxu0 }
 0x750   :  { %6391 = vmatmul.mubr.bf16.gmra.mxu1 %v5427_v1  ;;  %v6154_v36 = vpop.f32.mrf.mxu1  ;;  %v5226_v45 = vmax.f32 %v4884_v8, 0.0 }
 0x751   :  { %14677 = vst [vmem:[#allocation67_spill] sm:$0xff] %v13341_v4  ;;  %6400 = vmatprep.mubr.bf16.mxu1 %v5430_v55  ;;  %v13346_v60 = vadd.f32 %v7027_v10, %v14678_v49  ;;  %v7028_v46 = vmul.f32 2.0, %v6644_v57  ;;  %v6645_v5 = vmax.f32 %v6153_v11, 0.0  ;;  %v6155_v1 = vadd.f32 %v6154_v36, %v12237_v17  ;;  %v4899_v34 = vpop.f32.mrf.mxu0 }
 0x752   :  { %v4900_v59 = vadd.f32 %v4899_v34, %v11487_v16  ;;  %v6156_v0 = vpop.f32.mrf.mxu1  ;;  %v5429_v55 = vpack.c.bf16 %v5228_v19, %v5226_v45  ;;  %v5231_v10 = vmax.f32 %v4896_v15, 0.0  ;;  %v4898_v57 = vadd.f32 %v4897_v25, %v11514_v63 }
 0x753   :  { %v13351_v32 = vadd.f32 %v7028_v46, %v13025_v40  ;;  %v7029_v61 = vmul.f32 2.0, %v6645_v5  ;;  %v6646_v33 = vmax.f32 %v6155_v1, 0.0  ;;  %v6157_v28 = vadd.f32 %v6156_v0, %v12231_v48  ;;  %v4903_v29 = vpop.f32.mrf.mxu0  ;;  %v14680_v0 = vld [vmem:[#allocation70_spill] sm:$0xff] }
 0x754   :  { %v5233_v11 = vmax.f32 %v4900_v59, 0.0  ;;  %v6158_v49 = vpop.f32.mrf.mxu1  ;;  %v4894_v46 = vadd.f32 %v4893_v9, %v11514_v63 }
 0x755   :  { %v13356_v36 = vadd.f32 %v7029_v61, %v13030_v6  ;;  %v7030_v8 = vmul.f32 2.0, %v6646_v33  ;;  %v6647_v34 = vmax.f32 %v6157_v28, 0.0  ;;  %v6159_v4 = vadd.f32 %v6158_v49, %v12237_v17  ;;  %v4905_v40 = vpop.f32.mrf.mxu0  ;;  %v14682_v28 = vld [vmem:[#allocation43_spill] sm:$0xff] }
 0x756   :  { %v6162_v5 = vpop.f32.mrf.mxu1  ;;  %v5432_v1 = vpack.c.bf16 %v5233_v11, %v5231_v10  ;;  %v5232_v6 = vmax.f32 %v4898_v57, 0.0  ;;  %v4906_v61 = vadd.f32 %v4905_v40, %v11487_v16  ;;  %v5230_v11 = vmax.f32 %v4894_v46, 0.0 }
 0x757   :  { %14679 = vst [vmem:[#allocation33_spill] sm:$0xff] %v13356_v36  ;;  %v13361_v19 = vadd.f32 %v7030_v8, %v14680_v0  ;;  %v7031_v15 = vmul.f32 2.0, %v6647_v34  ;;  %v6648_v25 = vmax.f32 %v6159_v4, 0.0  ;;  %v6163_v45 = vadd.f32 %v6162_v5, %v12231_v48  ;;  %v4907_v59 = vpop.f32.mrf.mxu0 }
 0x758   :  { %6401 = vmatmul.mubr.bf16.gmra.mxu1 %v5429_v55  ;;  %v6164_v33 = vpop.f32.mrf.mxu1  ;;  %v5431_v0 = vpack.c.bf16 %v5232_v6, %v5230_v11 }
 0x759   :  { %14681 = vst [vmem:[#allocation60_spill] sm:$0xff] %v13361_v19  ;;  %6410 = vmatprep.mubr.bf16.mxu1 %v5432_v1  ;;  %v13366_v49 = vadd.f32 %v7031_v15, %v14682_v28  ;;  %v7032_v9 = vmul.f32 2.0, %v6648_v25  ;;  %v6649_v36 = vmax.f32 %v6163_v45, 0.0  ;;  %v6165_v55 = vadd.f32 %v6164_v33, %v12237_v17  ;;  %v4909_v10 = vpop.f32.mrf.mxu0 }
 0x75a   :  { %v4910_v8 = vadd.f32 %v4909_v10, %v11487_v16  ;;  %v6166_v4 = vpop.f32.mrf.mxu1  ;;  %v5235_v15 = vmax.f32 %v4906_v61, 0.0  ;;  %v4908_v25 = vadd.f32 %v4907_v59, %v11514_v63 }
 0x75b   :  { %v13371_v34 = vadd.f32 %v7032_v9, %v13045_v31  ;;  %v7033_v57 = vmul.f32 2.0, %v6649_v36  ;;  %v6650_v5 = vmax.f32 %v6165_v55, 0.0  ;;  %v6167_v40 = vadd.f32 %v6166_v4, %v12231_v48 }
 0x75c   :  { %v4913_v1 = vpop.f32.mrf.mxu0  ;;  %v5237_v45 = vmax.f32 %v4910_v8, 0.0  ;;  %v6168_v28 = vpop.f32.mrf.mxu1  ;;  %v4904_v36 = vadd.f32 %v4903_v29, %v11514_v63 }
 0x75d   :  { %v13376_v33 = vadd.f32 %v7033_v57, %v13050_v51  ;;  %v7034_v46 = vmul.f32 2.0, %v6650_v5  ;;  %v6651_v10 = vmax.f32 %v6167_v40, 0.0  ;;  %v6169_v19 = vadd.f32 %v6168_v28, %v12237_v17  ;;  %v14684_v5 = vld [vmem:[#allocation86_spill] sm:$0xff] }
 0x75e   :  { %v4915_v31 = vpop.f32.mrf.mxu0  ;;  %v5434_v55 = vpack.c.bf16 %v5237_v45, %v5235_v15  ;;  %v5236_v51 = vmax.f32 %v4908_v25, 0.0 }
 0x75f   :  { %v6172_v9 = vpop.f32.mrf.mxu1  ;;  %v13381_v6 = vadd.f32 %v7034_v46, %v13055_v20  ;;  %v7035_v61 = vmul.f32 2.0, %v6651_v10  ;;  %v6652_v59 = vmax.f32 %v6169_v19, 0.0  ;;  %v4916_v4 = vadd.f32 %v4915_v31, %v11487_v16 }
 0x760   :  { %6411 = vmatmul.mubr.bf16.gmra.mxu1 %v5431_v0  ;;  %v6173_v11 = vadd.f32 %v6172_v9, %v12231_v48  ;;  %v4917_v8 = vpop.f32.mrf.mxu0  ;;  %v5234_v20 = vmax.f32 %v4904_v36, 0.0 }
 0x761   :  { %14683 = vst [vmem:[#allocation14_spill] sm:$0xff] %v13381_v6  ;;  %v6174_v57 = vpop.f32.mrf.mxu1  ;;  %6420 = vmatprep.mubr.bf16.mxu1 %v5434_v55  ;;  %v13386_v40 = vadd.f32 %v7035_v61, %v14684_v5  ;;  %v7036_v29 = vmul.f32 2.0, %v6652_v59  ;;  %v5239_v55 = vmax.f32 %v4916_v4, 0.0  ;;  %v4918_v61 = vadd.f32 %v4917_v8, %v11514_v63  ;;  %v14685_v5 = vld [vmem:[#allocation21_spill] sm:$0xff] }
 0x762   :  { %v6653_v28 = vmax.f32 %v6173_v11, 0.0  ;;  %v6175_v0 = vadd.f32 %v6174_v57, %v12237_v17  ;;  %v4919_v15 = vpop.f32.mrf.mxu0  ;;  %v5433_v9 = vpack.c.bf16 %v5236_v51, %v5234_v20 }
 0x763   :  { %v4920_v45 = vadd.f32 %v4919_v15, %v11487_v16  ;;  %v6176_v19 = vpop.f32.mrf.mxu1  ;;  %v13391_v46 = vadd.f32 %v7036_v29, %v13065_v56  ;;  %v4914_v56 = vadd.f32 %v4913_v1, %v11514_v63  ;;  %v5240_v15 = vmax.f32 %v4918_v61, 0.0 }
 0x764   :  { %v7037_v25 = vmul.f32 2.0, %v6653_v28  ;;  %v6654_v10 = vmax.f32 %v6175_v0, 0.0  ;;  %v6177_v31 = vadd.f32 %v6176_v19, %v12231_v48 }
 0x765   :  { %v5241_v59 = vmax.f32 %v4920_v45, 0.0  ;;  %v6178_v11 = vpop.f32.mrf.mxu1  ;;  %v14686_v45 = vld [vmem:[#allocation12_spill] sm:$0xff]  ;;  %v5238_v1 = vmax.f32 %v4914_v56, 0.0 }
 0x766   :  { %v13396_v57 = vadd.f32 %v7037_v25, %v14685_v5  ;;  %v7038_v36 = vmul.f32 2.0, %v6654_v10  ;;  %v6655_v6 = vmax.f32 %v6177_v31, 0.0  ;;  %v6179_v16 = vadd.f32 %v6178_v11, %v12237_v17  ;;  %v14687_v56 = vld [vmem:[#allocation48_spill] sm:$0xff] }
 0x767   :  { %v6182_v29 = vpop.f32.mrf.mxu1  ;;  %v5436_v28 = vpack.c.bf16 %v5241_v59, %v5239_v55  ;;  %v5435_v59 = vpack.c.bf16 %v5240_v15, %v5238_v1 }
 0x768   :  { %6421 = vmatmul.mubr.bf16.gmra.mxu1 %v5433_v9  ;;  %v13401_v0 = vadd.f32 %v7038_v36, %v13075_v27  ;;  %v7039_v51 = vmul.f32 2.0, %v6655_v6  ;;  %v6656_v4 = vmax.f32 %v6179_v16, 0.0  ;;  %v6183_v8 = vadd.f32 %v6182_v29, %v12231_v48 }
 0x769   :  { %v6184_v20 = vpop.f32.mrf.mxu1  ;;  %6430 = vmatprep.mubr.bf16.mxu1 %v5436_v28 }
 0x76a   :  { %v13405_v19 = vadd.f32 %v7039_v51, %v14686_v45  ;;  %v7040_v25 = vmul.f32 2.0, %v6656_v4  ;;  %v6657_v10 = vmax.f32 %v6183_v8, 0.0  ;;  %v6185_v63 = vadd.f32 %v6184_v20, %v12237_v17  ;;  %v14688_v20 = vld [vmem:[#allocation18_spill] sm:$0xff] }
 0x76b   :  { %v6186_v31 = vpop.f32.mrf.mxu1 }
 0x76c   :  { %v13409_v9 = vadd.f32 %v7040_v25, %v13085_v62  ;;  %v7041_v27 = vmul.f32 2.0, %v6657_v10  ;;  %v6658_v6 = vmax.f32 %v6185_v63, 0.0  ;;  %v6187_v55 = vadd.f32 %v6186_v31, %v12231_v48 }
 0x76d   :  { %v6188_v61 = vpop.f32.mrf.mxu1 }
 0x76e   :  { %v13413_v11 = vadd.f32 %v7041_v27, %v13090_v35  ;;  %v7042_v5 = vmul.f32 2.0, %v6658_v6  ;;  %v6659_v36 = vmax.f32 %v6187_v55, 0.0  ;;  %v6189_v16 = vadd.f32 %v6188_v61, %v12237_v17  ;;  %v14689_v55 = vld [vmem:[#allocation74_spill] sm:$0xff] }
 0x770   :  { %v6192_v29 = vpop.f32.mrf.mxu1  ;;  %6431 = vmatmul.mubr.bf16.gmra.mxu1 %v5435_v59  ;;  %v13417_v28 = vadd.f32 %v7042_v5, %v14687_v56  ;;  %v7043_v62 = vmul.f32 2.0, %v6659_v36  ;;  %v6660_v51 = vmax.f32 %v6189_v16, 0.0 }
 0x771   :  { %v6193_v4 = vadd.f32 %v6192_v29, %v12231_v48 }
 0x772   :  { %v6194_v8 = vpop.f32.mrf.mxu1  ;;  %v13421_v15 = vadd.f32 %v7043_v62, %v14688_v20  ;;  %v7044_v45 = vmul.f32 2.0, %v6660_v51 }
 0x773   :  { %v6661_v35 = vmax.f32 %v6193_v4, 0.0  ;;  %v6195_v25 = vadd.f32 %v6194_v8, %v12237_v17 }
 0x774   :  { %v6196_v10 = vpop.f32.mrf.mxu1  ;;  %v13425_v63 = vadd.f32 %v7044_v45, %v13105_v7 }
 0x775   :  { %v7045_v1 = vmul.f32 2.0, %v6661_v35  ;;  %v6662_v31 = vmax.f32 %v6195_v25, 0.0  ;;  %v6197_v27 = vadd.f32 %v6196_v10, %v12231_v48 }
 0x776   :  { %v6198_v6 = vpop.f32.mrf.mxu1 }
 0x777   :  { %v13429_v59 = vadd.f32 %v7045_v1, %v14689_v55  ;;  %v7046_v61 = vmul.f32 2.0, %v6662_v31  ;;  %v6663_v5 = vmax.f32 %v6197_v27, 0.0  ;;  %v6199_v36 = vadd.f32 %v6198_v6, %v12237_v17 }
 0x778   :  { %v6202_v16 = vpop.f32.mrf.mxu1 }
 0x779   :  { %v13433_v29 = vadd.f32 %v7046_v61, %v13115_v18  ;;  %v7047_v56 = vmul.f32 2.0, %v6663_v5  ;;  %v6664_v62 = vmax.f32 %v6199_v36, 0.0  ;;  %v6203_v7 = vadd.f32 %v6202_v16, %v12231_v48 }
 0x77a   :  { %v6204_v51 = vpop.f32.mrf.mxu1 }
 0x77b   :  { %v13437_v4 = vadd.f32 %v7047_v56, %v13120_v13  ;;  %v7048_v8 = vmul.f32 2.0, %v6664_v62  ;;  %v6665_v20 = vmax.f32 %v6203_v7, 0.0  ;;  %v6205_v45 = vadd.f32 %v6204_v51, %v12237_v17  ;;  %v14690_v62 = vld [vmem:[#allocation47_spill] sm:$0xff] }
 0x77c   :  { %v6206_v35 = vpop.f32.mrf.mxu1 }
 0x77d   :  { %v13441_v25 = vadd.f32 %v7048_v8, %v13125_v52  ;;  %v7049_v10 = vmul.f32 2.0, %v6665_v20  ;;  %v6666_v1 = vmax.f32 %v6205_v45, 0.0  ;;  %v6207_v18 = vadd.f32 %v6206_v35, %v12231_v48 }
 0x77e   :  { %v6208_v31 = vpop.f32.mrf.mxu1 }
 0x77f   :  { %v13445_v27 = vadd.f32 %v7049_v10, %v13133_v22  ;;  %v7050_v6 = vmul.f32 2.0, %v6666_v1  ;;  %v6667_v55 = vmax.f32 %v6207_v18, 0.0  ;;  %v6209_v13 = vadd.f32 %v6208_v31, %v12237_v17  ;;  %v14691_v18 = vld [vmem:[#allocation84_spill] sm:$0xff] }
 0x780   :  { %v6212_v61 = vpop.f32.mrf.mxu1 }
 0x781   :  { %v13449_v5 = vadd.f32 %v7050_v6, %v13141_v47  ;;  %v7051_v36 = vmul.f32 2.0, %v6667_v55  ;;  %v6668_v16 = vmax.f32 %v6209_v13, 0.0  ;;  %v6213_v52 = vadd.f32 %v6212_v61, %v12231_v48 }
 0x782   :  { %v6214_v56 = vpop.f32.mrf.mxu1 }
 0x783   :  { %v13453_v7 = vadd.f32 %v7051_v36, %v14690_v62  ;;  %v7052_v51 = vmul.f32 2.0, %v6668_v16  ;;  %v6669_v8 = vmax.f32 %v6213_v52, 0.0  ;;  %v6215_v22 = vadd.f32 %v6214_v56, %v12237_v17  ;;  %v14693_v62 = vld [vmem:[#allocation77_spill] sm:$0xff] }
 0x784   :  { %v6216_v20 = vpop.f32.mrf.mxu1 }
 0x785   :  { %v13457_v45 = vadd.f32 %v7052_v51, %v13151_v21  ;;  %v7053_v35 = vmul.f32 2.0, %v6669_v8  ;;  %v6670_v10 = vmax.f32 %v6215_v22, 0.0  ;;  %v6217_v47 = vadd.f32 %v6216_v20, %v12231_v48 }
 0x786   :  { %v6218_v1 = vpop.f32.mrf.mxu1 }
 0x787   :  { %v13461_v31 = vadd.f32 %v7053_v35, %v14691_v18  ;;  %v7054_v6 = vmul.f32 2.0, %v6670_v10  ;;  %v6671_v55 = vmax.f32 %v6217_v47, 0.0  ;;  %v6219_v13 = vadd.f32 %v6218_v1, %v12237_v17 }
 0x788   :  { %v6222_v61 = vpop.f32.mrf.mxu1 }
 0x789   :  { %v13465_v36 = vadd.f32 %v7054_v6, %v13161_v39  ;;  %v7055_v16 = vmul.f32 2.0, %v6671_v55  ;;  %v6672_v52 = vmax.f32 %v6219_v13, 0.0  ;;  %v6223_v21 = vadd.f32 %v6222_v61, %v12231_v48  ;;  %v14695_v6 = vld [vmem:[#allocation13_spill] sm:$0xff] }
 0x78a   :  { %v6224_v56 = vpop.f32.mrf.mxu1 }
 0x78b   :  { %14692 = vst [vmem:[#allocation83_spill] sm:$0xff] %v13465_v36  ;;  %v13469_v51 = vadd.f32 %v7055_v16, %v14693_v62  ;;  %v7056_v8 = vmul.f32 2.0, %v6672_v52  ;;  %v6673_v22 = vmax.f32 %v6223_v21, 0.0  ;;  %v6225_v20 = vadd.f32 %v6224_v56, %v12237_v17  ;;  %v14696_v21 = vld [vmem:[#allocation52_spill] sm:$0xff] }
 0x78c   :  { %v6226_v35 = vpop.f32.mrf.mxu1 }
 0x78d   :  { %v13473_v10 = vadd.f32 %v7056_v8, %v13171_v14  ;;  %v7057_v47 = vmul.f32 2.0, %v6673_v22  ;;  %v6674_v1 = vmax.f32 %v6225_v20, 0.0  ;;  %v6227_v39 = vadd.f32 %v6226_v35, %v12231_v48  ;;  %v14698_v22 = vld [vmem:[#allocation76_spill] sm:$0xff] }
 0x78e   :  { %v6228_v18 = vpop.f32.mrf.mxu1 }
 0x78f   :  { %14694 = vst [vmem:[#allocation75_spill] sm:$0xff] %v13473_v10  ;;  %v13477_v55 = vadd.f32 %v7057_v47, %v14695_v6  ;;  %v7058_v13 = vmul.f32 2.0, %v6674_v1  ;;  %v6675_v61 = vmax.f32 %v6227_v39, 0.0  ;;  %v6229_v16 = vadd.f32 %v6228_v18, %v12237_v17 }
 0x790   :  { %v6232_v52 = vpop.f32.mrf.mxu1 }
 0x791   :  { %v13481_v62 = vadd.f32 %v7058_v13, %v14696_v21  ;;  %v7059_v56 = vmul.f32 2.0, %v6675_v61  ;;  %v6676_v36 = vmax.f32 %v6229_v16, 0.0  ;;  %v6233_v14 = vadd.f32 %v6232_v52, %v12231_v48  ;;  %v14701_v16 = vld [vmem:[#allocation79_spill] sm:$0xff] }
 0x792   :  { %v6234_v8 = vpop.f32.mrf.mxu1 }
 0x793   :  { %14697 = vst [vmem:[#allocation17_spill] sm:$0xff] %v13481_v62  ;;  %v13485_v20 = vadd.f32 %v7059_v56, %v14698_v22  ;;  %v7060_v35 = vmul.f32 2.0, %v6676_v36  ;;  %v6677_v10 = vmax.f32 %v6233_v14, 0.0  ;;  %v6235_v47 = vadd.f32 %v6234_v8, %v12237_v17  ;;  %v14702_v14 = vld [vmem:[#allocation51_spill] sm:$0xff] }
 0x794   :  { %v6236_v1 = vpop.f32.mrf.mxu1 }
 0x795   :  { %14699 = vst [vmem:[#allocation11_spill] sm:$0xff] %v13485_v20  ;;  %v13489_v39 = vadd.f32 %v7060_v35, %v13191_v54  ;;  %v7061_v18 = vmul.f32 2.0, %v6677_v10  ;;  %v6678_v6 = vmax.f32 %v6235_v47, 0.0  ;;  %v6237_v13 = vadd.f32 %v6236_v1, %v12231_v48  ;;  %v14704_v35 = vld [vmem:[#allocation73_spill] sm:$0xff] }
 0x796   :  { %v6238_v61 = vpop.f32.mrf.mxu1 }
 0x797   :  { %14700 = vst [vmem:[#allocation41_spill] sm:$0xff] %v13489_v39  ;;  %v13493_v21 = vadd.f32 %v7061_v18, %v14701_v16  ;;  %v7062_v52 = vmul.f32 2.0, %v6678_v6  ;;  %v6679_v62 = vmax.f32 %v6237_v13, 0.0  ;;  %v6239_v56 = vadd.f32 %v6238_v61, %v12237_v17 }
 0x798   :  { %v6242_v36 = vpop.f32.mrf.mxu1 }
 0x799   :  { %v13497_v22 = vadd.f32 %v7062_v52, %v14702_v14  ;;  %v7063_v8 = vmul.f32 2.0, %v6679_v62  ;;  %v6680_v20 = vmax.f32 %v6239_v56, 0.0  ;;  %v6243_v54 = vadd.f32 %v6242_v36, %v12231_v48  ;;  %v14706_v56 = vld [vmem:[#allocation81_spill] sm:$0xff] }
 0x79a   :  { %v6244_v10 = vpop.f32.mrf.mxu1 }
 0x79b   :  { %14703 = vst [vmem:[#allocation15_spill] sm:$0xff] %v13497_v22  ;;  %v13501_v47 = vadd.f32 %v7063_v8, %v14704_v35  ;;  %v7064_v1 = vmul.f32 2.0, %v6680_v20  ;;  %v6681_v39 = vmax.f32 %v6243_v54, 0.0  ;;  %v6245_v18 = vadd.f32 %v6244_v10, %v12237_v17 }
 0x79c   :  { %v6246_v6 = vpop.f32.mrf.mxu1 }
 0x79d   :  { %v13505_v13 = vadd.f32 %v7064_v1, %v13211_v58  ;;  %v7065_v61 = vmul.f32 2.0, %v6681_v39  ;;  %v6682_v16 = vmax.f32 %v6245_v18, 0.0  ;;  %v6247_v52 = vadd.f32 %v6246_v6, %v12231_v48  ;;  %v14709_v1 = vld [vmem:[#allocation68_spill] sm:$0xff] }
 0x79e   :  { %v6248_v62 = vpop.f32.mrf.mxu1 }
 0x79f   :  { %14705 = vst [vmem:[#allocation45_spill] sm:$0xff] %v13505_v13  ;;  %v13509_v14 = vadd.f32 %v7065_v61, %v14706_v56  ;;  %v7066_v36 = vmul.f32 2.0, %v6682_v16  ;;  %v6683_v22 = vmax.f32 %v6247_v52, 0.0  ;;  %v6249_v8 = vadd.f32 %v6248_v62, %v12237_v17  ;;  %v14711_v52 = vld [vmem:[#allocation56_spill] sm:$0xff] }
 0x7a0   :  { %v6252_v20 = vpop.f32.mrf.mxu1 }
 0x7a1   :  { %14707 = vst [vmem:[#allocation16_spill] sm:$0xff] %v13509_v14  ;;  %v13513_v54 = vadd.f32 %v7066_v36, %v13221_v12  ;;  %v7067_v10 = vmul.f32 2.0, %v6683_v22  ;;  %v6684_v35 = vmax.f32 %v6249_v8, 0.0  ;;  %v6253_v58 = vadd.f32 %v6252_v20, %v12231_v48  ;;  %v14713_v36 = vld [vmem:[#allocation80_spill] sm:$0xff] }
 0x7a2   :  { %v6254_v39 = vpop.f32.mrf.mxu1 }
 0x7a3   :  { %14708 = vst [vmem:[#allocation49_spill] sm:$0xff] %v13513_v54  ;;  %v13517_v18 = vadd.f32 %v7067_v10, %v14709_v1  ;;  %v7068_v6 = vmul.f32 2.0, %v6684_v35  ;;  %v6685_v13 = vmax.f32 %v6253_v58, 0.0  ;;  %v6255_v61 = vadd.f32 %v6254_v39, %v12237_v17  ;;  %v14714_v58 = vld [vmem:[#allocation85_spill] sm:$0xff] }
 0x7a4   :  { %v6256_v16 = vpop.f32.mrf.mxu1 }
 0x7a5   :  { %14710 = vst [vmem:[#allocation46_spill] sm:$0xff] %v13517_v18  ;;  %v13521_v56 = vadd.f32 %v7068_v6, %v14711_v52  ;;  %v7069_v62 = vmul.f32 2.0, %v6685_v13  ;;  %v6686_v14 = vmax.f32 %v6255_v61, 0.0  ;;  %v6257_v12 = vadd.f32 %v6256_v16, %v12231_v48  ;;  %v14716_v61 = vld [vmem:[#allocation82_spill] sm:$0xff] }
 0x7a6   :  { %v6258_v22 = vpop.f32.mrf.mxu1 }
 0x7a7   :  { %14712 = vst [vmem:[#allocation53_spill] sm:$0xff] %v13521_v56  ;;  %v13525_v8 = vadd.f32 %v7069_v62, %v14713_v36  ;;  %v7070_v20 = vmul.f32 2.0, %v6686_v14  ;;  %v6687_v54 = vmax.f32 %v6257_v12, 0.0  ;;  %v6259_v10 = vadd.f32 %v6258_v22, %v12237_v17 }
 0x7a8   :  { %v6262_v35 = vpop.f32.mrf.mxu1 }
 0x7a9   :  { %v13529_v1 = vadd.f32 %v7070_v20, %v14714_v58  ;;  %v7071_v39 = vmul.f32 2.0, %v6687_v54  ;;  %v6688_v18 = vmax.f32 %v6259_v10, 0.0  ;;  %v6263_v6 = vadd.f32 %v6262_v35, %v12231_v48  ;;  %v14718_v10 = vld [vmem:[#allocation55_spill] sm:$0xff] }
 0x7aa   :  { %v6264_v13 = vpop.f32.mrf.mxu1 }
 0x7ab   :  { %14715 = vst [vmem:[#allocation50_spill] sm:$0xff] %v13529_v1  ;;  %v13533_v52 = vadd.f32 %v7071_v39, %v14716_v61  ;;  %v7072_v16 = vmul.f32 2.0, %v6688_v18  ;;  %v6689_v56 = vmax.f32 %v6263_v6, 0.0  ;;  %v6265_v62 = vadd.f32 %v6264_v13, %v12237_v17 }
 0x7ac   :  { %v6266_v14 = vpop.f32.mrf.mxu1 }
 0x7ad   :  { %v13537_v12 = vadd.f32 %v7072_v16, %v13251_v53  ;;  %v7073_v22 = vmul.f32 2.0, %v6689_v56  ;;  %v6690_v36 = vmax.f32 %v6265_v62, 0.0  ;;  %v6267_v20 = vadd.f32 %v6266_v14, %v12231_v48  ;;  %v14719_v16 = vld [vmem:[#allocation71_spill] sm:$0xff] }
 0x7ae   :  { %v6268_v54 = vpop.f32.mrf.mxu1 }
 0x7af   :  { %14717 = vst [vmem:[#allocation57_spill] sm:$0xff] %v13537_v12  ;;  %v13541_v58 = vadd.f32 %v7073_v22, %v14718_v10  ;;  %v7074_v35 = vmul.f32 2.0, %v6690_v36  ;;  %v6691_v1 = vmax.f32 %v6267_v20, 0.0  ;;  %v6269_v39 = vadd.f32 %v6268_v54, %v12237_v17 }
 0x7b0   :  { %v6272_v18 = vpop.f32.mrf.mxu1 }
 0x7b1   :  { %v13545_v6 = vadd.f32 %v7074_v35, %v13261_v43  ;;  %v7075_v13 = vmul.f32 2.0, %v6691_v1  ;;  %v6692_v61 = vmax.f32 %v6269_v39, 0.0  ;;  %v6273_v53 = vadd.f32 %v6272_v18, %v12231_v48 }
 0x7b2   :  { %v6274_v56 = vpop.f32.mrf.mxu1 }
 0x7b3   :  { %v13549_v62 = vadd.f32 %v7075_v13, %v14719_v16  ;;  %v7076_v14 = vmul.f32 2.0, %v6692_v61  ;;  %v6693_v12 = vmax.f32 %v6273_v53, 0.0  ;;  %v6275_v22 = vadd.f32 %v6274_v56, %v12237_v17 }
 0x7b4   :  { %v6276_v36 = vpop.f32.mrf.mxu1 }
 0x7b5   :  { %v13553_v20 = vadd.f32 %v7076_v14, %v13271_v24  ;;  %v7077_v54 = vmul.f32 2.0, %v6693_v12  ;;  %v6694_v10 = vmax.f32 %v6275_v22, 0.0  ;;  %v6277_v43 = vadd.f32 %v6276_v36, %v12231_v48 }
 0x7b6   :  { %v6278_v1 = vpop.f32.mrf.mxu1 }
 0x7b7   :  { %v13557_v35 = vadd.f32 %v7077_v54, %v13276_v42  ;;  %v7078_v39 = vmul.f32 2.0, %v6694_v10  ;;  %v6695_v18 = vmax.f32 %v6277_v43, 0.0  ;;  %v6279_v13 = vadd.f32 %v6278_v1, %v12237_v17 }
 0x7b8   :  { %v6282_v61 = vpop.f32.mrf.mxu1 }
 0x7b9   :  { %v13561_v53 = vadd.f32 %v7078_v39, %v13281_v23  ;;  %v7079_v56 = vmul.f32 2.0, %v6695_v18  ;;  %v6696_v16 = vmax.f32 %v6279_v13, 0.0  ;;  %v6283_v24 = vadd.f32 %v6282_v61, %v12231_v48 }
 0x7ba   :  { %v6284_v12 = vpop.f32.mrf.mxu1 }
 0x7bb   :  { %14720 = vst [vmem:[#allocation54_spill] sm:$0xff] %v13561_v53  ;;  %v13565_v14 = vadd.f32 %v7079_v56, %v13286_v41  ;;  %v7080_v22 = vmul.f32 2.0, %v6696_v16  ;;  %v6285_v42 = vadd.f32 %v6284_v12, %v12237_v17  ;;  %v6697_v10 = vmax.f32 %v6283_v24, 0.0  ;;  %v8900_v41 = vld [vmem:[%s13863_s5 + $0x8] sm:$0xff]   ;;  %v14723_v12 = vld [vmem:[#allocation72_spill] sm:$0xff] }
 0x7bc   :  { %v6286_v36 = vpop.f32.mrf.mxu1  ;;  %8529 = vmatprep.subr.bf16.mxu0 %v8900_v41 }
 0x7bd   :  { %14721 = vst [vmem:[#allocation59_spill] sm:$0xff] %v13565_v14  ;;  %v13569_v54 = vadd.f32 %v7080_v22, %v13291_v2  ;;  %v6287_v43 = vadd.f32 %v6286_v36, %v12231_v48  ;;  %v6698_v1 = vmax.f32 %v6285_v42, 0.0  ;;  %v7145_v61 = vadd.f32 %v13296_v30, %v6697_v10 }
 0x7be   :  { %v6288_v23 = vpop.f32.mrf.mxu1 }
 0x7bf   :  { %14722 = vst [vmem:[#allocation58_spill] sm:$0xff] %v13569_v54  ;;  %v6699_v39 = vmax.f32 %v6287_v43, 0.0  ;;  %v6289_v18 = vadd.f32 %v6288_v23, %v12237_v17  ;;  %v7146_v22 = vadd.f32 %v14723_v12, %v6698_v1 }
 0x7c0   :  { %v6292_v13 = vpop.f32.mrf.mxu1 }
 0x7c1   :  { %v7147_v56 = vadd.f32 %v13306_v37, %v6699_v39  ;;  %v6700_v16 = vmax.f32 %v6289_v18, 0.0  ;;  %v6293_v2 = vadd.f32 %v6292_v13, %v12231_v48 }
 0x7c2   :  { %v6294_v24 = vpop.f32.mrf.mxu1 }
 0x7c3   :  { %v7242_v42 = vpack.c.bf16 %v7147_v56, %v7145_v61  ;;  %v7148_v36 = vadd.f32 %v13311_v38, %v6700_v16  ;;  %v6295_v43 = vadd.f32 %v6294_v24, %v12237_v17  ;;  %v6701_v54 = vmax.f32 %v6293_v2, 0.0  ;;  %v14724_v16 = vld [vmem:[#allocation69_spill] sm:$0xff] }
 0x7c4   :  { %v6296_v23 = vpop.f32.mrf.mxu1 }
 0x7c5   :  { %v6297_v53 = vadd.f32 %v6296_v23, %v12231_v48  ;;  %v7243_v14 = vpack.c.bf16 %v7148_v36, %v7146_v22  ;;  %v6702_v10 = vmax.f32 %v6295_v43, 0.0  ;;  %v7149_v1 = vadd.f32 %v13316_v26, %v6701_v54 }
 0x7c6   :  { %v6298_v30 = vpop.f32.mrf.mxu1 }
 0x7c7   :  { %v6703_v37 = vmax.f32 %v6297_v53, 0.0  ;;  %v6299_v39 = vadd.f32 %v6298_v30, %v12237_v17  ;;  %7406 = vmatprep.mubr.bf16.mxu0 %v7243_v14  ;;  %v7150_v2 = vadd.f32 %v14724_v16, %v6702_v10 }
 0x7c8   :  { %v6302_v18 = vpop.f32.mrf.mxu1  ;;  %7407 = vmatmul.mubr.bf16.vlgmr.msra.gmra.mxu0 %v7242_v42 }
 0x7c9   :  { %v7151_v13 = vadd.f32 %v13326_v50, %v6703_v37  ;;  %v6704_v38 = vmax.f32 %v6299_v39, 0.0  ;;  %v6303_v61 = vadd.f32 %v6302_v18, %v12231_v48  ;;  %8530 = vmatpush3.bf16.msra.mxu0 %v8900_v41  ;;  %v14725_v39 = vld [vmem:[#allocation67_spill] sm:$0xff] }
 0x7ca   :  { %v6304_v56 = vpop.f32.mrf.mxu1 }
 0x7cb   :  { %v7244_v24 = vpack.c.bf16 %v7151_v13, %v7149_v1  ;;  %v7152_v12 = vadd.f32 %v13331_v3, %v6704_v38  ;;  %v6305_v53 = vadd.f32 %v6304_v56, %v12237_v17  ;;  %v6705_v14 = vmax.f32 %v6303_v61, 0.0 }
 0x7cc   :  { %v6306_v22 = vpop.f32.mrf.mxu1 }
 0x7cd   :  { %v6307_v42 = vadd.f32 %v6306_v22, %v12231_v48  ;;  %v7245_v36 = vpack.c.bf16 %v7152_v12, %v7150_v2  ;;  %v6706_v54 = vmax.f32 %v6305_v53, 0.0  ;;  %v7153_v23 = vadd.f32 %v13336_v44, %v6705_v14  ;;  %v14726_v22 = vld [vmem:[#allocation33_spill] sm:$0xff] }
 0x7ce   :  { %v6308_v26 = vpop.f32.mrf.mxu1 }
 0x7cf   :  { %v6707_v50 = vmax.f32 %v6307_v42, 0.0  ;;  %v6309_v43 = vadd.f32 %v6308_v26, %v12237_v17  ;;  %7414 = vmatprep.mubr.bf16.mxu0 %v7245_v36  ;;  %v7154_v18 = vadd.f32 %v14725_v39, %v6706_v54  ;;  %v14727_v54 = vld [vmem:[#allocation60_spill] sm:$0xff] }
 0x7d0   :  { %v6312_v41 = vpop.f32.mrf.mxu1  ;;  %7415 = vmatmul.mubr.bf16.gmra.mxu0 %v7244_v24 }
 0x7d1   :  { %v7155_v30 = vadd.f32 %v13346_v60, %v6707_v50  ;;  %v6708_v3 = vmax.f32 %v6309_v43, 0.0  ;;  %v6313_v10 = vadd.f32 %v6312_v41, %v12231_v48 }
 0x7d2   :  { %v6314_v37 = vpop.f32.mrf.mxu1 }
 0x7d3   :  { %v7246_v1 = vpack.c.bf16 %v7155_v30, %v7153_v23  ;;  %v7156_v13 = vadd.f32 %v13351_v32, %v6708_v3  ;;  %v6315_v38 = vadd.f32 %v6314_v37, %v12237_v17  ;;  %v6709_v56 = vmax.f32 %v6313_v10, 0.0 }
 0x7d4   :  { %v6316_v61 = vpop.f32.mrf.mxu1 }
 0x7d5   :  { %v6317_v16 = vadd.f32 %v6316_v61, %v12231_v48  ;;  %v7247_v2 = vpack.c.bf16 %v7156_v13, %v7154_v18  ;;  %v6710_v44 = vmax.f32 %v6315_v38, 0.0  ;;  %v7157_v14 = vadd.f32 %v14726_v22, %v6709_v56 }
 0x7d6   :  { %v6318_v24 = vpop.f32.mrf.mxu1 }
 0x7d7   :  { %v6711_v12 = vmax.f32 %v6317_v16, 0.0  ;;  %v6319_v60 = vadd.f32 %v6318_v24, %v12237_v17  ;;  %7422 = vmatprep.mubr.bf16.mxu0 %v7247_v2  ;;  %v7158_v50 = vadd.f32 %v14727_v54, %v6710_v44  ;;  %v14728_v2 = vld [vmem:[#allocation14_spill] sm:$0xff] }
 0x7d8   :  { %v6322_v53 = vpop.f32.mrf.mxu1  ;;  %7423 = vmatmul.mubr.bf16.gmra.mxu0 %v7246_v1 }
 0x7d9   :  { %v7159_v42 = vadd.f32 %v13366_v49, %v6711_v12  ;;  %v6712_v32 = vmax.f32 %v6319_v60, 0.0  ;;  %v6323_v36 = vadd.f32 %v6322_v53, %v12231_v48 }
 0x7da   :  { %v6324_v26 = vpop.f32.mrf.mxu1 }
 0x7db   :  { %v7248_v43 = vpack.c.bf16 %v7159_v42, %v7157_v14  ;;  %v7160_v41 = vadd.f32 %v13371_v34, %v6712_v32  ;;  %v6325_v23 = vadd.f32 %v6324_v26, %v12237_v17  ;;  %v6713_v3 = vmax.f32 %v6323_v36, 0.0 }
 0x7dc   :  { %v6326_v30 = vpop.f32.mrf.mxu1 }
 0x7dd   :  { %v6327_v10 = vadd.f32 %v6326_v30, %v12231_v48  ;;  %v7249_v37 = vpack.c.bf16 %v7160_v41, %v7158_v50  ;;  %v6714_v18 = vmax.f32 %v6325_v23, 0.0  ;;  %v7161_v38 = vadd.f32 %v13376_v33, %v6713_v3 }
 0x7de   :  { %v6328_v39 = vpop.f32.mrf.mxu1 }
 0x7df   :  { %v6715_v1 = vmax.f32 %v6327_v10, 0.0  ;;  %v6329_v49 = vadd.f32 %v6328_v39, %v12237_v17  ;;  %7430 = vmatprep.mubr.bf16.mxu0 %v7249_v37  ;;  %v7162_v24 = vadd.f32 %v14728_v2, %v6714_v18 }
 0x7e0   :  { %v6332_v13 = vpop.f32.mrf.mxu1  ;;  %7431 = vmatmul.mubr.bf16.gmra.mxu0 %v7248_v43 }
 0x7e1   :  { %v7163_v61 = vadd.f32 %v13386_v40, %v6715_v1  ;;  %v6716_v34 = vmax.f32 %v6329_v49, 0.0  ;;  %v6333_v56 = vadd.f32 %v6332_v13, %v12231_v48 }
 0x7e2   :  { %v6334_v16 = vpop.f32.mrf.mxu1 }
 0x7e3   :  { %v7250_v44 = vpack.c.bf16 %v7163_v61, %v7161_v38  ;;  %v7164_v12 = vadd.f32 %v13391_v46, %v6716_v34  ;;  %v6335_v60 = vadd.f32 %v6334_v16, %v12237_v17  ;;  %v6717_v22 = vmax.f32 %v6333_v56, 0.0 }
 0x7e4   :  { %v6336_v53 = vpop.f32.mrf.mxu1 }
 0x7e5   :  { %v6337_v14 = vadd.f32 %v6336_v53, %v12231_v48  ;;  %v7251_v42 = vpack.c.bf16 %v7164_v12, %v7162_v24  ;;  %v6718_v33 = vmax.f32 %v6335_v60, 0.0  ;;  %v7165_v54 = vadd.f32 %v13396_v57, %v6717_v22 }
 0x7e6   :  { %v6338_v32 = vpop.f32.mrf.mxu1 }
 0x7e7   :  { %v6719_v36 = vmax.f32 %v6337_v14, 0.0  ;;  %v6339_v40 = vadd.f32 %v6338_v32, %v12237_v17  ;;  %7438 = vmatprep.mubr.bf16.mxu0 %v7251_v42  ;;  %v7166_v23 = vadd.f32 %v13401_v0, %v6718_v33 }
 0x7e8   :  { %v6342_v26 = vpop.f32.mrf.mxu1  ;;  %7439 = vmatmul.mubr.bf16.gmra.mxu0 %v7250_v44 }
 0x7e9   :  { %v7167_v50 = vadd.f32 %v13405_v19, %v6719_v36  ;;  %v6720_v46 = vmax.f32 %v6339_v40, 0.0  ;;  %v6343_v43 = vadd.f32 %v6342_v26, %v12231_v48 }
 0x7ea   :  { %v6344_v41 = vpop.f32.mrf.mxu1 }
 0x7eb   :  { %v7252_v30 = vpack.c.bf16 %v7167_v50, %v7165_v54  ;;  %v7168_v3 = vadd.f32 %v13409_v9, %v6720_v46  ;;  %v6345_v10 = vadd.f32 %v6344_v41, %v12237_v17  ;;  %v6721_v39 = vmax.f32 %v6343_v43, 0.0 }
 0x7ec   :  { %v6346_v37 = vpop.f32.mrf.mxu1 }
 0x7ed   :  { %v6347_v18 = vadd.f32 %v6346_v37, %v12231_v48  ;;  %v7253_v1 = vpack.c.bf16 %v7168_v3, %v7166_v23  ;;  %v6722_v57 = vmax.f32 %v6345_v10, 0.0  ;;  %v7169_v0 = vadd.f32 %v13413_v11, %v6721_v39 }
 0x7ee   :  { %v6348_v49 = vpop.f32.mrf.mxu1 }
 0x7ef   :  { %v6723_v13 = vmax.f32 %v6347_v18, 0.0  ;;  %v6349_v19 = vadd.f32 %v6348_v49, %v12237_v17  ;;  %7446 = vmatprep.mubr.bf16.mxu0 %v7253_v1  ;;  %v7170_v16 = vadd.f32 %v13417_v28, %v6722_v57 }
 0x7f0   :  { %v6352_v38 = vpop.f32.mrf.mxu1  ;;  %7447 = vmatmul.mubr.bf16.gmra.mxu0 %v7252_v30 }
 0x7f1   :  { %v7171_v61 = vadd.f32 %v13421_v15, %v6723_v13  ;;  %v6724_v9 = vmax.f32 %v6349_v19, 0.0  ;;  %v6353_v34 = vadd.f32 %v6352_v38, %v12231_v48 }
 0x7f2   :  { %v6354_v56 = vpop.f32.mrf.mxu1 }
 0x7f3   :  { %v7254_v2 = vpack.c.bf16 %v7171_v61, %v7169_v0  ;;  %v7172_v24 = vadd.f32 %v13425_v63, %v6724_v9  ;;  %v6355_v44 = vadd.f32 %v6354_v56, %v12237_v17  ;;  %v6725_v60 = vmax.f32 %v6353_v34, 0.0 }
 0x7f4   :  { %v6356_v12 = vpop.f32.mrf.mxu1 }
 0x7f5   :  { %v6357_v53 = vadd.f32 %v6356_v12, %v12231_v48  ;;  %v7255_v22 = vpack.c.bf16 %v7172_v24, %v7170_v16  ;;  %v6726_v11 = vmax.f32 %v6355_v44, 0.0  ;;  %v7173_v28 = vadd.f32 %v13429_v59, %v6725_v60  ;;  %v14729_v12 = vld [vmem:[#allocation83_spill] sm:$0xff] }
 0x7f6   :  { %v6358_v14 = vpop.f32.mrf.mxu1 }
 0x7f7   :  { %v6727_v42 = vmax.f32 %v6357_v53, 0.0  ;;  %v6359_v15 = vadd.f32 %v6358_v14, %v12237_v17  ;;  %7454 = vmatprep.mubr.bf16.mxu0 %v7255_v22  ;;  %v7174_v26 = vadd.f32 %v13433_v29, %v6726_v11  ;;  %v14730_v22 = vld [vmem:[#allocation75_spill] sm:$0xff] }
 0x7f8   :  { %v6362_v32 = vpop.f32.mrf.mxu1  ;;  %7455 = vmatmul.mubr.bf16.gmra.mxu0 %v7254_v2 }
 0x7f9   :  { %v7175_v33 = vadd.f32 %v13437_v4, %v6727_v42  ;;  %v6728_v63 = vmax.f32 %v6359_v15, 0.0  ;;  %v6363_v36 = vadd.f32 %v6362_v32, %v12231_v48 }
 0x7fa   :  { %v6364_v40 = vpop.f32.mrf.mxu1 }
 0x7fb   :  { %v7256_v54 = vpack.c.bf16 %v7175_v33, %v7173_v28  ;;  %v7176_v50 = vadd.f32 %v13441_v25, %v6728_v63  ;;  %v6365_v46 = vadd.f32 %v6364_v40, %v12237_v17  ;;  %v6729_v41 = vmax.f32 %v6363_v36, 0.0 }
 0x7fc   :  { %v6366_v43 = vpop.f32.mrf.mxu1 }
 0x7fd   :  { %v6367_v23 = vadd.f32 %v6366_v43, %v12231_v48  ;;  %v7257_v30 = vpack.c.bf16 %v7176_v50, %v7174_v26  ;;  %v6730_v59 = vmax.f32 %v6365_v46, 0.0  ;;  %v7177_v29 = vadd.f32 %v13445_v27, %v6729_v41  ;;  %v14731_v26 = vld [vmem:[#allocation11_spill] sm:$0xff]  ;;  %v14732_v41 = vld [vmem:[#allocation17_spill] sm:$0xff] }
 0x7fe   :  { %v6368_v3 = vpop.f32.mrf.mxu1 }
 0x7ff   :  { %v6731_v10 = vmax.f32 %v6367_v23, 0.0  ;;  %v6369_v4 = vadd.f32 %v6368_v3, %v12237_v17  ;;  %7462 = vmatprep.mubr.bf16.mxu0 %v7257_v30  ;;  %v7178_v49 = vadd.f32 %v13449_v5, %v6730_v59  ;;  %v14733_v3 = vld [vmem:[#allocation41_spill] sm:$0xff] }
 0x800   :  { %v6372_v37 = vpop.f32.mrf.mxu1  ;;  %7463 = vmatmul.mubr.bf16.gmra.mxu0 %v7256_v54 }
 0x801   :  { %v7179_v39 = vadd.f32 %v13453_v7, %v6731_v10  ;;  %v6732_v25 = vmax.f32 %v6369_v4, 0.0  ;;  %v6373_v18 = vadd.f32 %v6372_v37, %v12231_v48 }
 0x802   :  { %v6374_v1 = vpop.f32.mrf.mxu1 }
 0x803   :  { %v7258_v57 = vpack.c.bf16 %v7179_v39, %v7177_v29  ;;  %v7180_v13 = vadd.f32 %v13457_v45, %v6732_v25  ;;  %v6375_v19 = vadd.f32 %v6374_v1, %v12237_v17  ;;  %v6733_v0 = vmax.f32 %v6373_v18, 0.0 }
 0x804   :  { %v6376_v38 = vpop.f32.mrf.mxu1 }
 0x805   :  { %v6377_v61 = vadd.f32 %v6376_v38, %v12231_v48  ;;  %v7259_v9 = vpack.c.bf16 %v7180_v13, %v7178_v49  ;;  %v6734_v27 = vmax.f32 %v6375_v19, 0.0  ;;  %v7181_v5 = vadd.f32 %v13461_v31, %v6733_v0  ;;  %v8901_v0 = vld [vmem:[%s13863_s5] sm:$0xff]  }
 0x806   :  { %v6378_v34 = vpop.f32.mrf.mxu1  ;;  %8531 = vmatprep.subr.bf16.mxu0 %v8901_v0 }
 0x807   :  { %v6735_v56 = vmax.f32 %v6377_v61, 0.0  ;;  %v6379_v7 = vadd.f32 %v6378_v34, %v12237_v17  ;;  %7470 = vmatprep.mubr.bf16.mxu0 %v7259_v9  ;;  %v7182_v60 = vadd.f32 %v14729_v12, %v6734_v27  ;;  %v14734_v9 = vld [vmem:[#allocation15_spill] sm:$0xff]  ;;  %8532 = vmatpush3.bf16.msra.mxu0 %v8901_v0 }
 0x808   :  { %v6382_v16 = vpop.f32.mrf.mxu1  ;;  %7471 = vmatmul.mubr.bf16.gmra.mxu0 %v7258_v57 }
 0x809   :  { %v7183_v2 = vadd.f32 %v13469_v51, %v6735_v56  ;;  %v6736_v45 = vmax.f32 %v6379_v7, 0.0  ;;  %v6383_v24 = vadd.f32 %v6382_v16, %v12231_v48  ;;  %v14735_v56 = vld [vmem:[#allocation45_spill] sm:$0xff] }
 0x80a   :  { %v6384_v44 = vpop.f32.mrf.mxu1 }
 0x80b   :  { %v7260_v53 = vpack.c.bf16 %v7183_v2, %v7181_v5  ;;  %v7184_v14 = vadd.f32 %v14730_v22, %v6736_v45  ;;  %v6385_v11 = vadd.f32 %v6384_v44, %v12237_v17  ;;  %v6737_v15 = vmax.f32 %v6383_v24, 0.0 }
 0x80c   :  { %v6386_v42 = vpop.f32.mrf.mxu1 }
 0x80d   :  { %v6387_v32 = vadd.f32 %v6386_v42, %v12231_v48  ;;  %v7261_v28 = vpack.c.bf16 %v7184_v14, %v7182_v60  ;;  %v6738_v31 = vmax.f32 %v6385_v11, 0.0  ;;  %v7185_v40 = vadd.f32 %v13477_v55, %v6737_v15  ;;  %v14737_v14 = vld [vmem:[#allocation46_spill] sm:$0xff] }
 0x80e   :  { %v6388_v33 = vpop.f32.mrf.mxu1 }
 0x80f   :  { %v6739_v63 = vmax.f32 %v6387_v32, 0.0  ;;  %v6389_v51 = vadd.f32 %v6388_v33, %v12237_v17  ;;  %7478 = vmatprep.mubr.bf16.mxu0 %v7261_v28  ;;  %v7186_v23 = vadd.f32 %v14732_v41, %v6738_v31  ;;  %v14738_v28 = vld [vmem:[#allocation49_spill] sm:$0xff] }
 0x810   :  { %v6392_v36 = vpop.f32.mrf.mxu1  ;;  %7479 = vmatmul.mubr.bf16.gmra.mxu0 %v7260_v53  ;;  %v14736_v53 = vld [vmem:[#allocation16_spill] sm:$0xff] }
 0x811   :  { %v7187_v54 = vadd.f32 %v14731_v26, %v6739_v63  ;;  %v6740_v50 = vmax.f32 %v6389_v51, 0.0  ;;  %v6393_v46 = vadd.f32 %v6392_v36, %v12231_v48  ;;  %v14739_v63 = vld [vmem:[#allocation53_spill] sm:$0xff] }
 0x812   :  { %v6394_v43 = vpop.f32.mrf.mxu1 }
 0x813   :  { %v7262_v30 = vpack.c.bf16 %v7187_v54, %v7185_v40  ;;  %v7188_v59 = vadd.f32 %v14733_v3, %v6740_v50  ;;  %v6395_v10 = vadd.f32 %v6394_v43, %v12237_v17  ;;  %v6741_v37 = vmax.f32 %v6393_v46, 0.0 }
 0x814   :  { %v6396_v4 = vpop.f32.mrf.mxu1 }
 0x815   :  { %v6397_v29 = vadd.f32 %v6396_v4, %v12231_v48  ;;  %v7263_v39 = vpack.c.bf16 %v7188_v59, %v7186_v23  ;;  %v6742_v55 = vmax.f32 %v6395_v10, 0.0  ;;  %v7189_v57 = vadd.f32 %v13493_v21, %v6741_v37 }
 0x816   :  { %v6398_v25 = vpop.f32.mrf.mxu1 }
 0x817   :  { %v6743_v18 = vmax.f32 %v6397_v29, 0.0  ;;  %v6399_v1 = vadd.f32 %v6398_v25, %v12237_v17  ;;  %7486 = vmatprep.mubr.bf16.mxu0 %v7263_v39  ;;  %v7190_v34 = vadd.f32 %v14734_v9, %v6742_v55  ;;  %v14740_v29 = vld [vmem:[#allocation50_spill] sm:$0xff]  ;;  %v14741_v55 = vld [vmem:[#allocation57_spill] sm:$0xff] }
 0x818   :  { %v6402_v49 = vpop.f32.mrf.mxu1  ;;  %7487 = vmatmul.mubr.bf16.gmra.mxu0 %v7262_v30 }
 0x819   :  { %v7191_v13 = vadd.f32 %v13501_v47, %v6743_v18  ;;  %v6744_v19 = vmax.f32 %v6399_v1, 0.0  ;;  %v6403_v38 = vadd.f32 %v6402_v49, %v12231_v48 }
 0x81a   :  { %v6404_v61 = vpop.f32.mrf.mxu1 }
 0x81b   :  { %v7264_v27 = vpack.c.bf16 %v7191_v13, %v7189_v57  ;;  %v7192_v7 = vadd.f32 %v14735_v56, %v6744_v19  ;;  %v6405_v16 = vadd.f32 %v6404_v61, %v12237_v17  ;;  %v6745_v21 = vmax.f32 %v6403_v38, 0.0 }
 0x81c   :  { %v6406_v5 = vpop.f32.mrf.mxu1 }
 0x81d   :  { %v6407_v47 = vadd.f32 %v6406_v5, %v12231_v48  ;;  %v7265_v2 = vpack.c.bf16 %v7192_v7, %v7190_v34  ;;  %v6746_v24 = vmax.f32 %v6405_v16, 0.0  ;;  %v7193_v22 = vadd.f32 %v14736_v53, %v6745_v21 }
 0x81e   :  { %v6408_v45 = vpop.f32.mrf.mxu1 }
 0x81f   :  { %v6747_v44 = vmax.f32 %v6407_v47, 0.0  ;;  %v6409_v12 = vadd.f32 %v6408_v45, %v12237_v17  ;;  %7494 = vmatprep.mubr.bf16.mxu0 %v7265_v2  ;;  %v7194_v33 = vadd.f32 %v14738_v28, %v6746_v24 }
 0x820   :  { %v6412_v60 = vpop.f32.mrf.mxu1  ;;  %7495 = vmatmul.mubr.bf16.gmra.mxu0 %v7264_v27 }
 0x821   :  { %v7195_v11 = vadd.f32 %v14737_v14, %v6747_v44  ;;  %v6748_v42 = vmax.f32 %v6409_v12, 0.0  ;;  %v6413_v15 = vadd.f32 %v6412_v60, %v12231_v48 }
 0x822   :  { %v6414_v32 = vpop.f32.mrf.mxu1 }
 0x823   :  { %v7266_v31 = vpack.c.bf16 %v7195_v11, %v7193_v22  ;;  %v7196_v51 = vadd.f32 %v14739_v63, %v6748_v42  ;;  %v6415_v36 = vadd.f32 %v6414_v32, %v12237_v17  ;;  %v6749_v26 = vmax.f32 %v6413_v15, 0.0  ;;  %v14744_v15 = vld [vmem:[#allocation58_spill] sm:$0xff] }
 0x824   :  { %v6416_v40 = vpop.f32.mrf.mxu1 }
 0x825   :  { %v6417_v54 = vadd.f32 %v6416_v40, %v12231_v48  ;;  %v7267_v50 = vpack.c.bf16 %v7196_v51, %v7194_v33  ;;  %v6750_v43 = vmax.f32 %v6415_v36, 0.0  ;;  %v7197_v3 = vadd.f32 %v13525_v8, %v6749_v26 }
 0x826   :  { %v6418_v46 = vpop.f32.mrf.mxu1 }
 0x827   :  { %v6751_v41 = vmax.f32 %v6417_v54, 0.0  ;;  %v6419_v23 = vadd.f32 %v6418_v46, %v12237_v17  ;;  %7502 = vmatprep.mubr.bf16.mxu0 %v7267_v50  ;;  %v7198_v39 = vadd.f32 %v14740_v29, %v6750_v43 }
 0x828   :  { %v6422_v30 = vpop.f32.mrf.mxu1  ;;  %7503 = vmatmul.mubr.bf16.gmra.mxu0 %v7266_v31 }
 0x829   :  { %v7199_v59 = vadd.f32 %v13533_v52, %v6751_v41  ;;  %v6752_v10 = vmax.f32 %v6419_v23, 0.0  ;;  %v6423_v4 = vadd.f32 %v6422_v30, %v12231_v48 }
 0x82a   :  { %v6424_v37 = vpop.f32.mrf.mxu1 }
 0x82b   :  { %v7268_v25 = vpack.c.bf16 %v7199_v59, %v7197_v3  ;;  %v7200_v18 = vadd.f32 %v14741_v55, %v6752_v10  ;;  %v6425_v1 = vadd.f32 %v6424_v37, %v12237_v17  ;;  %v6753_v57 = vmax.f32 %v6423_v4, 0.0 }
 0x82c   :  { %v6426_v49 = vpop.f32.mrf.mxu1 }
 0x82d   :  { %v6427_v13 = vadd.f32 %v6426_v49, %v12231_v48  ;;  %v7269_v19 = vpack.c.bf16 %v7200_v18, %v7198_v39  ;;  %v6754_v8 = vmax.f32 %v6425_v1, 0.0  ;;  %v7201_v9 = vadd.f32 %v13541_v58, %v6753_v57 }
 0x82e   :  { %v6428_v38 = vpop.f32.mrf.mxu1 }
 0x82f   :  { %v6755_v0 = vmax.f32 %v6427_v13, 0.0  ;;  %v6429_v52 = vadd.f32 %v6428_v38, %v12237_v17  ;;  %7510 = vmatprep.mubr.bf16.mxu0 %v7269_v19  ;;  %v7202_v16 = vadd.f32 %v13545_v6, %v6754_v8  ;;  %v14742_v6 = vld [vmem:[#allocation59_spill] sm:$0xff] }
 0x830   :  { %v6432_v61 = vpop.f32.mrf.mxu1  ;;  %7511 = vmatmul.mubr.bf16.gmra.mxu0 %v7268_v25 }
 0x831   :  { %v7203_v34 = vadd.f32 %v13549_v62, %v6755_v0  ;;  %v6756_v27 = vmax.f32 %v6429_v52, 0.0  ;;  %v6433_v56 = vadd.f32 %v6432_v61, %v12231_v48 }
 0x832   :  { %v6434_v7 = vpop.f32.mrf.mxu1 }
 0x833   :  { %v7270_v5 = vpack.c.bf16 %v7203_v34, %v7201_v9  ;;  %v7204_v21 = vadd.f32 %v13553_v20, %v6756_v27  ;;  %v6435_v47 = vadd.f32 %v6434_v7, %v12237_v17  ;;  %v6757_v45 = vmax.f32 %v6433_v56, 0.0  ;;  %v14743_v20 = vld [vmem:[#allocation54_spill] sm:$0xff] }
 0x834   :  { %v6436_v2 = vpop.f32.mrf.mxu1 }
 0x835   :  { %v6437_v24 = vadd.f32 %v6436_v2, %v12231_v48  ;;  %v7271_v44 = vpack.c.bf16 %v7204_v21, %v7202_v16  ;;  %v6758_v58 = vmax.f32 %v6435_v47, 0.0  ;;  %v7205_v53 = vadd.f32 %v13557_v35, %v6757_v45 }
 0x836   :  { %v6438_v12 = vpop.f32.mrf.mxu1 }
 0x837   :  { %v6759_v60 = vmax.f32 %v6437_v24, 0.0  ;;  %v6439_v62 = vadd.f32 %v6438_v12, %v12237_v17  ;;  %7518 = vmatprep.mubr.bf16.mxu0 %v7271_v44  ;;  %v7206_v11 = vadd.f32 %v14743_v20, %v6758_v58  ;;  %v13706_v17 = vld [vmem:[%s13865_s7] ss:$0 sm:$0xff] }
 0x838   :  { %7519 = vmatmul.mubr.bf16.gmra.mxu0 %v7270_v5 }
 0x839   :  { %v7207_v22 = vadd.f32 %v14742_v6, %v6759_v60  ;;  %v6760_v14 = vmax.f32 %v6439_v62, 0.0 }
 0x83b   :  { %v7272_v42 = vpack.c.bf16 %v7207_v22, %v7205_v53  ;;  %v7208_v32 = vadd.f32 %v14744_v15, %v6760_v14 }
 0x83d   :  { %v7273_v28 = vpack.c.bf16 %v7208_v32, %v7206_v11 }
 0x83f   :  { %7526 = vmatprep.mubr.bf16.mxu0 %v7273_v28 }
 0x840   :  { %7527 = vmatmul.mubr.bf16.gmra.mxu0 %v7272_v42 }
 0x888   :  { %v8397_v48 = vpop.f32.mrf.mxu0 }
 0x88a   :  { %v8398_v33 = vpop.f32.mrf.mxu0 }
 0x88b   :  { %v8399_v31 = vadd.f32 %v8398_v33, %v8397_v48 }
 0x88c   :  { %v8400_v35 = vpop.f32.mrf.mxu0 }
 0x88d   :  { %v7409_v51 = vadd.f32 %v8399_v31, %v13706_v17 }
 0x88e   :  { %v8401_v63 = vpop.f32.mrf.mxu0 }
 0x88f   :  { %v8402_v36 = vadd.f32 %v8401_v63, %v8400_v35  ;;  %v7535_v50 = vmax.f32 %v7409_v51, 0.0 }
 0x890   :  { %v8403_v40 = vpop.f32.mrf.mxu0 }
 0x891   :  { %v7412_v26 = vadd.f32 %v8402_v36, %v13706_v17 }
 0x892   :  { %v8404_v54 = vpop.f32.mrf.mxu0 }
 0x893   :  { %v7536_v46 = vmax.f32 %v7412_v26, 0.0  ;;  %v8405_v43 = vadd.f32 %v8404_v54, %v8403_v40 }
 0x894   :  { %v8406_v41 = vpop.f32.mrf.mxu0 }
 0x895   :  { %v7572_v23 = vpack.c.bf16 %v7536_v46, %v7535_v50  ;;  %v7417_v3 = vadd.f32 %v8405_v43, %v13706_v17 }
 0x896   :  { %v8407_v30 = vpop.f32.mrf.mxu0 }
 0x897   :  { %v8408_v59 = vadd.f32 %v8407_v30, %v8406_v41  ;;  %8533 = vmatprep.mubr.msk.bf16.mxu0 %vm7604_vm4, %v7572_v23  ;;  %v7537_v29 = vmax.f32 %v7417_v3, 0.0 }
 0x898   :  { %v8409_v10 = vpop.f32.mrf.mxu0 }
 0x899   :  { %v7420_v4 = vadd.f32 %v8408_v59, %v13706_v17 }
 0x89a   :  { %v8410_v37 = vpop.f32.mrf.mxu0 }
 0x89b   :  { %v7538_v39 = vmax.f32 %v7420_v4, 0.0  ;;  %v8411_v25 = vadd.f32 %v8410_v37, %v8409_v10 }
 0x89c   :  { %v8412_v55 = vpop.f32.mrf.mxu0 }
 0x89d   :  { %v7573_v18 = vpack.c.bf16 %v7538_v39, %v7537_v29  ;;  %v7425_v49 = vadd.f32 %v8411_v25, %v13706_v17 }
 0x89e   :  { %v8413_v1 = vpop.f32.mrf.mxu0 }
 0x89f   :  { %v8414_v57 = vadd.f32 %v8413_v1, %v8412_v55  ;;  %8534 = vmatmul.mubr.msk.bf16.vlgmr.msra.gmra.mxu0 %vm7604_vm4, %v7573_v18  ;;  %v7539_v8 = vmax.f32 %v7425_v49, 0.0 }
 0x8a0   :  { %v8415_v13 = vpop.f32.mrf.mxu0 }
 0x8a1   :  { %v7428_v19 = vadd.f32 %v8414_v57, %v13706_v17 }
 0x8a2   :  { %v8416_v38 = vpop.f32.mrf.mxu0 }
 0x8a3   :  { %v7540_v0 = vmax.f32 %v7428_v19, 0.0  ;;  %v8417_v52 = vadd.f32 %v8416_v38, %v8415_v13 }
 0x8a4   :  { %v8418_v61 = vpop.f32.mrf.mxu0 }
 0x8a5   :  { %v7574_v9 = vpack.c.bf16 %v7540_v0, %v7539_v8  ;;  %v7433_v27 = vadd.f32 %v8417_v52, %v13706_v17 }
 0x8a6   :  { %v8419_v34 = vpop.f32.mrf.mxu0 }
 0x8a7   :  { %v8420_v56 = vadd.f32 %v8419_v34, %v8418_v61  ;;  %8537 = vmatprep.mubr.msk.bf16.mxu0 %vm7604_vm4, %v7574_v9  ;;  %v7541_v21 = vmax.f32 %v7433_v27, 0.0 }
 0x8a8   :  { %v8421_v7 = vpop.f32.mrf.mxu0 }
 0x8a9   :  { %v7436_v16 = vadd.f32 %v8420_v56, %v13706_v17 }
 0x8aa   :  { %v8422_v5 = vpop.f32.mrf.mxu0 }
 0x8ab   :  { %v7542_v47 = vmax.f32 %v7436_v16, 0.0  ;;  %v8423_v2 = vadd.f32 %v8422_v5, %v8421_v7 }
 0x8ac   :  { %v8424_v45 = vpop.f32.mrf.mxu0 }
 0x8ad   :  { %v7575_v24 = vpack.c.bf16 %v7542_v47, %v7541_v21  ;;  %v7441_v12 = vadd.f32 %v8423_v2, %v13706_v17 }
 0x8ae   :  { %v8425_v44 = vpop.f32.mrf.mxu0 }
 0x8af   :  { %v8426_v58 = vadd.f32 %v8425_v44, %v8424_v45  ;;  %8538 = vmatmul.mubr.msk.bf16.gmra.mxu0 %vm7604_vm4, %v7575_v24  ;;  %v7543_v6 = vmax.f32 %v7441_v12, 0.0 }
 0x8b0   :  { %v8427_v60 = vpop.f32.mrf.mxu0 }
 0x8b1   :  { %v7444_v62 = vadd.f32 %v8426_v58, %v13706_v17 }
 0x8b2   :  { %v8428_v53 = vpop.f32.mrf.mxu0 }
 0x8b3   :  { %v7544_v22 = vmax.f32 %v7444_v62, 0.0  ;;  %v8429_v14 = vadd.f32 %v8428_v53, %v8427_v60 }
 0x8b4   :  { %v8430_v20 = vpop.f32.mrf.mxu0 }
 0x8b5   :  { %v7576_v11 = vpack.c.bf16 %v7544_v22, %v7543_v6  ;;  %v7449_v15 = vadd.f32 %v8429_v14, %v13706_v17 }
 0x8b6   :  { %v8431_v42 = vpop.f32.mrf.mxu0 }
 0x8b7   :  { %v8432_v32 = vadd.f32 %v8431_v42, %v8430_v20  ;;  %8541 = vmatprep.mubr.msk.bf16.mxu0 %vm7604_vm4, %v7576_v11  ;;  %v7545_v31 = vmax.f32 %v7449_v15, 0.0  ;;  %v8902_v15 = vld [vmem:[%s13864_s6 + $0x8] sm:$0xff]  }
 0x8b8   :  { %v8433_v28 = vpop.f32.mrf.mxu0  ;;  %8565 = vmatprep.subr.bf16.mxu0 %v8902_v15 }
 0x8b9   :  { %v7452_v48 = vadd.f32 %v8432_v32, %v13706_v17  ;;  %8566 = vmatpush3.bf16.msra.mxu0 %v8902_v15 }
 0x8ba   :  { %v8434_v33 = vpop.f32.mrf.mxu0 }
 0x8bb   :  { %v7546_v35 = vmax.f32 %v7452_v48, 0.0  ;;  %v8435_v63 = vadd.f32 %v8434_v33, %v8433_v28 }
 0x8bc   :  { %v8436_v51 = vpop.f32.mrf.mxu0 }
 0x8bd   :  { %v7577_v36 = vpack.c.bf16 %v7546_v35, %v7545_v31  ;;  %v7457_v26 = vadd.f32 %v8435_v63, %v13706_v17  ;;  %v8903_v35 = vld [vmem:[%s13864_s6] sm:$0xff]  }
 0x8be   :  { %v8437_v40 = vpop.f32.mrf.mxu0  ;;  %8567 = vmatprep.subr.bf16.mxu0 %v8903_v35 }
 0x8bf   :  { %v8438_v54 = vadd.f32 %v8437_v40, %v8436_v51  ;;  %8542 = vmatmul.mubr.msk.bf16.gmra.mxu0 %vm7604_vm4, %v7577_v36  ;;  %v7547_v41 = vmax.f32 %v7457_v26, 0.0 }
 0x8c0   :  { %v8439_v50 = vpop.f32.mrf.mxu0  ;;  %8568 = vmatpush3.bf16.msra.mxu0 %v8903_v35 }
 0x8c1   :  { %v7460_v46 = vadd.f32 %v8438_v54, %v13706_v17 }
 0x8c2   :  { %v8440_v43 = vpop.f32.mrf.mxu0 }
 0x8c3   :  { %v7548_v23 = vmax.f32 %v7460_v46, 0.0  ;;  %v8441_v30 = vadd.f32 %v8440_v43, %v8439_v50 }
 0x8c4   :  { %v8442_v3 = vpop.f32.mrf.mxu0 }
 0x8c5   :  { %v7578_v59 = vpack.c.bf16 %v7548_v23, %v7547_v41  ;;  %v7465_v4 = vadd.f32 %v8441_v30, %v13706_v17 }
 0x8c6   :  { %v8443_v10 = vpop.f32.mrf.mxu0 }
 0x8c7   :  { %v8444_v37 = vadd.f32 %v8443_v10, %v8442_v3  ;;  %8545 = vmatprep.mubr.msk.bf16.mxu0 %vm7604_vm4, %v7578_v59  ;;  %v7549_v55 = vmax.f32 %v7465_v4, 0.0 }
 0x8c8   :  { %v8445_v29 = vpop.f32.mrf.mxu0 }
 0x8c9   :  { %v7468_v39 = vadd.f32 %v8444_v37, %v13706_v17 }
 0x8ca   :  { %v8446_v25 = vpop.f32.mrf.mxu0 }
 0x8cb   :  { %v7550_v18 = vmax.f32 %v7468_v39, 0.0  ;;  %v8447_v1 = vadd.f32 %v8446_v25, %v8445_v29 }
 0x8cc   :  { %v8448_v49 = vpop.f32.mrf.mxu0 }
 0x8cd   :  { %v7579_v57 = vpack.c.bf16 %v7550_v18, %v7549_v55  ;;  %v7473_v19 = vadd.f32 %v8447_v1, %v13706_v17 }
 0x8ce   :  { %v8449_v13 = vpop.f32.mrf.mxu0 }
 0x8cf   :  { %v8450_v38 = vadd.f32 %v8449_v13, %v8448_v49  ;;  %8546 = vmatmul.mubr.msk.bf16.gmra.mxu0 %vm7604_vm4, %v7579_v57  ;;  %v7551_v61 = vmax.f32 %v7473_v19, 0.0 }
 0x8d0   :  { %v8451_v8 = vpop.f32.mrf.mxu0 }
 0x8d1   :  { %v7476_v0 = vadd.f32 %v8450_v38, %v13706_v17 }
 0x8d2   :  { %v8452_v52 = vpop.f32.mrf.mxu0 }
 0x8d3   :  { %v7552_v9 = vmax.f32 %v7476_v0, 0.0  ;;  %v8453_v34 = vadd.f32 %v8452_v52, %v8451_v8 }
 0x8d4   :  { %v8454_v27 = vpop.f32.mrf.mxu0 }
 0x8d5   :  { %v7580_v56 = vpack.c.bf16 %v7552_v9, %v7551_v61  ;;  %v7481_v16 = vadd.f32 %v8453_v34, %v13706_v17 }
 0x8d6   :  { %v8455_v7 = vpop.f32.mrf.mxu0 }
 0x8d7   :  { %v8456_v5 = vadd.f32 %v8455_v7, %v8454_v27  ;;  %8549 = vmatprep.mubr.msk.bf16.mxu0 %vm7604_vm4, %v7580_v56  ;;  %v7553_v45 = vmax.f32 %v7481_v16, 0.0 }
 0x8d8   :  { %v8457_v21 = vpop.f32.mrf.mxu0 }
 0x8d9   :  { %v7484_v47 = vadd.f32 %v8456_v5, %v13706_v17 }
 0x8da   :  { %v8458_v2 = vpop.f32.mrf.mxu0 }
 0x8db   :  { %v7554_v24 = vmax.f32 %v7484_v47, 0.0  ;;  %v8459_v44 = vadd.f32 %v8458_v2, %v8457_v21 }
 0x8dc   :  { %v8460_v12 = vpop.f32.mrf.mxu0 }
 0x8dd   :  { %v7581_v58 = vpack.c.bf16 %v7554_v24, %v7553_v45  ;;  %v7489_v62 = vadd.f32 %v8459_v44, %v13706_v17 }
 0x8de   :  { %v8461_v60 = vpop.f32.mrf.mxu0 }
 0x8df   :  { %v8462_v53 = vadd.f32 %v8461_v60, %v8460_v12  ;;  %8550 = vmatmul.mubr.msk.bf16.gmra.mxu0 %vm7604_vm4, %v7581_v58  ;;  %v7555_v20 = vmax.f32 %v7489_v62, 0.0 }
 0x8e0   :  { %v8463_v6 = vpop.f32.mrf.mxu0 }
 0x8e1   :  { %v7492_v22 = vadd.f32 %v8462_v53, %v13706_v17 }
 0x8e2   :  { %v8464_v14 = vpop.f32.mrf.mxu0 }
 0x8e3   :  { %v7556_v11 = vmax.f32 %v7492_v22, 0.0  ;;  %v8465_v42 = vadd.f32 %v8464_v14, %v8463_v6  ;;  %v13765_v6 = vld [vmem:[%s13865_s7 + $0x1] ss:$0 sm:$0xff] }
 0x8e4   :  { %v8466_v32 = vpop.f32.mrf.mxu0 }
 0x8e5   :  { %v7582_v28 = vpack.c.bf16 %v7556_v11, %v7555_v20  ;;  %v7497_v33 = vadd.f32 %v8465_v42, %v13706_v17 }
 0x8e6   :  { %v8467_v48 = vpop.f32.mrf.mxu0 }
 0x8e7   :  { %v8468_v31 = vadd.f32 %v8467_v48, %v8466_v32  ;;  %8553 = vmatprep.mubr.msk.bf16.mxu0 %vm7604_vm4, %v7582_v28  ;;  %v7557_v40 = vmax.f32 %v7497_v33, 0.0 }
 0x8e8   :  { %v8469_v63 = vpop.f32.mrf.mxu0 }
 0x8e9   :  { %v7500_v51 = vadd.f32 %v8468_v31, %v13706_v17 }
 0x8ea   :  { %v8470_v36 = vpop.f32.mrf.mxu0 }
 0x8eb   :  { %v7558_v26 = vmax.f32 %v7500_v51, 0.0  ;;  %v8471_v54 = vadd.f32 %v8470_v36, %v8469_v63 }
 0x8ec   :  { %v8472_v50 = vpop.f32.mrf.mxu0 }
 0x8ed   :  { %v7583_v46 = vpack.c.bf16 %v7558_v26, %v7557_v40  ;;  %v7505_v41 = vadd.f32 %v8471_v54, %v13706_v17 }
 0x8ee   :  { %v8473_v43 = vpop.f32.mrf.mxu0 }
 0x8ef   :  { %v8474_v23 = vadd.f32 %v8473_v43, %v8472_v50  ;;  %8554 = vmatmul.mubr.msk.bf16.gmra.mxu0 %vm7604_vm4, %v7583_v46  ;;  %v7559_v10 = vmax.f32 %v7505_v41, 0.0 }
 0x8f0   :  { %v8475_v30 = vpop.f32.mrf.mxu0 }
 0x8f1   :  { %v7508_v3 = vadd.f32 %v8474_v23, %v13706_v17 }
 0x8f2   :  { %v8476_v59 = vpop.f32.mrf.mxu0 }
 0x8f3   :  { %v7560_v4 = vmax.f32 %v7508_v3, 0.0  ;;  %v8477_v37 = vadd.f32 %v8476_v59, %v8475_v30 }
 0x8f4   :  { %v8478_v29 = vpop.f32.mrf.mxu0 }
 0x8f5   :  { %v7584_v39 = vpack.c.bf16 %v7560_v4, %v7559_v10  ;;  %v7513_v55 = vadd.f32 %v8477_v37, %v13706_v17 }
 0x8f6   :  { %v8479_v25 = vpop.f32.mrf.mxu0 }
 0x8f7   :  { %v8480_v18 = vadd.f32 %v8479_v25, %v8478_v29  ;;  %8557 = vmatprep.mubr.msk.bf16.mxu0 %vm7604_vm4, %v7584_v39  ;;  %v7561_v13 = vmax.f32 %v7513_v55, 0.0 }
 0x8f8   :  { %v8481_v1 = vpop.f32.mrf.mxu0 }
 0x8f9   :  { %v7516_v49 = vadd.f32 %v8480_v18, %v13706_v17 }
 0x8fa   :  { %v8482_v57 = vpop.f32.mrf.mxu0 }
 0x8fb   :  { %v7562_v19 = vmax.f32 %v7516_v49, 0.0  ;;  %v8483_v38 = vadd.f32 %v8482_v57, %v8481_v1 }
 0x8fc   :  { %v8484_v8 = vpop.f32.mrf.mxu0 }
 0x8fd   :  { %v7585_v0 = vpack.c.bf16 %v7562_v19, %v7561_v13  ;;  %v7521_v61 = vadd.f32 %v8483_v38, %v13706_v17 }
 0x8fe   :  { %v8485_v52 = vpop.f32.mrf.mxu0 }
 0x8ff   :  { %v8486_v9 = vadd.f32 %v8485_v52, %v8484_v8  ;;  %8558 = vmatmul.mubr.msk.bf16.gmra.mxu0 %vm7604_vm4, %v7585_v0  ;;  %v7563_v7 = vmax.f32 %v7521_v61, 0.0 }
 0x900   :  { %v8487_v34 = vpop.f32.mrf.mxu0 }
 0x901   :  { %v7524_v27 = vadd.f32 %v8486_v9, %v13706_v17 }
 0x902   :  { %v8488_v56 = vpop.f32.mrf.mxu0 }
 0x903   :  { %v7564_v16 = vmax.f32 %v7524_v27, 0.0  ;;  %v8489_v5 = vadd.f32 %v8488_v56, %v8487_v34 }
 0x904   :  { %v8490_v21 = vpop.f32.mrf.mxu0 }
 0x905   :  { %v7586_v47 = vpack.c.bf16 %v7564_v16, %v7563_v7  ;;  %v7529_v45 = vadd.f32 %v8489_v5, %v13706_v17 }
 0x906   :  { %v8491_v2 = vpop.f32.mrf.mxu0 }
 0x907   :  { %v8492_v24 = vadd.f32 %v8491_v2, %v8490_v21  ;;  %8561 = vmatprep.mubr.msk.bf16.mxu0 %vm7604_vm4, %v7586_v47  ;;  %v7565_v12 = vmax.f32 %v7529_v45, 0.0 }
 0x909   :  { %v7532_v44 = vadd.f32 %v8492_v24, %v13706_v17 }
 0x90b   :  { %v7566_v58 = vmax.f32 %v7532_v44, 0.0 }
 0x90d   :  { %v7587_v60 = vpack.c.bf16 %v7566_v58, %v7565_v12 }
 0x90f   :  { %8562 = vmatmul.mubr.msk.bf16.gmra.mxu0 %vm7604_vm4, %v7587_v60 }
 0x95f   :  { %v8535_v62 = vpop.f32.mrf.mxu0 }
 0x960   :  { %v7696_v11 = vadd.f32 %v8535_v62, %v13765_v6 }
 0x961   :  { %v7687_v53 = vpop.f32.mrf.mxu0 }
 0x962   :  { %v7688_v14 = vadd.f32 %v13765_v6, %v7687_v53  ;;  %v7816_v48 = vmax.f32 %v7696_v11, 0.0 }
 0x963   :  { %v8536_v22 = vpop.f32.mrf.mxu0 }
 0x964   :  { %v7699_v20 = vadd.f32 %v8536_v22, %v13765_v6  ;;  %v7814_v32 = vmax.f32 %v7688_v14, 0.0 }
 0x965   :  { %v7690_v17 = vpop.f32.mrf.mxu0 }
 0x966   :  { %v7691_v42 = vadd.f32 %v13765_v6, %v7690_v17  ;;  %v7817_v15 = vmax.f32 %v7699_v20, 0.0 }
 0x968   :  { %v7815_v28 = vmax.f32 %v7691_v42, 0.0  ;;  %v7852_v31 = vpack.c.bf16 %v7817_v15, %v7816_v48 }
 0x96a   :  { %v7851_v33 = vpack.c.bf16 %v7815_v28, %v7814_v32 }
 0x96c   :  { %8569 = vmatprep.mubr.msk.bf16.mxu0 %vm7604_vm4, %v7851_v33 }
 0x96d   :  { %8570 = vmatmul.mubr.msk.bf16.vlgmr.msra.gmra.mxu0 %vm7604_vm4, %v7852_v31 }
 0x96f   :  { %v8539_v35 = vpop.f32.mrf.mxu0 }
 0x970   :  { %v7712_v26 = vadd.f32 %v8539_v35, %v13765_v6 }
 0x971   :  { %v7703_v63 = vpop.f32.mrf.mxu0 }
 0x972   :  { %v7704_v36 = vadd.f32 %v13765_v6, %v7703_v63  ;;  %v7820_v23 = vmax.f32 %v7712_v26, 0.0 }
 0x973   :  { %v8540_v51 = vpop.f32.mrf.mxu0 }
 0x974   :  { %v7715_v40 = vadd.f32 %v8540_v51, %v13765_v6  ;;  %v7818_v43 = vmax.f32 %v7704_v36, 0.0 }
 0x975   :  { %v7706_v54 = vpop.f32.mrf.mxu0 }
 0x976   :  { %v7707_v50 = vadd.f32 %v13765_v6, %v7706_v54  ;;  %v7821_v46 = vmax.f32 %v7715_v40, 0.0 }
 0x978   :  { %v7819_v41 = vmax.f32 %v7707_v50, 0.0  ;;  %v7854_v3 = vpack.c.bf16 %v7821_v46, %v7820_v23 }
 0x97a   :  { %v7853_v30 = vpack.c.bf16 %v7819_v41, %v7818_v43 }
 0x97c   :  { %8573 = vmatprep.mubr.msk.bf16.mxu0 %vm7604_vm4, %v7853_v30 }
 0x97d   :  { %8574 = vmatmul.mubr.msk.bf16.gmra.mxu0 %vm7604_vm4, %v7854_v3 }
 0x97f   :  { %v8543_v59 = vpop.f32.mrf.mxu0 }
 0x980   :  { %v7728_v39 = vadd.f32 %v8543_v59, %v13765_v6 }
 0x981   :  { %v7719_v10 = vpop.f32.mrf.mxu0 }
 0x982   :  { %v7720_v37 = vadd.f32 %v13765_v6, %v7719_v10  ;;  %v7824_v57 = vmax.f32 %v7728_v39, 0.0 }
 0x983   :  { %v8544_v4 = vpop.f32.mrf.mxu0 }
 0x984   :  { %v7731_v29 = vadd.f32 %v8544_v4, %v13765_v6  ;;  %v7822_v1 = vmax.f32 %v7720_v37, 0.0 }
 0x985   :  { %v7722_v25 = vpop.f32.mrf.mxu0 }
 0x986   :  { %v7723_v55 = vadd.f32 %v13765_v6, %v7722_v25  ;;  %v7825_v18 = vmax.f32 %v7731_v29, 0.0 }
 0x988   :  { %v7823_v49 = vmax.f32 %v7723_v55, 0.0  ;;  %v7856_v19 = vpack.c.bf16 %v7825_v18, %v7824_v57 }
 0x98a   :  { %v7855_v13 = vpack.c.bf16 %v7823_v49, %v7822_v1 }
 0x98c   :  { %8577 = vmatprep.mubr.msk.bf16.mxu0 %vm7604_vm4, %v7855_v13 }
 0x98d   :  { %8578 = vmatmul.mubr.msk.bf16.gmra.mxu0 %vm7604_vm4, %v7856_v19 }
 0x98f   :  { %v8547_v38 = vpop.f32.mrf.mxu0 }
 0x990   :  { %v7744_v9 = vadd.f32 %v8547_v38, %v13765_v6 }
 0x991   :  { %v7735_v8 = vpop.f32.mrf.mxu0 }
 0x992   :  { %v7736_v52 = vadd.f32 %v13765_v6, %v7735_v8  ;;  %v7828_v5 = vmax.f32 %v7744_v9, 0.0 }
 0x993   :  { %v8548_v0 = vpop.f32.mrf.mxu0 }
 0x994   :  { %v7747_v61 = vadd.f32 %v8548_v0, %v13765_v6  ;;  %v7826_v7 = vmax.f32 %v7736_v52, 0.0 }
 0x995   :  { %v7738_v34 = vpop.f32.mrf.mxu0 }
 0x996   :  { %v7739_v27 = vadd.f32 %v13765_v6, %v7738_v34  ;;  %v7829_v56 = vmax.f32 %v7747_v61, 0.0 }
 0x998   :  { %v7827_v16 = vmax.f32 %v7739_v27, 0.0  ;;  %v7858_v47 = vpack.c.bf16 %v7829_v56, %v7828_v5  ;;  %v13818_v27 = vld [vmem:[%s13866_s8] ss:$0 sm:$0xff]  ;;  %s8955_s8 = smov [#allocation5]  }
 0x999   :  { %s8131_s30 = sshll.u32 %s8955_s8, 4  ;;  %s8132_s30 = int_to_ptr.vmem [resolvable:$true] %s8131_s30 }
 0x99a   :  { %v7857_v21 = vpack.c.bf16 %v7827_v16, %v7826_v7  ;;  %s8924_s3 = scalar_lea.vmem %s8132_s30, 4096  ;;  %p8929_p6 = scmp.lt.s32.totalorder %s8132_s30, %s8132_s30 }
 0x99b   :  { %p8925_p5 = scmp.ne.s32.totalorder %s8132_s30, %s8924_s3  ;;  %p8930_p7 = scmp.lt.s32.totalorder %s8924_s3, %s8924_s3 }
 0x99c   :  { %8581 = vmatprep.mubr.msk.bf16.mxu0 %vm7604_vm4, %v7857_v21 }
 0x99d   :  { %8582 = vmatmul.mubr.msk.bf16.gmra.mxu0 %vm7604_vm4, %v7858_v47  ;;  %p8931_p8 = por %p8930_p7, %p8929_p6 }
 0x99f   :  { %v8551_v2 = vpop.f32.mrf.mxu0  ;;  %p8932_p9 = pnand %p8931_p8, %p8925_p5 }
 0x9a0   :  { %v7760_v58 = vadd.f32 %v8551_v2, %v13765_v6 }
 0x9a1   :  { %v7751_v45 = vpop.f32.mrf.mxu0 }
 0x9a2   :  { %v7752_v44 = vadd.f32 %v13765_v6, %v7751_v45  ;;  %v7832_v20 = vmax.f32 %v7760_v58, 0.0 }
 0x9a3   :  { %v8552_v24 = vpop.f32.mrf.mxu0 }
 0x9a4   :  { %v7763_v12 = vadd.f32 %v8552_v24, %v13765_v6  ;;  %v7830_v22 = vmax.f32 %v7752_v44, 0.0 }
 0x9a5   :  { %v7754_v60 = vpop.f32.mrf.mxu0 }
 0x9a6   :  { %v7755_v62 = vadd.f32 %v13765_v6, %v7754_v60  ;;  %v7833_v53 = vmax.f32 %v7763_v12, 0.0 }
 0x9a8   :  { %v7831_v14 = vmax.f32 %v7755_v62, 0.0  ;;  %v7860_v17 = vpack.c.bf16 %v7833_v53, %v7832_v20 }
 0x9aa   :  { %v7859_v11 = vpack.c.bf16 %v7831_v14, %v7830_v22 }
 0x9ac   :  { %8585 = vmatprep.mubr.msk.bf16.mxu0 %vm7604_vm4, %v7859_v11 }
 0x9ad   :  { %8586 = vmatmul.mubr.msk.bf16.gmra.mxu0 %vm7604_vm4, %v7860_v17 }
 0x9af   :  { %v8555_v42 = vpop.f32.mrf.mxu0 }
 0x9b0   :  { %v7776_v33 = vadd.f32 %v8555_v42, %v13765_v6 }
 0x9b1   :  { %v7767_v15 = vpop.f32.mrf.mxu0 }
 0x9b2   :  { %v7768_v28 = vadd.f32 %v13765_v6, %v7767_v15  ;;  %v7836_v40 = vmax.f32 %v7776_v33, 0.0 }
 0x9b3   :  { %v8556_v32 = vpop.f32.mrf.mxu0 }
 0x9b4   :  { %v7779_v48 = vadd.f32 %v8556_v32, %v13765_v6  ;;  %v7834_v51 = vmax.f32 %v7768_v28, 0.0 }
 0x9b5   :  { %v7770_v31 = vpop.f32.mrf.mxu0 }
 0x9b6   :  { %v7771_v35 = vadd.f32 %v13765_v6, %v7770_v31  ;;  %v7837_v63 = vmax.f32 %v7779_v48, 0.0 }
 0x9b8   :  { %v7835_v36 = vmax.f32 %v7771_v35, 0.0  ;;  %v7862_v54 = vpack.c.bf16 %v7837_v63, %v7836_v40 }
 0x9ba   :  { %v7861_v26 = vpack.c.bf16 %v7835_v36, %v7834_v51 }
 0x9bc   :  { %8589 = vmatprep.mubr.msk.bf16.mxu0 %vm7604_vm4, %v7861_v26 }
 0x9bd   :  { %8590 = vmatmul.mubr.msk.bf16.gmra.mxu0 %vm7604_vm4, %v7862_v54 }
 0x9bf   :  { %v8559_v50 = vpop.f32.mrf.mxu0 }
 0x9c0   :  { %v7792_v30 = vadd.f32 %v8559_v50, %v13765_v6 }
 0x9c1   :  { %v7783_v46 = vpop.f32.mrf.mxu0 }
 0x9c2   :  { %v7784_v41 = vadd.f32 %v13765_v6, %v7783_v46  ;;  %v7840_v29 = vmax.f32 %v7792_v30, 0.0 }
 0x9c3   :  { %v8560_v43 = vpop.f32.mrf.mxu0 }
 0x9c4   :  { %v7795_v23 = vadd.f32 %v8560_v43, %v13765_v6  ;;  %v7838_v4 = vmax.f32 %v7784_v41, 0.0 }
 0x9c5   :  { %v7786_v3 = vpop.f32.mrf.mxu0 }
 0x9c6   :  { %v7787_v59 = vadd.f32 %v13765_v6, %v7786_v3  ;;  %v7841_v10 = vmax.f32 %v7795_v23, 0.0 }
 0x9c8   :  { %v7839_v37 = vmax.f32 %v7787_v59, 0.0  ;;  %v7864_v25 = vpack.c.bf16 %v7841_v10, %v7840_v29 }
 0x9ca   :  { %v7863_v39 = vpack.c.bf16 %v7839_v37, %v7838_v4 }
 0x9cc   :  { %8593 = vmatprep.mubr.msk.bf16.mxu0 %vm7604_vm4, %v7863_v39 }
 0x9cd   :  { %8594 = vmatmul.mubr.msk.bf16.gmra.mxu0 %vm7604_vm4, %v7864_v25 }
 0x9cf   :  { %v8563_v55 = vpop.f32.mrf.mxu0 }
 0x9d0   :  { %v7808_v13 = vadd.f32 %v8563_v55, %v13765_v6 }
 0x9d1   :  { %v7799_v18 = vpop.f32.mrf.mxu0 }
 0x9d2   :  { %v7800_v49 = vadd.f32 %v13765_v6, %v7799_v18  ;;  %v7844_v61 = vmax.f32 %v7808_v13, 0.0 }
 0x9d3   :  { %v8564_v1 = vpop.f32.mrf.mxu0 }
 0x9d4   :  { %v7811_v57 = vadd.f32 %v8564_v1, %v13765_v6  ;;  %v7842_v0 = vmax.f32 %v7800_v49, 0.0 }
 0x9d5   :  { %v7802_v19 = vpop.f32.mrf.mxu0 }
 0x9d6   :  { %v7803_v38 = vadd.f32 %v13765_v6, %v7802_v19  ;;  %v7845_v8 = vmax.f32 %v7811_v57, 0.0 }
 0x9d8   :  { %v7843_v52 = vmax.f32 %v7803_v38, 0.0  ;;  %v7866_v34 = vpack.c.bf16 %v7845_v8, %v7844_v61 }
 0x9da   :  { %v7865_v9 = vpack.c.bf16 %v7843_v52, %v7842_v0 }
 0x9dc   :  { %8597 = vmatprep.mubr.msk.bf16.mxu0 %vm7604_vm4, %v7865_v9 }
 0x9dd   :  { %8598 = vmatmul.mubr.msk.bf16.gmra.mxu0 %vm7604_vm4, %v7866_v34 }
 0xa2d   :  { %v8571_v56 = vpop.f32.mrf.mxu0 }
 0xa2e   :  { %v7976_v7 = vadd.f32 %v8571_v56, %v13818_v27 }
 0xa2f   :  { %v7967_v16 = vpop.f32.mrf.mxu0 }
 0xa30   :  { %8096 = vst [vmem:[#allocation5 + $0x10] sm:$0xff] %v7976_v7  ;;  %v7968_v6 = vadd.f32 %v13818_v27, %v7967_v16 }
 0xa31   :  { %v8572_v5 = vpop.f32.mrf.mxu0 }
 0xa32   :  { %8094 = vst [vmem:[#allocation5] sm:$0xff] %v7968_v6  ;;  %v7979_v21 = vadd.f32 %v8572_v5, %v13818_v27 }
 0xa33   :  { %v7970_v47 = vpop.f32.mrf.mxu0 }
 0xa34   :  { %8097 = vst [vmem:[#allocation5 + $0x18] sm:$0xff] %v7979_v21  ;;  %v7971_v2 = vadd.f32 %v13818_v27, %v7970_v47 }
 0xa36   :  { %8095 = vst [vmem:[#allocation5 + $0x8] sm:$0xff] %v7971_v2 }
 0xa3d   :  { %v8575_v45 = vpop.f32.mrf.mxu0 }
 0xa3e   :  { %v7992_v24 = vadd.f32 %v8575_v45, %v13818_v27 }
 0xa3f   :  { %v7983_v44 = vpop.f32.mrf.mxu0 }
 0xa40   :  { %8100 = vst [vmem:[#allocation5 + $0x30] sm:$0xff] %v7992_v24  ;;  %v7984_v12 = vadd.f32 %v13818_v27, %v7983_v44 }
 0xa41   :  { %v8576_v58 = vpop.f32.mrf.mxu0 }
 0xa42   :  { %8098 = vst [vmem:[#allocation5 + $0x20] sm:$0xff] %v7984_v12  ;;  %v7995_v60 = vadd.f32 %v8576_v58, %v13818_v27 }
 0xa43   :  { %v7986_v62 = vpop.f32.mrf.mxu0 }
 0xa44   :  { %8101 = vst [vmem:[#allocation5 + $0x38] sm:$0xff] %v7995_v60  ;;  %v7987_v53 = vadd.f32 %v13818_v27, %v7986_v62 }
 0xa46   :  { %8099 = vst [vmem:[#allocation5 + $0x28] sm:$0xff] %v7987_v53 }
 0xa4d   :  { %v8579_v22 = vpop.f32.mrf.mxu0 }
 0xa4e   :  { %v8008_v14 = vadd.f32 %v8579_v22, %v13818_v27 }
 0xa4f   :  { %v7999_v20 = vpop.f32.mrf.mxu0 }
 0xa50   :  { %8104 = vst [vmem:[#allocation5 + $0x50] sm:$0xff] %v8008_v14  ;;  %v8000_v11 = vadd.f32 %v13818_v27, %v7999_v20 }
 0xa51   :  { %v8580_v17 = vpop.f32.mrf.mxu0 }
 0xa52   :  { %8102 = vst [vmem:[#allocation5 + $0x40] sm:$0xff] %v8000_v11  ;;  %v8011_v42 = vadd.f32 %v8580_v17, %v13818_v27 }
 0xa53   :  { %v8002_v15 = vpop.f32.mrf.mxu0 }
 0xa54   :  { %8105 = vst [vmem:[#allocation5 + $0x58] sm:$0xff] %v8011_v42  ;;  %v8003_v32 = vadd.f32 %v13818_v27, %v8002_v15 }
 0xa56   :  { %8103 = vst [vmem:[#allocation5 + $0x48] sm:$0xff] %v8003_v32 }
 0xa5d   :  { %v8583_v28 = vpop.f32.mrf.mxu0 }
 0xa5e   :  { %v8024_v48 = vadd.f32 %v8583_v28, %v13818_v27 }
 0xa5f   :  { %v8015_v33 = vpop.f32.mrf.mxu0 }
 0xa60   :  { %8108 = vst [vmem:[#allocation5 + $0x70] sm:$0xff] %v8024_v48  ;;  %v8016_v31 = vadd.f32 %v13818_v27, %v8015_v33 }
 0xa61   :  { %v8584_v35 = vpop.f32.mrf.mxu0 }
 0xa62   :  { %8106 = vst [vmem:[#allocation5 + $0x60] sm:$0xff] %v8016_v31  ;;  %v8027_v63 = vadd.f32 %v8584_v35, %v13818_v27 }
 0xa63   :  { %v8018_v51 = vpop.f32.mrf.mxu0 }
 0xa64   :  { %8109 = vst [vmem:[#allocation5 + $0x78] sm:$0xff] %v8027_v63  ;;  %v8019_v36 = vadd.f32 %v13818_v27, %v8018_v51 }
 0xa66   :  { %8107 = vst [vmem:[#allocation5 + $0x68] sm:$0xff] %v8019_v36 }
 0xa6d   :  { %v8587_v40 = vpop.f32.mrf.mxu0 }
 0xa6e   :  { %v8040_v26 = vadd.f32 %v8587_v40, %v13818_v27 }
 0xa6f   :  { %v8031_v54 = vpop.f32.mrf.mxu0 }
 0xa70   :  { %8112 = vst [vmem:[#allocation5 + $0x90] sm:$0xff] %v8040_v26  ;;  %v8032_v50 = vadd.f32 %v13818_v27, %v8031_v54 }
 0xa71   :  { %v8588_v46 = vpop.f32.mrf.mxu0 }
 0xa72   :  { %8110 = vst [vmem:[#allocation5 + $0x80] sm:$0xff] %v8032_v50  ;;  %v8043_v43 = vadd.f32 %v8588_v46, %v13818_v27 }
 0xa73   :  { %v8034_v41 = vpop.f32.mrf.mxu0 }
 0xa74   :  { %8113 = vst [vmem:[#allocation5 + $0x98] sm:$0xff] %v8043_v43  ;;  %v8035_v23 = vadd.f32 %v13818_v27, %v8034_v41 }
 0xa76   :  { %8111 = vst [vmem:[#allocation5 + $0x88] sm:$0xff] %v8035_v23 }
 0xa7d   :  { %v8591_v30 = vpop.f32.mrf.mxu0 }
 0xa7e   :  { %v8056_v3 = vadd.f32 %v8591_v30, %v13818_v27 }
 0xa7f   :  { %v8047_v59 = vpop.f32.mrf.mxu0 }
 0xa80   :  { %8116 = vst [vmem:[#allocation5 + $0xb0] sm:$0xff] %v8056_v3  ;;  %v8048_v10 = vadd.f32 %v13818_v27, %v8047_v59 }
 0xa81   :  { %v8592_v4 = vpop.f32.mrf.mxu0 }
 0xa82   :  { %8114 = vst [vmem:[#allocation5 + $0xa0] sm:$0xff] %v8048_v10  ;;  %v8059_v37 = vadd.f32 %v8592_v4, %v13818_v27 }
 0xa83   :  { %v8050_v29 = vpop.f32.mrf.mxu0 }
 0xa84   :  { %8117 = vst [vmem:[#allocation5 + $0xb8] sm:$0xff] %v8059_v37  ;;  %v8051_v39 = vadd.f32 %v13818_v27, %v8050_v29 }
 0xa86   :  { %8115 = vst [vmem:[#allocation5 + $0xa8] sm:$0xff] %v8051_v39 }
 0xa8d   :  { %v8595_v25 = vpop.f32.mrf.mxu0 }
 0xa8e   :  { %v8072_v55 = vadd.f32 %v8595_v25, %v13818_v27 }
 0xa8f   :  { %v8063_v18 = vpop.f32.mrf.mxu0 }
 0xa90   :  { %8120 = vst [vmem:[#allocation5 + $0xd0] sm:$0xff] %v8072_v55  ;;  %v8064_v1 = vadd.f32 %v13818_v27, %v8063_v18 }
 0xa91   :  { %v8596_v49 = vpop.f32.mrf.mxu0 }
 0xa92   :  { %8118 = vst [vmem:[#allocation5 + $0xc0] sm:$0xff] %v8064_v1  ;;  %v8075_v57 = vadd.f32 %v8596_v49, %v13818_v27 }
 0xa93   :  { %v8066_v13 = vpop.f32.mrf.mxu0 }
 0xa94   :  { %8121 = vst [vmem:[#allocation5 + $0xd8] sm:$0xff] %v8075_v57  ;;  %v8067_v19 = vadd.f32 %v13818_v27, %v8066_v13 }
 0xa96   :  { %8119 = vst [vmem:[#allocation5 + $0xc8] sm:$0xff] %v8067_v19 }
 0xa9d   :  { %v8599_v38 = vpop.f32.mrf.mxu0 }
 0xa9e   :  { %v8088_v8 = vadd.f32 %v8599_v38, %v13818_v27 }
 0xa9f   :  { %v8079_v0 = vpop.f32.mrf.mxu0 }
 0xaa0   :  { %8124 = vst [vmem:[#allocation5 + $0xf0] sm:$0xff] %v8088_v8  ;;  %v8080_v52 = vadd.f32 %v13818_v27, %v8079_v0 }
 0xaa1   :  { %v8600_v61 = vpop.f32.mrf.mxu0 }
 0xaa2   :  { %8122 = vst [vmem:[#allocation5 + $0xe0] sm:$0xff] %v8080_v52  ;;  %v8091_v9 = vadd.f32 %v8600_v61, %v13818_v27 }
 0xaa3   :  { %v8082_v34 = vpop.f32.mrf.mxu0 }
 0xaa4   :  { %8125 = vst [vmem:[#allocation5 + $0xf8] sm:$0xff] %v8091_v9  ;;  %v8083_v56 = vadd.f32 %v13818_v27, %v8082_v34 }
 0xaa6   :  { %8123 = vst [vmem:[#allocation5 + $0xe8] sm:$0xff] %v8083_v56 }
 0xaa7   :  { %8935 = shalt.err (!%p8932_p9)
}
 0xaa8   :  { %8137 = dma.vmem_to_hbm [thread:$0]  %s8132_s30, 4096, %s13867_s9, [#allocation4], %s8949_s12, %s8949_s12, %s8950_s13  }
 0xaa9   :  { %8946 = dma.done.wait [#allocation4], 4096  }
 0xaaa   :  { %8947 = vsyncadd [#allocation4], 4294963200 }
 0xaab   :  { %8141 = vsyncpa [#allocation3], 1 }
 0xaac   :  { %8142 = vsyncpa [#allocation4], 1 }

</bundles_post_ra>
